<compile_context>
chip_gen: v7x
topology: tpu7x:2x2x1
jax: 0.10.0
libtpu: 0.0.40
codegen_flags: <defaults>
</compile_context>

<pallas_src>
import math
import functools

import numpy as np
import jax
import jax.numpy as jnp
from jax.experimental import pallas as pl
from jax.experimental.pallas import tpu as pltpu

_BF16 = jnp.bfloat16
_NEG_INF = -1e30

_TEL_NAMES = ('wqkv', 'bqkv', 'wo', 'bo', 'g1', 'be1',
              'w1', 'bf1', 'w2', 'bf2', 'g2', 'be2')


# ============================================================================
# In-kernel building blocks
# ============================================================================

def _layernorm(x, g, b, eps=1e-5):
    mu = jnp.mean(x, axis=-1, keepdims=True)
    xc = x - mu
    var = jnp.mean(xc * xc, axis=-1, keepdims=True)
    return xc * jax.lax.rsqrt(var + eps) * g + b


def _mm(a, w_bf16):
    """f32 activations -> one bf16 cast at the matmul, f32 accumulation on MXU."""
    return jnp.dot(a.astype(_BF16), w_bf16, preferred_element_type=jnp.float32)


def _qkt(a_bf16, b_bf16):
    """a @ b.T for two (rows, d) operands (contract dim 1 of both)."""
    return jax.lax.dot_general(a_bf16, b_bf16, (((1,), (1,)), ((), ())),
                               preferred_element_type=jnp.float32)


def _tel_apply(x2, head_mask, bias, nhead, w):
    """Fused nn.TransformerEncoderLayer (post-norm, ReLU, eval mode).

    x2:        (R, D) token rows, R = n_sequences * seq_len (sequences contiguous).
    head_mask: (nhead, 1, D) 0/1 lane masks selecting each head's dh columns.
    bias:      (R, R) additive mask: 0 inside a sequence, -1e30 across sequences.
    """
    (wqkv, bqkv, wo, bo, g1, be1, w1, bf1, w2, bf2, g2, be2) = w
    d = x2.shape[1]

    # Fused QKV projection (1/sqrt(dh) pre-folded into the Q block host-side).
    qkv = _mm(x2, wqkv) + bqkv                     # (R, 3D) f32
    q2 = qkv[:, :d]
    k2 = qkv[:, d:2 * d].astype(_BF16)             # cast once, shared by all heads
    v2 = qkv[:, 2 * d:]

    # Per-head attention via full-lane masked matmuls: each head's P@V lands
    # directly in its own lane group of `attn` (no slices/concats of width 8,
    # no batched degenerate einsums).
    attn = None
    for h in range(nhead):
        m_h = head_mask[h]                         # (1, D)
        qh = (q2 * m_h).astype(_BF16)
        s = _qkt(qh, k2) + bias                    # (R, R) per-head scores
        mx = jnp.max(s, axis=-1, keepdims=True)
        p = jnp.exp(s - mx)
        p = p * pl.reciprocal(jnp.sum(p, axis=-1, keepdims=True), approx=True)
        vh = (v2 * m_h).astype(_BF16)
        oh = jnp.dot(p.astype(_BF16), vh, preferred_element_type=jnp.float32)
        attn = oh if attn is None else attn + oh

    attn = _mm(attn, wo) + bo
    h1 = _layernorm(x2 + attn, g1, be1)
    ff = jnp.maximum(_mm(h1, w1) + bf1, 0.0)
    ff = _mm(ff, w2) + bf2
    return _layernorm(h1 + ff, g2, be2)


def _hattn_stack_kernel(*refs, num_layers, n_levels, nhead, kernel_size, batch):
    """Whole hierarchical-attention stack + output head in one kernel call."""
    n_inner = n_levels - 1
    kk = kernel_size * kernel_size

    idx = 0
    lvl_refs = refs[idx:idx + n_levels]; idx += n_levels
    bias_refs = refs[idx:idx + n_inner]; idx += n_inner
    head_mask = refs[idx][...]; idx += 1
    tel_refs = refs[idx:idx + len(_TEL_NAMES)]; idx += len(_TEL_NAMES)
    ng_ref, nb_ref, wout_ref, bout_ref = refs[idx:idx + 4]; idx += 4
    out_ref = refs[idx]

    d = lvl_refs[0].shape[1]
    levels = [r[...] for r in lvl_refs]            # all pyramid levels resident
    biases = [r[...] for r in bias_refs]

    for layer in range(num_layers):
        for i in range(n_inner):
            j = layer * n_inner + i                # stacked TEL parameter index
            w = tuple(ref[j] for ref in tel_refs)

            c = levels[i]                          # (M_i, D), quadtree order
            n_seq = c.shape[0] // kk
            # Z-order => children of each sequence are a contiguous row group
            # and its parent is row n of the next level: pure reshapes.
            parts = [c.reshape(n_seq, kk, d),
                     levels[i + 1].reshape(n_seq, 1, d)]
            if i == 0:                             # global (top) token
                npb = n_seq // batch
                top = levels[-1].reshape(batch, 1, d)
                parts.append(jnp.broadcast_to(top, (batch, npb, d))
                             .reshape(n_seq, 1, d))
            x3 = jnp.concatenate(parts, axis=1)    # (n_seq, S, D)
            s_len = x3.shape[1]

            y2 = _tel_apply(x3.reshape(n_seq * s_len, d),
                            head_mask, biases[i], nhead, w)

            y3 = y2.reshape(n_seq, s_len, d)
            levels[i] = y3[:, :kk, :].reshape(n_seq * kk, d)        # children
            levels[i + 1] = y3[:, kk:kk + 1, :].reshape(n_seq, d)   # parent
            # (the global token's own output is discarded, as in the reference)

    # Output head (LayerNorm + Linear) fused into the same kernel.
    top = _layernorm(levels[-1], ng_ref[...], nb_ref[...])
    out_ref[...] = _mm(top, wout_ref[...]) + bout_ref[...]


# ============================================================================
# Glue (pure data movement + tiny embedder, fused by XLA under one jit)
# ============================================================================

def _z_order_perm(g, k):
    """perm[z] = h * g + w of the cell whose quadtree (Z) index is z."""
    if g == 1:
        return np.zeros((1,), np.int32)
    nd = int(round(math.log(g, k)))
    assert k ** nd == g, "spatial size must be a power of kernel_size"
    perm = np.empty(g * g, dtype=np.int32)
    for hh in range(g):
        for ww in range(g):
            z = 0
            for dig in range(nd):
                sh = k ** (nd - 1 - dig)
                z = z * (k * k) + ((hh // sh) % k) * k + (ww // sh) % k
            perm[z] = hh * g + ww
    return perm


def hattn_encoder_forward(x, prep, cfg):
    b, c, h, w = x.shape
    cs, k, d = cfg['chunk_size'], cfg['kernel_size'], cfg['d_model']
    hb, wb = h // cs, w // cs
    kk = k * k
    assert hb == wb  # TODO(synk): square grids only

    # ---- patch extraction into Z-ordered token rows (data movement only) ----
    p = x.reshape(b, c, hb, cs, wb, cs)
    p = jnp.transpose(p, (0, 2, 4, 3, 5, 1)).reshape(b, hb * wb, cs * cs * c)
    p = p[:, _z_order_perm(hb, k), :].reshape(b * hb * wb, cs * cs * c)

    # ---- embedder: tiny, left to XLA (per perf review) ----
    x0 = jnp.dot(p, prep['embed_w'],
                 preferred_element_type=jnp.float32) + prep['embed_b']

    # ---- pyramid mean pooling; Z-order keeps each parent's children contiguous ----
    n_levels = int(math.log2(max(hb, wb)) / math.log2(k)) + 1
    levels = [x0]
    for _ in range(n_levels - 1):
        prev = levels[-1]
        levels.append(prev.reshape(prev.shape[0] // kk, kk, d).mean(axis=1))

    # ---- precomputed additive same-sequence softmax masks (host-built) ----
    biases = []
    for i in range(n_levels - 1):
        n_seq = levels[i].shape[0] // kk
        s_len = kk + 2 if i == 0 else kk + 1
        seq_id = np.arange(n_seq * s_len) // s_len
        biases.append(jnp.asarray(
            np.where(seq_id[:, None] == seq_id[None, :], 0.0, _NEG_INF),
            jnp.float32))

    kernel = functools.partial(
        _hattn_stack_kernel, num_layers=cfg['num_layers'], n_levels=n_levels,
        nhead=cfg['nhead'], kernel_size=k, batch=b)

    # Single pallas_call for the whole stack: no grid, whole-array VMEM blocks.
    return pl.pallas_call(
        kernel,
        out_shape=jax.ShapeDtypeStruct((b, cfg['output_size']), jnp.float32),
        compiler_params=pltpu.CompilerParams(vmem_limit_bytes=32 * 1024 * 1024),
    )(*levels, *biases, prep['head_mask'],
      *[prep[name] for name in _TEL_NAMES],
      prep['norm_g'], prep['norm_b'], prep['out_w'], prep['out_b'])


# ============================================================================
# Parameter init (mirrors the torch module) + host-side kernel prep
# ============================================================================

def init_tel_params(key, d_model, dff):
    ks = jax.random.split(key, 8)
    s = 0.05
    return dict(
        wqkv=jax.random.normal(ks[0], (d_model, 3 * d_model), jnp.float32) * s,
        bqkv=jax.random.normal(ks[1], (1, 3 * d_model), jnp.float32) * s,
        wo=jax.random.normal(ks[2], (d_model, d_model), jnp.float32) * s,
        bo=jax.random.normal(ks[3], (1, d_model), jnp.float32) * s,
        g1=jnp.ones((1, d_model), jnp.float32),
        be1=jnp.zeros((1, d_model), jnp.float32),
        w1=jax.random.normal(ks[4], (d_model, dff), jnp.float32) * s,
        bf1=jax.random.normal(ks[5], (1, dff), jnp.float32) * s,
        w2=jax.random.normal(ks[6], (dff, d_model), jnp.float32) * s,
        bf2=jax.random.normal(ks[7], (1, d_model), jnp.float32) * s,
        g2=jnp.ones((1, d_model), jnp.float32),
        be2=jnp.zeros((1, d_model), jnp.float32),
    )


def init_params(key, cfg):
    d = cfg['d_model']
    k_embed = cfg['input_dim'] * cfg['chunk_size'] ** 2
    reduced = max(cfg['input_size']) // cfg['chunk_size']
    inner = int(math.log2(reduced) / math.log2(cfg['kernel_size']))

    keys = jax.random.split(key, 4 + cfg['num_layers'] * inner)
    params = dict(
        embed_w=jax.random.normal(keys[0], (k_embed, d), jnp.float32) * 0.02,
        embed_b=jax.random.normal(keys[1], (1, d), jnp.float32) * 0.02,
        norm_g=jnp.ones((1, d), jnp.float32),
        norm_b=jnp.zeros((1, d), jnp.float32),
        out_w=jax.random.normal(keys[2], (d, cfg['output_size']), jnp.float32) * 0.02,
        out_b=jax.random.normal(keys[3], (1, cfg['output_size']), jnp.float32) * 0.02,
    )
    layers, idx = [], 4
    for _ in range(cfg['num_layers']):
        lyr = []
        for _ in range(inner):
            lyr.append(init_tel_params(keys[idx], d, cfg['dim_feedforward']))
            idx += 1
        layers.append(lyr)
    params['layers'] = layers
    return params


def prepare_params(params, cfg):
    """Host-side, once: stack per-TEL weights, fold 1/sqrt(dh) into the Q block
    of the fused QKV weight/bias, cast matmul weights to bf16, build head masks."""
    d, nhead = cfg['d_model'], cfg['nhead']
    dh = d // nhead
    scale = 1.0 / math.sqrt(dh)
    qkv_scale = jnp.concatenate(
        [jnp.full((1, 1, d), scale, jnp.float32),
         jnp.ones((1, 1, 2 * d), jnp.float32)], axis=-1)

    flat = [tel for layer in params['layers'] for tel in layer]
    prep = {name: jnp.stack([t[name] for t in flat], axis=0) for name in _TEL_NAMES}
    prep['wqkv'] = (prep['wqkv'] * qkv_scale).astype(_BF16)
    prep['bqkv'] = prep['bqkv'] * qkv_scale
    for name in ('wo', 'w1', 'w2'):
        prep[name] = prep[name].astype(_BF16)

    hm = np.zeros((nhead, 1, d), np.float32)
    for h in range(nhead):
        hm[h, 0, h * dh:(h + 1) * dh] = 1.0
    prep['head_mask'] = jnp.asarray(hm)

    prep['embed_w'] = params['embed_w']
    prep['embed_b'] = params['embed_b']
    prep['norm_g'] = params['norm_g']
    prep['norm_b'] = params['norm_b']
    prep['out_w'] = params['out_w'].astype(_BF16)
    prep['out_b'] = params['out_b']
    return prep


# ============================================================================
# Demo
# ============================================================================

if __name__ == "__main__":
    cfg = dict(
        input_size=[64, 64],
        d_model=32,
        nhead=4,
        input_dim=3,
        num_layers=2,
        dim_feedforward=64,
        kernel_size=2,
        chunk_size=16,
        output_size=16,
    )

    key = jax.random.PRNGKey(0)
    kx, kp = jax.random.split(key)
    x = jax.random.normal(kx, (2, cfg['input_dim'],
                               cfg['input_size'][0], cfg['input_size'][1]),
                          jnp.float32)
    params = init_params(kp, cfg)
    prep = prepare_params(params, cfg)   # host-side weight prep, done once

    fwd = jax.jit(functools.partial(hattn_encoder_forward, cfg=cfg))
    out = jax.block_until_ready(fwd(x, prep))

    assert out.shape == (2, cfg['output_size'])
    assert bool(jnp.all(jnp.isfinite(out)))
    print("KERNEL_OK")
</pallas_src>

<mosaic_0001>
module attributes {stable_mosaic.version = 11 : i64} {
  func.func @_hattn_stack_kernel(%arg0: memref<32x32xf32, #tpu.memory_space<vmem>>, %arg1: memref<8x32xf32, #tpu.memory_space<vmem>>, %arg2: memref<2x32xf32, #tpu.memory_space<vmem>>, %arg3: memref<48x48xf32, #tpu.memory_space<vmem>>, %arg4: memref<10x10xf32, #tpu.memory_space<vmem>>, %arg5: memref<4x1x32xf32, #tpu.memory_space<vmem>>, %arg6: memref<4x32x96xbf16, #tpu.memory_space<vmem>>, %arg7: memref<4x1x96xf32, #tpu.memory_space<vmem>>, %arg8: memref<4x32x32xbf16, #tpu.memory_space<vmem>>, %arg9: memref<4x1x32xf32, #tpu.memory_space<vmem>>, %arg10: memref<4x1x32xf32, #tpu.memory_space<vmem>>, %arg11: memref<4x1x32xf32, #tpu.memory_space<vmem>>, %arg12: memref<4x32x64xbf16, #tpu.memory_space<vmem>>, %arg13: memref<4x1x64xf32, #tpu.memory_space<vmem>>, %arg14: memref<4x64x32xbf16, #tpu.memory_space<vmem>>, %arg15: memref<4x1x32xf32, #tpu.memory_space<vmem>>, %arg16: memref<4x1x32xf32, #tpu.memory_space<vmem>>, %arg17: memref<4x1x32xf32, #tpu.memory_space<vmem>>, %arg18: memref<1x32xf32, #tpu.memory_space<vmem>>, %arg19: memref<1x32xf32, #tpu.memory_space<vmem>>, %arg20: memref<32x16xbf16, #tpu.memory_space<vmem>>, %arg21: memref<1x16xf32, #tpu.memory_space<vmem>>, %arg22: memref<2x16xf32, #tpu.memory_space<vmem>>) attributes {dimension_semantics = [], scalar_prefetch = 0 : i64, scratch_operands = 0 : i64, tpu.core_type = #tpu.core_type<tc>} {
    %c0 = arith.constant 0 : index
    %c0_0 = arith.constant 0 : index
    %c0_1 = arith.constant 0 : index
    %0 = vector.load %arg5[%c0, %c0_0, %c0_1] : memref<4x1x32xf32, #tpu.memory_space<vmem>>, vector<4x1x32xf32>
    %c0_2 = arith.constant 0 : index
    %c0_3 = arith.constant 0 : index
    %1 = vector.load %arg0[%c0_2, %c0_3] : memref<32x32xf32, #tpu.memory_space<vmem>>, vector<32x32xf32>
    %c0_4 = arith.constant 0 : index
    %c0_5 = arith.constant 0 : index
    %2 = vector.load %arg1[%c0_4, %c0_5] : memref<8x32xf32, #tpu.memory_space<vmem>>, vector<8x32xf32>
    %c0_6 = arith.constant 0 : index
    %c0_7 = arith.constant 0 : index
    %3 = vector.load %arg2[%c0_6, %c0_7] : memref<2x32xf32, #tpu.memory_space<vmem>>, vector<2x32xf32>
    %c0_8 = arith.constant 0 : index
    %c0_9 = arith.constant 0 : index
    %4 = vector.load %arg3[%c0_8, %c0_9] : memref<48x48xf32, #tpu.memory_space<vmem>>, vector<48x48xf32>
    %c0_10 = arith.constant 0 : index
    %c0_11 = arith.constant 0 : index
    %5 = vector.load %arg4[%c0_10, %c0_11] : memref<10x10xf32, #tpu.memory_space<vmem>>, vector<10x10xf32>
    %c0_12 = arith.constant 0 : index
    %c0_13 = arith.constant 0 : index
    %c0_14 = arith.constant 0 : index
    %6 = vector.load %arg6[%c0_12, %c0_13, %c0_14] : memref<4x32x96xbf16, #tpu.memory_space<vmem>>, vector<1x32x96xbf16>
    %7 = vector.shape_cast %6 : vector<1x32x96xbf16> to vector<32x96xbf16>
    %c0_15 = arith.constant 0 : index
    %c0_16 = arith.constant 0 : index
    %c0_17 = arith.constant 0 : index
    %8 = vector.load %arg7[%c0_15, %c0_16, %c0_17] : memref<4x1x96xf32, #tpu.memory_space<vmem>>, vector<1x1x96xf32>
    %9 = vector.shape_cast %8 : vector<1x1x96xf32> to vector<1x96xf32>
    %c0_18 = arith.constant 0 : index
    %c0_19 = arith.constant 0 : index
    %c0_20 = arith.constant 0 : index
    %10 = vector.load %arg8[%c0_18, %c0_19, %c0_20] : memref<4x32x32xbf16, #tpu.memory_space<vmem>>, vector<1x32x32xbf16>
    %11 = vector.shape_cast %10 : vector<1x32x32xbf16> to vector<32x32xbf16>
    %c0_21 = arith.constant 0 : index
    %c0_22 = arith.constant 0 : index
    %c0_23 = arith.constant 0 : index
    %12 = vector.load %arg9[%c0_21, %c0_22, %c0_23] : memref<4x1x32xf32, #tpu.memory_space<vmem>>, vector<1x1x32xf32>
    %13 = vector.shape_cast %12 : vector<1x1x32xf32> to vector<1x32xf32>
    %c0_24 = arith.constant 0 : index
    %c0_25 = arith.constant 0 : index
    %c0_26 = arith.constant 0 : index
    %14 = vector.load %arg10[%c0_24, %c0_25, %c0_26] : memref<4x1x32xf32, #tpu.memory_space<vmem>>, vector<1x1x32xf32>
    %15 = vector.shape_cast %14 : vector<1x1x32xf32> to vector<1x32xf32>
    %c0_27 = arith.constant 0 : index
    %c0_28 = arith.constant 0 : index
    %c0_29 = arith.constant 0 : index
    %16 = vector.load %arg11[%c0_27, %c0_28, %c0_29] : memref<4x1x32xf32, #tpu.memory_space<vmem>>, vector<1x1x32xf32>
    %17 = vector.shape_cast %16 : vector<1x1x32xf32> to vector<1x32xf32>
    %c0_30 = arith.constant 0 : index
    %c0_31 = arith.constant 0 : index
    %c0_32 = arith.constant 0 : index
    %18 = vector.load %arg12[%c0_30, %c0_31, %c0_32] : memref<4x32x64xbf16, #tpu.memory_space<vmem>>, vector<1x32x64xbf16>
    %19 = vector.shape_cast %18 : vector<1x32x64xbf16> to vector<32x64xbf16>
    %c0_33 = arith.constant 0 : index
    %c0_34 = arith.constant 0 : index
    %c0_35 = arith.constant 0 : index
    %20 = vector.load %arg13[%c0_33, %c0_34, %c0_35] : memref<4x1x64xf32, #tpu.memory_space<vmem>>, vector<1x1x64xf32>
    %21 = vector.shape_cast %20 : vector<1x1x64xf32> to vector<1x64xf32>
    %c0_36 = arith.constant 0 : index
    %c0_37 = arith.constant 0 : index
    %c0_38 = arith.constant 0 : index
    %22 = vector.load %arg14[%c0_36, %c0_37, %c0_38] : memref<4x64x32xbf16, #tpu.memory_space<vmem>>, vector<1x64x32xbf16>
    %23 = vector.shape_cast %22 : vector<1x64x32xbf16> to vector<64x32xbf16>
    %c0_39 = arith.constant 0 : index
    %c0_40 = arith.constant 0 : index
    %c0_41 = arith.constant 0 : index
    %24 = vector.load %arg15[%c0_39, %c0_40, %c0_41] : memref<4x1x32xf32, #tpu.memory_space<vmem>>, vector<1x1x32xf32>
    %25 = vector.shape_cast %24 : vector<1x1x32xf32> to vector<1x32xf32>
    %c0_42 = arith.constant 0 : index
    %c0_43 = arith.constant 0 : index
    %c0_44 = arith.constant 0 : index
    %26 = vector.load %arg16[%c0_42, %c0_43, %c0_44] : memref<4x1x32xf32, #tpu.memory_space<vmem>>, vector<1x1x32xf32>
    %27 = vector.shape_cast %26 : vector<1x1x32xf32> to vector<1x32xf32>
    %c0_45 = arith.constant 0 : index
    %c0_46 = arith.constant 0 : index
    %c0_47 = arith.constant 0 : index
    %28 = vector.load %arg17[%c0_45, %c0_46, %c0_47] : memref<4x1x32xf32, #tpu.memory_space<vmem>>, vector<1x1x32xf32>
    %29 = vector.shape_cast %28 : vector<1x1x32xf32> to vector<1x32xf32>
    %30 = vector.shape_cast %1 : vector<32x32xf32> to vector<8x4x32xf32>
    %31 = vector.shape_cast %2 : vector<8x32xf32> to vector<8x1x32xf32>
    %32 = vector.shape_cast %3 : vector<2x32xf32> to vector<2x1x32xf32>
    %33 = vector.shape_cast %32 : vector<2x1x32xf32> to vector<2x1x32xf32>
    %34 = vector.broadcast %33 : vector<2x1x32xf32> to vector<2x4x32xf32>
    %35 = vector.shape_cast %34 : vector<2x4x32xf32> to vector<8x1x32xf32>
    %36 = tpu.concatenate %30, %31, %35 in 1 : vector<8x4x32xf32>, vector<8x1x32xf32>, vector<8x1x32xf32> -> vector<8x6x32xf32>
    %37 = vector.shape_cast %36 : vector<8x6x32xf32> to vector<48x32xf32>
    %38 = arith.truncf %37 : vector<48x32xf32> to vector<48x32xbf16>
    %cst = arith.constant dense<0.000000e+00> : vector<48x96xf32>
    %39 = tpu.matmul %38, %7, %cst {dimension_numbers = #tpu.dot_dimension_numbers<[1], [0], [0], [1], [0, 0, 1, 1], [], []>} : vector<48x32xbf16>, vector<32x96xbf16>, vector<48x96xf32> -> vector<48x96xf32>
    %40 = vector.broadcast %9 : vector<1x96xf32> to vector<48x96xf32>
    %41 = arith.addf %39, %40 : vector<48x96xf32>
    %42 = vector.extract_strided_slice %41 {offsets = [0, 0], sizes = [48, 32], strides = [1, 1]} : vector<48x96xf32> to vector<48x32xf32>
    %43 = vector.extract_strided_slice %41 {offsets = [0, 32], sizes = [48, 32], strides = [1, 1]} : vector<48x96xf32> to vector<48x32xf32>
    %44 = arith.truncf %43 : vector<48x32xf32> to vector<48x32xbf16>
    %45 = vector.extract_strided_slice %41 {offsets = [0, 64], sizes = [48, 32], strides = [1, 1]} : vector<48x96xf32> to vector<48x32xf32>
    %46 = vector.extract_strided_slice %0 {offsets = [0, 0, 0], sizes = [1, 1, 32], strides = [1, 1, 1]} : vector<4x1x32xf32> to vector<1x1x32xf32>
    %47 = vector.shape_cast %46 : vector<1x1x32xf32> to vector<1x32xf32>
    %48 = vector.broadcast %47 : vector<1x32xf32> to vector<48x32xf32>
    %49 = arith.mulf %42, %48 : vector<48x32xf32>
    %50 = arith.truncf %49 : vector<48x32xf32> to vector<48x32xbf16>
    %cst_48 = arith.constant dense<0.000000e+00> : vector<48x48xf32>
    %51 = tpu.matmul %50, %44, %cst_48 {dimension_numbers = #tpu.dot_dimension_numbers<[1], [1], [0], [0], [0, 0, 1, 0], [], []>} : vector<48x32xbf16>, vector<48x32xbf16>, vector<48x48xf32> -> vector<48x48xf32>
    %52 = arith.addf %51, %4 : vector<48x48xf32>
    %cst_49 = arith.constant dense<0xFF800000> : vector<48xf32>
    %53 = vector.multi_reduction <maximumf>, %52, %cst_49 [1] : vector<48x48xf32> to vector<48xf32>
    %54 = vector.shape_cast %53 : vector<48xf32> to vector<48x1xf32>
    %55 = vector.broadcast %54 : vector<48x1xf32> to vector<48x48xf32>
    %56 = arith.subf %52, %55 : vector<48x48xf32>
    %57 = math.exp %56 : vector<48x48xf32>
    %cst_50 = arith.constant dense<0.000000e+00> : vector<48xf32>
    %58 = vector.multi_reduction <add>, %57, %cst_50 [1] : vector<48x48xf32> to vector<48xf32>
    %59 = vector.shape_cast %58 : vector<48xf32> to vector<48x1xf32>
    %60 = tpu.reciprocal %59 {approx = true} : vector<48x1xf32> -> vector<48x1xf32>
    %61 = vector.broadcast %60 : vector<48x1xf32> to vector<48x48xf32>
    %62 = arith.mulf %57, %61 : vector<48x48xf32>
    %63 = vector.broadcast %47 : vector<1x32xf32> to vector<48x32xf32>
    %64 = arith.mulf %45, %63 : vector<48x32xf32>
    %65 = arith.truncf %64 : vector<48x32xf32> to vector<48x32xbf16>
    %66 = arith.truncf %62 : vector<48x48xf32> to vector<48x48xbf16>
    %cst_51 = arith.constant dense<0.000000e+00> : vector<48x32xf32>
    %67 = tpu.matmul %66, %65, %cst_51 {dimension_numbers = #tpu.dot_dimension_numbers<[1], [0], [0], [1], [0, 0, 1, 1], [], []>} : vector<48x48xbf16>, vector<48x32xbf16>, vector<48x32xf32> -> vector<48x32xf32>
    %68 = vector.extract_strided_slice %0 {offsets = [1, 0, 0], sizes = [1, 1, 32], strides = [1, 1, 1]} : vector<4x1x32xf32> to vector<1x1x32xf32>
    %69 = vector.shape_cast %68 : vector<1x1x32xf32> to vector<1x32xf32>
    %70 = vector.broadcast %69 : vector<1x32xf32> to vector<48x32xf32>
    %71 = arith.mulf %42, %70 : vector<48x32xf32>
    %72 = arith.truncf %71 : vector<48x32xf32> to vector<48x32xbf16>
    %cst_52 = arith.constant dense<0.000000e+00> : vector<48x48xf32>
    %73 = tpu.matmul %72, %44, %cst_52 {dimension_numbers = #tpu.dot_dimension_numbers<[1], [1], [0], [0], [0, 0, 1, 0], [], []>} : vector<48x32xbf16>, vector<48x32xbf16>, vector<48x48xf32> -> vector<48x48xf32>
    %74 = arith.addf %73, %4 : vector<48x48xf32>
    %cst_53 = arith.constant dense<0xFF800000> : vector<48xf32>
    %75 = vector.multi_reduction <maximumf>, %74, %cst_53 [1] : vector<48x48xf32> to vector<48xf32>
    %76 = vector.shape_cast %75 : vector<48xf32> to vector<48x1xf32>
    %77 = vector.broadcast %76 : vector<48x1xf32> to vector<48x48xf32>
    %78 = arith.subf %74, %77 : vector<48x48xf32>
    %79 = math.exp %78 : vector<48x48xf32>
    %cst_54 = arith.constant dense<0.000000e+00> : vector<48xf32>
    %80 = vector.multi_reduction <add>, %79, %cst_54 [1] : vector<48x48xf32> to vector<48xf32>
    %81 = vector.shape_cast %80 : vector<48xf32> to vector<48x1xf32>
    %82 = tpu.reciprocal %81 {approx = true} : vector<48x1xf32> -> vector<48x1xf32>
    %83 = vector.broadcast %82 : vector<48x1xf32> to vector<48x48xf32>
    %84 = arith.mulf %79, %83 : vector<48x48xf32>
    %85 = vector.broadcast %69 : vector<1x32xf32> to vector<48x32xf32>
    %86 = arith.mulf %45, %85 : vector<48x32xf32>
    %87 = arith.truncf %86 : vector<48x32xf32> to vector<48x32xbf16>
    %88 = arith.truncf %84 : vector<48x48xf32> to vector<48x48xbf16>
    %cst_55 = arith.constant dense<0.000000e+00> : vector<48x32xf32>
    %89 = tpu.matmul %88, %87, %cst_55 {dimension_numbers = #tpu.dot_dimension_numbers<[1], [0], [0], [1], [0, 0, 1, 1], [], []>} : vector<48x48xbf16>, vector<48x32xbf16>, vector<48x32xf32> -> vector<48x32xf32>
    %90 = arith.addf %67, %89 : vector<48x32xf32>
    %91 = vector.extract_strided_slice %0 {offsets = [2, 0, 0], sizes = [1, 1, 32], strides = [1, 1, 1]} : vector<4x1x32xf32> to vector<1x1x32xf32>
    %92 = vector.shape_cast %91 : vector<1x1x32xf32> to vector<1x32xf32>
    %93 = vector.broadcast %92 : vector<1x32xf32> to vector<48x32xf32>
    %94 = arith.mulf %42, %93 : vector<48x32xf32>
    %95 = arith.truncf %94 : vector<48x32xf32> to vector<48x32xbf16>
    %cst_56 = arith.constant dense<0.000000e+00> : vector<48x48xf32>
    %96 = tpu.matmul %95, %44, %cst_56 {dimension_numbers = #tpu.dot_dimension_numbers<[1], [1], [0], [0], [0, 0, 1, 0], [], []>} : vector<48x32xbf16>, vector<48x32xbf16>, vector<48x48xf32> -> vector<48x48xf32>
    %97 = arith.addf %96, %4 : vector<48x48xf32>
    %cst_57 = arith.constant dense<0xFF800000> : vector<48xf32>
    %98 = vector.multi_reduction <maximumf>, %97, %cst_57 [1] : vector<48x48xf32> to vector<48xf32>
    %99 = vector.shape_cast %98 : vector<48xf32> to vector<48x1xf32>
    %100 = vector.broadcast %99 : vector<48x1xf32> to vector<48x48xf32>
    %101 = arith.subf %97, %100 : vector<48x48xf32>
    %102 = math.exp %101 : vector<48x48xf32>
    %cst_58 = arith.constant dense<0.000000e+00> : vector<48xf32>
    %103 = vector.multi_reduction <add>, %102, %cst_58 [1] : vector<48x48xf32> to vector<48xf32>
    %104 = vector.shape_cast %103 : vector<48xf32> to vector<48x1xf32>
    %105 = tpu.reciprocal %104 {approx = true} : vector<48x1xf32> -> vector<48x1xf32>
    %106 = vector.broadcast %105 : vector<48x1xf32> to vector<48x48xf32>
    %107 = arith.mulf %102, %106 : vector<48x48xf32>
    %108 = vector.broadcast %92 : vector<1x32xf32> to vector<48x32xf32>
    %109 = arith.mulf %45, %108 : vector<48x32xf32>
    %110 = arith.truncf %109 : vector<48x32xf32> to vector<48x32xbf16>
    %111 = arith.truncf %107 : vector<48x48xf32> to vector<48x48xbf16>
    %cst_59 = arith.constant dense<0.000000e+00> : vector<48x32xf32>
    %112 = tpu.matmul %111, %110, %cst_59 {dimension_numbers = #tpu.dot_dimension_numbers<[1], [0], [0], [1], [0, 0, 1, 1], [], []>} : vector<48x48xbf16>, vector<48x32xbf16>, vector<48x32xf32> -> vector<48x32xf32>
    %113 = arith.addf %90, %112 : vector<48x32xf32>
    %114 = vector.extract_strided_slice %0 {offsets = [3, 0, 0], sizes = [1, 1, 32], strides = [1, 1, 1]} : vector<4x1x32xf32> to vector<1x1x32xf32>
    %115 = vector.shape_cast %114 : vector<1x1x32xf32> to vector<1x32xf32>
    %116 = vector.broadcast %115 : vector<1x32xf32> to vector<48x32xf32>
    %117 = arith.mulf %42, %116 : vector<48x32xf32>
    %118 = arith.truncf %117 : vector<48x32xf32> to vector<48x32xbf16>
    %cst_60 = arith.constant dense<0.000000e+00> : vector<48x48xf32>
    %119 = tpu.matmul %118, %44, %cst_60 {dimension_numbers = #tpu.dot_dimension_numbers<[1], [1], [0], [0], [0, 0, 1, 0], [], []>} : vector<48x32xbf16>, vector<48x32xbf16>, vector<48x48xf32> -> vector<48x48xf32>
    %120 = arith.addf %119, %4 : vector<48x48xf32>
    %cst_61 = arith.constant dense<0xFF800000> : vector<48xf32>
    %121 = vector.multi_reduction <maximumf>, %120, %cst_61 [1] : vector<48x48xf32> to vector<48xf32>
    %122 = vector.shape_cast %121 : vector<48xf32> to vector<48x1xf32>
    %123 = vector.broadcast %122 : vector<48x1xf32> to vector<48x48xf32>
    %124 = arith.subf %120, %123 : vector<48x48xf32>
    %125 = math.exp %124 : vector<48x48xf32>
    %cst_62 = arith.constant dense<0.000000e+00> : vector<48xf32>
    %126 = vector.multi_reduction <add>, %125, %cst_62 [1] : vector<48x48xf32> to vector<48xf32>
    %127 = vector.shape_cast %126 : vector<48xf32> to vector<48x1xf32>
    %128 = tpu.reciprocal %127 {approx = true} : vector<48x1xf32> -> vector<48x1xf32>
    %129 = vector.broadcast %128 : vector<48x1xf32> to vector<48x48xf32>
    %130 = arith.mulf %125, %129 : vector<48x48xf32>
    %131 = vector.broadcast %115 : vector<1x32xf32> to vector<48x32xf32>
    %132 = arith.mulf %45, %131 : vector<48x32xf32>
    %133 = arith.truncf %132 : vector<48x32xf32> to vector<48x32xbf16>
    %134 = arith.truncf %130 : vector<48x48xf32> to vector<48x48xbf16>
    %cst_63 = arith.constant dense<0.000000e+00> : vector<48x32xf32>
    %135 = tpu.matmul %134, %133, %cst_63 {dimension_numbers = #tpu.dot_dimension_numbers<[1], [0], [0], [1], [0, 0, 1, 1], [], []>} : vector<48x48xbf16>, vector<48x32xbf16>, vector<48x32xf32> -> vector<48x32xf32>
    %136 = arith.addf %113, %135 : vector<48x32xf32>
    %137 = arith.truncf %136 : vector<48x32xf32> to vector<48x32xbf16>
    %cst_64 = arith.constant dense<0.000000e+00> : vector<48x32xf32>
    %138 = tpu.matmul %137, %11, %cst_64 {dimension_numbers = #tpu.dot_dimension_numbers<[1], [0], [0], [1], [0, 0, 1, 1], [], []>} : vector<48x32xbf16>, vector<32x32xbf16>, vector<48x32xf32> -> vector<48x32xf32>
    %139 = vector.broadcast %13 : vector<1x32xf32> to vector<48x32xf32>
    %140 = arith.addf %138, %139 : vector<48x32xf32>
    %141 = arith.addf %37, %140 : vector<48x32xf32>
    %cst_65 = arith.constant dense<0.000000e+00> : vector<48xf32>
    %142 = vector.multi_reduction <add>, %141, %cst_65 [1] : vector<48x32xf32> to vector<48xf32>
    %143 = vector.shape_cast %142 : vector<48xf32> to vector<48x1xf32>
    %cst_66 = arith.constant 3.200000e+01 : f32
    %144 = vector.broadcast %cst_66 : f32 to vector<48x1xf32>
    %145 = arith.divf %143, %144 : vector<48x1xf32>
    %146 = vector.broadcast %145 : vector<48x1xf32> to vector<48x32xf32>
    %147 = arith.subf %141, %146 : vector<48x32xf32>
    %148 = arith.mulf %147, %147 : vector<48x32xf32>
    %cst_67 = arith.constant dense<0.000000e+00> : vector<48xf32>
    %149 = vector.multi_reduction <add>, %148, %cst_67 [1] : vector<48x32xf32> to vector<48xf32>
    %150 = vector.shape_cast %149 : vector<48xf32> to vector<48x1xf32>
    %cst_68 = arith.constant 3.200000e+01 : f32
    %151 = vector.broadcast %cst_68 : f32 to vector<48x1xf32>
    %152 = arith.divf %150, %151 : vector<48x1xf32>
    %cst_69 = arith.constant 9.99999974E-6 : f32
    %153 = vector.broadcast %cst_69 : f32 to vector<48x1xf32>
    %154 = arith.addf %152, %153 : vector<48x1xf32>
    %155 = math.rsqrt %154 : vector<48x1xf32>
    %156 = vector.broadcast %155 : vector<48x1xf32> to vector<48x32xf32>
    %157 = arith.mulf %147, %156 : vector<48x32xf32>
    %158 = vector.broadcast %15 : vector<1x32xf32> to vector<48x32xf32>
    %159 = arith.mulf %157, %158 : vector<48x32xf32>
    %160 = vector.broadcast %17 : vector<1x32xf32> to vector<48x32xf32>
    %161 = arith.addf %159, %160 : vector<48x32xf32>
    %162 = arith.truncf %161 : vector<48x32xf32> to vector<48x32xbf16>
    %cst_70 = arith.constant dense<0.000000e+00> : vector<48x64xf32>
    %163 = tpu.matmul %162, %19, %cst_70 {dimension_numbers = #tpu.dot_dimension_numbers<[1], [0], [0], [1], [0, 0, 1, 1], [], []>} : vector<48x32xbf16>, vector<32x64xbf16>, vector<48x64xf32> -> vector<48x64xf32>
    %164 = vector.broadcast %21 : vector<1x64xf32> to vector<48x64xf32>
    %165 = arith.addf %163, %164 : vector<48x64xf32>
    %cst_71 = arith.constant 0.000000e+00 : f32
    %166 = vector.broadcast %cst_71 : f32 to vector<48x64xf32>
    %167 = arith.maximumf %165, %166 : vector<48x64xf32>
    %168 = arith.truncf %167 : vector<48x64xf32> to vector<48x64xbf16>
    %cst_72 = arith.constant dense<0.000000e+00> : vector<48x32xf32>
    %169 = tpu.matmul %168, %23, %cst_72 {dimension_numbers = #tpu.dot_dimension_numbers<[1], [0], [0], [1], [0, 0, 1, 1], [], []>} : vector<48x64xbf16>, vector<64x32xbf16>, vector<48x32xf32> -> vector<48x32xf32>
    %170 = vector.broadcast %25 : vector<1x32xf32> to vector<48x32xf32>
    %171 = arith.addf %169, %170 : vector<48x32xf32>
    %172 = arith.addf %161, %171 : vector<48x32xf32>
    %cst_73 = arith.constant dense<0.000000e+00> : vector<48xf32>
    %173 = vector.multi_reduction <add>, %172, %cst_73 [1] : vector<48x32xf32> to vector<48xf32>
    %174 = vector.shape_cast %173 : vector<48xf32> to vector<48x1xf32>
    %cst_74 = arith.constant 3.200000e+01 : f32
    %175 = vector.broadcast %cst_74 : f32 to vector<48x1xf32>
    %176 = arith.divf %174, %175 : vector<48x1xf32>
    %177 = vector.broadcast %176 : vector<48x1xf32> to vector<48x32xf32>
    %178 = arith.subf %172, %177 : vector<48x32xf32>
    %179 = arith.mulf %178, %178 : vector<48x32xf32>
    %cst_75 = arith.constant dense<0.000000e+00> : vector<48xf32>
    %180 = vector.multi_reduction <add>, %179, %cst_75 [1] : vector<48x32xf32> to vector<48xf32>
    %181 = vector.shape_cast %180 : vector<48xf32> to vector<48x1xf32>
    %cst_76 = arith.constant 3.200000e+01 : f32
    %182 = vector.broadcast %cst_76 : f32 to vector<48x1xf32>
    %183 = arith.divf %181, %182 : vector<48x1xf32>
    %cst_77 = arith.constant 9.99999974E-6 : f32
    %184 = vector.broadcast %cst_77 : f32 to vector<48x1xf32>
    %185 = arith.addf %183, %184 : vector<48x1xf32>
    %186 = math.rsqrt %185 : vector<48x1xf32>
    %187 = vector.broadcast %186 : vector<48x1xf32> to vector<48x32xf32>
    %188 = arith.mulf %178, %187 : vector<48x32xf32>
    %189 = vector.broadcast %27 : vector<1x32xf32> to vector<48x32xf32>
    %190 = arith.mulf %188, %189 : vector<48x32xf32>
    %191 = vector.broadcast %29 : vector<1x32xf32> to vector<48x32xf32>
    %192 = arith.addf %190, %191 : vector<48x32xf32>
    %193 = vector.shape_cast %192 : vector<48x32xf32> to vector<8x6x32xf32>
    %194 = vector.extract_strided_slice %193 {offsets = [0, 0, 0], sizes = [8, 4, 32], strides = [1, 1, 1]} : vector<8x6x32xf32> to vector<8x4x32xf32>
    %195 = vector.shape_cast %194 : vector<8x4x32xf32> to vector<32x32xf32>
    %196 = vector.extract_strided_slice %193 {offsets = [0, 4, 0], sizes = [8, 1, 32], strides = [1, 1, 1]} : vector<8x6x32xf32> to vector<8x1x32xf32>
    %197 = vector.shape_cast %196 : vector<8x1x32xf32> to vector<8x32xf32>
    %c1 = arith.constant 1 : index
    %c0_78 = arith.constant 0 : index
    %c0_79 = arith.constant 0 : index
    %198 = vector.load %arg6[%c1, %c0_78, %c0_79] : memref<4x32x96xbf16, #tpu.memory_space<vmem>>, vector<1x32x96xbf16>
    %199 = vector.shape_cast %198 : vector<1x32x96xbf16> to vector<32x96xbf16>
    %c1_80 = arith.constant 1 : index
    %c0_81 = arith.constant 0 : index
    %c0_82 = arith.constant 0 : index
    %200 = vector.load %arg7[%c1_80, %c0_81, %c0_82] : memref<4x1x96xf32, #tpu.memory_space<vmem>>, vector<1x1x96xf32>
    %201 = vector.shape_cast %200 : vector<1x1x96xf32> to vector<1x96xf32>
    %c1_83 = arith.constant 1 : index
    %c0_84 = arith.constant 0 : index
    %c0_85 = arith.constant 0 : index
    %202 = vector.load %arg8[%c1_83, %c0_84, %c0_85] : memref<4x32x32xbf16, #tpu.memory_space<vmem>>, vector<1x32x32xbf16>
    %203 = vector.shape_cast %202 : vector<1x32x32xbf16> to vector<32x32xbf16>
    %c1_86 = arith.constant 1 : index
    %c0_87 = arith.constant 0 : index
    %c0_88 = arith.constant 0 : index
    %204 = vector.load %arg9[%c1_86, %c0_87, %c0_88] : memref<4x1x32xf32, #tpu.memory_space<vmem>>, vector<1x1x32xf32>
    %205 = vector.shape_cast %204 : vector<1x1x32xf32> to vector<1x32xf32>
    %c1_89 = arith.constant 1 : index
    %c0_90 = arith.constant 0 : index
    %c0_91 = arith.constant 0 : index
    %206 = vector.load %arg10[%c1_89, %c0_90, %c0_91] : memref<4x1x32xf32, #tpu.memory_space<vmem>>, vector<1x1x32xf32>
    %207 = vector.shape_cast %206 : vector<1x1x32xf32> to vector<1x32xf32>
    %c1_92 = arith.constant 1 : index
    %c0_93 = arith.constant 0 : index
    %c0_94 = arith.constant 0 : index
    %208 = vector.load %arg11[%c1_92, %c0_93, %c0_94] : memref<4x1x32xf32, #tpu.memory_space<vmem>>, vector<1x1x32xf32>
    %209 = vector.shape_cast %208 : vector<1x1x32xf32> to vector<1x32xf32>
    %c1_95 = arith.constant 1 : index
    %c0_96 = arith.constant 0 : index
    %c0_97 = arith.constant 0 : index
    %210 = vector.load %arg12[%c1_95, %c0_96, %c0_97] : memref<4x32x64xbf16, #tpu.memory_space<vmem>>, vector<1x32x64xbf16>
    %211 = vector.shape_cast %210 : vector<1x32x64xbf16> to vector<32x64xbf16>
    %c1_98 = arith.constant 1 : index
    %c0_99 = arith.constant 0 : index
    %c0_100 = arith.constant 0 : index
    %212 = vector.load %arg13[%c1_98, %c0_99, %c0_100] : memref<4x1x64xf32, #tpu.memory_space<vmem>>, vector<1x1x64xf32>
    %213 = vector.shape_cast %212 : vector<1x1x64xf32> to vector<1x64xf32>
    %c1_101 = arith.constant 1 : index
    %c0_102 = arith.constant 0 : index
    %c0_103 = arith.constant 0 : index
    %214 = vector.load %arg14[%c1_101, %c0_102, %c0_103] : memref<4x64x32xbf16, #tpu.memory_space<vmem>>, vector<1x64x32xbf16>
    %215 = vector.shape_cast %214 : vector<1x64x32xbf16> to vector<64x32xbf16>
    %c1_104 = arith.constant 1 : index
    %c0_105 = arith.constant 0 : index
    %c0_106 = arith.constant 0 : index
    %216 = vector.load %arg15[%c1_104, %c0_105, %c0_106] : memref<4x1x32xf32, #tpu.memory_space<vmem>>, vector<1x1x32xf32>
    %217 = vector.shape_cast %216 : vector<1x1x32xf32> to vector<1x32xf32>
    %c1_107 = arith.constant 1 : index
    %c0_108 = arith.constant 0 : index
    %c0_109 = arith.constant 0 : index
    %218 = vector.load %arg16[%c1_107, %c0_108, %c0_109] : memref<4x1x32xf32, #tpu.memory_space<vmem>>, vector<1x1x32xf32>
    %219 = vector.shape_cast %218 : vector<1x1x32xf32> to vector<1x32xf32>
    %c1_110 = arith.constant 1 : index
    %c0_111 = arith.constant 0 : index
    %c0_112 = arith.constant 0 : index
    %220 = vector.load %arg17[%c1_110, %c0_111, %c0_112] : memref<4x1x32xf32, #tpu.memory_space<vmem>>, vector<1x1x32xf32>
    %221 = vector.shape_cast %220 : vector<1x1x32xf32> to vector<1x32xf32>
    %222 = vector.shape_cast %197 : vector<8x32xf32> to vector<2x4x32xf32>
    %223 = vector.shape_cast %3 : vector<2x32xf32> to vector<2x1x32xf32>
    %224 = tpu.concatenate %222, %223 in 1 : vector<2x4x32xf32>, vector<2x1x32xf32> -> vector<2x5x32xf32>
    %225 = vector.shape_cast %224 : vector<2x5x32xf32> to vector<10x32xf32>
    %226 = arith.truncf %225 : vector<10x32xf32> to vector<10x32xbf16>
    %cst_113 = arith.constant dense<0.000000e+00> : vector<10x96xf32>
    %227 = tpu.matmul %226, %199, %cst_113 {dimension_numbers = #tpu.dot_dimension_numbers<[1], [0], [0], [1], [0, 0, 1, 1], [], []>} : vector<10x32xbf16>, vector<32x96xbf16>, vector<10x96xf32> -> vector<10x96xf32>
    %228 = vector.broadcast %201 : vector<1x96xf32> to vector<10x96xf32>
    %229 = arith.addf %227, %228 : vector<10x96xf32>
    %230 = vector.extract_strided_slice %229 {offsets = [0, 0], sizes = [10, 32], strides = [1, 1]} : vector<10x96xf32> to vector<10x32xf32>
    %231 = vector.extract_strided_slice %229 {offsets = [0, 32], sizes = [10, 32], strides = [1, 1]} : vector<10x96xf32> to vector<10x32xf32>
    %232 = arith.truncf %231 : vector<10x32xf32> to vector<10x32xbf16>
    %233 = vector.extract_strided_slice %229 {offsets = [0, 64], sizes = [10, 32], strides = [1, 1]} : vector<10x96xf32> to vector<10x32xf32>
    %234 = vector.extract_strided_slice %0 {offsets = [0, 0, 0], sizes = [1, 1, 32], strides = [1, 1, 1]} : vector<4x1x32xf32> to vector<1x1x32xf32>
    %235 = vector.shape_cast %234 : vector<1x1x32xf32> to vector<1x32xf32>
    %236 = vector.broadcast %235 : vector<1x32xf32> to vector<10x32xf32>
    %237 = arith.mulf %230, %236 : vector<10x32xf32>
    %238 = arith.truncf %237 : vector<10x32xf32> to vector<10x32xbf16>
    %cst_114 = arith.constant dense<0.000000e+00> : vector<10x10xf32>
    %239 = tpu.matmul %238, %232, %cst_114 {dimension_numbers = #tpu.dot_dimension_numbers<[1], [1], [0], [0], [0, 0, 1, 0], [], []>} : vector<10x32xbf16>, vector<10x32xbf16>, vector<10x10xf32> -> vector<10x10xf32>
    %240 = arith.addf %239, %5 : vector<10x10xf32>
    %cst_115 = arith.constant dense<0xFF800000> : vector<10xf32>
    %241 = vector.multi_reduction <maximumf>, %240, %cst_115 [1] : vector<10x10xf32> to vector<10xf32>
    %242 = vector.shape_cast %241 : vector<10xf32> to vector<10x1xf32>
    %243 = vector.broadcast %242 : vector<10x1xf32> to vector<10x10xf32>
    %244 = arith.subf %240, %243 : vector<10x10xf32>
    %245 = math.exp %244 : vector<10x10xf32>
    %cst_116 = arith.constant dense<0.000000e+00> : vector<10xf32>
    %246 = vector.multi_reduction <add>, %245, %cst_116 [1] : vector<10x10xf32> to vector<10xf32>
    %247 = vector.shape_cast %246 : vector<10xf32> to vector<10x1xf32>
    %248 = tpu.reciprocal %247 {approx = true} : vector<10x1xf32> -> vector<10x1xf32>
    %249 = vector.broadcast %248 : vector<10x1xf32> to vector<10x10xf32>
    %250 = arith.mulf %245, %249 : vector<10x10xf32>
    %251 = vector.broadcast %235 : vector<1x32xf32> to vector<10x32xf32>
    %252 = arith.mulf %233, %251 : vector<10x32xf32>
    %253 = arith.truncf %252 : vector<10x32xf32> to vector<10x32xbf16>
    %254 = arith.truncf %250 : vector<10x10xf32> to vector<10x10xbf16>
    %cst_117 = arith.constant dense<0.000000e+00> : vector<10x32xf32>
    %255 = tpu.matmul %254, %253, %cst_117 {dimension_numbers = #tpu.dot_dimension_numbers<[1], [0], [0], [1], [0, 0, 1, 1], [], []>} : vector<10x10xbf16>, vector<10x32xbf16>, vector<10x32xf32> -> vector<10x32xf32>
    %256 = vector.extract_strided_slice %0 {offsets = [1, 0, 0], sizes = [1, 1, 32], strides = [1, 1, 1]} : vector<4x1x32xf32> to vector<1x1x32xf32>
    %257 = vector.shape_cast %256 : vector<1x1x32xf32> to vector<1x32xf32>
    %258 = vector.broadcast %257 : vector<1x32xf32> to vector<10x32xf32>
    %259 = arith.mulf %230, %258 : vector<10x32xf32>
    %260 = arith.truncf %259 : vector<10x32xf32> to vector<10x32xbf16>
    %cst_118 = arith.constant dense<0.000000e+00> : vector<10x10xf32>
    %261 = tpu.matmul %260, %232, %cst_118 {dimension_numbers = #tpu.dot_dimension_numbers<[1], [1], [0], [0], [0, 0, 1, 0], [], []>} : vector<10x32xbf16>, vector<10x32xbf16>, vector<10x10xf32> -> vector<10x10xf32>
    %262 = arith.addf %261, %5 : vector<10x10xf32>
    %cst_119 = arith.constant dense<0xFF800000> : vector<10xf32>
    %263 = vector.multi_reduction <maximumf>, %262, %cst_119 [1] : vector<10x10xf32> to vector<10xf32>
    %264 = vector.shape_cast %263 : vector<10xf32> to vector<10x1xf32>
    %265 = vector.broadcast %264 : vector<10x1xf32> to vector<10x10xf32>
    %266 = arith.subf %262, %265 : vector<10x10xf32>
    %267 = math.exp %266 : vector<10x10xf32>
    %cst_120 = arith.constant dense<0.000000e+00> : vector<10xf32>
    %268 = vector.multi_reduction <add>, %267, %cst_120 [1] : vector<10x10xf32> to vector<10xf32>
    %269 = vector.shape_cast %268 : vector<10xf32> to vector<10x1xf32>
    %270 = tpu.reciprocal %269 {approx = true} : vector<10x1xf32> -> vector<10x1xf32>
    %271 = vector.broadcast %270 : vector<10x1xf32> to vector<10x10xf32>
    %272 = arith.mulf %267, %271 : vector<10x10xf32>
    %273 = vector.broadcast %257 : vector<1x32xf32> to vector<10x32xf32>
    %274 = arith.mulf %233, %273 : vector<10x32xf32>
    %275 = arith.truncf %274 : vector<10x32xf32> to vector<10x32xbf16>
    %276 = arith.truncf %272 : vector<10x10xf32> to vector<10x10xbf16>
    %cst_121 = arith.constant dense<0.000000e+00> : vector<10x32xf32>
    %277 = tpu.matmul %276, %275, %cst_121 {dimension_numbers = #tpu.dot_dimension_numbers<[1], [0], [0], [1], [0, 0, 1, 1], [], []>} : vector<10x10xbf16>, vector<10x32xbf16>, vector<10x32xf32> -> vector<10x32xf32>
    %278 = arith.addf %255, %277 : vector<10x32xf32>
    %279 = vector.extract_strided_slice %0 {offsets = [2, 0, 0], sizes = [1, 1, 32], strides = [1, 1, 1]} : vector<4x1x32xf32> to vector<1x1x32xf32>
    %280 = vector.shape_cast %279 : vector<1x1x32xf32> to vector<1x32xf32>
    %281 = vector.broadcast %280 : vector<1x32xf32> to vector<10x32xf32>
    %282 = arith.mulf %230, %281 : vector<10x32xf32>
    %283 = arith.truncf %282 : vector<10x32xf32> to vector<10x32xbf16>
    %cst_122 = arith.constant dense<0.000000e+00> : vector<10x10xf32>
    %284 = tpu.matmul %283, %232, %cst_122 {dimension_numbers = #tpu.dot_dimension_numbers<[1], [1], [0], [0], [0, 0, 1, 0], [], []>} : vector<10x32xbf16>, vector<10x32xbf16>, vector<10x10xf32> -> vector<10x10xf32>
    %285 = arith.addf %284, %5 : vector<10x10xf32>
    %cst_123 = arith.constant dense<0xFF800000> : vector<10xf32>
    %286 = vector.multi_reduction <maximumf>, %285, %cst_123 [1] : vector<10x10xf32> to vector<10xf32>
    %287 = vector.shape_cast %286 : vector<10xf32> to vector<10x1xf32>
    %288 = vector.broadcast %287 : vector<10x1xf32> to vector<10x10xf32>
    %289 = arith.subf %285, %288 : vector<10x10xf32>
    %290 = math.exp %289 : vector<10x10xf32>
    %cst_124 = arith.constant dense<0.000000e+00> : vector<10xf32>
    %291 = vector.multi_reduction <add>, %290, %cst_124 [1] : vector<10x10xf32> to vector<10xf32>
    %292 = vector.shape_cast %291 : vector<10xf32> to vector<10x1xf32>
    %293 = tpu.reciprocal %292 {approx = true} : vector<10x1xf32> -> vector<10x1xf32>
    %294 = vector.broadcast %293 : vector<10x1xf32> to vector<10x10xf32>
    %295 = arith.mulf %290, %294 : vector<10x10xf32>
    %296 = vector.broadcast %280 : vector<1x32xf32> to vector<10x32xf32>
    %297 = arith.mulf %233, %296 : vector<10x32xf32>
    %298 = arith.truncf %297 : vector<10x32xf32> to vector<10x32xbf16>
    %299 = arith.truncf %295 : vector<10x10xf32> to vector<10x10xbf16>
    %cst_125 = arith.constant dense<0.000000e+00> : vector<10x32xf32>
    %300 = tpu.matmul %299, %298, %cst_125 {dimension_numbers = #tpu.dot_dimension_numbers<[1], [0], [0], [1], [0, 0, 1, 1], [], []>} : vector<10x10xbf16>, vector<10x32xbf16>, vector<10x32xf32> -> vector<10x32xf32>
    %301 = arith.addf %278, %300 : vector<10x32xf32>
    %302 = vector.extract_strided_slice %0 {offsets = [3, 0, 0], sizes = [1, 1, 32], strides = [1, 1, 1]} : vector<4x1x32xf32> to vector<1x1x32xf32>
    %303 = vector.shape_cast %302 : vector<1x1x32xf32> to vector<1x32xf32>
    %304 = vector.broadcast %303 : vector<1x32xf32> to vector<10x32xf32>
    %305 = arith.mulf %230, %304 : vector<10x32xf32>
    %306 = arith.truncf %305 : vector<10x32xf32> to vector<10x32xbf16>
    %cst_126 = arith.constant dense<0.000000e+00> : vector<10x10xf32>
    %307 = tpu.matmul %306, %232, %cst_126 {dimension_numbers = #tpu.dot_dimension_numbers<[1], [1], [0], [0], [0, 0, 1, 0], [], []>} : vector<10x32xbf16>, vector<10x32xbf16>, vector<10x10xf32> -> vector<10x10xf32>
    %308 = arith.addf %307, %5 : vector<10x10xf32>
    %cst_127 = arith.constant dense<0xFF800000> : vector<10xf32>
    %309 = vector.multi_reduction <maximumf>, %308, %cst_127 [1] : vector<10x10xf32> to vector<10xf32>
    %310 = vector.shape_cast %309 : vector<10xf32> to vector<10x1xf32>
    %311 = vector.broadcast %310 : vector<10x1xf32> to vector<10x10xf32>
    %312 = arith.subf %308, %311 : vector<10x10xf32>
    %313 = math.exp %312 : vector<10x10xf32>
    %cst_128 = arith.constant dense<0.000000e+00> : vector<10xf32>
    %314 = vector.multi_reduction <add>, %313, %cst_128 [1] : vector<10x10xf32> to vector<10xf32>
    %315 = vector.shape_cast %314 : vector<10xf32> to vector<10x1xf32>
    %316 = tpu.reciprocal %315 {approx = true} : vector<10x1xf32> -> vector<10x1xf32>
    %317 = vector.broadcast %316 : vector<10x1xf32> to vector<10x10xf32>
    %318 = arith.mulf %313, %317 : vector<10x10xf32>
    %319 = vector.broadcast %303 : vector<1x32xf32> to vector<10x32xf32>
    %320 = arith.mulf %233, %319 : vector<10x32xf32>
    %321 = arith.truncf %320 : vector<10x32xf32> to vector<10x32xbf16>
    %322 = arith.truncf %318 : vector<10x10xf32> to vector<10x10xbf16>
    %cst_129 = arith.constant dense<0.000000e+00> : vector<10x32xf32>
    %323 = tpu.matmul %322, %321, %cst_129 {dimension_numbers = #tpu.dot_dimension_numbers<[1], [0], [0], [1], [0, 0, 1, 1], [], []>} : vector<10x10xbf16>, vector<10x32xbf16>, vector<10x32xf32> -> vector<10x32xf32>
    %324 = arith.addf %301, %323 : vector<10x32xf32>
    %325 = arith.truncf %324 : vector<10x32xf32> to vector<10x32xbf16>
    %cst_130 = arith.constant dense<0.000000e+00> : vector<10x32xf32>
    %326 = tpu.matmul %325, %203, %cst_130 {dimension_numbers = #tpu.dot_dimension_numbers<[1], [0], [0], [1], [0, 0, 1, 1], [], []>} : vector<10x32xbf16>, vector<32x32xbf16>, vector<10x32xf32> -> vector<10x32xf32>
    %327 = vector.broadcast %205 : vector<1x32xf32> to vector<10x32xf32>
    %328 = arith.addf %326, %327 : vector<10x32xf32>
    %329 = arith.addf %225, %328 : vector<10x32xf32>
    %cst_131 = arith.constant dense<0.000000e+00> : vector<10xf32>
    %330 = vector.multi_reduction <add>, %329, %cst_131 [1] : vector<10x32xf32> to vector<10xf32>
    %331 = vector.shape_cast %330 : vector<10xf32> to vector<10x1xf32>
    %cst_132 = arith.constant 3.200000e+01 : f32
    %332 = vector.broadcast %cst_132 : f32 to vector<10x1xf32>
    %333 = arith.divf %331, %332 : vector<10x1xf32>
    %334 = vector.broadcast %333 : vector<10x1xf32> to vector<10x32xf32>
    %335 = arith.subf %329, %334 : vector<10x32xf32>
    %336 = arith.mulf %335, %335 : vector<10x32xf32>
    %cst_133 = arith.constant dense<0.000000e+00> : vector<10xf32>
    %337 = vector.multi_reduction <add>, %336, %cst_133 [1] : vector<10x32xf32> to vector<10xf32>
    %338 = vector.shape_cast %337 : vector<10xf32> to vector<10x1xf32>
    %cst_134 = arith.constant 3.200000e+01 : f32
    %339 = vector.broadcast %cst_134 : f32 to vector<10x1xf32>
    %340 = arith.divf %338, %339 : vector<10x1xf32>
    %cst_135 = arith.constant 9.99999974E-6 : f32
    %341 = vector.broadcast %cst_135 : f32 to vector<10x1xf32>
    %342 = arith.addf %340, %341 : vector<10x1xf32>
    %343 = math.rsqrt %342 : vector<10x1xf32>
    %344 = vector.broadcast %343 : vector<10x1xf32> to vector<10x32xf32>
    %345 = arith.mulf %335, %344 : vector<10x32xf32>
    %346 = vector.broadcast %207 : vector<1x32xf32> to vector<10x32xf32>
    %347 = arith.mulf %345, %346 : vector<10x32xf32>
    %348 = vector.broadcast %209 : vector<1x32xf32> to vector<10x32xf32>
    %349 = arith.addf %347, %348 : vector<10x32xf32>
    %350 = arith.truncf %349 : vector<10x32xf32> to vector<10x32xbf16>
    %cst_136 = arith.constant dense<0.000000e+00> : vector<10x64xf32>
    %351 = tpu.matmul %350, %211, %cst_136 {dimension_numbers = #tpu.dot_dimension_numbers<[1], [0], [0], [1], [0, 0, 1, 1], [], []>} : vector<10x32xbf16>, vector<32x64xbf16>, vector<10x64xf32> -> vector<10x64xf32>
    %352 = vector.broadcast %213 : vector<1x64xf32> to vector<10x64xf32>
    %353 = arith.addf %351, %352 : vector<10x64xf32>
    %cst_137 = arith.constant 0.000000e+00 : f32
    %354 = vector.broadcast %cst_137 : f32 to vector<10x64xf32>
    %355 = arith.maximumf %353, %354 : vector<10x64xf32>
    %356 = arith.truncf %355 : vector<10x64xf32> to vector<10x64xbf16>
    %cst_138 = arith.constant dense<0.000000e+00> : vector<10x32xf32>
    %357 = tpu.matmul %356, %215, %cst_138 {dimension_numbers = #tpu.dot_dimension_numbers<[1], [0], [0], [1], [0, 0, 1, 1], [], []>} : vector<10x64xbf16>, vector<64x32xbf16>, vector<10x32xf32> -> vector<10x32xf32>
    %358 = vector.broadcast %217 : vector<1x32xf32> to vector<10x32xf32>
    %359 = arith.addf %357, %358 : vector<10x32xf32>
    %360 = arith.addf %349, %359 : vector<10x32xf32>
    %cst_139 = arith.constant dense<0.000000e+00> : vector<10xf32>
    %361 = vector.multi_reduction <add>, %360, %cst_139 [1] : vector<10x32xf32> to vector<10xf32>
    %362 = vector.shape_cast %361 : vector<10xf32> to vector<10x1xf32>
    %cst_140 = arith.constant 3.200000e+01 : f32
    %363 = vector.broadcast %cst_140 : f32 to vector<10x1xf32>
    %364 = arith.divf %362, %363 : vector<10x1xf32>
    %365 = vector.broadcast %364 : vector<10x1xf32> to vector<10x32xf32>
    %366 = arith.subf %360, %365 : vector<10x32xf32>
    %367 = arith.mulf %366, %366 : vector<10x32xf32>
    %cst_141 = arith.constant dense<0.000000e+00> : vector<10xf32>
    %368 = vector.multi_reduction <add>, %367, %cst_141 [1] : vector<10x32xf32> to vector<10xf32>
    %369 = vector.shape_cast %368 : vector<10xf32> to vector<10x1xf32>
    %cst_142 = arith.constant 3.200000e+01 : f32
    %370 = vector.broadcast %cst_142 : f32 to vector<10x1xf32>
    %371 = arith.divf %369, %370 : vector<10x1xf32>
    %cst_143 = arith.constant 9.99999974E-6 : f32
    %372 = vector.broadcast %cst_143 : f32 to vector<10x1xf32>
    %373 = arith.addf %371, %372 : vector<10x1xf32>
    %374 = math.rsqrt %373 : vector<10x1xf32>
    %375 = vector.broadcast %374 : vector<10x1xf32> to vector<10x32xf32>
    %376 = arith.mulf %366, %375 : vector<10x32xf32>
    %377 = vector.broadcast %219 : vector<1x32xf32> to vector<10x32xf32>
    %378 = arith.mulf %376, %377 : vector<10x32xf32>
    %379 = vector.broadcast %221 : vector<1x32xf32> to vector<10x32xf32>
    %380 = arith.addf %378, %379 : vector<10x32xf32>
    %381 = vector.shape_cast %380 : vector<10x32xf32> to vector<2x5x32xf32>
    %382 = vector.extract_strided_slice %381 {offsets = [0, 0, 0], sizes = [2, 4, 32], strides = [1, 1, 1]} : vector<2x5x32xf32> to vector<2x4x32xf32>
    %383 = vector.shape_cast %382 : vector<2x4x32xf32> to vector<8x32xf32>
    %384 = vector.extract_strided_slice %381 {offsets = [0, 4, 0], sizes = [2, 1, 32], strides = [1, 1, 1]} : vector<2x5x32xf32> to vector<2x1x32xf32>
    %385 = vector.shape_cast %384 : vector<2x1x32xf32> to vector<2x32xf32>
    %c2 = arith.constant 2 : index
    %c0_144 = arith.constant 0 : index
    %c0_145 = arith.constant 0 : index
    %386 = vector.load %arg6[%c2, %c0_144, %c0_145] : memref<4x32x96xbf16, #tpu.memory_space<vmem>>, vector<1x32x96xbf16>
    %387 = vector.shape_cast %386 : vector<1x32x96xbf16> to vector<32x96xbf16>
    %c2_146 = arith.constant 2 : index
    %c0_147 = arith.constant 0 : index
    %c0_148 = arith.constant 0 : index
    %388 = vector.load %arg7[%c2_146, %c0_147, %c0_148] : memref<4x1x96xf32, #tpu.memory_space<vmem>>, vector<1x1x96xf32>
    %389 = vector.shape_cast %388 : vector<1x1x96xf32> to vector<1x96xf32>
    %c2_149 = arith.constant 2 : index
    %c0_150 = arith.constant 0 : index
    %c0_151 = arith.constant 0 : index
    %390 = vector.load %arg8[%c2_149, %c0_150, %c0_151] : memref<4x32x32xbf16, #tpu.memory_space<vmem>>, vector<1x32x32xbf16>
    %391 = vector.shape_cast %390 : vector<1x32x32xbf16> to vector<32x32xbf16>
    %c2_152 = arith.constant 2 : index
    %c0_153 = arith.constant 0 : index
    %c0_154 = arith.constant 0 : index
    %392 = vector.load %arg9[%c2_152, %c0_153, %c0_154] : memref<4x1x32xf32, #tpu.memory_space<vmem>>, vector<1x1x32xf32>
    %393 = vector.shape_cast %392 : vector<1x1x32xf32> to vector<1x32xf32>
    %c2_155 = arith.constant 2 : index
    %c0_156 = arith.constant 0 : index
    %c0_157 = arith.constant 0 : index
    %394 = vector.load %arg10[%c2_155, %c0_156, %c0_157] : memref<4x1x32xf32, #tpu.memory_space<vmem>>, vector<1x1x32xf32>
    %395 = vector.shape_cast %394 : vector<1x1x32xf32> to vector<1x32xf32>
    %c2_158 = arith.constant 2 : index
    %c0_159 = arith.constant 0 : index
    %c0_160 = arith.constant 0 : index
    %396 = vector.load %arg11[%c2_158, %c0_159, %c0_160] : memref<4x1x32xf32, #tpu.memory_space<vmem>>, vector<1x1x32xf32>
    %397 = vector.shape_cast %396 : vector<1x1x32xf32> to vector<1x32xf32>
    %c2_161 = arith.constant 2 : index
    %c0_162 = arith.constant 0 : index
    %c0_163 = arith.constant 0 : index
    %398 = vector.load %arg12[%c2_161, %c0_162, %c0_163] : memref<4x32x64xbf16, #tpu.memory_space<vmem>>, vector<1x32x64xbf16>
    %399 = vector.shape_cast %398 : vector<1x32x64xbf16> to vector<32x64xbf16>
    %c2_164 = arith.constant 2 : index
    %c0_165 = arith.constant 0 : index
    %c0_166 = arith.constant 0 : index
    %400 = vector.load %arg13[%c2_164, %c0_165, %c0_166] : memref<4x1x64xf32, #tpu.memory_space<vmem>>, vector<1x1x64xf32>
    %401 = vector.shape_cast %400 : vector<1x1x64xf32> to vector<1x64xf32>
    %c2_167 = arith.constant 2 : index
    %c0_168 = arith.constant 0 : index
    %c0_169 = arith.constant 0 : index
    %402 = vector.load %arg14[%c2_167, %c0_168, %c0_169] : memref<4x64x32xbf16, #tpu.memory_space<vmem>>, vector<1x64x32xbf16>
    %403 = vector.shape_cast %402 : vector<1x64x32xbf16> to vector<64x32xbf16>
    %c2_170 = arith.constant 2 : index
    %c0_171 = arith.constant 0 : index
    %c0_172 = arith.constant 0 : index
    %404 = vector.load %arg15[%c2_170, %c0_171, %c0_172] : memref<4x1x32xf32, #tpu.memory_space<vmem>>, vector<1x1x32xf32>
    %405 = vector.shape_cast %404 : vector<1x1x32xf32> to vector<1x32xf32>
    %c2_173 = arith.constant 2 : index
    %c0_174 = arith.constant 0 : index
    %c0_175 = arith.constant 0 : index
    %406 = vector.load %arg16[%c2_173, %c0_174, %c0_175] : memref<4x1x32xf32, #tpu.memory_space<vmem>>, vector<1x1x32xf32>
    %407 = vector.shape_cast %406 : vector<1x1x32xf32> to vector<1x32xf32>
    %c2_176 = arith.constant 2 : index
    %c0_177 = arith.constant 0 : index
    %c0_178 = arith.constant 0 : index
    %408 = vector.load %arg17[%c2_176, %c0_177, %c0_178] : memref<4x1x32xf32, #tpu.memory_space<vmem>>, vector<1x1x32xf32>
    %409 = vector.shape_cast %408 : vector<1x1x32xf32> to vector<1x32xf32>
    %410 = vector.shape_cast %195 : vector<32x32xf32> to vector<8x4x32xf32>
    %411 = vector.shape_cast %383 : vector<8x32xf32> to vector<8x1x32xf32>
    %412 = vector.shape_cast %385 : vector<2x32xf32> to vector<2x1x32xf32>
    %413 = vector.shape_cast %412 : vector<2x1x32xf32> to vector<2x1x32xf32>
    %414 = vector.broadcast %413 : vector<2x1x32xf32> to vector<2x4x32xf32>
    %415 = vector.shape_cast %414 : vector<2x4x32xf32> to vector<8x1x32xf32>
    %416 = tpu.concatenate %410, %411, %415 in 1 : vector<8x4x32xf32>, vector<8x1x32xf32>, vector<8x1x32xf32> -> vector<8x6x32xf32>
    %417 = vector.shape_cast %416 : vector<8x6x32xf32> to vector<48x32xf32>
    %418 = arith.truncf %417 : vector<48x32xf32> to vector<48x32xbf16>
    %cst_179 = arith.constant dense<0.000000e+00> : vector<48x96xf32>
    %419 = tpu.matmul %418, %387, %cst_179 {dimension_numbers = #tpu.dot_dimension_numbers<[1], [0], [0], [1], [0, 0, 1, 1], [], []>} : vector<48x32xbf16>, vector<32x96xbf16>, vector<48x96xf32> -> vector<48x96xf32>
    %420 = vector.broadcast %389 : vector<1x96xf32> to vector<48x96xf32>
    %421 = arith.addf %419, %420 : vector<48x96xf32>
    %422 = vector.extract_strided_slice %421 {offsets = [0, 0], sizes = [48, 32], strides = [1, 1]} : vector<48x96xf32> to vector<48x32xf32>
    %423 = vector.extract_strided_slice %421 {offsets = [0, 32], sizes = [48, 32], strides = [1, 1]} : vector<48x96xf32> to vector<48x32xf32>
    %424 = arith.truncf %423 : vector<48x32xf32> to vector<48x32xbf16>
    %425 = vector.extract_strided_slice %421 {offsets = [0, 64], sizes = [48, 32], strides = [1, 1]} : vector<48x96xf32> to vector<48x32xf32>
    %426 = vector.extract_strided_slice %0 {offsets = [0, 0, 0], sizes = [1, 1, 32], strides = [1, 1, 1]} : vector<4x1x32xf32> to vector<1x1x32xf32>
    %427 = vector.shape_cast %426 : vector<1x1x32xf32> to vector<1x32xf32>
    %428 = vector.broadcast %427 : vector<1x32xf32> to vector<48x32xf32>
    %429 = arith.mulf %422, %428 : vector<48x32xf32>
    %430 = arith.truncf %429 : vector<48x32xf32> to vector<48x32xbf16>
    %cst_180 = arith.constant dense<0.000000e+00> : vector<48x48xf32>
    %431 = tpu.matmul %430, %424, %cst_180 {dimension_numbers = #tpu.dot_dimension_numbers<[1], [1], [0], [0], [0, 0, 1, 0], [], []>} : vector<48x32xbf16>, vector<48x32xbf16>, vector<48x48xf32> -> vector<48x48xf32>
    %432 = arith.addf %431, %4 : vector<48x48xf32>
    %cst_181 = arith.constant dense<0xFF800000> : vector<48xf32>
    %433 = vector.multi_reduction <maximumf>, %432, %cst_181 [1] : vector<48x48xf32> to vector<48xf32>
    %434 = vector.shape_cast %433 : vector<48xf32> to vector<48x1xf32>
    %435 = vector.broadcast %434 : vector<48x1xf32> to vector<48x48xf32>
    %436 = arith.subf %432, %435 : vector<48x48xf32>
    %437 = math.exp %436 : vector<48x48xf32>
    %cst_182 = arith.constant dense<0.000000e+00> : vector<48xf32>
    %438 = vector.multi_reduction <add>, %437, %cst_182 [1] : vector<48x48xf32> to vector<48xf32>
    %439 = vector.shape_cast %438 : vector<48xf32> to vector<48x1xf32>
    %440 = tpu.reciprocal %439 {approx = true} : vector<48x1xf32> -> vector<48x1xf32>
    %441 = vector.broadcast %440 : vector<48x1xf32> to vector<48x48xf32>
    %442 = arith.mulf %437, %441 : vector<48x48xf32>
    %443 = vector.broadcast %427 : vector<1x32xf32> to vector<48x32xf32>
    %444 = arith.mulf %425, %443 : vector<48x32xf32>
    %445 = arith.truncf %444 : vector<48x32xf32> to vector<48x32xbf16>
    %446 = arith.truncf %442 : vector<48x48xf32> to vector<48x48xbf16>
    %cst_183 = arith.constant dense<0.000000e+00> : vector<48x32xf32>
    %447 = tpu.matmul %446, %445, %cst_183 {dimension_numbers = #tpu.dot_dimension_numbers<[1], [0], [0], [1], [0, 0, 1, 1], [], []>} : vector<48x48xbf16>, vector<48x32xbf16>, vector<48x32xf32> -> vector<48x32xf32>
    %448 = vector.extract_strided_slice %0 {offsets = [1, 0, 0], sizes = [1, 1, 32], strides = [1, 1, 1]} : vector<4x1x32xf32> to vector<1x1x32xf32>
    %449 = vector.shape_cast %448 : vector<1x1x32xf32> to vector<1x32xf32>
    %450 = vector.broadcast %449 : vector<1x32xf32> to vector<48x32xf32>
    %451 = arith.mulf %422, %450 : vector<48x32xf32>
    %452 = arith.truncf %451 : vector<48x32xf32> to vector<48x32xbf16>
    %cst_184 = arith.constant dense<0.000000e+00> : vector<48x48xf32>
    %453 = tpu.matmul %452, %424, %cst_184 {dimension_numbers = #tpu.dot_dimension_numbers<[1], [1], [0], [0], [0, 0, 1, 0], [], []>} : vector<48x32xbf16>, vector<48x32xbf16>, vector<48x48xf32> -> vector<48x48xf32>
    %454 = arith.addf %453, %4 : vector<48x48xf32>
    %cst_185 = arith.constant dense<0xFF800000> : vector<48xf32>
    %455 = vector.multi_reduction <maximumf>, %454, %cst_185 [1] : vector<48x48xf32> to vector<48xf32>
    %456 = vector.shape_cast %455 : vector<48xf32> to vector<48x1xf32>
    %457 = vector.broadcast %456 : vector<48x1xf32> to vector<48x48xf32>
    %458 = arith.subf %454, %457 : vector<48x48xf32>
    %459 = math.exp %458 : vector<48x48xf32>
    %cst_186 = arith.constant dense<0.000000e+00> : vector<48xf32>
    %460 = vector.multi_reduction <add>, %459, %cst_186 [1] : vector<48x48xf32> to vector<48xf32>
    %461 = vector.shape_cast %460 : vector<48xf32> to vector<48x1xf32>
    %462 = tpu.reciprocal %461 {approx = true} : vector<48x1xf32> -> vector<48x1xf32>
    %463 = vector.broadcast %462 : vector<48x1xf32> to vector<48x48xf32>
    %464 = arith.mulf %459, %463 : vector<48x48xf32>
    %465 = vector.broadcast %449 : vector<1x32xf32> to vector<48x32xf32>
    %466 = arith.mulf %425, %465 : vector<48x32xf32>
    %467 = arith.truncf %466 : vector<48x32xf32> to vector<48x32xbf16>
    %468 = arith.truncf %464 : vector<48x48xf32> to vector<48x48xbf16>
    %cst_187 = arith.constant dense<0.000000e+00> : vector<48x32xf32>
    %469 = tpu.matmul %468, %467, %cst_187 {dimension_numbers = #tpu.dot_dimension_numbers<[1], [0], [0], [1], [0, 0, 1, 1], [], []>} : vector<48x48xbf16>, vector<48x32xbf16>, vector<48x32xf32> -> vector<48x32xf32>
    %470 = arith.addf %447, %469 : vector<48x32xf32>
    %471 = vector.extract_strided_slice %0 {offsets = [2, 0, 0], sizes = [1, 1, 32], strides = [1, 1, 1]} : vector<4x1x32xf32> to vector<1x1x32xf32>
    %472 = vector.shape_cast %471 : vector<1x1x32xf32> to vector<1x32xf32>
    %473 = vector.broadcast %472 : vector<1x32xf32> to vector<48x32xf32>
    %474 = arith.mulf %422, %473 : vector<48x32xf32>
    %475 = arith.truncf %474 : vector<48x32xf32> to vector<48x32xbf16>
    %cst_188 = arith.constant dense<0.000000e+00> : vector<48x48xf32>
    %476 = tpu.matmul %475, %424, %cst_188 {dimension_numbers = #tpu.dot_dimension_numbers<[1], [1], [0], [0], [0, 0, 1, 0], [], []>} : vector<48x32xbf16>, vector<48x32xbf16>, vector<48x48xf32> -> vector<48x48xf32>
    %477 = arith.addf %476, %4 : vector<48x48xf32>
    %cst_189 = arith.constant dense<0xFF800000> : vector<48xf32>
    %478 = vector.multi_reduction <maximumf>, %477, %cst_189 [1] : vector<48x48xf32> to vector<48xf32>
    %479 = vector.shape_cast %478 : vector<48xf32> to vector<48x1xf32>
    %480 = vector.broadcast %479 : vector<48x1xf32> to vector<48x48xf32>
    %481 = arith.subf %477, %480 : vector<48x48xf32>
    %482 = math.exp %481 : vector<48x48xf32>
    %cst_190 = arith.constant dense<0.000000e+00> : vector<48xf32>
    %483 = vector.multi_reduction <add>, %482, %cst_190 [1] : vector<48x48xf32> to vector<48xf32>
    %484 = vector.shape_cast %483 : vector<48xf32> to vector<48x1xf32>
    %485 = tpu.reciprocal %484 {approx = true} : vector<48x1xf32> -> vector<48x1xf32>
    %486 = vector.broadcast %485 : vector<48x1xf32> to vector<48x48xf32>
    %487 = arith.mulf %482, %486 : vector<48x48xf32>
    %488 = vector.broadcast %472 : vector<1x32xf32> to vector<48x32xf32>
    %489 = arith.mulf %425, %488 : vector<48x32xf32>
    %490 = arith.truncf %489 : vector<48x32xf32> to vector<48x32xbf16>
    %491 = arith.truncf %487 : vector<48x48xf32> to vector<48x48xbf16>
    %cst_191 = arith.constant dense<0.000000e+00> : vector<48x32xf32>
    %492 = tpu.matmul %491, %490, %cst_191 {dimension_numbers = #tpu.dot_dimension_numbers<[1], [0], [0], [1], [0, 0, 1, 1], [], []>} : vector<48x48xbf16>, vector<48x32xbf16>, vector<48x32xf32> -> vector<48x32xf32>
    %493 = arith.addf %470, %492 : vector<48x32xf32>
    %494 = vector.extract_strided_slice %0 {offsets = [3, 0, 0], sizes = [1, 1, 32], strides = [1, 1, 1]} : vector<4x1x32xf32> to vector<1x1x32xf32>
    %495 = vector.shape_cast %494 : vector<1x1x32xf32> to vector<1x32xf32>
    %496 = vector.broadcast %495 : vector<1x32xf32> to vector<48x32xf32>
    %497 = arith.mulf %422, %496 : vector<48x32xf32>
    %498 = arith.truncf %497 : vector<48x32xf32> to vector<48x32xbf16>
    %cst_192 = arith.constant dense<0.000000e+00> : vector<48x48xf32>
    %499 = tpu.matmul %498, %424, %cst_192 {dimension_numbers = #tpu.dot_dimension_numbers<[1], [1], [0], [0], [0, 0, 1, 0], [], []>} : vector<48x32xbf16>, vector<48x32xbf16>, vector<48x48xf32> -> vector<48x48xf32>
    %500 = arith.addf %499, %4 : vector<48x48xf32>
    %cst_193 = arith.constant dense<0xFF800000> : vector<48xf32>
    %501 = vector.multi_reduction <maximumf>, %500, %cst_193 [1] : vector<48x48xf32> to vector<48xf32>
    %502 = vector.shape_cast %501 : vector<48xf32> to vector<48x1xf32>
    %503 = vector.broadcast %502 : vector<48x1xf32> to vector<48x48xf32>
    %504 = arith.subf %500, %503 : vector<48x48xf32>
    %505 = math.exp %504 : vector<48x48xf32>
    %cst_194 = arith.constant dense<0.000000e+00> : vector<48xf32>
    %506 = vector.multi_reduction <add>, %505, %cst_194 [1] : vector<48x48xf32> to vector<48xf32>
    %507 = vector.shape_cast %506 : vector<48xf32> to vector<48x1xf32>
    %508 = tpu.reciprocal %507 {approx = true} : vector<48x1xf32> -> vector<48x1xf32>
    %509 = vector.broadcast %508 : vector<48x1xf32> to vector<48x48xf32>
    %510 = arith.mulf %505, %509 : vector<48x48xf32>
    %511 = vector.broadcast %495 : vector<1x32xf32> to vector<48x32xf32>
    %512 = arith.mulf %425, %511 : vector<48x32xf32>
    %513 = arith.truncf %512 : vector<48x32xf32> to vector<48x32xbf16>
    %514 = arith.truncf %510 : vector<48x48xf32> to vector<48x48xbf16>
    %cst_195 = arith.constant dense<0.000000e+00> : vector<48x32xf32>
    %515 = tpu.matmul %514, %513, %cst_195 {dimension_numbers = #tpu.dot_dimension_numbers<[1], [0], [0], [1], [0, 0, 1, 1], [], []>} : vector<48x48xbf16>, vector<48x32xbf16>, vector<48x32xf32> -> vector<48x32xf32>
    %516 = arith.addf %493, %515 : vector<48x32xf32>
    %517 = arith.truncf %516 : vector<48x32xf32> to vector<48x32xbf16>
    %cst_196 = arith.constant dense<0.000000e+00> : vector<48x32xf32>
    %518 = tpu.matmul %517, %391, %cst_196 {dimension_numbers = #tpu.dot_dimension_numbers<[1], [0], [0], [1], [0, 0, 1, 1], [], []>} : vector<48x32xbf16>, vector<32x32xbf16>, vector<48x32xf32> -> vector<48x32xf32>
    %519 = vector.broadcast %393 : vector<1x32xf32> to vector<48x32xf32>
    %520 = arith.addf %518, %519 : vector<48x32xf32>
    %521 = arith.addf %417, %520 : vector<48x32xf32>
    %cst_197 = arith.constant dense<0.000000e+00> : vector<48xf32>
    %522 = vector.multi_reduction <add>, %521, %cst_197 [1] : vector<48x32xf32> to vector<48xf32>
    %523 = vector.shape_cast %522 : vector<48xf32> to vector<48x1xf32>
    %cst_198 = arith.constant 3.200000e+01 : f32
    %524 = vector.broadcast %cst_198 : f32 to vector<48x1xf32>
    %525 = arith.divf %523, %524 : vector<48x1xf32>
    %526 = vector.broadcast %525 : vector<48x1xf32> to vector<48x32xf32>
    %527 = arith.subf %521, %526 : vector<48x32xf32>
    %528 = arith.mulf %527, %527 : vector<48x32xf32>
    %cst_199 = arith.constant dense<0.000000e+00> : vector<48xf32>
    %529 = vector.multi_reduction <add>, %528, %cst_199 [1] : vector<48x32xf32> to vector<48xf32>
    %530 = vector.shape_cast %529 : vector<48xf32> to vector<48x1xf32>
    %cst_200 = arith.constant 3.200000e+01 : f32
    %531 = vector.broadcast %cst_200 : f32 to vector<48x1xf32>
    %532 = arith.divf %530, %531 : vector<48x1xf32>
    %cst_201 = arith.constant 9.99999974E-6 : f32
    %533 = vector.broadcast %cst_201 : f32 to vector<48x1xf32>
    %534 = arith.addf %532, %533 : vector<48x1xf32>
    %535 = math.rsqrt %534 : vector<48x1xf32>
    %536 = vector.broadcast %535 : vector<48x1xf32> to vector<48x32xf32>
    %537 = arith.mulf %527, %536 : vector<48x32xf32>
    %538 = vector.broadcast %395 : vector<1x32xf32> to vector<48x32xf32>
    %539 = arith.mulf %537, %538 : vector<48x32xf32>
    %540 = vector.broadcast %397 : vector<1x32xf32> to vector<48x32xf32>
    %541 = arith.addf %539, %540 : vector<48x32xf32>
    %542 = arith.truncf %541 : vector<48x32xf32> to vector<48x32xbf16>
    %cst_202 = arith.constant dense<0.000000e+00> : vector<48x64xf32>
    %543 = tpu.matmul %542, %399, %cst_202 {dimension_numbers = #tpu.dot_dimension_numbers<[1], [0], [0], [1], [0, 0, 1, 1], [], []>} : vector<48x32xbf16>, vector<32x64xbf16>, vector<48x64xf32> -> vector<48x64xf32>
    %544 = vector.broadcast %401 : vector<1x64xf32> to vector<48x64xf32>
    %545 = arith.addf %543, %544 : vector<48x64xf32>
    %cst_203 = arith.constant 0.000000e+00 : f32
    %546 = vector.broadcast %cst_203 : f32 to vector<48x64xf32>
    %547 = arith.maximumf %545, %546 : vector<48x64xf32>
    %548 = arith.truncf %547 : vector<48x64xf32> to vector<48x64xbf16>
    %cst_204 = arith.constant dense<0.000000e+00> : vector<48x32xf32>
    %549 = tpu.matmul %548, %403, %cst_204 {dimension_numbers = #tpu.dot_dimension_numbers<[1], [0], [0], [1], [0, 0, 1, 1], [], []>} : vector<48x64xbf16>, vector<64x32xbf16>, vector<48x32xf32> -> vector<48x32xf32>
    %550 = vector.broadcast %405 : vector<1x32xf32> to vector<48x32xf32>
    %551 = arith.addf %549, %550 : vector<48x32xf32>
    %552 = arith.addf %541, %551 : vector<48x32xf32>
    %cst_205 = arith.constant dense<0.000000e+00> : vector<48xf32>
    %553 = vector.multi_reduction <add>, %552, %cst_205 [1] : vector<48x32xf32> to vector<48xf32>
    %554 = vector.shape_cast %553 : vector<48xf32> to vector<48x1xf32>
    %cst_206 = arith.constant 3.200000e+01 : f32
    %555 = vector.broadcast %cst_206 : f32 to vector<48x1xf32>
    %556 = arith.divf %554, %555 : vector<48x1xf32>
    %557 = vector.broadcast %556 : vector<48x1xf32> to vector<48x32xf32>
    %558 = arith.subf %552, %557 : vector<48x32xf32>
    %559 = arith.mulf %558, %558 : vector<48x32xf32>
    %cst_207 = arith.constant dense<0.000000e+00> : vector<48xf32>
    %560 = vector.multi_reduction <add>, %559, %cst_207 [1] : vector<48x32xf32> to vector<48xf32>
    %561 = vector.shape_cast %560 : vector<48xf32> to vector<48x1xf32>
    %cst_208 = arith.constant 3.200000e+01 : f32
    %562 = vector.broadcast %cst_208 : f32 to vector<48x1xf32>
    %563 = arith.divf %561, %562 : vector<48x1xf32>
    %cst_209 = arith.constant 9.99999974E-6 : f32
    %564 = vector.broadcast %cst_209 : f32 to vector<48x1xf32>
    %565 = arith.addf %563, %564 : vector<48x1xf32>
    %566 = math.rsqrt %565 : vector<48x1xf32>
    %567 = vector.broadcast %566 : vector<48x1xf32> to vector<48x32xf32>
    %568 = arith.mulf %558, %567 : vector<48x32xf32>
    %569 = vector.broadcast %407 : vector<1x32xf32> to vector<48x32xf32>
    %570 = arith.mulf %568, %569 : vector<48x32xf32>
    %571 = vector.broadcast %409 : vector<1x32xf32> to vector<48x32xf32>
    %572 = arith.addf %570, %571 : vector<48x32xf32>
    %573 = vector.shape_cast %572 : vector<48x32xf32> to vector<8x6x32xf32>
    %574 = vector.extract_strided_slice %573 {offsets = [0, 4, 0], sizes = [8, 1, 32], strides = [1, 1, 1]} : vector<8x6x32xf32> to vector<8x1x32xf32>
    %575 = vector.shape_cast %574 : vector<8x1x32xf32> to vector<8x32xf32>
    %c3 = arith.constant 3 : index
    %c0_210 = arith.constant 0 : index
    %c0_211 = arith.constant 0 : index
    %576 = vector.load %arg6[%c3, %c0_210, %c0_211] : memref<4x32x96xbf16, #tpu.memory_space<vmem>>, vector<1x32x96xbf16>
    %577 = vector.shape_cast %576 : vector<1x32x96xbf16> to vector<32x96xbf16>
    %c3_212 = arith.constant 3 : index
    %c0_213 = arith.constant 0 : index
    %c0_214 = arith.constant 0 : index
    %578 = vector.load %arg7[%c3_212, %c0_213, %c0_214] : memref<4x1x96xf32, #tpu.memory_space<vmem>>, vector<1x1x96xf32>
    %579 = vector.shape_cast %578 : vector<1x1x96xf32> to vector<1x96xf32>
    %c3_215 = arith.constant 3 : index
    %c0_216 = arith.constant 0 : index
    %c0_217 = arith.constant 0 : index
    %580 = vector.load %arg8[%c3_215, %c0_216, %c0_217] : memref<4x32x32xbf16, #tpu.memory_space<vmem>>, vector<1x32x32xbf16>
    %581 = vector.shape_cast %580 : vector<1x32x32xbf16> to vector<32x32xbf16>
    %c3_218 = arith.constant 3 : index
    %c0_219 = arith.constant 0 : index
    %c0_220 = arith.constant 0 : index
    %582 = vector.load %arg9[%c3_218, %c0_219, %c0_220] : memref<4x1x32xf32, #tpu.memory_space<vmem>>, vector<1x1x32xf32>
    %583 = vector.shape_cast %582 : vector<1x1x32xf32> to vector<1x32xf32>
    %c3_221 = arith.constant 3 : index
    %c0_222 = arith.constant 0 : index
    %c0_223 = arith.constant 0 : index
    %584 = vector.load %arg10[%c3_221, %c0_222, %c0_223] : memref<4x1x32xf32, #tpu.memory_space<vmem>>, vector<1x1x32xf32>
    %585 = vector.shape_cast %584 : vector<1x1x32xf32> to vector<1x32xf32>
    %c3_224 = arith.constant 3 : index
    %c0_225 = arith.constant 0 : index
    %c0_226 = arith.constant 0 : index
    %586 = vector.load %arg11[%c3_224, %c0_225, %c0_226] : memref<4x1x32xf32, #tpu.memory_space<vmem>>, vector<1x1x32xf32>
    %587 = vector.shape_cast %586 : vector<1x1x32xf32> to vector<1x32xf32>
    %c3_227 = arith.constant 3 : index
    %c0_228 = arith.constant 0 : index
    %c0_229 = arith.constant 0 : index
    %588 = vector.load %arg12[%c3_227, %c0_228, %c0_229] : memref<4x32x64xbf16, #tpu.memory_space<vmem>>, vector<1x32x64xbf16>
    %589 = vector.shape_cast %588 : vector<1x32x64xbf16> to vector<32x64xbf16>
    %c3_230 = arith.constant 3 : index
    %c0_231 = arith.constant 0 : index
    %c0_232 = arith.constant 0 : index
    %590 = vector.load %arg13[%c3_230, %c0_231, %c0_232] : memref<4x1x64xf32, #tpu.memory_space<vmem>>, vector<1x1x64xf32>
    %591 = vector.shape_cast %590 : vector<1x1x64xf32> to vector<1x64xf32>
    %c3_233 = arith.constant 3 : index
    %c0_234 = arith.constant 0 : index
    %c0_235 = arith.constant 0 : index
    %592 = vector.load %arg14[%c3_233, %c0_234, %c0_235] : memref<4x64x32xbf16, #tpu.memory_space<vmem>>, vector<1x64x32xbf16>
    %593 = vector.shape_cast %592 : vector<1x64x32xbf16> to vector<64x32xbf16>
    %c3_236 = arith.constant 3 : index
    %c0_237 = arith.constant 0 : index
    %c0_238 = arith.constant 0 : index
    %594 = vector.load %arg15[%c3_236, %c0_237, %c0_238] : memref<4x1x32xf32, #tpu.memory_space<vmem>>, vector<1x1x32xf32>
    %595 = vector.shape_cast %594 : vector<1x1x32xf32> to vector<1x32xf32>
    %c3_239 = arith.constant 3 : index
    %c0_240 = arith.constant 0 : index
    %c0_241 = arith.constant 0 : index
    %596 = vector.load %arg16[%c3_239, %c0_240, %c0_241] : memref<4x1x32xf32, #tpu.memory_space<vmem>>, vector<1x1x32xf32>
    %597 = vector.shape_cast %596 : vector<1x1x32xf32> to vector<1x32xf32>
    %c3_242 = arith.constant 3 : index
    %c0_243 = arith.constant 0 : index
    %c0_244 = arith.constant 0 : index
    %598 = vector.load %arg17[%c3_242, %c0_243, %c0_244] : memref<4x1x32xf32, #tpu.memory_space<vmem>>, vector<1x1x32xf32>
    %599 = vector.shape_cast %598 : vector<1x1x32xf32> to vector<1x32xf32>
    %600 = vector.shape_cast %575 : vector<8x32xf32> to vector<2x4x32xf32>
    %601 = vector.shape_cast %385 : vector<2x32xf32> to vector<2x1x32xf32>
    %602 = tpu.concatenate %600, %601 in 1 : vector<2x4x32xf32>, vector<2x1x32xf32> -> vector<2x5x32xf32>
    %603 = vector.shape_cast %602 : vector<2x5x32xf32> to vector<10x32xf32>
    %604 = arith.truncf %603 : vector<10x32xf32> to vector<10x32xbf16>
    %cst_245 = arith.constant dense<0.000000e+00> : vector<10x96xf32>
    %605 = tpu.matmul %604, %577, %cst_245 {dimension_numbers = #tpu.dot_dimension_numbers<[1], [0], [0], [1], [0, 0, 1, 1], [], []>} : vector<10x32xbf16>, vector<32x96xbf16>, vector<10x96xf32> -> vector<10x96xf32>
    %606 = vector.broadcast %579 : vector<1x96xf32> to vector<10x96xf32>
    %607 = arith.addf %605, %606 : vector<10x96xf32>
    %608 = vector.extract_strided_slice %607 {offsets = [0, 0], sizes = [10, 32], strides = [1, 1]} : vector<10x96xf32> to vector<10x32xf32>
    %609 = vector.extract_strided_slice %607 {offsets = [0, 32], sizes = [10, 32], strides = [1, 1]} : vector<10x96xf32> to vector<10x32xf32>
    %610 = arith.truncf %609 : vector<10x32xf32> to vector<10x32xbf16>
    %611 = vector.extract_strided_slice %607 {offsets = [0, 64], sizes = [10, 32], strides = [1, 1]} : vector<10x96xf32> to vector<10x32xf32>
    %612 = vector.extract_strided_slice %0 {offsets = [0, 0, 0], sizes = [1, 1, 32], strides = [1, 1, 1]} : vector<4x1x32xf32> to vector<1x1x32xf32>
    %613 = vector.shape_cast %612 : vector<1x1x32xf32> to vector<1x32xf32>
    %614 = vector.broadcast %613 : vector<1x32xf32> to vector<10x32xf32>
    %615 = arith.mulf %608, %614 : vector<10x32xf32>
    %616 = arith.truncf %615 : vector<10x32xf32> to vector<10x32xbf16>
    %cst_246 = arith.constant dense<0.000000e+00> : vector<10x10xf32>
    %617 = tpu.matmul %616, %610, %cst_246 {dimension_numbers = #tpu.dot_dimension_numbers<[1], [1], [0], [0], [0, 0, 1, 0], [], []>} : vector<10x32xbf16>, vector<10x32xbf16>, vector<10x10xf32> -> vector<10x10xf32>
    %618 = arith.addf %617, %5 : vector<10x10xf32>
    %cst_247 = arith.constant dense<0xFF800000> : vector<10xf32>
    %619 = vector.multi_reduction <maximumf>, %618, %cst_247 [1] : vector<10x10xf32> to vector<10xf32>
    %620 = vector.shape_cast %619 : vector<10xf32> to vector<10x1xf32>
    %621 = vector.broadcast %620 : vector<10x1xf32> to vector<10x10xf32>
    %622 = arith.subf %618, %621 : vector<10x10xf32>
    %623 = math.exp %622 : vector<10x10xf32>
    %cst_248 = arith.constant dense<0.000000e+00> : vector<10xf32>
    %624 = vector.multi_reduction <add>, %623, %cst_248 [1] : vector<10x10xf32> to vector<10xf32>
    %625 = vector.shape_cast %624 : vector<10xf32> to vector<10x1xf32>
    %626 = tpu.reciprocal %625 {approx = true} : vector<10x1xf32> -> vector<10x1xf32>
    %627 = vector.broadcast %626 : vector<10x1xf32> to vector<10x10xf32>
    %628 = arith.mulf %623, %627 : vector<10x10xf32>
    %629 = vector.broadcast %613 : vector<1x32xf32> to vector<10x32xf32>
    %630 = arith.mulf %611, %629 : vector<10x32xf32>
    %631 = arith.truncf %630 : vector<10x32xf32> to vector<10x32xbf16>
    %632 = arith.truncf %628 : vector<10x10xf32> to vector<10x10xbf16>
    %cst_249 = arith.constant dense<0.000000e+00> : vector<10x32xf32>
    %633 = tpu.matmul %632, %631, %cst_249 {dimension_numbers = #tpu.dot_dimension_numbers<[1], [0], [0], [1], [0, 0, 1, 1], [], []>} : vector<10x10xbf16>, vector<10x32xbf16>, vector<10x32xf32> -> vector<10x32xf32>
    %634 = vector.extract_strided_slice %0 {offsets = [1, 0, 0], sizes = [1, 1, 32], strides = [1, 1, 1]} : vector<4x1x32xf32> to vector<1x1x32xf32>
    %635 = vector.shape_cast %634 : vector<1x1x32xf32> to vector<1x32xf32>
    %636 = vector.broadcast %635 : vector<1x32xf32> to vector<10x32xf32>
    %637 = arith.mulf %608, %636 : vector<10x32xf32>
    %638 = arith.truncf %637 : vector<10x32xf32> to vector<10x32xbf16>
    %cst_250 = arith.constant dense<0.000000e+00> : vector<10x10xf32>
    %639 = tpu.matmul %638, %610, %cst_250 {dimension_numbers = #tpu.dot_dimension_numbers<[1], [1], [0], [0], [0, 0, 1, 0], [], []>} : vector<10x32xbf16>, vector<10x32xbf16>, vector<10x10xf32> -> vector<10x10xf32>
    %640 = arith.addf %639, %5 : vector<10x10xf32>
    %cst_251 = arith.constant dense<0xFF800000> : vector<10xf32>
    %641 = vector.multi_reduction <maximumf>, %640, %cst_251 [1] : vector<10x10xf32> to vector<10xf32>
    %642 = vector.shape_cast %641 : vector<10xf32> to vector<10x1xf32>
    %643 = vector.broadcast %642 : vector<10x1xf32> to vector<10x10xf32>
    %644 = arith.subf %640, %643 : vector<10x10xf32>
    %645 = math.exp %644 : vector<10x10xf32>
    %cst_252 = arith.constant dense<0.000000e+00> : vector<10xf32>
    %646 = vector.multi_reduction <add>, %645, %cst_252 [1] : vector<10x10xf32> to vector<10xf32>
    %647 = vector.shape_cast %646 : vector<10xf32> to vector<10x1xf32>
    %648 = tpu.reciprocal %647 {approx = true} : vector<10x1xf32> -> vector<10x1xf32>
    %649 = vector.broadcast %648 : vector<10x1xf32> to vector<10x10xf32>
    %650 = arith.mulf %645, %649 : vector<10x10xf32>
    %651 = vector.broadcast %635 : vector<1x32xf32> to vector<10x32xf32>
    %652 = arith.mulf %611, %651 : vector<10x32xf32>
    %653 = arith.truncf %652 : vector<10x32xf32> to vector<10x32xbf16>
    %654 = arith.truncf %650 : vector<10x10xf32> to vector<10x10xbf16>
    %cst_253 = arith.constant dense<0.000000e+00> : vector<10x32xf32>
    %655 = tpu.matmul %654, %653, %cst_253 {dimension_numbers = #tpu.dot_dimension_numbers<[1], [0], [0], [1], [0, 0, 1, 1], [], []>} : vector<10x10xbf16>, vector<10x32xbf16>, vector<10x32xf32> -> vector<10x32xf32>
    %656 = arith.addf %633, %655 : vector<10x32xf32>
    %657 = vector.extract_strided_slice %0 {offsets = [2, 0, 0], sizes = [1, 1, 32], strides = [1, 1, 1]} : vector<4x1x32xf32> to vector<1x1x32xf32>
    %658 = vector.shape_cast %657 : vector<1x1x32xf32> to vector<1x32xf32>
    %659 = vector.broadcast %658 : vector<1x32xf32> to vector<10x32xf32>
    %660 = arith.mulf %608, %659 : vector<10x32xf32>
    %661 = arith.truncf %660 : vector<10x32xf32> to vector<10x32xbf16>
    %cst_254 = arith.constant dense<0.000000e+00> : vector<10x10xf32>
    %662 = tpu.matmul %661, %610, %cst_254 {dimension_numbers = #tpu.dot_dimension_numbers<[1], [1], [0], [0], [0, 0, 1, 0], [], []>} : vector<10x32xbf16>, vector<10x32xbf16>, vector<10x10xf32> -> vector<10x10xf32>
    %663 = arith.addf %662, %5 : vector<10x10xf32>
    %cst_255 = arith.constant dense<0xFF800000> : vector<10xf32>
    %664 = vector.multi_reduction <maximumf>, %663, %cst_255 [1] : vector<10x10xf32> to vector<10xf32>
    %665 = vector.shape_cast %664 : vector<10xf32> to vector<10x1xf32>
    %666 = vector.broadcast %665 : vector<10x1xf32> to vector<10x10xf32>
    %667 = arith.subf %663, %666 : vector<10x10xf32>
    %668 = math.exp %667 : vector<10x10xf32>
    %cst_256 = arith.constant dense<0.000000e+00> : vector<10xf32>
    %669 = vector.multi_reduction <add>, %668, %cst_256 [1] : vector<10x10xf32> to vector<10xf32>
    %670 = vector.shape_cast %669 : vector<10xf32> to vector<10x1xf32>
    %671 = tpu.reciprocal %670 {approx = true} : vector<10x1xf32> -> vector<10x1xf32>
    %672 = vector.broadcast %671 : vector<10x1xf32> to vector<10x10xf32>
    %673 = arith.mulf %668, %672 : vector<10x10xf32>
    %674 = vector.broadcast %658 : vector<1x32xf32> to vector<10x32xf32>
    %675 = arith.mulf %611, %674 : vector<10x32xf32>
    %676 = arith.truncf %675 : vector<10x32xf32> to vector<10x32xbf16>
    %677 = arith.truncf %673 : vector<10x10xf32> to vector<10x10xbf16>
    %cst_257 = arith.constant dense<0.000000e+00> : vector<10x32xf32>
    %678 = tpu.matmul %677, %676, %cst_257 {dimension_numbers = #tpu.dot_dimension_numbers<[1], [0], [0], [1], [0, 0, 1, 1], [], []>} : vector<10x10xbf16>, vector<10x32xbf16>, vector<10x32xf32> -> vector<10x32xf32>
    %679 = arith.addf %656, %678 : vector<10x32xf32>
    %680 = vector.extract_strided_slice %0 {offsets = [3, 0, 0], sizes = [1, 1, 32], strides = [1, 1, 1]} : vector<4x1x32xf32> to vector<1x1x32xf32>
    %681 = vector.shape_cast %680 : vector<1x1x32xf32> to vector<1x32xf32>
    %682 = vector.broadcast %681 : vector<1x32xf32> to vector<10x32xf32>
    %683 = arith.mulf %608, %682 : vector<10x32xf32>
    %684 = arith.truncf %683 : vector<10x32xf32> to vector<10x32xbf16>
    %cst_258 = arith.constant dense<0.000000e+00> : vector<10x10xf32>
    %685 = tpu.matmul %684, %610, %cst_258 {dimension_numbers = #tpu.dot_dimension_numbers<[1], [1], [0], [0], [0, 0, 1, 0], [], []>} : vector<10x32xbf16>, vector<10x32xbf16>, vector<10x10xf32> -> vector<10x10xf32>
    %686 = arith.addf %685, %5 : vector<10x10xf32>
    %cst_259 = arith.constant dense<0xFF800000> : vector<10xf32>
    %687 = vector.multi_reduction <maximumf>, %686, %cst_259 [1] : vector<10x10xf32> to vector<10xf32>
    %688 = vector.shape_cast %687 : vector<10xf32> to vector<10x1xf32>
    %689 = vector.broadcast %688 : vector<10x1xf32> to vector<10x10xf32>
    %690 = arith.subf %686, %689 : vector<10x10xf32>
    %691 = math.exp %690 : vector<10x10xf32>
    %cst_260 = arith.constant dense<0.000000e+00> : vector<10xf32>
    %692 = vector.multi_reduction <add>, %691, %cst_260 [1] : vector<10x10xf32> to vector<10xf32>
    %693 = vector.shape_cast %692 : vector<10xf32> to vector<10x1xf32>
    %694 = tpu.reciprocal %693 {approx = true} : vector<10x1xf32> -> vector<10x1xf32>
    %695 = vector.broadcast %694 : vector<10x1xf32> to vector<10x10xf32>
    %696 = arith.mulf %691, %695 : vector<10x10xf32>
    %697 = vector.broadcast %681 : vector<1x32xf32> to vector<10x32xf32>
    %698 = arith.mulf %611, %697 : vector<10x32xf32>
    %699 = arith.truncf %698 : vector<10x32xf32> to vector<10x32xbf16>
    %700 = arith.truncf %696 : vector<10x10xf32> to vector<10x10xbf16>
    %cst_261 = arith.constant dense<0.000000e+00> : vector<10x32xf32>
    %701 = tpu.matmul %700, %699, %cst_261 {dimension_numbers = #tpu.dot_dimension_numbers<[1], [0], [0], [1], [0, 0, 1, 1], [], []>} : vector<10x10xbf16>, vector<10x32xbf16>, vector<10x32xf32> -> vector<10x32xf32>
    %702 = arith.addf %679, %701 : vector<10x32xf32>
    %703 = arith.truncf %702 : vector<10x32xf32> to vector<10x32xbf16>
    %cst_262 = arith.constant dense<0.000000e+00> : vector<10x32xf32>
    %704 = tpu.matmul %703, %581, %cst_262 {dimension_numbers = #tpu.dot_dimension_numbers<[1], [0], [0], [1], [0, 0, 1, 1], [], []>} : vector<10x32xbf16>, vector<32x32xbf16>, vector<10x32xf32> -> vector<10x32xf32>
    %705 = vector.broadcast %583 : vector<1x32xf32> to vector<10x32xf32>
    %706 = arith.addf %704, %705 : vector<10x32xf32>
    %707 = arith.addf %603, %706 : vector<10x32xf32>
    %cst_263 = arith.constant dense<0.000000e+00> : vector<10xf32>
    %708 = vector.multi_reduction <add>, %707, %cst_263 [1] : vector<10x32xf32> to vector<10xf32>
    %709 = vector.shape_cast %708 : vector<10xf32> to vector<10x1xf32>
    %cst_264 = arith.constant 3.200000e+01 : f32
    %710 = vector.broadcast %cst_264 : f32 to vector<10x1xf32>
    %711 = arith.divf %709, %710 : vector<10x1xf32>
    %712 = vector.broadcast %711 : vector<10x1xf32> to vector<10x32xf32>
    %713 = arith.subf %707, %712 : vector<10x32xf32>
    %714 = arith.mulf %713, %713 : vector<10x32xf32>
    %cst_265 = arith.constant dense<0.000000e+00> : vector<10xf32>
    %715 = vector.multi_reduction <add>, %714, %cst_265 [1] : vector<10x32xf32> to vector<10xf32>
    %716 = vector.shape_cast %715 : vector<10xf32> to vector<10x1xf32>
    %cst_266 = arith.constant 3.200000e+01 : f32
    %717 = vector.broadcast %cst_266 : f32 to vector<10x1xf32>
    %718 = arith.divf %716, %717 : vector<10x1xf32>
    %cst_267 = arith.constant 9.99999974E-6 : f32
    %719 = vector.broadcast %cst_267 : f32 to vector<10x1xf32>
    %720 = arith.addf %718, %719 : vector<10x1xf32>
    %721 = math.rsqrt %720 : vector<10x1xf32>
    %722 = vector.broadcast %721 : vector<10x1xf32> to vector<10x32xf32>
    %723 = arith.mulf %713, %722 : vector<10x32xf32>
    %724 = vector.broadcast %585 : vector<1x32xf32> to vector<10x32xf32>
    %725 = arith.mulf %723, %724 : vector<10x32xf32>
    %726 = vector.broadcast %587 : vector<1x32xf32> to vector<10x32xf32>
    %727 = arith.addf %725, %726 : vector<10x32xf32>
    %728 = arith.truncf %727 : vector<10x32xf32> to vector<10x32xbf16>
    %cst_268 = arith.constant dense<0.000000e+00> : vector<10x64xf32>
    %729 = tpu.matmul %728, %589, %cst_268 {dimension_numbers = #tpu.dot_dimension_numbers<[1], [0], [0], [1], [0, 0, 1, 1], [], []>} : vector<10x32xbf16>, vector<32x64xbf16>, vector<10x64xf32> -> vector<10x64xf32>
    %730 = vector.broadcast %591 : vector<1x64xf32> to vector<10x64xf32>
    %731 = arith.addf %729, %730 : vector<10x64xf32>
    %cst_269 = arith.constant 0.000000e+00 : f32
    %732 = vector.broadcast %cst_269 : f32 to vector<10x64xf32>
    %733 = arith.maximumf %731, %732 : vector<10x64xf32>
    %734 = arith.truncf %733 : vector<10x64xf32> to vector<10x64xbf16>
    %cst_270 = arith.constant dense<0.000000e+00> : vector<10x32xf32>
    %735 = tpu.matmul %734, %593, %cst_270 {dimension_numbers = #tpu.dot_dimension_numbers<[1], [0], [0], [1], [0, 0, 1, 1], [], []>} : vector<10x64xbf16>, vector<64x32xbf16>, vector<10x32xf32> -> vector<10x32xf32>
    %736 = vector.broadcast %595 : vector<1x32xf32> to vector<10x32xf32>
    %737 = arith.addf %735, %736 : vector<10x32xf32>
    %738 = arith.addf %727, %737 : vector<10x32xf32>
    %cst_271 = arith.constant dense<0.000000e+00> : vector<10xf32>
    %739 = vector.multi_reduction <add>, %738, %cst_271 [1] : vector<10x32xf32> to vector<10xf32>
    %740 = vector.shape_cast %739 : vector<10xf32> to vector<10x1xf32>
    %cst_272 = arith.constant 3.200000e+01 : f32
    %741 = vector.broadcast %cst_272 : f32 to vector<10x1xf32>
    %742 = arith.divf %740, %741 : vector<10x1xf32>
    %743 = vector.broadcast %742 : vector<10x1xf32> to vector<10x32xf32>
    %744 = arith.subf %738, %743 : vector<10x32xf32>
    %745 = arith.mulf %744, %744 : vector<10x32xf32>
    %cst_273 = arith.constant dense<0.000000e+00> : vector<10xf32>
    %746 = vector.multi_reduction <add>, %745, %cst_273 [1] : vector<10x32xf32> to vector<10xf32>
    %747 = vector.shape_cast %746 : vector<10xf32> to vector<10x1xf32>
    %cst_274 = arith.constant 3.200000e+01 : f32
    %748 = vector.broadcast %cst_274 : f32 to vector<10x1xf32>
    %749 = arith.divf %747, %748 : vector<10x1xf32>
    %cst_275 = arith.constant 9.99999974E-6 : f32
    %750 = vector.broadcast %cst_275 : f32 to vector<10x1xf32>
    %751 = arith.addf %749, %750 : vector<10x1xf32>
    %752 = math.rsqrt %751 : vector<10x1xf32>
    %753 = vector.broadcast %752 : vector<10x1xf32> to vector<10x32xf32>
    %754 = arith.mulf %744, %753 : vector<10x32xf32>
    %755 = vector.broadcast %597 : vector<1x32xf32> to vector<10x32xf32>
    %756 = arith.mulf %754, %755 : vector<10x32xf32>
    %757 = vector.broadcast %599 : vector<1x32xf32> to vector<10x32xf32>
    %758 = arith.addf %756, %757 : vector<10x32xf32>
    %759 = vector.shape_cast %758 : vector<10x32xf32> to vector<2x5x32xf32>
    %760 = vector.extract_strided_slice %759 {offsets = [0, 4, 0], sizes = [2, 1, 32], strides = [1, 1, 1]} : vector<2x5x32xf32> to vector<2x1x32xf32>
    %761 = vector.shape_cast %760 : vector<2x1x32xf32> to vector<2x32xf32>
    %c0_276 = arith.constant 0 : index
    %c0_277 = arith.constant 0 : index
    %762 = vector.load %arg18[%c0_276, %c0_277] : memref<1x32xf32, #tpu.memory_space<vmem>>, vector<1x32xf32>
    %c0_278 = arith.constant 0 : index
    %c0_279 = arith.constant 0 : index
    %763 = vector.load %arg19[%c0_278, %c0_279] : memref<1x32xf32, #tpu.memory_space<vmem>>, vector<1x32xf32>
    %cst_280 = arith.constant dense<0.000000e+00> : vector<2xf32>
    %764 = vector.multi_reduction <add>, %761, %cst_280 [1] : vector<2x32xf32> to vector<2xf32>
    %765 = vector.shape_cast %764 : vector<2xf32> to vector<2x1xf32>
    %cst_281 = arith.constant 3.200000e+01 : f32
    %766 = vector.broadcast %cst_281 : f32 to vector<2x1xf32>
    %767 = arith.divf %765, %766 : vector<2x1xf32>
    %768 = vector.broadcast %767 : vector<2x1xf32> to vector<2x32xf32>
    %769 = arith.subf %761, %768 : vector<2x32xf32>
    %770 = arith.mulf %769, %769 : vector<2x32xf32>
    %cst_282 = arith.constant dense<0.000000e+00> : vector<2xf32>
    %771 = vector.multi_reduction <add>, %770, %cst_282 [1] : vector<2x32xf32> to vector<2xf32>
    %772 = vector.shape_cast %771 : vector<2xf32> to vector<2x1xf32>
    %cst_283 = arith.constant 3.200000e+01 : f32
    %773 = vector.broadcast %cst_283 : f32 to vector<2x1xf32>
    %774 = arith.divf %772, %773 : vector<2x1xf32>
    %cst_284 = arith.constant 9.99999974E-6 : f32
    %775 = vector.broadcast %cst_284 : f32 to vector<2x1xf32>
    %776 = arith.addf %774, %775 : vector<2x1xf32>
    %777 = math.rsqrt %776 : vector<2x1xf32>
    %778 = vector.broadcast %777 : vector<2x1xf32> to vector<2x32xf32>
    %779 = arith.mulf %769, %778 : vector<2x32xf32>
    %780 = vector.broadcast %762 : vector<1x32xf32> to vector<2x32xf32>
    %781 = arith.mulf %779, %780 : vector<2x32xf32>
    %782 = vector.broadcast %763 : vector<1x32xf32> to vector<2x32xf32>
    %783 = arith.addf %781, %782 : vector<2x32xf32>
    %c0_285 = arith.constant 0 : index
    %c0_286 = arith.constant 0 : index
    %784 = vector.load %arg20[%c0_285, %c0_286] : memref<32x16xbf16, #tpu.memory_space<vmem>>, vector<32x16xbf16>
    %785 = arith.truncf %783 : vector<2x32xf32> to vector<2x32xbf16>
    %cst_287 = arith.constant dense<0.000000e+00> : vector<2x16xf32>
    %786 = tpu.matmul %785, %784, %cst_287 {dimension_numbers = #tpu.dot_dimension_numbers<[1], [0], [0], [1], [0, 0, 1, 1], [], []>} : vector<2x32xbf16>, vector<32x16xbf16>, vector<2x16xf32> -> vector<2x16xf32>
    %c0_288 = arith.constant 0 : index
    %c0_289 = arith.constant 0 : index
    %787 = vector.load %arg21[%c0_288, %c0_289] : memref<1x16xf32, #tpu.memory_space<vmem>>, vector<1x16xf32>
    %788 = vector.broadcast %787 : vector<1x16xf32> to vector<2x16xf32>
    %789 = arith.addf %786, %788 : vector<2x16xf32>
    %c0_290 = arith.constant 0 : index
    %c0_291 = arith.constant 0 : index
    %790 = vector.load %arg22[%c0_290, %c0_291] : memref<2x16xf32, #tpu.memory_space<vmem>>, vector<2x16xf32>
    tpu.vector_store %arg22[%c0_290, %c0_291], %789 {strides = array<i32>} : memref<2x16xf32, #tpu.memory_space<vmem>>, vector<2x16xf32>,
    return
  }
}

</mosaic_0001>

<bundles_post_ra>
// kernel: hattn_encoder_forward.1
= control target key start
LH: loop header
LB: loop body
LE: loop exit
PB: predicated region body
PF: predicated region fallthrough
CT: control target
= control target key end

     0   :  { %s19139_s0 = inlined_call_operand.vmem [shape: f32[32,32], index: 0, kind: input, shape index: {}]   ;;  %s19140_s1 = inlined_call_operand.vmem [shape: f32[8,32], index: 1, kind: input, shape index: {}]   ;;  %s19141_s2 = inlined_call_operand.vmem [shape: f32[2,32], index: 2, kind: input, shape index: {}]   ;;  %s19142_s3 = inlined_call_operand.vmem [shape: f32[48,48], index: 3, kind: input, shape index: {}]   ;;  %s19143_s4 = inlined_call_operand.vmem [shape: f32[10,10], index: 4, kind: input, shape index: {}]   ;;  %s19144_s5 = inlined_call_operand.vmem [shape: f32[4,1,32], index: 5, kind: input, shape index: {}]   ;;  %s19145_s6 = inlined_call_operand.vmem [shape: bf16[4,32,96], index: 6, kind: input, shape index: {}]   ;;  %s19146_s7 = inlined_call_operand.vmem [shape: f32[4,1,96], index: 7, kind: input, shape index: {}]   ;;  %s19147_s8 = inlined_call_operand.vmem [shape: bf16[4,32,32], index: 8, kind: input, shape index: {}]   ;;  %s19148_s9 = inlined_call_operand.vmem [shape: f32[4,1,32], index: 9, kind: input, shape index: {}]   ;;  %s19149_s10 = inlined_call_operand.vmem [shape: f32[4,1,32], index: 10, kind: input, shape index: {}]   ;;  %s19150_s11 = inlined_call_operand.vmem [shape: f32[4,1,32], index: 11, kind: input, shape index: {}]   ;;  %s19151_s12 = inlined_call_operand.vmem [shape: bf16[4,32,64], index: 12, kind: input, shape index: {}]   ;;  %s19152_s13 = inlined_call_operand.vmem [shape: f32[4,1,64], index: 13, kind: input, shape index: {}]   ;;  %s19153_s14 = inlined_call_operand.vmem [shape: bf16[4,64,32], index: 14, kind: input, shape index: {}]   ;;  %s19154_s15 = inlined_call_operand.vmem [shape: f32[4,1,32], index: 15, kind: input, shape index: {}]   ;;  %s19155_s16 = inlined_call_operand.vmem [shape: f32[4,1,32], index: 16, kind: input, shape index: {}]   ;;  %s19156_s17 = inlined_call_operand.vmem [shape: f32[4,1,32], index: 17, kind: input, shape index: {}]   ;;  %s19157_s18 = inlined_call_operand.vmem [shape: f32[1,32], index: 18, kind: input, shape index: {}]   ;;  %s19158_s19 = inlined_call_operand.vmem [shape: f32[1,32], index: 19, kind: input, shape index: {}]   ;;  %s19159_s20 = inlined_call_operand.vmem [shape: bf16[32,16], index: 20, kind: input, shape index: {}]   ;;  %s19160_s21 = inlined_call_operand.vmem [shape: f32[1,16], index: 21, kind: input, shape index: {}]   ;;  %s19161_s22 = inlined_call_operand.hbm [shape: f32[2,16], index: 22, kind: output, shape index: {}]  }
   0x1   :  { %19253 = sst [smem:[#allocation40_spill]] %s19139_s0 }
   0x2   :  { %19254 = sst [smem:[#allocation41_spill]] %s19140_s1 }
   0x3   :  { %19255 = sst [smem:[#allocation42_spill]] %s19141_s2 }
   0x4   :  { %19256 = sst [smem:[#allocation43_spill]] %s19142_s3 }
   0x5   :  { %19257 = sst [smem:[#allocation44_spill]] %s19143_s4 }
   0x6   :  { %19258 = sst [smem:[#allocation45_spill]] %s19144_s5 }
   0x7   :  { %19259 = sst [smem:[#allocation46_spill]] %s19145_s6 }
   0x8   :  { %s19260_s29 = sld [smem:[#allocation46_spill]]  ;;  %v136_v1 = vlaneseq  ;;  %v19167_v2 = vmov 0.0   ;;  %vm14218_vm0 = vmmov 0   ;;  %s19261_s1 = sld [smem:[#allocation41_spill]]  ;;  %v14219_v5 = vmov 1966171168  }
   0x9   :  { %13097 = vmatprep.subr.bf16.mxu0 %v19167_v2  ;;  %13113 = vmatprep.subr.bf16.mxu1 %v19167_v2  ;;  %v134_v6 = vunpack.c.l.s4 %v14219_v5  ;;  %s19263_s6 = sld [smem:[#allocation42_spill]]  ;;  %s19264_s2 = sld [smem:[#allocation40_spill]]  ;;  %vm340_vm1 = vcmask 1043456   ;;  %v14220_v12 = vmov 1983009808   ;;  %vm349_vm2 = vcmask 1044480  }
   0xa   :  { %13101 = vmatprep.mubr.msk.bf16.mxu0 %vm14218_vm0, %v19167_v2  ;;  %v14357_v7 = vshrl.u32 %v136_v1, 7  ;;  %13119 = vmatprep.mubr.msk.bf16.mxu1 %vm14218_vm0, %v19167_v2  ;;  %v368_v13 = vunpack.c.l.s4 %v14220_v12  ;;  %vm647_vm3 = vcmask 261120  }
   0xb   :  { %v135_v10 = vunpack.c.0.s8 %v134_v6 }
   0xc   :  { %19262 = vst [vmem:[#allocation5_spill] sm:$0xff] %v14357_v7  ;;  %v14368_v11 = vsub.s32 0, %v14357_v7  ;;  %v369_v20 = vunpack.c.0.s8 %v368_v13 }
   0xd   :  { %v14379_v18 = vsub.s32 %v135_v10, %v14357_v7 }
   0xe   :  { %v13804_v0 = vld [vmem:[%s19260_s29] sm:$0xff]   ;;  %v13805_v3 = vld [vmem:[%s19260_s29 + $0x8] sm:$0xff]   ;;  %19265 = vst [vmem:[#allocation6_spill] sm:$0xff] %v14368_v11  ;;  %v14398_v32 = vsub.s32 %v369_v20, %v14357_v7 }
   0xf   :  { %13098 = vmatpush3.bf16.msra.mxu0 %v13804_v0  ;;  %v81_v4 = vld [vmem:[%s19261_s1] sm:$0xff]  ;;  %v14373_v14 = vld [vmem:[%s19264_s2 + $0x10] sm:$0xff]  ;;  %v78_v17 = vld [vmem:[%s19264_s2 + $0x8] sm:$0xff]  ;;  %19266 = vst [vmem:[#allocation7_spill] sm:$0xff] %v14379_v18 }
  0x10   :  { %13099 = vmatprep.subr.bf16.mxu0 %v19167_v2  ;;  %v12629_v8 = vld.sshfl [vmem:[%s19263_s6] sm:$0x11 pattern:$0x75316420]  ;;  %v132_v15 = vcombine.high %v81_v4, %v81_v4  ;;  %v14384_v19 = vld [vmem:[%s19264_s2 + $0x18] sm:$0xff]  ;;  %v139_v21 = vrot.slane %v81_v4, %v14379_v18  ;;  %v124_v25 = vcombine.high %v78_v17, %v78_v17  ;;  %v125_v26 = vcombine.high %v14373_v14, %v14373_v14 }
  0x11   :  { %v77_v9 = vld [vmem:[%s19264_s2] sm:$0xff]  ;;  %v189_v16 = vcombine.high %v12629_v8, %v12629_v8  ;;  %v196_v22 = vrot.slane %v12629_v8, %v14379_v18  ;;  %v126_v35 = vcombine.high %v14384_v19, %v14384_v19 }
  0x12   :  { %v146_v23 = vrot.slane %v132_v15, %v14379_v18  ;;  %v123_v24 = vcombine.high %v77_v9, %v77_v9  ;;  %v147_v28 = vcombine.high %v139_v21, %v139_v21  ;;  %v155_v29 = vrot.slane %v139_v21, %v14379_v18 }
  0x13   :  { %13100 = vmatpush3.bf16.msra.mxu0 %v13805_v3  ;;  %v203_v27 = vrot.slane %v189_v16, %v14379_v18  ;;  %v14395_v30 = vrot.slane %v196_v22, %v14368_v11 }
  0x14   :  { %13131 = vmatprep.subr.bf16.mxu0 %v19167_v2  ;;  %v148_v31 = vcombine.high %v146_v23, %v146_v23  ;;  %v14401_v33 = vrot.slane %v146_v23, %v14379_v18  ;;  %v169_v36 = vrot.slane %v147_v28, %v14379_v18  ;;  %v177_v37 = vcombine.high %v155_v29, %v155_v29 }
  0x15   :  { %19267 = vst [vmem:[#allocation8_spill] sm:$0xff] %v14395_v30  ;;  %v14404_v34 = vrot.slane %v203_v27, %v14368_v11  ;;  %v218_v38 = vrot.slane %v14395_v30, %v14379_v18  ;;  %v263_v39 = vrot.slane %v155_v29, %v14368_v11 }
  0x16   :  { %v14413_v40 = vrot.slane %v148_v31, %v14379_v18  ;;  %v279_v42 = vrot.slane %v14401_v33, %v14368_v11  ;;  %v178_v43 = vcombine.high %v14401_v33, %v14401_v33  ;;  %v267_v46 = vrot.slane %v169_v36, %v14368_v11 }
  0x17   :  { %19268 = vst [vmem:[#allocation9_spill] sm:$0xff] %v14404_v34  ;;  %v242_v41 = vrot.slane %v14404_v34, %v14379_v18  ;;  %v219_v44 = vcombine.high %v218_v38, %v218_v38  ;;  %v226_v45 = vrot.slane %v218_v38, %v14379_v18  ;;  %v271_v47 = vrot.slane %v177_v37, %v14368_v11 }
  0x18   :  { %v341_v48 = vsel %vm340_vm1, %v77_v9, %v263_v39  ;;  %v179_v49 = vcombine.high %v169_v36, %v169_v36  ;;  %v342_v55 = vsel %vm340_vm1, %v123_v24, %v267_v46  ;;  %v283_v59 = vrot.slane %v14413_v40, %v14368_v11 }
  0x19   :  { %v243_v50 = vcombine.high %v242_v41, %v242_v41  ;;  %v14426_v51 = vrot.slane %v242_v41, %v14379_v18  ;;  %v233_v52 = vrot.slane %v219_v44, %v14379_v18  ;;  %v234_v53 = vcombine.high %v226_v45, %v226_v45 }
  0x1a   :  { %v303_v54 = vrot.slane %v226_v45, %v14368_v11  ;;  %v343_v56 = vsel %vm340_vm1, %v78_v17, %v271_v47  ;;  %v275_v58 = vrot.slane %v179_v49, %v14368_v11  ;;  %v345_v17 = vsel %vm340_vm1, %v14373_v14, %v279_v42 }
  0x1b   :  { %v14433_v57 = vrot.slane %v243_v50, %v14379_v18  ;;  %v307_v60 = vrot.slane %v233_v52, %v14368_v11  ;;  %v311_v61 = vrot.slane %v234_v53, %v14368_v11  ;;  %v235_v63 = vcombine.high %v233_v52, %v233_v52 }
  0x1c   :  { %v350_v62 = vsel %vm349_vm2, %v341_v48, %v303_v54  ;;  %v319_v3 = vrot.slane %v14426_v51, %v14368_v11  ;;  %v344_v9 = vsel %vm340_vm1, %v124_v25, %v275_v58  ;;  %v346_v20 = vsel %vm340_vm1, %v125_v26, %v283_v59 }
  0x1d   :  { %v366_v0 = vcombine.high %v350_v62, %v350_v62  ;;  %v14442_v1 = vrot.slane %v350_v62, %v14398_v32  ;;  %v323_v4 = vrot.slane %v14433_v57, %v14368_v11  ;;  %v351_v5 = vsel %vm349_vm2, %v342_v55, %v307_v60 }
  0x1e   :  { %v352_v6 = vsel %vm349_vm2, %v343_v56, %v311_v61  ;;  %v315_v8 = vrot.slane %v235_v63, %v14368_v11  ;;  %v382_v13 = vcombine.high %v351_v5, %v351_v5  ;;  %v14460_v15 = vrot.slane %v351_v5, %v14398_v32 }
  0x1f   :  { %v14453_v10 = vrot.slane %v366_v0, %v14398_v32  ;;  %v14457_v12 = vcombine.high %v14442_v1, %v14442_v1  ;;  %v14463_v16 = vrot.slane %v352_v6, %v14398_v32  ;;  %v354_v26 = vsel %vm349_vm2, %v345_v17, %v319_v3 }
  0x20   :  { %v353_v21 = vsel %vm349_vm2, %v344_v9, %v315_v8  ;;  %v14470_v22 = vrot.slane %v382_v13, %v14398_v32  ;;  %v14474_v23 = vcombine.high %v14460_v15, %v14460_v15  ;;  %v355_v27 = vsel %vm349_vm2, %v346_v20, %v323_v4 }
  0x21   :  { %v518_v24 = vcombine.low %v14442_v1, %v14457_v12  ;;  %v519_v25 = vcombine.low %v14453_v10, %v14460_v15  ;;  %v14482_v14 = vcombine.high %v14463_v16, %v14463_v16  ;;  %v398_v28 = vcombine.high %v352_v6, %v352_v6 }
  0x22   :  { %v535_v36 = vcombine.low %v14474_v23, %v14470_v22  ;;  %v414_v37 = vcombine.high %v353_v21, %v353_v21  ;;  %v14496_v41 = vrot.slane %v353_v21, %v14398_v32  ;;  %v430_v42 = vcombine.high %v354_v26, %v354_v26 }
  0x23   :  { %v526_v29 = vrot.slane %v518_v24, %v14398_v32  ;;  %v533_v31 = vrot.slane %v519_v25, %v14398_v32  ;;  %v536_v38 = vcombine.low %v14463_v16, %v14482_v14  ;;  %v14493_v39 = vrot.slane %v398_v28, %v14398_v32 }
  0x24   :  { %v543_v45 = vrot.slane %v535_v36, %v14398_v32  ;;  %v14500_v46 = vrot.slane %v414_v37, %v14398_v32  ;;  %v14503_v47 = vrot.slane %v354_v26, %v14398_v32  ;;  %v14508_v49 = vcombine.high %v14496_v41, %v14496_v41 }
  0x25   :  { %v534_v44 = vcombine.low %v526_v29, %v533_v31  ;;  %v550_v48 = vrot.slane %v536_v38, %v14398_v32  ;;  %v14511_v50 = vrot.slane %v430_v42, %v14398_v32  ;;  %v14514_v52 = vrot.slane %v355_v27, %v14398_v32 }
  0x26   :  { %19269 = vst [vmem:[#allocation10_spill] sm:$0xff] %v14500_v46  ;;  %19270 = vst [vmem:[#allocation11_spill] sm:$0xff] %v14503_v47  ;;  %v14518_v53 = vcombine.high %v14503_v47, %v14503_v47  ;;  %v552_v54 = vcombine.low %v14493_v39, %v14496_v41  ;;  %v180_v55 = vcombine.high %v14413_v40, %v14413_v40 }
  0x27   :  { %19271 = vst [vmem:[#allocation12_spill] sm:$0xff] %v14511_v50  ;;  %19272 = vst [vmem:[#allocation13_spill] sm:$0xff] %v14514_v52  ;;  %v258_v56 = vcombine.high %v14426_v51, %v14426_v51  ;;  %v551_v58 = vcombine.low %v543_v45, %v550_v48  ;;  %v553_v59 = vcombine.low %v14508_v49, %v14500_v46 }
  0x28   :  { %19273 = vst [vmem:[#allocation14_spill] sm:$0xff] %v14518_v53  ;;  %v570_v60 = vcombine.low %v14511_v50, %v14514_v52  ;;  %v259_v61 = vcombine.high %v14433_v57, %v14433_v57  ;;  %v560_v62 = vrot.slane %v552_v54, %v14398_v32  ;;  %v569_v63 = vcombine.low %v14503_v47, %v14518_v53 }
  0x29   :  { %v287_v40 = vrot.slane %v178_v43, %v14368_v11  ;;  %v291_v51 = vrot.slane %v180_v55, %v14368_v11 }
  0x2a   :  { %27 = vsyncpa [#allocation3], 0  ;;  %v626_v0 = vpack.c.bf16 %v551_v58, %v534_v44  ;;  %v567_v3 = vrot.slane %v553_v59, %v14398_v32  ;;  %v584_v4 = vrot.slane %v570_v60, %v14398_v32  ;;  %v327_v57 = vrot.slane %v258_v56, %v14368_v11  ;;  %v12630_v60 = vld [vmem:[%s19146_s7] ss:$0 sm:$0xff]  ;;  %s14221_s5 = smov 96   ;;  %s19282_s25 = sld [smem:[#allocation45_spill]] }
  0x2b   :  { %v577_v5 = vrot.slane %v569_v63, %v14398_v32  ;;  %v331_v6 = vrot.slane %v259_v61, %v14368_v11  ;;  %v347_v8 = vsel %vm340_vm1, %v14384_v19, %v287_v40  ;;  %v348_v33 = vsel %vm340_vm1, %v126_v35, %v291_v51  ;;  %s14222_s26 = smov 64   ;;  %s19286_s1 = sld [smem:[#allocation43_spill]] }
  0x2c   :  { %13102 = vmatmul.mubr.msk.bf16.vlgmr.msra.gmra.mrb[0].mxu0 %vm647_vm3, %v626_v0  ;;  %v568_v43 = vcombine.low %v560_v62, %v567_v3  ;;  %v356_v9 = vsel %vm349_vm2, %v347_v8, %v327_v57  ;;  %v446_v13 = vcombine.high %v355_v27, %v355_v27  ;;  %v14555_v17 = vcombine.high %v14514_v52, %v14514_v52  ;;  %s19322_s30 = sld [smem:[#allocation44_spill]] }
  0x2d   :  { %13105 = vmatprep.mubr.msk.bf16.mxu0 %vm14218_vm0, %v19167_v2  ;;  %v585_v20 = vcombine.low %v577_v5, %v584_v4  ;;  %v357_v21 = vsel %vm349_vm2, %v348_v33, %v331_v6  ;;  %v462_v24 = vcombine.high %v356_v9, %v356_v9  ;;  %v14561_v19 = vrot.slane %v356_v9, %v14398_v32 }
  0x2e   :  { %19274 = vst [vmem:[#allocation15_spill] sm:$0xff] %v14555_v17  ;;  %v14564_v35 = vrot.slane %v446_v13, %v14398_v32  ;;  %v478_v25 = vcombine.high %v357_v21, %v357_v21  ;;  %v14567_v26 = vrot.slane %v357_v21, %v14398_v32  ;;  %vm816_vm4 = vcmask 392192  }
  0x2f   :  { %19275 = vst [vmem:[#allocation16_spill] sm:$0xff] %v14561_v19  ;;  %v14570_v27 = vrot.slane %v462_v24, %v14398_v32  ;;  %v14574_v28 = vcombine.high %v14561_v19, %v14561_v19  ;;  %v627_v29 = vpack.c.bf16 %v585_v20, %v568_v43  ;;  %vm3102_vm5 = vcmask 523264  }
  0x30   :  { %19276 = vst [vmem:[#allocation17_spill] sm:$0xff] %v14564_v35  ;;  %19277 = vst [vmem:[#allocation18_spill] sm:$0xff] %v14567_v26  ;;  %v14577_v31 = vrot.slane %v478_v25, %v14398_v32  ;;  %v14581_v36 = vcombine.high %v14567_v26, %v14567_v26  ;;  %v586_v37 = vcombine.low %v14555_v17, %v14564_v35  ;;  %v14621_v21 = vld [vmem:[%s19282_s25 + $0x1] ss:$0 sm:$0xff]  ;;  %vm4297_vm6 = vcmask 1041409  }
  0x31   :  { %19278 = vst [vmem:[#allocation19_spill] sm:$0xff] %v14570_v27  ;;  %19279 = vst [vmem:[#allocation20_spill] sm:$0xff] %v14574_v28  ;;  %v587_v38 = vcombine.low %v14561_v19, %v14574_v28  ;;  %v603_v42 = vcombine.low %v14570_v27, %v14567_v26  ;;  %vm4299_vm7 = vcmask 1042434   ;;  %vm4301_vm8 = vcmask 1043459  }
  0x32   :  { %19280 = vst [vmem:[#allocation21_spill] sm:$0xff] %v14577_v31  ;;  %19281 = vst [vmem:[#allocation22_spill] sm:$0xff] %v14581_v36  ;;  %v594_v44 = vrot.slane %v586_v37, %v14398_v32  ;;  %v604_v45 = vcombine.low %v14581_v36, %v14577_v31  ;;  %vm4585_vm9 = vcmask 80896   ;;  %vm4589_vm10 = vcmask 74752  }
  0x33   :  { %v601_v48 = vrot.slane %v587_v38, %v14398_v32  ;;  %v611_v54 = vrot.slane %v603_v42, %v14398_v32  ;;  %v14634_v38 = vld [vmem:[%s19282_s25] ss:$0 sm:$0xff]  ;;  %v14642_v42 = vld [vmem:[%s19282_s25 + $0x2] ss:$0 sm:$0xff]  ;;  %vm5271_vm11 = vcmask 254976   ;;  %vm12613_vm12 = vcmask 123904  }
  0x34   :  { %13106 = vmatmul.mubr.msk.bf16.gmra.mrb[4].mxu0 %vm647_vm3, %v627_v29  ;;  %v618_v55 = vrot.slane %v604_v45, %v14398_v32 }
  0x35   :  { %13109 = vmatprep.mubr.msk.bf16.mxu0 %vm14218_vm0, %v19167_v2  ;;  %v602_v56 = vcombine.low %v594_v44, %v601_v48 }
  0x36   :  { %v619_v58 = vcombine.low %v611_v54, %v618_v55 }
  0x38   :  { %v628_v59 = vpack.c.bf16 %v619_v58, %v602_v56 }
  0x3c   :  { %13110 = vmatmul.mubr.msk.bf16.gmra.mrb[8].mxu0 %vm647_vm3, %v628_v59 }
  0x3d   :  { %13137 = vmatprep.mubr.msk.bf16.mxu0 %vm14218_vm0, %v19167_v2 }
  0xff   :  { %v691_v61 = vpop.f32.mrb[0].mxu0 }
 0x100   :  { %v13103_v62 = vpop.f32.mrb[1].mxu0  ;;  %v14604_v40 = vadd.f32 %v12630_v60, %v691_v61 }
 0x101   :  { %v694_v63 = vpop.f32.mrb[2].mxu0 }
 0x102   :  { %v14606_v51 = vadd.f32 %v12630_v60, %v694_v63  ;;  %v13104_v0 = vpop.f32.mrb[3].mxu0 }
 0x104   :  { %v714_v3 = vpack.c.bf16 %v14606_v51, %v14604_v40 }
 0x106   :  { %735 = vrot.lane.b32.xlu0 %v714_v3, %s14221_s5 }
 0x107   :  { %v699_v4 = vpop.f32.mrb[4].mxu0 }
 0x108   :  { %v13107_v57 = vpop.f32.mrb[5].mxu0  ;;  %v14611_v6 = vadd.f32 %v12630_v60, %v699_v4 }
 0x109   :  { %v702_v5 = vpop.f32.mrb[6].mxu0 }
 0x10a   :  { %v14613_v8 = vadd.f32 %v12630_v60, %v702_v5  ;;  %v13108_v33 = vpop.f32.mrb[7].mxu0  ;;  %v905_v5 = vmul.f32 %v14621_v21, %v14606_v51 }
 0x10c   :  { %v715_v43 = vpack.c.bf16 %v14613_v8, %v14611_v6 }
 0x10e   :  { %737 = vrot.lane.b32.xlu0 %v715_v43, %s14221_s5 }
 0x10f   :  { %v707_v9 = vpop.f32.mrb[8].mxu0 }
 0x110   :  { %v13111_v13 = vpop.f32.mrb[9].mxu0  ;;  %v14623_v24 = vadd.f32 %v12630_v60, %v707_v9 }
 0x111   :  { %v710_v20 = vpop.f32.mrb[10].mxu0 }
 0x112   :  { %v14625_v25 = vadd.f32 %v12630_v60, %v710_v20  ;;  %v13112_v29 = vpop.f32.mrb[11].mxu0  ;;  %1045 = vrot.lane.b32.xlu0 %v14621_v21, %s14222_s26  ;;  %v14696_v20 = vld [vmem:[%s19282_s25 + $0x3] ss:$0 sm:$0xff] }
 0x114   :  { %v716_v37 = vpack.c.bf16 %v14625_v25, %v14623_v24 }
 0x116   :  { %739 = vrot.lane.b32.xlu1 %v716_v37, %s14221_s5  ;;  %883 = vrot.lane.b32.xlu0 %v14634_v38, %s14222_s26 }
 0x11a   :  { %1363 = vrot.lane.b32.xlu1 %v14642_v42, %s14222_s26 }
 0x178   :  { %v736_v44 = vpop.permute.xlu0 %735 }
 0x179   :  { %v14647_v45 = vsel %vm647_vm3, %v736_v44, 0  ;;  %v724_v44 = vmul.f32 %v14634_v38, %v14606_v51 }
 0x17a   :  { %13114 = vmatpush3.bf16.xpose.msra.mxu1 %v14647_v45  ;;  %13132 = vmatpush3.bf16.xpose.msra.mxu0 %v14647_v45 }
 0x17b   :  { %13115 = vmatprep.subr.bf16.mxu1 %v19167_v2  ;;  %13133 = vmatprep.subr.bf16.mxu0 %v19167_v2 }
 0x180   :  { %v738_v48 = vpop.permute.xlu0 %737 }
 0x181   :  { %v14654_v54 = vsel %vm647_vm3, %v738_v48, 0  ;;  %v904_v48 = vmul.f32 %v14621_v21, %v14604_v40 }
 0x182   :  { %13116 = vmatpush3.bf16.xpose.msra.mxu1 %v14654_v54  ;;  %13134 = vmatpush3.bf16.xpose.msra.mxu0 %v14654_v54 }
 0x183   :  { %13117 = vmatprep.subr.bf16.mxu1 %v19167_v2  ;;  %13135 = vmatprep.subr.bf16.mxu0 %v19167_v2 }
 0x184   :  { %v14660_v55 = vpop.permute.xlu0 %1045 }
 0x185   :  { %19283 = vst [vmem:[#allocation23_spill] sm:$0xff] %v14660_v55  ;;  %v1048_v56 = vmul.f32 %v14660_v55, %v14604_v40  ;;  %v1049_v58 = vmul.f32 %v14660_v55, %v14606_v51  ;;  %v1050_v59 = vmul.f32 %v14660_v55, %v14611_v6  ;;  %v1051_v60 = vmul.f32 %v14660_v55, %v14613_v8 }
 0x186   :  { %v1052_v29 = vmul.f32 %v14660_v55, %v14623_v24  ;;  %v1053_v37 = vmul.f32 %v14660_v55, %v14625_v25 }
 0x187   :  { %v1054_v61 = vpack.c.bf16 %v1049_v58, %v1048_v56  ;;  %v1055_v62 = vpack.c.bf16 %v1051_v60, %v1050_v59  ;;  %v723_v56 = vmul.f32 %v14634_v38, %v14604_v40  ;;  %v910_v58 = vpack.c.bf16 %v905_v5, %v904_v48 }
 0x188   :  { %v740_v63 = vpop.permute.xlu1 %739  ;;  %v14670_v0 = vpop.permute.xlu0 %883 }
 0x189   :  { %19284 = vst [vmem:[#allocation24_spill] sm:$0xff] %v14670_v0  ;;  %v14673_v3 = vsel %vm647_vm3, %v740_v63, 0  ;;  %1063 = vrot.lane.b32.xlu1 %v1054_v61, %s14222_s26  ;;  %1065 = vrot.lane.b32.xlu0 %v1055_v62, %s14222_s26  ;;  %v886_v4 = vmul.f32 %v14670_v0, %v14604_v40  ;;  %v887_v57 = vmul.f32 %v14670_v0, %v14606_v51 }
 0x18a   :  { %13118 = vmatpush3.bf16.xpose.msra.mxu1 %v14673_v3  ;;  %13136 = vmatpush3.bf16.xpose.msra.mxu0 %v14673_v3  ;;  %v888_v43 = vmul.f32 %v14670_v0, %v14611_v6  ;;  %v889_v9 = vmul.f32 %v14670_v0, %v14613_v8  ;;  %v1056_v62 = vpack.c.bf16 %v1053_v37, %v1052_v29 }
 0x18b   :  { %v892_v33 = vpack.c.bf16 %v887_v57, %v886_v4  ;;  %13185 = vmatprep.subr.bf16.mxu0 %v19167_v2  ;;  %13149 = vmatprep.subr.bf16.mxu1 %v19167_v2  ;;  %v729_v63 = vpack.c.bf16 %v724_v44, %v723_v56  ;;  %v890_v4 = vmul.f32 %v14670_v0, %v14623_v24 }
 0x18c   :  { %v14691_v13 = vpop.permute.xlu1 %1363  ;;  %v893_v59 = vpack.c.bf16 %v889_v9, %v888_v43  ;;  %v891_v57 = vmul.f32 %v14670_v0, %v14625_v25  ;;  %v726_v9 = vmul.f32 %v14634_v38, %v14613_v8  ;;  %v906_v29 = vmul.f32 %v14621_v21, %v14611_v6 }
 0x18d   :  { %19285 = vst [vmem:[#allocation25_spill] sm:$0xff] %v14691_v13  ;;  %1609 = vrot.lane.b32.xlu0 %v14696_v20, %s14222_s26  ;;  %1141 = vrot.lane.b32.xlu1 %v892_v33, %s14222_s26  ;;  %v1366_v60 = vmul.f32 %v14691_v13, %v14604_v40  ;;  %v1367_v61 = vmul.f32 %v14691_v13, %v14606_v51 }
 0x18e   :  { %v907_v33 = vmul.f32 %v14621_v21, %v14613_v8  ;;  %v894_v43 = vpack.c.bf16 %v891_v57, %v890_v4  ;;  %v725_v37 = vmul.f32 %v14634_v38, %v14611_v6  ;;  %v909_v56 = vmul.f32 %v14621_v21, %v14625_v25 }
 0x18f   :  { %v1372_v5 = vpack.c.bf16 %v1367_v61, %v1366_v60  ;;  %v727_v60 = vmul.f32 %v14634_v38, %v14623_v24  ;;  %v1225_v4 = vmul.f32 %v14642_v42, %v14613_v8  ;;  %v1224_v57 = vmul.f32 %v14642_v42, %v14611_v6 }
 0x190   :  { %v911_v44 = vpack.c.bf16 %v907_v33, %v906_v29  ;;  %v730_v48 = vpack.c.bf16 %v726_v9, %v725_v37  ;;  %v1226_v33 = vmul.f32 %v14642_v42, %v14623_v24  ;;  %v1468_v9 = vmul.f32 %v14696_v20, %v14604_v40 }
 0x191   :  { %13138 = vmatmul.mubr.msk.bf16.vlgmr.msra.gmra.mrb[12].mxu0 %vm647_vm3, %v910_v58  ;;  %1143 = vrot.lane.b32.xlu0 %v893_v59, %s14222_s26  ;;  %v728_v58 = vmul.f32 %v14634_v38, %v14625_v25  ;;  %v908_v59 = vmul.f32 %v14621_v21, %v14623_v24  ;;  %v1223_v21 = vmul.f32 %v14642_v42, %v14606_v51 }
 0x192   :  { %1067 = vrot.lane.b32.xlu1 %v1056_v62, %s14222_s26  ;;  %13120 = vmatmul.mubr.msk.bf16.vlgmr.msra.gmra.mrb[0].mxu1 %vm647_vm3, %v729_v63  ;;  %v1222_v38 = vmul.f32 %v14642_v42, %v14604_v40  ;;  %v1368_v7 = vmul.f32 %v14691_v13, %v14611_v6 }
 0x193   :  { %13186 = vmatpush3.bf16.xpose.msra.mxu0 %v14647_v45  ;;  %13123 = vmatprep.mubr.msk.bf16.mxu1 %vm14218_vm0, %v19167_v2  ;;  %v912_v61 = vpack.c.bf16 %v909_v56, %v908_v59  ;;  %v731_v62 = vpack.c.bf16 %v728_v58, %v727_v60 }
 0x194   :  { %13141 = vmatprep.mubr.msk.bf16.mxu0 %vm14218_vm0, %v19167_v2  ;;  %13187 = vmatprep.subr.bf16.mxu0 %v19167_v2  ;;  %v1228_v63 = vpack.c.bf16 %v1223_v21, %v1222_v38 }
 0x195   :  { %1381 = vrot.lane.b32.xlu0 %v1372_v5, %s14222_s26  ;;  %v1229_v5 = vpack.c.bf16 %v1225_v4, %v1224_v57  ;;  %v14827_v4 = vld [vmem:[%s19286_s1 + $0x8] sm:$0xff] }
 0x196   :  { %1145 = vrot.lane.b32.xlu1 %v894_v43, %s14222_s26 }
 0x199   :  { %13142 = vmatmul.mubr.msk.bf16.gmra.mrb[16].mxu0 %vm647_vm3, %v911_v44  ;;  %v1473_v44 = vmul.f32 %v14696_v20, %v14625_v25 }
 0x19a   :  { %13124 = vmatmul.mubr.msk.bf16.gmra.mrb[4].mxu1 %vm647_vm3, %v730_v48  ;;  %13145 = vmatprep.mubr.msk.bf16.mxu0 %vm14218_vm0, %v19167_v2  ;;  %v1472_v48 = vmul.f32 %v14696_v20, %v14623_v24 }
 0x19b   :  { %13188 = vmatpush3.bf16.xpose.msra.mxu0 %v14654_v54  ;;  %13127 = vmatprep.mubr.msk.bf16.mxu1 %vm14218_vm0, %v19167_v2 }
 0x19c   :  { %13189 = vmatprep.subr.bf16.mxu0 %v19167_v2  ;;  %v1476_v56 = vpack.c.bf16 %v1473_v44, %v1472_v48 }
 0x1a1   :  { %13146 = vmatmul.mubr.msk.bf16.gmra.mrb[20].mxu0 %vm647_vm3, %v912_v61 }
 0x1a2   :  { %13128 = vmatmul.mubr.msk.bf16.gmra.mrb[8].mxu1 %vm647_vm3, %v731_v62  ;;  %13191 = vmatprep.mubr.msk.bf16.mxu0 %vm14218_vm0, %v19167_v2 }
 0x1a3   :  { %13190 = vmatpush3.bf16.xpose.msra.mxu0 %v14673_v3  ;;  %13155 = vmatprep.mubr.msk.bf16.mxu1 %vm14218_vm0, %v19167_v2 }
 0x1a4   :  { %13221 = vmatprep.subr.bf16.mxu0 %v19167_v2 }
 0x1aa   :  { %13192 = vmatmul.mubr.msk.bf16.vlgmr.msra.gmra.mrb[24].mxu0 %vm647_vm3, %v1228_v63 }
 0x1ab   :  { %13222 = vmatpush3.bf16.xpose.msra.mxu0 %v14647_v45  ;;  %13195 = vmatprep.mubr.msk.bf16.mxu0 %vm14218_vm0, %v19167_v2  ;;  %v1227_v45 = vmul.f32 %v14642_v42, %v14625_v25  ;;  %v1471_v42 = vmul.f32 %v14696_v20, %v14613_v8 }
 0x1ac   :  { %13223 = vmatprep.subr.bf16.mxu0 %v19167_v2 }
 0x1ad   :  { %v1230_v43 = vpack.c.bf16 %v1227_v45, %v1226_v33 }
 0x1b2   :  { %13196 = vmatmul.mubr.msk.bf16.gmra.mrb[28].mxu0 %vm647_vm3, %v1229_v5 }
 0x1b3   :  { %13224 = vmatpush3.bf16.xpose.msra.mxu0 %v14654_v54  ;;  %13199 = vmatprep.mubr.msk.bf16.mxu0 %vm14218_vm0, %v19167_v2  ;;  %v1469_v54 = vmul.f32 %v14696_v20, %v14606_v51 }
 0x1b4   :  { %13225 = vmatprep.subr.bf16.mxu0 %v19167_v2 }
 0x1b5   :  { %v1474_v29 = vpack.c.bf16 %v1469_v54, %v1468_v9 }
 0x1ba   :  { %13200 = vmatmul.mubr.msk.bf16.gmra.mrb[32].mxu0 %vm647_vm3, %v1230_v43 }
 0x1bb   :  { %13226 = vmatpush3.bf16.xpose.msra.mxu0 %v14673_v3  ;;  %13227 = vmatprep.mubr.msk.bf16.mxu0 %vm14218_vm0, %v19167_v2  ;;  %v1470_v3 = vmul.f32 %v14696_v20, %v14611_v6  ;;  %v14819_v20 = vld [vmem:[%s19286_s1] sm:$0xff] }
 0x1bc   :  { %13257 = vmatprep.subr.bf16.mxu0 %v19167_v2 }
 0x1bd   :  { %v1475_v37 = vpack.c.bf16 %v1471_v42, %v1470_v3 }
 0x1c2   :  { %13228 = vmatmul.mubr.msk.bf16.vlgmr.msra.gmra.mrb[36].mxu0 %vm647_vm3, %v1474_v29 }
 0x1c3   :  { %13231 = vmatprep.mubr.msk.bf16.mxu0 %vm14218_vm0, %v19167_v2 }
 0x1ca   :  { %13232 = vmatmul.mubr.msk.bf16.gmra.mrb[40].mxu0 %vm647_vm3, %v1475_v37  ;;  %v14845_v37 = vld [vmem:[%s19286_s1 + $0x10] sm:$0xff] }
 0x1cb   :  { %13235 = vmatprep.mubr.msk.bf16.mxu0 %vm14218_vm0, %v19167_v2 }
 0x1d2   :  { %13236 = vmatmul.mubr.msk.bf16.gmra.mrb[44].mxu0 %vm647_vm3, %v1476_v56 }
 0x1d3   :  { %13261 = vmatprep.mubr.msk.bf16.mxu0 %vm14218_vm0, %v19167_v2 }
 0x1fb   :  { %v1064_v58 = vpop.permute.xlu1 %1063  ;;  %v1066_v59 = vpop.permute.xlu0 %1065 }
 0x1fc   :  { %13150 = vmatpush3.bf16.msra.mxu1 %v1064_v58  ;;  %v14854_v58 = vld [vmem:[%s19286_s1 + $0x18] sm:$0xff] }
 0x1fd   :  { %13151 = vmatprep.subr.bf16.mxu1 %v19167_v2 }
 0x1ff   :  { %v14812_v60 = vpop.permute.xlu1 %1141 }
 0x200   :  { %13152 = vmatpush3.bf16.msra.mxu1 %v1066_v59 }
 0x201   :  { %13153 = vmatprep.subr.bf16.mxu1 %v19167_v2 }
 0x204   :  { %v1068_v61 = vpop.permute.xlu1 %1067 }
 0x205   :  { %13154 = vmatpush3.bf16.msra.mxu1 %v1068_v61 }
 0x206   :  { %13167 = vmatprep.subr.bf16.mxu1 %v19167_v2 }
 0x264   :  { %v956_v62 = vpop.f32.mrb[12].mxu0 }
 0x265   :  { %v793_v21 = vpop.f32.mrb[0].mxu1  ;;  %v14822_v38 = vadd.f32 %v956_v62, %v14819_v20  ;;  %v13139_v63 = vpop.f32.mrb[13].mxu0 }
 0x266   :  { %v14830_v57 = vadd.f32 %v793_v21, %v14819_v20  ;;  %v13121_v5 = vpop.f32.mrb[1].mxu1  ;;  %v959_v45 = vpop.f32.mrb[14].mxu0 }
 0x267   :  { %v796_v33 = vpop.f32.mrb[2].mxu1  ;;  %v13140_v43 = vpop.f32.mrb[15].mxu0  ;;  %v979_v54 = vsel %vm816_vm4, %v14822_v38, -inf  ;;  %v14838_v29 = vadd.f32 %v959_v45, %v14827_v4 }
 0x268   :  { %v14835_v9 = vadd.f32 %v796_v33, %v14827_v4  ;;  %v13122_v42 = vpop.f32.mrb[3].mxu1  ;;  %980 = vmax.xlane.f32.xlu1 %v979_v54  ;;  %v817_v3 = vsel %vm816_vm4, %v14830_v57, -inf }
 0x269   :  { %818 = vmax.xlane.f32.xlu0 %v817_v3  ;;  %v982_v56 = vsel %vm816_vm4, %v14838_v29, -inf }
 0x26a   :  { %v820_v44 = vsel %vm816_vm4, %v14835_v9, -inf }
 0x26c   :  { %v964_v48 = vpop.f32.mrb[16].mxu0  ;;  %821 = vmax.xlane.f32.xlu1 %v820_v44 }
 0x26d   :  { %v14857_v59 = vadd.f32 %v964_v48, %v14845_v37  ;;  %983 = vmax.xlane.f32.xlu0 %v982_v56  ;;  %v801_v61 = vpop.f32.mrb[4].mxu1  ;;  %v13143_v62 = vpop.f32.mrb[17].mxu0  ;;  %v14875_v48 = vld [vmem:[%s19286_s1 + $0x20] sm:$0xff] }
 0x26e   :  { %v13125_v21 = vpop.f32.mrb[5].mxu1  ;;  %v967_v63 = vpop.f32.mrb[18].mxu0  ;;  %v14865_v54 = vadd.f32 %v801_v61, %v14845_v37  ;;  %v14882_v61 = vld [vmem:[%s19286_s1 + $0x28] sm:$0xff] }
 0x26f   :  { %v804_v5 = vpop.f32.mrb[6].mxu1  ;;  %v14860_v45 = vadd.f32 %v967_v63, %v14854_v58  ;;  %v13144_v33 = vpop.f32.mrb[19].mxu0  ;;  %v985_v43 = vsel %vm816_vm4, %v14857_v59, -inf }
 0x270   :  { %v13126_v42 = vpop.f32.mrb[7].mxu1  ;;  %v14868_v3 = vadd.f32 %v804_v5, %v14854_v58  ;;  %v823_v62 = vsel %vm816_vm4, %v14865_v54, -inf }
 0x271   :  { %986 = vmax.xlane.f32.xlu0 %v985_v43  ;;  %v988_v44 = vsel %vm816_vm4, %v14860_v45, -inf }
 0x272   :  { %989 = vmax.xlane.f32.xlu1 %v988_v44  ;;  %v826_v33 = vsel %vm816_vm4, %v14868_v3, -inf }
 0x274   :  { %v972_v56 = vpop.f32.mrb[20].mxu0 }
 0x275   :  { %v14885_v21 = vadd.f32 %v972_v56, %v14875_v48  ;;  %824 = vmax.xlane.f32.xlu0 %v823_v62  ;;  %v809_v63 = vpop.f32.mrb[8].mxu1  ;;  %v13147_v5 = vpop.f32.mrb[21].mxu0 }
 0x276   :  { %v13129_v43 = vpop.f32.mrb[9].mxu1  ;;  %v975_v42 = vpop.f32.mrb[22].mxu0  ;;  %827 = vmax.xlane.f32.xlu1 %v826_v33  ;;  %v14895_v56 = vadd.f32 %v809_v63, %v14875_v48 }
 0x277   :  { %v14890_v44 = vadd.f32 %v975_v42, %v14882_v61  ;;  %v812_v2 = vpop.f32.mrb[10].mxu1  ;;  %v13148_v0 = vpop.f32.mrb[23].mxu0  ;;  %v991_v55 = vsel %vm816_vm4, %v14885_v21, -inf }
 0x278   :  { %v13130_v62 = vpop.f32.mrb[11].mxu1  ;;  %v14898_v5 = vadd.f32 %v812_v2, %v14882_v61  ;;  %v829_v33 = vsel %vm816_vm4, %v14895_v56, -inf }
 0x279   :  { %992 = vmax.xlane.f32.xlu0 %v991_v55  ;;  %v994_v43 = vsel %vm816_vm4, %v14890_v44, -inf }
 0x27a   :  { %995 = vmax.xlane.f32.xlu1 %v994_v43  ;;  %v832_v0 = vsel %vm816_vm4, %v14898_v5, -inf }
 0x27d   :  { %v1274_v42 = vpop.f32.mrb[24].mxu0  ;;  %830 = vmax.xlane.f32.xlu0 %v829_v33 }
 0x27e   :  { %v14907_v63 = vadd.f32 %v1274_v42, %v14819_v20  ;;  %v13193_v62 = vpop.f32.mrb[25].mxu0  ;;  %833 = vmax.xlane.f32.xlu1 %v832_v0 }
 0x27f   :  { %v1277_v2 = vpop.f32.mrb[26].mxu0 }
 0x280   :  { %v13194_v34 = vpop.f32.mrb[27].mxu0  ;;  %v14910_v55 = vadd.f32 %v1277_v2, %v14827_v4  ;;  %v1297_v43 = vsel %vm816_vm4, %v14907_v63, -inf }
 0x282   :  { %1298 = vmax.xlane.f32.xlu1 %v1297_v43  ;;  %v1300_v33 = vsel %vm816_vm4, %v14910_v55, -inf }
 0x285   :  { %v1282_v18 = vpop.f32.mrb[28].mxu0 }
 0x286   :  { %v14917_v30 = vadd.f32 %v1282_v18, %v14845_v37  ;;  %v13197_v42 = vpop.f32.mrb[29].mxu0  ;;  %1301 = vmax.xlane.f32.xlu1 %v1300_v33  ;;  %v1369_v18 = vmul.f32 %v14691_v13, %v14613_v8 }
 0x287   :  { %v1285_v62 = vpop.f32.mrb[30].mxu0 }
 0x288   :  { %v13198_v0 = vpop.f32.mrb[31].mxu0  ;;  %v14920_v34 = vadd.f32 %v1285_v62, %v14854_v58  ;;  %v1303_v2 = vsel %vm816_vm4, %v14917_v30, -inf }
 0x28a   :  { %1304 = vmax.xlane.f32.xlu1 %v1303_v2  ;;  %v1306_v43 = vsel %vm816_vm4, %v14920_v34, -inf  ;;  %v1373_v2 = vpack.c.bf16 %v1369_v18, %v1368_v7 }
 0x28d   :  { %v1290_v11 = vpop.f32.mrb[32].mxu0 }
 0x28e   :  { %v14931_v33 = vadd.f32 %v1290_v11, %v14875_v48  ;;  %v13201_v42 = vpop.f32.mrb[33].mxu0  ;;  %1307 = vmax.xlane.f32.xlu1 %v1306_v43 }
 0x28f   :  { %v1293_v62 = vpop.f32.mrb[34].mxu0 }
 0x290   :  { %v13202_v0 = vpop.f32.mrb[35].mxu0  ;;  %v14934_v31 = vadd.f32 %v1293_v62, %v14882_v61  ;;  %v1309_v36 = vsel %vm816_vm4, %v14931_v33, -inf }
 0x292   :  { %1310 = vmax.xlane.f32.xlu1 %v1309_v36  ;;  %v1312_v27 = vsel %vm816_vm4, %v14934_v31, -inf }
 0x293   :  { %1383 = vrot.lane.b32.xlu0 %v1373_v2, %s14222_s26 }
 0x295   :  { %v1520_v26 = vpop.f32.mrb[36].mxu0 }
 0x296   :  { %v14942_v11 = vadd.f32 %v1520_v26, %v14819_v20  ;;  %v13229_v43 = vpop.f32.mrb[37].mxu0  ;;  %1313 = vmax.xlane.f32.xlu1 %v1312_v27 }
 0x297   :  { %v1523_v42 = vpop.f32.mrb[38].mxu0 }
 0x298   :  { %v13230_v0 = vpop.f32.mrb[39].mxu0  ;;  %v1543_v7 = vsel %vm816_vm4, %v14942_v11, -inf }
 0x29a   :  { %1544 = vmax.xlane.f32.xlu1 %v1543_v7 }
 0x29d   :  { %v1528_v18 = vpop.f32.mrb[40].mxu0 }
 0x29e   :  { %v14947_v36 = vadd.f32 %v1528_v18, %v14845_v37  ;;  %v13233_v62 = vpop.f32.mrb[41].mxu0 }
 0x29f   :  { %v1531_v2 = vpop.f32.mrb[42].mxu0  ;;  %v14967_v62 = vadd.f32 %v1523_v42, %v14827_v4 }
 0x2a0   :  { %v14950_v28 = vadd.f32 %v1531_v2, %v14854_v58  ;;  %v13234_v19 = vpop.f32.mrb[43].mxu0  ;;  %v1549_v26 = vsel %vm816_vm4, %v14947_v36, -inf  ;;  %v14971_v2 = vpop.permute.xlu0 %1609 }
 0x2a1   :  { %1550 = vmax.xlane.f32.xlu1 %v1549_v26  ;;  %19287 = vst [vmem:[#allocation26_spill] sm:$0xff] %v14971_v2  ;;  %v14975_v26 = vpop.permute.xlu1 %1145 }
 0x2a2   :  { %v1552_v27 = vsel %vm816_vm4, %v14950_v28, -inf }
 0x2a5   :  { %v1536_v20 = vpop.f32.mrb[44].mxu0  ;;  %1553 = vmax.xlane.f32.xlu1 %v1552_v27 }
 0x2a6   :  { %v14957_v43 = vadd.f32 %v1536_v20, %v14875_v48  ;;  %v13237_v37 = vpop.f32.mrb[45].mxu0  ;;  %v1546_v48 = vsel %vm816_vm4, %v14967_v62, -inf }
 0x2a7   :  { %v1539_v0 = vpop.f32.mrb[46].mxu0 }
 0x2a8   :  { %v14960_v7 = vadd.f32 %v1539_v0, %v14882_v61  ;;  %v13238_v58 = vpop.f32.mrb[47].mxu0  ;;  %v1555_v19 = vsel %vm816_vm4, %v14957_v43, -inf  ;;  %v14973_v61 = vpop.permute.xlu0 %1143 }
 0x2a9   :  { %1556 = vmax.xlane.f32.xlu1 %v1555_v19 }
 0x2aa   :  { %v1558_v18 = vsel %vm816_vm4, %v14960_v7, -inf }
 0x2ac   :  { %v14977_v27 = vpop.permute.xlu0 %1381 }
 0x2ad   :  { %1559 = vmax.xlane.f32.xlu1 %v1558_v18 }
 0x2b2   :  { %1547 = vmax.xlane.f32.xlu0 %v1546_v48 }
 0x2f5   :  { %v981_v20 = vpop.xlane.xlu1 %980 }
 0x2f6   :  { %v997_v37 = vsub.f32 %v14822_v38, %v981_v20  ;;  %v819_v0 = vpop.xlane.xlu0 %818 }
 0x2f7   :  { %v835_v4 = vsub.f32 %v14830_v57, %v819_v0 }
 0x2f8   :  { %v1003_v42 = vmul.f32 1.442695, %v997_v37 }
 0x2f9   :  { %v841_v58 = vmul.f32 1.442695, %v835_v4  ;;  %v822_v19 = vpop.xlane.xlu1 %821 }
 0x2fa   :  { %13851 = vpow2.f32 %v1003_v42  ;;  %v984_v18 = vpop.xlane.xlu0 %983  ;;  %v836_v48 = vsub.f32 %v14835_v9, %v822_v19 }
 0x2fb   :  { %v998_v35 = vsub.f32 %v14838_v29, %v984_v18  ;;  %13853 = vpow2.f32 %v841_v58 }
 0x2fc   :  { %v843_v17 = vmul.f32 1.442695, %v836_v48 }
 0x2fd   :  { %v1005_v52 = vmul.f32 1.442695, %v998_v35 }
 0x2fe   :  { %13855 = vpow2.f32 %v843_v17  ;;  %v987_v50 = vpop.xlane.xlu0 %986 }
 0x2ff   :  { %v999_v53 = vsub.f32 %v14857_v59, %v987_v50  ;;  %v990_v38 = vpop.xlane.xlu1 %989  ;;  %13857 = vpow2.f32 %v1005_v52 }
 0x300   :  { %v1000_v57 = vsub.f32 %v14860_v45, %v990_v38 }
 0x301   :  { %v1007_v20 = vmul.f32 1.442695, %v999_v53 }
 0x302   :  { %v1009_v37 = vmul.f32 1.442695, %v1000_v57  ;;  %v825_v0 = vpop.xlane.xlu0 %824 }
 0x303   :  { %13859 = vpow2.f32 %v1007_v20  ;;  %v837_v4 = vsub.f32 %v14865_v54, %v825_v0  ;;  %v828_v9 = vpop.xlane.xlu1 %827 }
 0x304   :  { %v14986_v42 = vpop.eup %13851  ;;  %v838_v29 = vsub.f32 %v14868_v3, %v828_v9  ;;  %13861 = vpow2.f32 %v1009_v37 }
 0x305   :  { %v845_v17 = vmul.f32 1.442695, %v837_v4  ;;  %v1015_v50 = vsel %vm816_vm4, %v14986_v42, 0.0  ;;  %v14991_v35 = vpop.eup %13853 }
 0x306   :  { %v847_v52 = vmul.f32 1.442695, %v838_v29  ;;  %v993_v59 = vpop.xlane.xlu0 %992  ;;  %1016 = vadd.xlane.f32.xlu1 %v1015_v50  ;;  %v853_v18 = vsel %vm816_vm4, %v14991_v35, 0.0 }
 0x307   :  { %13863 = vpow2.f32 %v845_v17  ;;  %v1001_v53 = vsub.f32 %v14885_v21, %v993_v59  ;;  %v996_v45 = vpop.xlane.xlu1 %995 }
 0x308   :  { %v14994_v54 = vpop.eup %13855  ;;  %v1002_v58 = vsub.f32 %v14890_v44, %v996_v45  ;;  %13865 = vpow2.f32 %v847_v52 }
 0x309   :  { %v1011_v3 = vmul.f32 1.442695, %v1001_v53  ;;  %v856_v19 = vsel %vm816_vm4, %v14994_v54, 0.0  ;;  %v15001_v48 = vpop.eup %13857 }
 0x30a   :  { %v831_v38 = vpop.xlane.xlu0 %830  ;;  %857 = vadd.xlane.f32.xlu0 %v856_v19  ;;  %854 = vadd.xlane.f32.xlu1 %v853_v18  ;;  %v1013_v20 = vmul.f32 1.442695, %v1002_v58  ;;  %v1018_v4 = vsel %vm816_vm4, %v15001_v48, 0.0 }
 0x30b   :  { %v839_v21 = vsub.f32 %v14895_v56, %v831_v38  ;;  %v834_v57 = vpop.xlane.xlu1 %833  ;;  %13867 = vpow2.f32 %v1011_v3 }
 0x30c   :  { %v840_v37 = vsub.f32 %v14898_v5, %v834_v57 }
 0x30d   :  { %v15005_v44 = vpop.eup %13859  ;;  %v849_v0 = vmul.f32 1.442695, %v839_v21 }
 0x30e   :  { %v851_v9 = vmul.f32 1.442695, %v840_v37  ;;  %v1021_v29 = vsel %vm816_vm4, %v15005_v44, 0.0  ;;  %1019 = vadd.xlane.f32.xlu1 %v1018_v4  ;;  %v15011_v17 = vpop.eup %13861  ;;  %v1371_v4 = vmul.f32 %v14691_v13, %v14625_v25 }
 0x30f   :  { %13869 = vpow2.f32 %v849_v0  ;;  %1022 = vadd.xlane.f32.xlu0 %v1021_v29  ;;  %v1024_v5 = vsel %vm816_vm4, %v15011_v17, 0.0  ;;  %v1299_v38 = vpop.xlane.xlu1 %1298  ;;  %v1370_v0 = vmul.f32 %v14691_v13, %v14623_v24  ;;  %v15051_v13 = vpop.permute.xlu0 %1383 }
 0x310   :  { %13871 = vpow2.f32 %v1013_v20 }
 0x311   :  { %v15013_v56 = vpop.eup %13863  ;;  %13873 = vpow2.f32 %v851_v9  ;;  %v1374_v9 = vpack.c.bf16 %v1371_v4, %v1370_v0 }
 0x312   :  { %v859_v50 = vsel %vm816_vm4, %v15013_v56, 0.0  ;;  %v15019_v52 = vpop.eup %13865 }
 0x313   :  { %1025 = vadd.xlane.f32.xlu0 %v1024_v5  ;;  %860 = vadd.xlane.f32.xlu1 %v859_v50  ;;  %v862_v59 = vsel %vm816_vm4, %v15019_v52, 0.0  ;;  %v1302_v20 = vpop.xlane.xlu1 %1301  ;;  %v1612_v5 = vmul.f32 %v14971_v2, %v14604_v40  ;;  %v1613_v50 = vmul.f32 %v14971_v2, %v14606_v51 }
 0x315   :  { %v15023_v53 = vpop.eup %13867 }
 0x316   :  { %v1027_v3 = vsel %vm816_vm4, %v15023_v53, 0.0 }
 0x317   :  { %863 = vadd.xlane.f32.xlu0 %v862_v59  ;;  %v1305_v37 = vpop.xlane.xlu1 %1304  ;;  %v1618_v59 = vpack.c.bf16 %v1613_v50, %v1612_v5 }
 0x318   :  { %v1317_v4 = vsub.f32 %v14917_v30, %v1305_v37 }
 0x319   :  { %v15025_v45 = vpop.eup %13869 }
 0x31a   :  { %v15027_v58 = vpop.eup %13871  ;;  %v865_v19 = vsel %vm816_vm4, %v15025_v45, 0.0 }
 0x31b   :  { %v15033_v18 = vpop.eup %13873  ;;  %1028 = vadd.xlane.f32.xlu0 %v1027_v3  ;;  %866 = vadd.xlane.f32.xlu1 %v865_v19  ;;  %v1030_v21 = vsel %vm816_vm4, %v15027_v58, 0.0  ;;  %v1308_v29 = vpop.xlane.xlu1 %1307 }
 0x31c   :  { %v868_v57 = vsel %vm816_vm4, %v15033_v18, 0.0  ;;  %v1318_v5 = vsub.f32 %v14920_v34, %v1308_v29 }
 0x31f   :  { %1031 = vadd.xlane.f32.xlu0 %v1030_v21  ;;  %869 = vadd.xlane.f32.xlu1 %v868_v57  ;;  %v1311_v3 = vpop.xlane.xlu1 %1310  ;;  %v1315_v21 = vsub.f32 %v14907_v63, %v1299_v38  ;;  %v1316_v57 = vsub.f32 %v14910_v55, %v1302_v20  ;;  %v1327_v55 = vmul.f32 1.442695, %v1318_v5 }
 0x320   :  { %v1319_v38 = vsub.f32 %v14931_v33, %v1311_v3 }
 0x321   :  { %v1321_v0 = vmul.f32 1.442695, %v1315_v21  ;;  %v1323_v46 = vmul.f32 1.442695, %v1316_v57 }
 0x323   :  { %v1314_v19 = vpop.xlane.xlu1 %1313  ;;  %13875 = vpow2.f32 %v1321_v0 }
 0x324   :  { %v1320_v51 = vsub.f32 %v14934_v31, %v1314_v19  ;;  %13877 = vpow2.f32 %v1323_v46  ;;  %v1329_v31 = vmul.f32 1.442695, %v1319_v38 }
 0x327   :  { %v1545_v40 = vpop.xlane.xlu1 %1544 }
 0x328   :  { %v1561_v19 = vsub.f32 %v14942_v11, %v1545_v40 }
 0x32d   :  { %v15060_v34 = vpop.eup %13875 }
 0x32e   :  { %v1551_v50 = vpop.xlane.xlu1 %1550  ;;  %v15062_v46 = vpop.eup %13877 }
 0x32f   :  { %v1563_v30 = vsub.f32 %v14947_v36, %v1551_v50  ;;  %v1333_v36 = vsel %vm816_vm4, %v15060_v34, 0.0  ;;  %v1336_v11 = vsel %vm816_vm4, %v15062_v46, 0.0 }
 0x330   :  { %1385 = vrot.lane.b32.xlu1 %v1374_v9, %s14222_s26  ;;  %v1325_v9 = vmul.f32 1.442695, %v1317_v4 }
 0x331   :  { %v1571_v21 = vmul.f32 1.442695, %v1563_v30 }
 0x332   :  { %13879 = vpow2.f32 %v1325_v9  ;;  %v1554_v37 = vpop.xlane.xlu1 %1553 }
 0x333   :  { %v1564_v33 = vsub.f32 %v14950_v28, %v1554_v37 }
 0x335   :  { %1627 = vrot.lane.b32.xlu0 %v1618_v59, %s14222_s26  ;;  %v1331_v59 = vmul.f32 1.442695, %v1320_v51  ;;  %v1573_v57 = vmul.f32 1.442695, %v1564_v33  ;;  %v1615_v33 = vmul.f32 %v14971_v2, %v14613_v8 }
 0x337   :  { %13881 = vpow2.f32 %v1331_v59 }
 0x338   :  { %13883 = vpow2.f32 %v1327_v55 }
 0x33c   :  { %v15065_v29 = vpop.eup %13879 }
 0x33d   :  { %v1339_v28 = vsel %vm816_vm4, %v15065_v29, 0.0 }
 0x33f   :  { %v1548_v47 = vpop.xlane.xlu0 %1547 }
 0x340   :  { %v1562_v63 = vsub.f32 %v14967_v62, %v1548_v47  ;;  %v1557_v47 = vpop.xlane.xlu1 %1556  ;;  %v1567_v62 = vmul.f32 1.442695, %v1561_v19 }
 0x341   :  { %v15071_v3 = vpop.eup %13881  ;;  %v1565_v0 = vsub.f32 %v14957_v43, %v1557_v47 }
 0x342   :  { %v1569_v20 = vmul.f32 1.442695, %v1562_v63  ;;  %v15074_v4 = vpop.eup %13883  ;;  %v1348_v51 = vsel %vm816_vm4, %v15071_v3, 0.0 }
 0x343   :  { %v1575_v5 = vmul.f32 1.442695, %v1565_v0  ;;  %v1342_v43 = vsel %vm816_vm4, %v15074_v4, 0.0  ;;  %v1616_v0 = vmul.f32 %v14971_v2, %v14623_v24  ;;  %v13812_v24 = vld [vmem:[%s19147_s8 + $0x8] sm:$0xff]  }
 0x344   :  { %13885 = vpow2.f32 %v1569_v20  ;;  %v1560_v40 = vpop.xlane.xlu1 %1559 }
 0x345   :  { %13887 = vpow2.f32 %v1329_v31  ;;  %v1566_v50 = vsub.f32 %v14960_v7, %v1560_v40  ;;  %v1617_v40 = vmul.f32 %v14971_v2, %v14625_v25  ;;  %v19288_v25 = vmov 0.0  }
 0x346   :  { %13889 = vpow2.f32 %v1571_v21 }
 0x347   :  { %13891 = vpow2.f32 %v1567_v62  ;;  %v1577_v38 = vmul.f32 1.442695, %v1566_v50  ;;  %v1614_v62 = vmul.f32 %v14971_v2, %v14611_v6  ;;  %v1620_v6 = vpack.c.bf16 %v1617_v40, %v1616_v0 }
 0x348   :  { %13893 = vpow2.f32 %v1573_v57 }
 0x349   :  { %13895 = vpow2.f32 %v1575_v5  ;;  %v1619_v57 = vpack.c.bf16 %v1615_v33, %v1614_v62  ;;  %v13811_v5 = vld [vmem:[%s19147_s8] sm:$0xff]  }
 0x34a   :  { %13897 = vpow2.f32 %v1577_v38  ;;  %13258 = vmatpush3.bf16.msra.mxu0 %v13811_v5 }
 0x34b   :  { %13259 = vmatprep.subr.bf16.mxu0 %v19288_v25 }
 0x34e   :  { %v15080_v9 = vpop.eup %13885  ;;  %13260 = vmatpush3.bf16.msra.mxu0 %v13812_v24 }
 0x34f   :  { %v15083_v59 = vpop.eup %13887  ;;  %v1582_v63 = vsel %vm816_vm4, %v15080_v9, 0.0  ;;  %13273 = vmatprep.subr.bf16.mxu0 %v19288_v25 }
 0x350   :  { %v15089_v55 = vpop.eup %13889  ;;  %v1345_v30 = vsel %vm816_vm4, %v15083_v59, 0.0 }
 0x351   :  { %v1585_v7 = vsel %vm816_vm4, %v15089_v55, 0.0  ;;  %v15095_v20 = vpop.eup %13891 }
 0x352   :  { %v1579_v37 = vsel %vm816_vm4, %v15095_v20, 0.0  ;;  %v15099_v31 = vpop.eup %13893 }
 0x353   :  { %v1588_v19 = vsel %vm816_vm4, %v15099_v31, 0.0  ;;  %v15103_v21 = vpop.eup %13895 }
 0x354   :  { %1334 = vadd.xlane.f32.xlu1 %v1333_v36  ;;  %1337 = vadd.xlane.f32.xlu0 %v1336_v11  ;;  %v1591_v47 = vsel %vm816_vm4, %v15103_v21, 0.0  ;;  %v15111_v36 = vpop.eup %13897 }
 0x355   :  { %v1594_v11 = vsel %vm816_vm4, %v15111_v36, 0.0 }
 0x358   :  { %1340 = vadd.xlane.f32.xlu0 %v1339_v28  ;;  %1349 = vadd.xlane.f32.xlu1 %v1348_v51 }
 0x35c   :  { %1343 = vadd.xlane.f32.xlu0 %v1342_v43  ;;  %1583 = vadd.xlane.f32.xlu1 %v1582_v63 }
 0x360   :  { %1346 = vadd.xlane.f32.xlu0 %v1345_v30  ;;  %1586 = vadd.xlane.f32.xlu1 %v1585_v7 }
 0x364   :  { %1580 = vadd.xlane.f32.xlu0 %v1579_v37 }
 0x368   :  { %1589 = vadd.xlane.f32.xlu0 %v1588_v19 }
 0x36c   :  { %1592 = vadd.xlane.f32.xlu0 %v1591_v47 }
 0x370   :  { %1595 = vadd.xlane.f32.xlu0 %v1594_v11 }
 0x371   :  { %1629 = vrot.lane.b32.xlu1 %v1619_v57, %s14222_s26 }
 0x386   :  { %1631 = vrot.lane.b32.xlu0 %v1620_v6, %s14222_s26 }
 0x393   :  { %v1017_v8 = vpop.xlane.xlu1 %1016 }
 0x394   :  { %13899 = vrcp.f32 %v1017_v8 }
 0x397   :  { %v858_v28 = vpop.xlane.xlu0 %857  ;;  %v855_v51 = vpop.xlane.xlu1 %854 }
 0x39b   :  { %v1020_v50 = vpop.xlane.xlu1 %1019 }
 0x39c   :  { %v1023_v43 = vpop.xlane.xlu0 %1022  ;;  %13901 = vrcp.f32 %v1020_v50 }
 0x39e   :  { %v13900_v38 = vpop.eup %13899 }
 0x39f   :  { %v1039_v37 = vmul.f32 %v13900_v38, %v14986_v42 }
 0x3a0   :  { %v1026_v63 = vpop.xlane.xlu0 %1025 }
 0x3a1   :  { %13903 = vrcp.f32 %v1026_v63 }
 0x3a2   :  { %13905 = vrcp.f32 %v1023_v43 }
 0x3a4   :  { %v864_v30 = vpop.xlane.xlu0 %863 }
 0x3a6   :  { %v13902_v7 = vpop.eup %13901 }
 0x3a7   :  { %v1040_v19 = vmul.f32 %v13902_v7, %v15001_v48 }
 0x3a8   :  { %v1029_v47 = vpop.xlane.xlu0 %1028 }
 0x3a9   :  { %v1057_v62 = vpack.c.bf16 %v1040_v19, %v1039_v37  ;;  %13907 = vrcp.f32 %v1029_v47 }
 0x3ab   :  { %v13904_v33 = vpop.eup %13903  ;;  %13156 = vmatmul.mubr.msk.bf16.vlgmr.msra.gmra.mrb[12].mxu1 %vm816_vm4, %v1057_v62 }
 0x3ac   :  { %v13906_v11 = vpop.eup %13905  ;;  %v1032_v57 = vpop.xlane.xlu0 %1031  ;;  %13168 = vmatpush3.bf16.msra.mxu1 %v14812_v60  ;;  %13159 = vmatprep.mubr.msk.bf16.mxu1 %vm14218_vm0, %v19288_v25  ;;  %v1042_v42 = vmul.f32 %v13904_v33, %v15011_v17 }
 0x3ad   :  { %13909 = vrcp.f32 %v1032_v57  ;;  %13169 = vmatprep.subr.bf16.mxu1 %v19288_v25  ;;  %v1041_v48 = vmul.f32 %v13906_v11, %v15005_v44  ;;  %v861_v60 = vpop.xlane.xlu1 %860 }
 0x3ae   :  { %13911 = vrcp.f32 %v858_v28 }
 0x3af   :  { %13913 = vrcp.f32 %v855_v51  ;;  %v1058_v0 = vpack.c.bf16 %v1042_v42, %v1041_v48 }
 0x3b0   :  { %13170 = vmatpush3.bf16.msra.mxu1 %v14973_v61  ;;  %13915 = vrcp.f32 %v864_v30 }
 0x3b1   :  { %13171 = vmatprep.subr.bf16.mxu1 %v19288_v25  ;;  %v867_v44 = vpop.xlane.xlu1 %866  ;;  %13917 = vrcp.f32 %v861_v60 }
 0x3b3   :  { %13160 = vmatmul.mubr.msk.bf16.gmra.mrb[16].mxu1 %vm816_vm4, %v1058_v0  ;;  %v13908_v40 = vpop.eup %13907 }
 0x3b4   :  { %13172 = vmatpush3.bf16.msra.mxu1 %v14975_v26  ;;  %13163 = vmatprep.mubr.msk.bf16.mxu1 %vm14218_vm0, %v19288_v25  ;;  %v1043_v6 = vmul.f32 %v13908_v40, %v15023_v53 }
 0x3b5   :  { %13203 = vmatprep.subr.bf16.mxu1 %v19288_v25  ;;  %v870_v50 = vpop.xlane.xlu1 %869 }
 0x3b6   :  { %13919 = vrcp.f32 %v870_v50 }
 0x3b7   :  { %v13910_v17 = vpop.eup %13909  ;;  %13921 = vrcp.f32 %v867_v44 }
 0x3b8   :  { %v1044_v61 = vmul.f32 %v13910_v17, %v15027_v58  ;;  %v13912_v8 = vpop.eup %13911 }
 0x3b9   :  { %v13914_v51 = vpop.eup %13913  ;;  %v878_v26 = vmul.f32 %v13912_v8, %v14994_v54  ;;  %v1386_v38 = vpop.permute.xlu1 %1385 }
 0x3ba   :  { %v1059_v28 = vpack.c.bf16 %v1044_v61, %v1043_v6  ;;  %v877_v5 = vmul.f32 %v13914_v51, %v14991_v35  ;;  %v13916_v53 = vpop.eup %13915 }
 0x3bb   :  { %v13918_v58 = vpop.eup %13917  ;;  %v880_v24 = vmul.f32 %v13916_v53, %v15019_v52 }
 0x3bc   :  { %13164 = vmatmul.mubr.msk.bf16.gmra.mrb[20].mxu1 %vm816_vm4, %v1059_v28  ;;  %v895_v43 = vpack.c.bf16 %v878_v26, %v877_v5  ;;  %v879_v54 = vmul.f32 %v13918_v58, %v15013_v56 }
 0x3bd   :  { %13173 = vmatprep.mubr.msk.bf16.mxu1 %vm14218_vm0, %v19288_v25 }
 0x3be   :  { %v896_v35 = vpack.c.bf16 %v880_v24, %v879_v54 }
 0x3c0   :  { %v13920_v63 = vpop.eup %13919 }
 0x3c1   :  { %v13922_v30 = vpop.eup %13921 }
 0x3c2   :  { %v881_v56 = vmul.f32 %v13922_v30, %v15025_v45 }
 0x3c4   :  { %13174 = vmatmul.mubr.msk.bf16.vlgmr.msra.gmra.mrb[12].mxu1 %vm816_vm4, %v895_v43 }
 0x3c5   :  { %13204 = vmatpush3.bf16.msra.mxu1 %v14977_v27  ;;  %13177 = vmatprep.mubr.msk.bf16.mxu1 %vm14218_vm0, %v19288_v25  ;;  %v882_v27 = vmul.f32 %v13920_v63, %v15033_v18 }
 0x3c6   :  { %13205 = vmatprep.subr.bf16.mxu1 %v19288_v25 }
 0x3c7   :  { %v897_v52 = vpack.c.bf16 %v882_v27, %v881_v56 }
 0x3c9   :  { %13206 = vmatpush3.bf16.msra.mxu1 %v15051_v13  ;;  %v1628_v13 = vpop.permute.xlu0 %1627 }
 0x3ca   :  { %13207 = vmatprep.subr.bf16.mxu1 %v19288_v25 }
 0x3cc   :  { %13178 = vmatmul.mubr.msk.bf16.gmra.mrb[16].mxu1 %vm816_vm4, %v896_v35 }
 0x3cd   :  { %13208 = vmatpush3.bf16.msra.mxu1 %v1386_v38  ;;  %13181 = vmatprep.mubr.msk.bf16.mxu1 %vm14218_vm0, %v19288_v25 }
 0x3ce   :  { %13239 = vmatprep.subr.bf16.mxu1 %v19288_v25 }
 0x3d4   :  { %13182 = vmatmul.mubr.msk.bf16.gmra.mrb[20].mxu1 %vm816_vm4, %v897_v52 }
 0x3d5   :  { %13209 = vmatprep.mubr.msk.bf16.mxu1 %vm14218_vm0, %v19288_v25 }
 0x3e1   :  { %v1338_v7 = vpop.xlane.xlu0 %1337  ;;  %v1335_v37 = vpop.xlane.xlu1 %1334 }
 0x3e2   :  { %13923 = vrcp.f32 %v1338_v7 }
 0x3e3   :  { %13925 = vrcp.f32 %v1335_v37 }
 0x3e5   :  { %v1341_v19 = vpop.xlane.xlu0 %1340  ;;  %v1350_v47 = vpop.xlane.xlu1 %1349 }
 0x3e6   :  { %13927 = vrcp.f32 %v1341_v19 }
 0x3e9   :  { %v1344_v62 = vpop.xlane.xlu0 %1343  ;;  %v1584_v18 = vpop.xlane.xlu1 %1583 }
 0x3ea   :  { %13929 = vrcp.f32 %v1344_v62 }
 0x3ec   :  { %v13924_v33 = vpop.eup %13923 }
 0x3ed   :  { %v13926_v11 = vpop.eup %13925  ;;  %v1358_v45 = vmul.f32 %v13924_v33, %v15062_v46  ;;  %v1347_v57 = vpop.xlane.xlu0 %1346 }
 0x3ee   :  { %v1357_v42 = vmul.f32 %v13926_v11, %v15060_v34  ;;  %13931 = vrcp.f32 %v1347_v57  ;;  %v1587_v0 = vpop.xlane.xlu1 %1586  ;;  %v15215_v57 = vld [vmem:[%s19148_s9] ss:$0 sm:$0xff] }
 0x3ef   :  { %13933 = vrcp.f32 %v1350_v47 }
 0x3f0   :  { %v1375_v48 = vpack.c.bf16 %v1358_v45, %v1357_v42  ;;  %v13928_v40 = vpop.eup %13927 }
 0x3f1   :  { %v1581_v60 = vpop.xlane.xlu0 %1580  ;;  %v1359_v46 = vmul.f32 %v13928_v40, %v15065_v29 }
 0x3f2   :  { %13210 = vmatmul.mubr.msk.bf16.vlgmr.msra.gmra.mrb[12].mxu1 %vm816_vm4, %v1375_v48  ;;  %v1630_v6 = vpop.permute.xlu1 %1629  ;;  %13935 = vrcp.f32 %v1581_v60 }
 0x3f3   :  { %13240 = vmatpush3.bf16.msra.mxu1 %v1628_v13  ;;  %13213 = vmatprep.mubr.msk.bf16.mxu1 %vm14218_vm0, %v19288_v25  ;;  %13937 = vrcp.f32 %v1584_v18 }
 0x3f4   :  { %v13930_v17 = vpop.eup %13929  ;;  %13241 = vmatprep.subr.bf16.mxu1 %v19288_v25 }
 0x3f5   :  { %v1590_v44 = vpop.xlane.xlu0 %1589  ;;  %v1360_v34 = vmul.f32 %v13930_v17, %v15074_v4 }
 0x3f6   :  { %13939 = vrcp.f32 %v1590_v44 }
 0x3f7   :  { %13242 = vmatpush3.bf16.msra.mxu1 %v1630_v6  ;;  %v1376_v61 = vpack.c.bf16 %v1360_v34, %v1359_v46  ;;  %13941 = vrcp.f32 %v1587_v0 }
 0x3f8   :  { %13243 = vmatprep.subr.bf16.mxu1 %v19288_v25  ;;  %v13932_v8 = vpop.eup %13931 }
 0x3f9   :  { %v1593_v28 = vpop.xlane.xlu0 %1592  ;;  %v13934_v51 = vpop.eup %13933  ;;  %v1361_v26 = vmul.f32 %v13932_v8, %v15083_v59 }
 0x3fa   :  { %13214 = vmatmul.mubr.msk.bf16.gmra.mrb[16].mxu1 %vm816_vm4, %v1376_v61  ;;  %v1362_v4 = vmul.f32 %v13934_v51, %v15071_v3 }
 0x3fb   :  { %13217 = vmatprep.mubr.msk.bf16.mxu1 %vm14218_vm0, %v19288_v25 }
 0x3fc   :  { %v1377_v5 = vpack.c.bf16 %v1362_v4, %v1361_v26  ;;  %v13936_v50 = vpop.eup %13935 }
 0x3fd   :  { %v1596_v29 = vpop.xlane.xlu0 %1595  ;;  %v13938_v53 = vpop.eup %13937  ;;  %v1603_v58 = vmul.f32 %v13936_v50, %v15095_v20 }
 0x3fe   :  { %v1604_v59 = vmul.f32 %v13938_v53, %v15080_v9  ;;  %13943 = vrcp.f32 %v1596_v29 }
 0x3ff   :  { %13945 = vrcp.f32 %v1593_v28 }
 0x400   :  { %v1621_v3 = vpack.c.bf16 %v1604_v59, %v1603_v58  ;;  %v13940_v24 = vpop.eup %13939 }
 0x401   :  { %v1632_v43 = vpop.permute.xlu0 %1631  ;;  %v13942_v54 = vpop.eup %13941  ;;  %v1606_v35 = vmul.f32 %v13940_v24, %v15099_v31 }
 0x402   :  { %13218 = vmatmul.mubr.msk.bf16.gmra.mrb[20].mxu1 %vm816_vm4, %v1377_v5  ;;  %v1605_v63 = vmul.f32 %v13942_v54, %v15089_v55 }
 0x403   :  { %13244 = vmatpush3.bf16.msra.mxu1 %v1632_v43  ;;  %13245 = vmatprep.mubr.msk.bf16.mxu1 %vm14218_vm0, %v19288_v25 }
 0x404   :  { %13289 = vmatprep.subr.bf16.mxu1 %v19288_v25  ;;  %v1622_v38 = vpack.c.bf16 %v1606_v35, %v1605_v63 }
 0x408   :  { %v13944_v20 = vpop.eup %13943 }
 0x409   :  { %v13946_v30 = vpop.eup %13945  ;;  %v1608_v9 = vmul.f32 %v13944_v20, %v15111_v36 }
 0x40a   :  { %13246 = vmatmul.mubr.msk.bf16.vlgmr.msra.gmra.mrb[12].mxu1 %vm816_vm4, %v1621_v3  ;;  %v1607_v27 = vmul.f32 %v13946_v30, %v15103_v21 }
 0x40b   :  { %13249 = vmatprep.mubr.msk.bf16.mxu1 %vm14218_vm0, %v19288_v25 }
 0x40c   :  { %v1623_v56 = vpack.c.bf16 %v1608_v9, %v1607_v27 }
 0x412   :  { %13250 = vmatmul.mubr.msk.bf16.gmra.mrb[16].mxu1 %vm816_vm4, %v1622_v38 }
 0x413   :  { %13253 = vmatprep.mubr.msk.bf16.mxu1 %vm14218_vm0, %v19288_v25 }
 0x41a   :  { %13254 = vmatmul.mubr.msk.bf16.gmra.mrb[20].mxu1 %vm816_vm4, %v1623_v56 }
 0x41b   :  { %13297 = vmatprep.mubr.msk.bf16.mxu1 %vm14218_vm0, %v19288_v25 }
 0x4dd   :  { %v1679_v31 = vpop.f32.mrb[12].mxu1 }
 0x4de   :  { %v13247_v55 = vpop.f32.mrb[13].mxu1 }
 0x4df   :  { %v1682_v52 = vpop.f32.mrb[14].mxu1 }
 0x4e0   :  { %v1708_v13 = vpack.c.bf16 %v1682_v52, %v1679_v31  ;;  %v13248_v7 = vpop.f32.mrb[15].mxu1 }
 0x4e2   :  { %13262 = vmatmul.mubr.msk.bf16.vlgmr.msra.gmra.mrb[48].mxu0 %vm647_vm3, %v1708_v13 }
 0x4e3   :  { %13265 = vmatprep.mubr.msk.bf16.mxu0 %vm14218_vm0, %v19288_v25 }
 0x4e5   :  { %v1687_v37 = vpop.f32.mrb[16].mxu1 }
 0x4e6   :  { %v13251_v36 = vpop.f32.mrb[17].mxu1 }
 0x4e7   :  { %v1690_v19 = vpop.f32.mrb[18].mxu1 }
 0x4e8   :  { %v1709_v21 = vpack.c.bf16 %v1690_v19, %v1687_v37  ;;  %v13252_v47 = vpop.f32.mrb[19].mxu1 }
 0x4ea   :  { %13266 = vmatmul.mubr.msk.bf16.gmra.mrb[52].mxu0 %vm647_vm3, %v1709_v21 }
 0x4eb   :  { %13269 = vmatprep.mubr.msk.bf16.mxu0 %vm14218_vm0, %v19288_v25 }
 0x4ed   :  { %v1695_v62 = vpop.f32.mrb[20].mxu1 }
 0x4ee   :  { %v13255_v18 = vpop.f32.mrb[21].mxu1 }
 0x4ef   :  { %v1698_v33 = vpop.f32.mrb[22].mxu1 }
 0x4f0   :  { %v1710_v11 = vpack.c.bf16 %v1698_v33, %v1695_v62  ;;  %v13256_v45 = vpop.f32.mrb[23].mxu1  ;;  %v19289_v62 = vld [vmem:[#allocation11_spill] sm:$0xff] }
 0x4f2   :  { %13270 = vmatmul.mubr.msk.bf16.gmra.mrb[56].mxu0 %vm647_vm3, %v1710_v11  ;;  %v19290_v11 = vld [vmem:[#allocation10_spill] sm:$0xff] }
 0x4f3   :  { %13277 = vmatprep.mubr.msk.bf16.mxu0 %vm14218_vm0, %v19288_v25 }
 0x5b5   :  { %v1772_v42 = vpop.f32.mrb[48].mxu0 }
 0x5b6   :  { %v1773_v48 = vadd.f32 %v15215_v57, %v1772_v42  ;;  %v13263_v0 = vpop.f32.mrb[49].mxu0  ;;  %v19291_v42 = vld [vmem:[#allocation14_spill] sm:$0xff] }
 0x5b7   :  { %v1775_v60 = vpop.f32.mrb[50].mxu0 }
 0x5b8   :  { %v1801_v40 = vcombine.high %v1773_v48, %v1773_v48  ;;  %v1808_v17 = vrot.slane %v1773_v48, %v14398_v32  ;;  %v1776_v44 = vadd.f32 %v15215_v57, %v1775_v60  ;;  %v13264_v46 = vpop.f32.mrb[51].mxu0 }
 0x5ba   :  { %v1815_v34 = vrot.slane %v1801_v40, %v14398_v32  ;;  %v1816_v6 = vcombine.high %v1808_v17, %v1808_v17  ;;  %v1818_v61 = vcombine.high %v1776_v44, %v1776_v44  ;;  %v1825_v8 = vrot.slane %v1776_v44, %v14398_v32 }
 0x5bb   :  { %v15227_v29 = vadd.f32 %v1808_v17, %v14442_v1 }
 0x5bc   :  { %v1817_v28 = vcombine.high %v1815_v34, %v1815_v34  ;;  %v15223_v51 = vadd.f32 %v1816_v6, %v14457_v12  ;;  %v1832_v26 = vrot.slane %v1818_v61, %v14398_v32  ;;  %v1833_v4 = vcombine.high %v1825_v8, %v1825_v8  ;;  %v19292_v61 = vld [vmem:[#allocation12_spill] sm:$0xff] }
 0x5bd   :  { %v1780_v5 = vpop.f32.mrb[52].mxu0  ;;  %v15230_v50 = vadd.f32 %v1815_v34, %v14453_v10  ;;  %v15237_v12 = vadd.f32 %v1825_v8, %v14474_v23 }
 0x5be   :  { %v1834_v43 = vcombine.high %v1832_v26, %v1832_v26  ;;  %v1781_v53 = vadd.f32 %v15215_v57, %v1780_v5  ;;  %v13267_v58 = vpop.f32.mrb[53].mxu0  ;;  %v15234_v59 = vadd.f32 %v1817_v28, %v14460_v15  ;;  %v15240_v3 = vadd.f32 %v1833_v4, %v14470_v22 }
 0x5bf   :  { %v1783_v1 = vpop.f32.mrb[54].mxu0  ;;  %v1975_v24 = vcombine.low %v15227_v29, %v15223_v51  ;;  %v15249_v38 = vadd.f32 %v1832_v26, %v14463_v16  ;;  %v19293_v26 = vld [vmem:[#allocation13_spill] sm:$0xff] }
 0x5c0   :  { %v1835_v54 = vcombine.high %v1781_v53, %v1781_v53  ;;  %v1842_v10 = vrot.slane %v1781_v53, %v14398_v32  ;;  %v1784_v35 = vadd.f32 %v15215_v57, %v1783_v1  ;;  %v13268_v63 = vpop.f32.mrb[55].mxu0  ;;  %v1976_v15 = vcombine.low %v15230_v50, %v15234_v59 }
 0x5c1   :  { %v15252_v23 = vadd.f32 %v1834_v43, %v14482_v14  ;;  %v1992_v22 = vcombine.low %v15237_v12, %v15240_v3  ;;  %v1983_v27 = vrot.slane %v1975_v24, %v14398_v32 }
 0x5c2   :  { %v1849_v20 = vrot.slane %v1835_v54, %v14398_v32  ;;  %v1850_v30 = vcombine.high %v1842_v10, %v1842_v10  ;;  %v1852_v9 = vcombine.high %v1784_v35, %v1784_v35  ;;  %v15259_v56 = vadd.f32 %v1842_v10, %v14493_v39 }
 0x5c3   :  { %v1859_v31 = vrot.slane %v1784_v35, %v14398_v32  ;;  %v1990_v16 = vrot.slane %v1976_v15, %v14398_v32  ;;  %v1993_v14 = vcombine.low %v15249_v38, %v15252_v23  ;;  %v2000_v7 = vrot.slane %v1992_v22, %v14398_v32  ;;  %v19294_v35 = vld [vmem:[#allocation15_spill] sm:$0xff]  ;;  %v19295_v15 = vld [vmem:[#allocation17_spill] sm:$0xff] }
 0x5c4   :  { %v1851_v55 = vcombine.high %v1849_v20, %v1849_v20  ;;  %v15266_v52 = vadd.f32 %v1850_v30, %v14496_v41  ;;  %v1866_v13 = vrot.slane %v1852_v9, %v14398_v32  ;;  %v15271_v37 = vadd.f32 %v1849_v20, %v14508_v49 }
 0x5c5   :  { %v1867_v39 = vcombine.high %v1859_v31, %v1859_v31  ;;  %v1788_v36 = vpop.f32.mrb[56].mxu0  ;;  %v1991_v19 = vcombine.low %v1983_v27, %v1990_v16  ;;  %v2007_v21 = vrot.slane %v1993_v14, %v14398_v32  ;;  %v15275_v18 = vadd.f32 %v1859_v31, %v19289_v62  ;;  %v19296_v16 = vld [vmem:[#allocation16_spill] sm:$0xff] }
 0x5c6   :  { %v1868_v47 = vcombine.high %v1866_v13, %v1866_v13  ;;  %v1789_v33 = vadd.f32 %v15215_v57, %v1788_v36  ;;  %v13271_v41 = vpop.f32.mrb[57].mxu0  ;;  %v15279_v45 = vadd.f32 %v1851_v55, %v19290_v11  ;;  %v2009_v40 = vcombine.low %v15259_v56, %v15266_v52  ;;  %v19298_v36 = vld [vmem:[#allocation19_spill] sm:$0xff] }
 0x5c7   :  { %v15282_v48 = vadd.f32 %v1867_v39, %v19291_v42  ;;  %v2083_v49 = vsel %vm647_vm3, %v1991_v19, 0.0  ;;  %v1791_v0 = vpop.f32.mrb[58].mxu0  ;;  %v2008_v60 = vcombine.low %v2000_v7, %v2007_v21  ;;  %v15292_v8 = vadd.f32 %v1866_v13, %v19292_v61  ;;  %v19297_v13 = vld [vmem:[#allocation20_spill] sm:$0xff]  ;;  %v19299_v21 = vld [vmem:[#allocation18_spill] sm:$0xff] }
 0x5c8   :  { %v1869_v17 = vcombine.high %v1789_v33, %v1789_v33  ;;  %v1876_v44 = vrot.slane %v1789_v33, %v14398_v32  ;;  %2084 = vadd.xlane.f32.xlu0 %v2083_v49  ;;  %v1792_v46 = vadd.f32 %v15215_v57, %v1791_v0  ;;  %v13272_v34 = vpop.f32.mrb[59].mxu0  ;;  %v2010_v6 = vcombine.low %v15271_v37, %v15279_v45  ;;  %v19300_v41 = vld [vmem:[#allocation22_spill] sm:$0xff]  ;;  %v19301_v49 = vld [vmem:[#allocation21_spill] sm:$0xff] }
 0x5c9   :  { %v2086_v28 = vsel %vm647_vm3, %v2008_v60, 0.0  ;;  %v15296_v4 = vadd.f32 %v1868_v47, %v19293_v26  ;;  %v2026_v5 = vcombine.low %v15275_v18, %v15282_v48  ;;  %v2017_v1 = vrot.slane %v2009_v40, %v14398_v32 }
 0x5ca   :  { %v1883_v43 = vrot.slane %v1869_v17, %v14398_v32  ;;  %v1884_v53 = vcombine.high %v1876_v44, %v1876_v44  ;;  %v1886_v58 = vcombine.high %v1792_v46, %v1792_v46  ;;  %2087 = vadd.xlane.f32.xlu1 %v2086_v28  ;;  %v1893_v57 = vrot.slane %v1792_v46, %v14398_v32 }
 0x5cb   :  { %v2024_v24 = vrot.slane %v2010_v6, %v14398_v32  ;;  %v2027_v54 = vcombine.low %v15292_v8, %v15296_v4  ;;  %v15307_v63 = vadd.f32 %v1876_v44, %v19294_v35  ;;  %v2034_v27 = vrot.slane %v2026_v5, %v14398_v32 }
 0x5cc   :  { %v1885_v10 = vcombine.high %v1883_v43, %v1883_v43  ;;  %v15310_v22 = vadd.f32 %v1884_v53, %v19295_v15  ;;  %v1900_v20 = vrot.slane %v1886_v58, %v14398_v32  ;;  %v1901_v30 = vcombine.high %v1893_v57, %v1893_v57 }
 0x5cd   :  { %v2025_v9 = vcombine.low %v2017_v1, %v2024_v24  ;;  %v2041_v31 = vrot.slane %v2027_v54, %v14398_v32  ;;  %v15316_v14 = vadd.f32 %v1883_v43, %v19296_v16  ;;  %v15324_v19 = vadd.f32 %v1893_v57, %v19298_v36 }
 0x5ce   :  { %v1902_v55 = vcombine.high %v1900_v20, %v1900_v20  ;;  %v15319_v7 = vadd.f32 %v1885_v10, %v19297_v13  ;;  %v2043_v39 = vcombine.low %v15307_v63, %v15310_v22  ;;  %v15327_v47 = vadd.f32 %v1901_v30, %v19299_v21 }
 0x5cf   :  { %v2089_v62 = vsel %vm647_vm3, %v2025_v9, 0.0  ;;  %v2042_v33 = vcombine.low %v2034_v27, %v2041_v31  ;;  %v15331_v11 = vadd.f32 %v1900_v20, %v19300_v41  ;;  %v14223_v43 = vmov 269488144   ;;  %v19302_v9 = vld [vmem:[#allocation5_spill] sm:$0xff] }
 0x5d0   :  { %2090 = vadd.xlane.f32.xlu0 %v2089_v62  ;;  %v2044_v42 = vcombine.low %v15316_v14, %v15319_v7  ;;  %v15336_v0 = vadd.f32 %v1902_v55, %v19301_v49  ;;  %v2060_v60 = vcombine.low %v15324_v19, %v15327_v47  ;;  %v2051_v40 = vrot.slane %v2043_v39, %v14398_v32 }
 0x5d1   :  { %v2092_v46 = vsel %vm647_vm3, %v2042_v33, 0.0  ;;  %v2115_v53 = vunpack.c.l.s4 %v14223_v43  ;;  %v14224_v58 = vmov 842150450   ;;  %v14225_v1 = vmov 1414812756  }
 0x5d2   :  { %v2058_v17 = vrot.slane %v2044_v42, %v14398_v32  ;;  %v2061_v44 = vcombine.low %v15331_v11, %v15336_v0  ;;  %v2068_v61 = vrot.slane %v2060_v60, %v14398_v32  ;;  %v2122_v57 = vunpack.c.l.s4 %v14224_v58 }
 0x5d3   :  { %v2129_v24 = vunpack.c.l.s4 %v14225_v1  ;;  %v14226_v54 = vmov 1987475062   ;;  %v2116_v35 = vunpack.c.0.s8 %v2115_v53 }
 0x5d4   :  { %2093 = vadd.xlane.f32.xlu0 %v2092_v46  ;;  %v2059_v34 = vcombine.low %v2051_v40, %v2058_v17  ;;  %v2075_v6 = vrot.slane %v2061_v44, %v14398_v32  ;;  %v2136_v10 = vunpack.c.l.s4 %v14226_v54  ;;  %v2123_v15 = vunpack.c.0.s8 %v2122_v57 }
 0x5d5   :  { %v2130_v20 = vunpack.c.0.s8 %v2129_v24  ;;  %v15350_v27 = vsub.s32 %v2116_v35, %v19302_v9 }
 0x5d6   :  { %v2095_v28 = vsel %vm647_vm3, %v2059_v34, 0.0  ;;  %v2076_v26 = vcombine.low %v2068_v61, %v2075_v6  ;;  %v2137_v30 = vunpack.c.0.s8 %v2136_v10  ;;  %v15353_v31 = vsub.s32 %v2123_v15, %v19302_v9 }
 0x5d7   :  { %19303 = vst [vmem:[#allocation11_spill] sm:$0xff] %v15350_v27  ;;  %v15356_v16 = vsub.s32 %v2130_v20, %v19302_v9 }
 0x5d8   :  { %2096 = vadd.xlane.f32.xlu0 %v2095_v28  ;;  %v2098_v5 = vsel %vm647_vm3, %v2076_v26, 0.0  ;;  %19304 = vst [vmem:[#allocation10_spill] sm:$0xff] %v15353_v31  ;;  %v15359_v55 = vsub.s32 %v2137_v30, %v19302_v9 }
 0x5d9   :  { %19305 = vst [vmem:[#allocation14_spill] sm:$0xff] %v15356_v16 }
 0x5da   :  { %19306 = vst [vmem:[#allocation12_spill] sm:$0xff] %v15359_v55 }
 0x5dc   :  { %2099 = vadd.xlane.f32.xlu0 %v2098_v5 }
 0x655   :  { %v2085_v13 = vpop.xlane.xlu0 %2084 }
 0x656   :  { %v2102_v39 = vmul.f32 0.03125, %v2085_v13 }
 0x657   :  { %v2088_v36 = vpop.xlane.xlu1 %2087 }
 0x658   :  { %v2120_v21 = vrot.slane %v2102_v39, %v15350_v27  ;;  %v2127_v62 = vrot.slane %v2102_v39, %v15353_v31  ;;  %v2134_v33 = vrot.slane %v2102_v39, %v15356_v16  ;;  %v2141_v41 = vrot.slane %v2102_v39, %v15359_v55 }
 0x659   :  { %v2103_v42 = vmul.f32 0.03125, %v2088_v36 }
 0x65a   :  { %v15366_v49 = vsub.f32 %v15227_v29, %v2120_v21  ;;  %v15369_v60 = vsub.f32 %v15223_v51, %v2127_v62  ;;  %v15372_v40 = vsub.f32 %v15230_v50, %v2134_v33  ;;  %v15375_v17 = vsub.f32 %v15234_v59, %v2141_v41 }
 0x65b   :  { %v2148_v44 = vrot.slane %v2103_v42, %v15350_v27  ;;  %v2155_v46 = vrot.slane %v2103_v42, %v15353_v31  ;;  %v2162_v34 = vrot.slane %v2103_v42, %v15356_v16  ;;  %v2169_v6 = vrot.slane %v2103_v42, %v15359_v55 }
 0x65c   :  { %v2330_v29 = vmul.f32 %v15366_v49, %v15366_v49  ;;  %v2331_v51 = vmul.f32 %v15369_v60, %v15369_v60  ;;  %v2332_v50 = vmul.f32 %v15372_v40, %v15372_v40  ;;  %v2333_v59 = vmul.f32 %v15375_v17, %v15375_v17 }
 0x65d   :  { %v2091_v61 = vpop.xlane.xlu0 %2090  ;;  %v15390_v28 = vsub.f32 %v15237_v12, %v2148_v44  ;;  %v15393_v26 = vsub.f32 %v15240_v3, %v2155_v46  ;;  %v15396_v5 = vsub.f32 %v15249_v38, %v2162_v34  ;;  %v15399_v43 = vsub.f32 %v15252_v23, %v2169_v6 }
 0x65e   :  { %v2104_v53 = vmul.f32 0.03125, %v2091_v61  ;;  %v2378_v58 = vcombine.low %v2330_v29, %v2331_v51  ;;  %v2379_v57 = vcombine.low %v2332_v50, %v2333_v59 }
 0x65f   :  { %v2334_v1 = vmul.f32 %v15390_v28, %v15390_v28  ;;  %v2335_v24 = vmul.f32 %v15393_v26, %v15393_v26  ;;  %v2336_v12 = vmul.f32 %v15396_v5, %v15396_v5  ;;  %v2337_v3 = vmul.f32 %v15399_v43, %v15399_v43 }
 0x660   :  { %v2176_v38 = vrot.slane %v2104_v53, %v15350_v27  ;;  %v2183_v23 = vrot.slane %v2104_v53, %v15353_v31  ;;  %v2190_v54 = vrot.slane %v2104_v53, %v15356_v16  ;;  %v2197_v10 = vrot.slane %v2104_v53, %v15359_v55 }
 0x661   :  { %v2094_v35 = vpop.xlane.xlu0 %2093  ;;  %v2386_v15 = vrot.slane %v2378_v58, %v14398_v32  ;;  %v2393_v20 = vrot.slane %v2379_v57, %v14398_v32  ;;  %v2395_v30 = vcombine.low %v2334_v1, %v2335_v24  ;;  %v2396_v13 = vcombine.low %v2336_v12, %v2337_v3 }
 0x662   :  { %v2105_v39 = vmul.f32 0.03125, %v2094_v35  ;;  %v15416_v36 = vsub.f32 %v15259_v56, %v2176_v38  ;;  %v15419_v21 = vsub.f32 %v15266_v52, %v2183_v23  ;;  %v15422_v62 = vsub.f32 %v15271_v37, %v2190_v54 }
 0x663   :  { %v2394_v33 = vcombine.low %v2386_v15, %v2393_v20  ;;  %v2403_v41 = vrot.slane %v2395_v30, %v14398_v32  ;;  %v2410_v42 = vrot.slane %v2396_v13, %v14398_v32  ;;  %v15427_v44 = vsub.f32 %v15279_v45, %v2197_v10 }
 0x664   :  { %v2204_v46 = vrot.slane %v2105_v39, %v15350_v27  ;;  %v2211_v34 = vrot.slane %v2105_v39, %v15353_v31  ;;  %v2218_v56 = vrot.slane %v2105_v39, %v15356_v16  ;;  %v2225_v52 = vrot.slane %v2105_v39, %v15359_v55 }
 0x665   :  { %v2097_v6 = vpop.xlane.xlu0 %2096  ;;  %v2486_v37 = vsel %vm647_vm3, %v2394_v33, 0.0  ;;  %v2411_v29 = vcombine.low %v2403_v41, %v2410_v42  ;;  %v2338_v51 = vmul.f32 %v15416_v36, %v15416_v36  ;;  %v2339_v50 = vmul.f32 %v15419_v21, %v15419_v21 }
 0x666   :  { %v2106_v45 = vmul.f32 0.03125, %v2097_v6  ;;  %2487 = vadd.xlane.f32.xlu0 %v2486_v37  ;;  %v2340_v59 = vmul.f32 %v15422_v62, %v15422_v62  ;;  %v2341_v61 = vmul.f32 %v15427_v44, %v15427_v44  ;;  %v15443_v53 = vsub.f32 %v15275_v18, %v2204_v46 }
 0x667   :  { %v2489_v58 = vsel %vm647_vm3, %v2411_v29, 0.0  ;;  %v2412_v57 = vcombine.low %v2338_v51, %v2339_v50  ;;  %v15447_v1 = vsub.f32 %v15282_v48, %v2211_v34  ;;  %v15450_v24 = vsub.f32 %v15292_v8, %v2218_v56 }
 0x668   :  { %v2232_v12 = vrot.slane %v2106_v45, %v15350_v27  ;;  %v2239_v3 = vrot.slane %v2106_v45, %v15353_v31  ;;  %v2246_v38 = vrot.slane %v2106_v45, %v15356_v16  ;;  %v2253_v23 = vrot.slane %v2106_v45, %v15359_v55  ;;  %2490 = vadd.xlane.f32.xlu1 %v2489_v58 }
 0x669   :  { %v2100_v18 = vpop.xlane.xlu0 %2099  ;;  %v2413_v54 = vcombine.low %v2340_v59, %v2341_v61  ;;  %v2420_v10 = vrot.slane %v2412_v57, %v14398_v32  ;;  %v15458_v35 = vsub.f32 %v15296_v4, %v2225_v52  ;;  %v2342_v48 = vmul.f32 %v15443_v53, %v15443_v53 }
 0x66a   :  { %v2107_v8 = vmul.f32 0.03125, %v2100_v18  ;;  %v2343_v15 = vmul.f32 %v15447_v1, %v15447_v1  ;;  %v2344_v20 = vmul.f32 %v15450_v24, %v15450_v24  ;;  %v15467_v30 = vsub.f32 %v15307_v63, %v2232_v12 }
 0x66b   :  { %v2427_v13 = vrot.slane %v2413_v54, %v14398_v32  ;;  %v2345_v39 = vmul.f32 %v15458_v35, %v15458_v35  ;;  %v15473_v4 = vsub.f32 %v15310_v22, %v2239_v3  ;;  %v15476_v33 = vsub.f32 %v15316_v14, %v2246_v38 }
 0x66c   :  { %v2260_v41 = vrot.slane %v2107_v8, %v15350_v27  ;;  %v2267_v42 = vrot.slane %v2107_v8, %v15353_v31  ;;  %v2274_v46 = vrot.slane %v2107_v8, %v15356_v16  ;;  %v2281_v63 = vrot.slane %v2107_v8, %v15359_v55 }
 0x66d   :  { %v2428_v34 = vcombine.low %v2420_v10, %v2427_v13  ;;  %v2429_v56 = vcombine.low %v2342_v48, %v2343_v15  ;;  %v2430_v52 = vcombine.low %v2344_v20, %v2345_v39  ;;  %v15483_v6 = vsub.f32 %v15319_v7, %v2253_v23 }
 0x66e   :  { %v2346_v22 = vmul.f32 %v15467_v30, %v15467_v30  ;;  %v2347_v14 = vmul.f32 %v15473_v4, %v15473_v4  ;;  %v2348_v37 = vmul.f32 %v15476_v33, %v15476_v33  ;;  %v15492_v29 = vsub.f32 %v15324_v19, %v2260_v41  ;;  %v13813_v41 = vld [vmem:[%s19151_s12] sm:$0xff]  }
 0x66f   :  { %v2492_v51 = vsel %vm647_vm3, %v2428_v34, 0.0  ;;  %v2437_v50 = vrot.slane %v2429_v56, %v14398_v32  ;;  %v2444_v45 = vrot.slane %v2430_v52, %v14398_v32  ;;  %v2349_v7 = vmul.f32 %v15483_v6, %v15483_v6  ;;  %13274 = vmatpush3.bf16.msra.mxu0 %v13813_v41 }
 0x670   :  { %2493 = vadd.xlane.f32.xlu0 %v2492_v51  ;;  %v2446_v59 = vcombine.low %v2346_v22, %v2347_v14  ;;  %v15500_v61 = vsub.f32 %v15327_v47, %v2267_v42  ;;  %v15503_v58 = vsub.f32 %v15331_v11, %v2274_v46  ;;  %v15506_v19 = vsub.f32 %v15336_v0, %v2281_v63  ;;  %v13814_v42 = vld [vmem:[%s19151_s12 + $0x8] sm:$0xff]   ;;  %v13815_v46 = vld [vmem:[%s19153_s14] sm:$0xff]  }
 0x671   :  { %v2445_v57 = vcombine.low %v2437_v50, %v2444_v45  ;;  %v2447_v12 = vcombine.low %v2348_v37, %v2349_v7  ;;  %v2350_v3 = vmul.f32 %v15492_v29, %v15492_v29  ;;  %13275 = vmatprep.subr.bf16.mxu0 %v19288_v25  ;;  %13290 = vmatpush3.bf16.msra.mxu1 %v13815_v46  ;;  %v13816_v63 = vld [vmem:[%s19153_s14 + $0x8] sm:$0xff]   ;;  %v12670_v51 = vld [vmem:[%s19149_s10] ss:$0 sm:$0xff] }
 0x672   :  { %v2454_v38 = vrot.slane %v2446_v59, %v14398_v32  ;;  %v2351_v23 = vmul.f32 %v15500_v61, %v15500_v61  ;;  %v2352_v47 = vmul.f32 %v15503_v58, %v15503_v58  ;;  %v2353_v11 = vmul.f32 %v15506_v19, %v15506_v19  ;;  %13291 = vmatprep.subr.bf16.mxu1 %v19288_v25  ;;  %v12671_v50 = vld [vmem:[%s19150_s11] ss:$0 sm:$0xff] }
 0x673   :  { %v2495_v18 = vsel %vm647_vm3, %v2445_v57, 0.0  ;;  %v2461_v0 = vrot.slane %v2447_v12, %v14398_v32  ;;  %13276 = vmatpush3.bf16.msra.mxu0 %v13814_v42  ;;  %v2749_v45 = vcombine.high %v12670_v51, %v12670_v51  ;;  %v2799_v7 = vcombine.high %v12671_v50, %v12671_v50 }
 0x674   :  { %2496 = vadd.xlane.f32.xlu1 %v2495_v18  ;;  %v2463_v54 = vcombine.low %v2350_v3, %v2351_v23  ;;  %v2464_v10 = vcombine.low %v2352_v47, %v2353_v11  ;;  %13309 = vmatprep.subr.bf16.mxu0 %v19288_v25  ;;  %v15546_v12 = vrot.slane %v12670_v51, %v14398_v32 }
 0x675   :  { %v2462_v48 = vcombine.low %v2454_v38, %v2461_v0  ;;  %13292 = vmatpush3.bf16.msra.mxu1 %v13816_v63  ;;  %v15549_v38 = vrot.slane %v2749_v45, %v14398_v32  ;;  %v15552_v23 = vrot.slane %v12671_v50, %v14398_v32  ;;  %v15555_v47 = vrot.slane %v2799_v7, %v14398_v32 }
 0x676   :  { %v2471_v8 = vrot.slane %v2463_v54, %v14398_v32  ;;  %v2478_v15 = vrot.slane %v2464_v10, %v14398_v32  ;;  %13293 = vmatprep.subr.bf16.mxu1 %v19288_v25  ;;  %v15559_v54 = vcombine.high %v15546_v12, %v15546_v12 }
 0x677   :  { %v2498_v20 = vsel %vm647_vm3, %v2462_v48, 0.0  ;;  %v15571_v41 = vcombine.high %v15552_v23, %v15552_v23  ;;  %v15575_v42 = vcombine.high %v15555_v47, %v15555_v47 }
 0x678   :  { %2499 = vadd.xlane.f32.xlu0 %v2498_v20  ;;  %v2479_v13 = vcombine.low %v2471_v8, %v2478_v15 }
 0x67a   :  { %v2501_v39 = vsel %vm647_vm3, %v2479_v13, 0.0 }
 0x67b   :  { %2502 = vadd.xlane.f32.xlu1 %v2501_v39  ;;  %v15567_v39 = vcombine.high %v15549_v38, %v15549_v38 }
 0x6f3   :  { %v2488_v34 = vpop.xlane.xlu0 %2487 }
 0x6f4   :  { %v2504_v56 = vmul.f32 0.03125, %v2488_v34 }
 0x6f5   :  { %v2491_v52 = vpop.xlane.xlu1 %2490 }
 0x6f6   :  { %v2510_v22 = vadd.f32 1e-05, %v2504_v56  ;;  %v2505_v14 = vmul.f32 0.03125, %v2491_v52 }
 0x6f8   :  { %13947 = vrsqrt.f32 %v2510_v22  ;;  %v2511_v37 = vadd.f32 1e-05, %v2505_v14 }
 0x6fa   :  { %13949 = vrsqrt.f32 %v2511_v37 }
 0x6fd   :  { %v2494_v59 = vpop.xlane.xlu0 %2493 }
 0x6fe   :  { %v2506_v57 = vmul.f32 0.03125, %v2494_v59 }
 0x700   :  { %v2512_v3 = vadd.f32 1e-05, %v2506_v57 }
 0x701   :  { %v2497_v11 = vpop.xlane.xlu1 %2496 }
 0x702   :  { %v13948_v18 = vpop.eup %13947  ;;  %13951 = vrsqrt.f32 %v2512_v3  ;;  %v2507_v0 = vmul.f32 0.03125, %v2497_v11 }
 0x703   :  { %v2534_v10 = vrot.slane %v13948_v18, %v15350_v27  ;;  %v2541_v48 = vrot.slane %v13948_v18, %v15353_v31  ;;  %v2548_v8 = vrot.slane %v13948_v18, %v15356_v16  ;;  %v2555_v15 = vrot.slane %v13948_v18, %v15359_v55 }
 0x704   :  { %v13950_v20 = vpop.eup %13949  ;;  %v2513_v13 = vadd.f32 1e-05, %v2507_v0 }
 0x705   :  { %v2500_v46 = vpop.xlane.xlu0 %2499  ;;  %v2562_v63 = vrot.slane %v13950_v20, %v15350_v27  ;;  %v2569_v34 = vrot.slane %v13950_v20, %v15353_v31  ;;  %v2576_v56 = vrot.slane %v13950_v20, %v15356_v16  ;;  %v2583_v52 = vrot.slane %v13950_v20, %v15359_v55 }
 0x706   :  { %13953 = vrsqrt.f32 %v2513_v13  ;;  %v2508_v22 = vmul.f32 0.03125, %v2500_v46  ;;  %v2720_v14 = vmul.f32 %v2534_v10, %v15366_v49  ;;  %v2721_v37 = vmul.f32 %v2541_v48, %v15369_v60 }
 0x707   :  { %v2722_v51 = vmul.f32 %v2548_v8, %v15372_v40  ;;  %v2723_v50 = vmul.f32 %v2555_v15, %v15375_v17  ;;  %v2724_v45 = vmul.f32 %v2562_v63, %v15390_v28  ;;  %v2725_v7 = vmul.f32 %v2569_v34, %v15393_v26 }
 0x708   :  { %v2514_v59 = vadd.f32 1e-05, %v2508_v22  ;;  %v2503_v57 = vpop.xlane.xlu1 %2502  ;;  %v2726_v3 = vmul.f32 %v2576_v56, %v15396_v5  ;;  %v2727_v11 = vmul.f32 %v2583_v52, %v15399_v43  ;;  %v2770_v18 = vmul.f32 %v15546_v12, %v2720_v14 }
 0x709   :  { %v2509_v0 = vmul.f32 0.03125, %v2503_v57  ;;  %v2771_v49 = vmul.f32 %v15559_v54, %v2721_v37  ;;  %v2772_v60 = vmul.f32 %v15549_v38, %v2722_v51  ;;  %v2773_v40 = vmul.f32 %v15567_v39, %v2723_v50 }
 0x70a   :  { %13955 = vrsqrt.f32 %v2514_v59  ;;  %v2774_v17 = vmul.f32 %v15546_v12, %v2724_v45  ;;  %v2775_v28 = vmul.f32 %v15559_v54, %v2725_v7  ;;  %v2776_v26 = vmul.f32 %v15549_v38, %v2726_v3 }
 0x70b   :  { %v2515_v10 = vadd.f32 1e-05, %v2509_v0  ;;  %v2777_v5 = vmul.f32 %v15567_v39, %v2727_v11  ;;  %v15598_v43 = vadd.f32 %v15552_v23, %v2770_v18  ;;  %v15601_v48 = vadd.f32 %v15571_v41, %v2771_v49 }
 0x70c   :  { %v13952_v8 = vpop.eup %13951  ;;  %v15604_v15 = vadd.f32 %v15555_v47, %v2772_v60  ;;  %v15607_v20 = vadd.f32 %v15575_v42, %v2773_v40  ;;  %v15610_v13 = vadd.f32 %v15552_v23, %v2774_v17  ;;  %v15613_v46 = vadd.f32 %v15571_v41, %v2775_v28 }
 0x70d   :  { %13957 = vrsqrt.f32 %v2515_v10  ;;  %v15616_v63 = vadd.f32 %v15555_v47, %v2776_v26  ;;  %v15619_v34 = vadd.f32 %v15575_v42, %v2777_v5  ;;  %v2868_v56 = vcombine.low %v15598_v43, %v15601_v48 }
 0x70e   :  { %v2869_v52 = vcombine.low %v15604_v15, %v15607_v20  ;;  %v2885_v22 = vcombine.low %v15610_v13, %v15613_v46  ;;  %v2590_v14 = vrot.slane %v13952_v8, %v15350_v27  ;;  %v2597_v37 = vrot.slane %v13952_v8, %v15353_v31 }
 0x70f   :  { %v2876_v51 = vrot.slane %v2868_v56, %v14398_v32  ;;  %v2886_v50 = vcombine.low %v15616_v63, %v15619_v34  ;;  %v2604_v45 = vrot.slane %v13952_v8, %v15356_v16  ;;  %v2611_v7 = vrot.slane %v13952_v8, %v15359_v55 }
 0x710   :  { %v13954_v59 = vpop.eup %13953  ;;  %v2883_v57 = vrot.slane %v2869_v52, %v14398_v32  ;;  %v2893_v3 = vrot.slane %v2885_v22, %v14398_v32  ;;  %v2728_v11 = vmul.f32 %v2590_v14, %v15416_v36  ;;  %v2729_v18 = vmul.f32 %v2597_v37, %v15419_v21 }
 0x711   :  { %v2900_v0 = vrot.slane %v2886_v50, %v14398_v32  ;;  %v2618_v49 = vrot.slane %v13954_v59, %v15350_v27  ;;  %v2625_v60 = vrot.slane %v13954_v59, %v15353_v31  ;;  %v2632_v40 = vrot.slane %v13954_v59, %v15356_v16 }
 0x712   :  { %v2884_v17 = vcombine.low %v2876_v51, %v2883_v57  ;;  %v2639_v28 = vrot.slane %v13954_v59, %v15359_v55  ;;  %v2730_v26 = vmul.f32 %v2604_v45, %v15422_v62  ;;  %v2731_v10 = vmul.f32 %v2611_v7, %v15427_v44 }
 0x713   :  { %v2901_v5 = vcombine.low %v2893_v3, %v2900_v0  ;;  %v2732_v36 = vmul.f32 %v2618_v49, %v15443_v53  ;;  %v2733_v21 = vmul.f32 %v2625_v60, %v15447_v1  ;;  %v2734_v8 = vmul.f32 %v2632_v40, %v15450_v24 }
 0x714   :  { %v13956_v56 = vpop.eup %13955  ;;  %v2735_v52 = vmul.f32 %v2639_v28, %v15458_v35  ;;  %v2778_v22 = vmul.f32 %v15546_v12, %v2728_v11  ;;  %v2779_v14 = vmul.f32 %v15559_v54, %v2729_v18  ;;  %v2780_v37 = vmul.f32 %v15549_v38, %v2730_v26 }
 0x715   :  { %v2976_v51 = vpack.c.bf16 %v2901_v5, %v2884_v17  ;;  %v2781_v62 = vmul.f32 %v15567_v39, %v2731_v10  ;;  %v2782_v44 = vmul.f32 %v15546_v12, %v2732_v36  ;;  %v2783_v53 = vmul.f32 %v15559_v54, %v2733_v21 }
 0x716   :  { %v2784_v1 = vmul.f32 %v15549_v38, %v2734_v8  ;;  %v2785_v24 = vmul.f32 %v15567_v39, %v2735_v52  ;;  %v15658_v50 = vadd.f32 %v15552_v23, %v2778_v22  ;;  %v15661_v35 = vadd.f32 %v15571_v41, %v2779_v14 }
 0x717   :  { %v13958_v45 = vpop.eup %13957  ;;  %13278 = vmatmul.mubr.msk.bf16.vlgmr.msra.gmra.mrb[60].mxu0 %vm647_vm3, %v2976_v51  ;;  %v15665_v7 = vadd.f32 %v15555_v47, %v2780_v37  ;;  %v15668_v59 = vadd.f32 %v15575_v42, %v2781_v62  ;;  %v15671_v57 = vadd.f32 %v15552_v23, %v2782_v44  ;;  %v15674_v3 = vadd.f32 %v15571_v41, %v2783_v53 }
 0x718   :  { %13281 = vmatprep.mubr.msk.bf16.mxu0 %vm14218_vm0, %v19288_v25  ;;  %v15679_v11 = vadd.f32 %v15555_v47, %v2784_v1  ;;  %v15682_v18 = vadd.f32 %v15575_v42, %v2785_v24  ;;  %v2902_v0 = vcombine.low %v15658_v50, %v15661_v35  ;;  %v2646_v49 = vrot.slane %v13956_v56, %v15350_v27 }
 0x719   :  { %v2903_v60 = vcombine.low %v15665_v7, %v15668_v59  ;;  %v2919_v40 = vcombine.low %v15671_v57, %v15674_v3  ;;  %v2653_v17 = vrot.slane %v13956_v56, %v15353_v31  ;;  %v2660_v28 = vrot.slane %v13956_v56, %v15356_v16 }
 0x71a   :  { %v2910_v26 = vrot.slane %v2902_v0, %v14398_v32  ;;  %v2920_v10 = vcombine.low %v15679_v11, %v15682_v18  ;;  %v2667_v5 = vrot.slane %v13956_v56, %v15359_v55  ;;  %v2674_v36 = vrot.slane %v13958_v45, %v15350_v27 }
 0x71b   :  { %v2917_v21 = vrot.slane %v2903_v60, %v14398_v32  ;;  %v2927_v8 = vrot.slane %v2919_v40, %v14398_v32  ;;  %v2681_v52 = vrot.slane %v13958_v45, %v15353_v31  ;;  %v2688_v22 = vrot.slane %v13958_v45, %v15356_v16 }
 0x71c   :  { %v2934_v14 = vrot.slane %v2920_v10, %v14398_v32  ;;  %v2695_v37 = vrot.slane %v13958_v45, %v15359_v55  ;;  %v2736_v51 = vmul.f32 %v2646_v49, %v15467_v30  ;;  %v2737_v62 = vmul.f32 %v2653_v17, %v15473_v4 }
 0x71d   :  { %v2918_v44 = vcombine.low %v2910_v26, %v2917_v21  ;;  %v2738_v56 = vmul.f32 %v2660_v28, %v15476_v33  ;;  %v2739_v53 = vmul.f32 %v2667_v5, %v15483_v6  ;;  %v2740_v1 = vmul.f32 %v2674_v36, %v15492_v29 }
 0x71e   :  { %v2935_v24 = vcombine.low %v2927_v8, %v2934_v14  ;;  %v2741_v0 = vmul.f32 %v2681_v52, %v15500_v61  ;;  %v2742_v60 = vmul.f32 %v2688_v22, %v15503_v58  ;;  %v2743_v40 = vmul.f32 %v2695_v37, %v15506_v19  ;;  %v13817_v14 = vld [vmem:[%s19153_s14 + $0x10] sm:$0xff]   ;;  %v13818_v37 = vld [vmem:[%s19153_s14 + $0x18] sm:$0xff]  }
 0x71f   :  { %v2786_v45 = vmul.f32 %v15546_v12, %v2736_v51  ;;  %v2787_v30 = vmul.f32 %v15559_v54, %v2737_v62  ;;  %v2788_v4 = vmul.f32 %v15549_v38, %v2738_v56  ;;  %v2789_v49 = vmul.f32 %v15567_v39, %v2739_v53  ;;  %13294 = vmatpush3.bf16.msra.mxu1 %v13817_v14  ;;  %v12672_v51 = vld [vmem:[%s19152_s13] ss:$0 sm:$0xff] }
 0x720   :  { %v2977_v33 = vpack.c.bf16 %v2935_v24, %v2918_v44  ;;  %v2790_v6 = vmul.f32 %v15546_v12, %v2740_v1  ;;  %v2791_v29 = vmul.f32 %v15559_v54, %v2741_v0  ;;  %v2792_v17 = vmul.f32 %v15549_v38, %v2742_v60  ;;  %13295 = vmatprep.subr.bf16.mxu1 %v19288_v25 }
 0x721   :  { %v2793_v61 = vmul.f32 %v15567_v39, %v2743_v40  ;;  %v15721_v58 = vadd.f32 %v15552_v23, %v2786_v45  ;;  %v15724_v19 = vadd.f32 %v15571_v41, %v2787_v30  ;;  %v15727_v28 = vadd.f32 %v15555_v47, %v2788_v4 }
 0x722   :  { %13282 = vmatmul.mubr.msk.bf16.gmra.mrb[64].mxu0 %vm647_vm3, %v2977_v33  ;;  %v15731_v26 = vadd.f32 %v15575_v42, %v2789_v49  ;;  %v15734_v12 = vadd.f32 %v15552_v23, %v2790_v6  ;;  %v15737_v38 = vadd.f32 %v15571_v41, %v2791_v29  ;;  %v15740_v54 = vadd.f32 %v15555_v47, %v2792_v17 }
 0x723   :  { %13285 = vmatprep.mubr.msk.bf16.mxu0 %vm14218_vm0, %v19288_v25  ;;  %v15745_v39 = vadd.f32 %v15575_v42, %v2793_v61  ;;  %v2936_v10 = vcombine.low %v15721_v58, %v15724_v19  ;;  %13296 = vmatpush3.bf16.msra.mxu1 %v13818_v37 }
 0x724   :  { %v2937_v5 = vcombine.low %v15727_v28, %v15731_v26  ;;  %v2953_v23 = vcombine.low %v15734_v12, %v15737_v38  ;;  %13329 = vmatprep.subr.bf16.mxu1 %v19288_v25 }
 0x725   :  { %v2944_v41 = vrot.slane %v2936_v10, %v14398_v32  ;;  %v2954_v47 = vcombine.low %v15740_v54, %v15745_v39 }
 0x726   :  { %v2951_v36 = vrot.slane %v2937_v5, %v14398_v32  ;;  %v2961_v21 = vrot.slane %v2953_v23, %v14398_v32 }
 0x727   :  { %v2968_v42 = vrot.slane %v2954_v47, %v14398_v32 }
 0x728   :  { %v2952_v8 = vcombine.low %v2944_v41, %v2951_v36 }
 0x729   :  { %v2969_v52 = vcombine.low %v2961_v21, %v2968_v42 }
 0x72b   :  { %v2978_v22 = vpack.c.bf16 %v2969_v52, %v2952_v8  ;;  %v15785_v52 = vld [vmem:[%s19154_s15] ss:$0 sm:$0xff] }
 0x72d   :  { %13286 = vmatmul.mubr.msk.bf16.gmra.mrb[68].mxu0 %vm647_vm3, %v2978_v22 }
 0x72e   :  { %13313 = vmatprep.mubr.msk.bf16.mxu0 %vm14218_vm0, %v19288_v25 }
 0x7ea   :  { %v3040_v62 = vpop.f32.mrb[60].mxu0 }
 0x7eb   :  { %v3041_v44 = vadd.f32 %v12672_v51, %v3040_v62  ;;  %v13279_v56 = vpop.f32.mrb[61].mxu0 }
 0x7ec   :  { %v3043_v53 = vpop.f32.mrb[62].mxu0 }
 0x7ed   :  { %v3044_v1 = vadd.f32 %v12672_v51, %v3043_v53  ;;  %v13280_v24 = vpop.f32.mrb[63].mxu0  ;;  %v3063_v0 = vmax.f32 %v3041_v44, 0.0 }
 0x7ef   :  { %v3064_v60 = vmax.f32 %v3044_v1, 0.0 }
 0x7f1   :  { %v3069_v40 = vpack.c.bf16 %v3064_v60, %v3063_v0 }
 0x7f3   :  { %13298 = vmatmul.mubr.msk.bf16.vlgmr.msra.gmra.mrb[24].mxu1 %vm3102_vm5, %v3069_v40 }
 0x7f4   :  { %13301 = vmatprep.mubr.msk.bf16.mxu1 %vm14218_vm0, %v19288_v25 }
 0x7f5   :  { %v3048_v45 = vpop.f32.mrb[64].mxu0 }
 0x7f6   :  { %v3049_v30 = vadd.f32 %v12672_v51, %v3048_v45  ;;  %v13283_v4 = vpop.f32.mrb[65].mxu0 }
 0x7f7   :  { %v3051_v49 = vpop.f32.mrb[66].mxu0 }
 0x7f8   :  { %v3052_v33 = vadd.f32 %v12672_v51, %v3051_v49  ;;  %v13284_v6 = vpop.f32.mrb[67].mxu0  ;;  %v3065_v29 = vmax.f32 %v3049_v30, 0.0 }
 0x7fa   :  { %v3066_v17 = vmax.f32 %v3052_v33, 0.0 }
 0x7fc   :  { %v3070_v61 = vpack.c.bf16 %v3066_v17, %v3065_v29 }
 0x7fe   :  { %13302 = vmatmul.mubr.msk.bf16.gmra.mrb[28].mxu1 %vm3102_vm5, %v3070_v61 }
 0x7ff   :  { %13305 = vmatprep.mubr.msk.bf16.mxu1 %vm14218_vm0, %v19288_v25 }
 0x800   :  { %v3056_v10 = vpop.f32.mrb[68].mxu0 }
 0x801   :  { %v3057_v5 = vadd.f32 %v12672_v51, %v3056_v10  ;;  %v13287_v23 = vpop.f32.mrb[69].mxu0 }
 0x802   :  { %v3059_v41 = vpop.f32.mrb[70].mxu0 }
 0x803   :  { %v3060_v47 = vadd.f32 %v12672_v51, %v3059_v41  ;;  %v13288_v36 = vpop.f32.mrb[71].mxu0  ;;  %v3067_v21 = vmax.f32 %v3057_v5, 0.0 }
 0x805   :  { %v3068_v42 = vmax.f32 %v3060_v47, 0.0 }
 0x807   :  { %v3071_v8 = vpack.c.bf16 %v3068_v42, %v3067_v21 }
 0x809   :  { %13306 = vmatmul.mubr.msk.bf16.gmra.mrb[32].mxu1 %vm3102_vm5, %v3071_v8 }
 0x80a   :  { %13331 = vmatprep.mubr.msk.bf16.mxu1 %vm14218_vm0, %v19288_v25 }
 0x8c6   :  { %v3146_v22 = vpop.f32.mrb[24].mxu1 }
 0x8c7   :  { %v3147_v14 = vadd.f32 %v15785_v52, %v3146_v22  ;;  %v13299_v37 = vpop.f32.mrb[25].mxu1 }
 0x8c8   :  { %v3149_v62 = vpop.f32.mrb[26].mxu1 }
 0x8c9   :  { %v3175_v51 = vcombine.high %v3147_v14, %v3147_v14  ;;  %v3182_v44 = vrot.slane %v3147_v14, %v14398_v32  ;;  %v3150_v56 = vadd.f32 %v15785_v52, %v3149_v62  ;;  %v13300_v53 = vpop.f32.mrb[27].mxu1 }
 0x8cb   :  { %v3189_v1 = vrot.slane %v3175_v51, %v14398_v32  ;;  %v3190_v24 = vcombine.high %v3182_v44, %v3182_v44  ;;  %v3192_v0 = vcombine.high %v3150_v56, %v3150_v56  ;;  %v3199_v60 = vrot.slane %v3150_v56, %v14398_v32 }
 0x8cc   :  { %v15793_v45 = vadd.f32 %v3182_v44, %v15598_v43 }
 0x8cd   :  { %v3191_v40 = vcombine.high %v3189_v1, %v3189_v1  ;;  %v15796_v30 = vadd.f32 %v3190_v24, %v15601_v48  ;;  %v3206_v4 = vrot.slane %v3192_v0, %v14398_v32  ;;  %v3207_v49 = vcombine.high %v3199_v60, %v3199_v60 }
 0x8ce   :  { %v15800_v33 = vadd.f32 %v3189_v1, %v15604_v15  ;;  %v15808_v61 = vadd.f32 %v3199_v60, %v15610_v13 }
 0x8cf   :  { %v3208_v6 = vcombine.high %v3206_v4, %v3206_v4  ;;  %v15803_v29 = vadd.f32 %v3191_v40, %v15607_v20  ;;  %v3349_v17 = vcombine.low %v15793_v45, %v15796_v30  ;;  %v15811_v43 = vadd.f32 %v3207_v49, %v15613_v46 }
 0x8d0   :  { %v15814_v48 = vadd.f32 %v3206_v4, %v15616_v63 }
 0x8d1   :  { %v3154_v10 = vpop.f32.mrb[28].mxu1  ;;  %v3350_v15 = vcombine.low %v15800_v33, %v15803_v29  ;;  %v15819_v5 = vadd.f32 %v3208_v6, %v15619_v34  ;;  %v3366_v13 = vcombine.low %v15808_v61, %v15811_v43  ;;  %v3357_v46 = vrot.slane %v3349_v17, %v14398_v32 }
 0x8d2   :  { %v3155_v20 = vadd.f32 %v15785_v52, %v3154_v10  ;;  %v13303_v23 = vpop.f32.mrb[29].mxu1 }
 0x8d3   :  { %v3157_v41 = vpop.f32.mrb[30].mxu1  ;;  %v3364_v47 = vrot.slane %v3350_v15, %v14398_v32  ;;  %v3367_v63 = vcombine.low %v15814_v48, %v15819_v5  ;;  %v3374_v22 = vrot.slane %v3366_v13, %v14398_v32 }
 0x8d4   :  { %v3209_v36 = vcombine.high %v3155_v20, %v3155_v20  ;;  %v3216_v21 = vrot.slane %v3155_v20, %v14398_v32  ;;  %v3158_v34 = vadd.f32 %v15785_v52, %v3157_v41  ;;  %v13304_v42 = vpop.f32.mrb[31].mxu1 }
 0x8d5   :  { %v3365_v8 = vcombine.low %v3357_v46, %v3364_v47  ;;  %v3381_v14 = vrot.slane %v3367_v63, %v14398_v32 }
 0x8d6   :  { %v3223_v37 = vrot.slane %v3209_v36, %v14398_v32  ;;  %v3224_v62 = vcombine.high %v3216_v21, %v3216_v21  ;;  %v3226_v51 = vcombine.high %v3158_v34, %v3158_v34  ;;  %v3233_v44 = vrot.slane %v3158_v34, %v14398_v32 }
 0x8d7   :  { %v3457_v56 = vsel %vm647_vm3, %v3365_v8, 0.0  ;;  %v3382_v53 = vcombine.low %v3374_v22, %v3381_v14  ;;  %v15853_v15 = vadd.f32 %v3216_v21, %v15658_v50 }
 0x8d8   :  { %v3225_v1 = vcombine.high %v3223_v37, %v3223_v37  ;;  %v3240_v24 = vrot.slane %v3226_v51, %v14398_v32  ;;  %3458 = vadd.xlane.f32.xlu0 %v3457_v56  ;;  %v3241_v0 = vcombine.high %v3233_v44, %v3233_v44  ;;  %v15838_v40 = vadd.f32 %v3224_v62, %v15661_v35 }
 0x8d9   :  { %v3460_v60 = vsel %vm647_vm3, %v3382_v53, 0.0  ;;  %v15841_v4 = vadd.f32 %v3223_v37, %v15665_v7  ;;  %v15847_v17 = vadd.f32 %v3233_v44, %v15671_v57 }
 0x8da   :  { %v3242_v49 = vcombine.high %v3240_v24, %v3240_v24  ;;  %3461 = vadd.xlane.f32.xlu1 %v3460_v60  ;;  %v15844_v6 = vadd.f32 %v3225_v1, %v15668_v59  ;;  %v15850_v10 = vadd.f32 %v3241_v0, %v15674_v3  ;;  %v15856_v35 = vadd.f32 %v3240_v24, %v15679_v11 }
 0x8db   :  { %v3383_v11 = vcombine.low %v15853_v15, %v15838_v40 }
 0x8dc   :  { %v3162_v20 = vpop.f32.mrb[32].mxu1  ;;  %v15859_v7 = vadd.f32 %v3242_v49, %v15682_v18  ;;  %v3384_v59 = vcombine.low %v15841_v4, %v15844_v6  ;;  %v3400_v3 = vcombine.low %v15847_v17, %v15850_v10 }
 0x8dd   :  { %v3163_v23 = vadd.f32 %v15785_v52, %v3162_v20  ;;  %v13307_v57 = vpop.f32.mrb[33].mxu1  ;;  %v3391_v37 = vrot.slane %v3383_v11, %v14398_v32 }
 0x8de   :  { %v3165_v13 = vpop.f32.mrb[34].mxu1  ;;  %v3401_v50 = vcombine.low %v15856_v35, %v15859_v7  ;;  %v3408_v63 = vrot.slane %v3400_v3, %v14398_v32  ;;  %v3398_v21 = vrot.slane %v3384_v59, %v14398_v32 }
 0x8df   :  { %v3243_v41 = vcombine.high %v3163_v23, %v3163_v23  ;;  %v3250_v18 = vrot.slane %v3163_v23, %v14398_v32  ;;  %v3166_v46 = vadd.f32 %v15785_v52, %v3165_v13  ;;  %v13308_v47 = vpop.f32.mrb[35].mxu1 }
 0x8e0   :  { %v3415_v36 = vrot.slane %v3401_v50, %v14398_v32  ;;  %v3399_v1 = vcombine.low %v3391_v37, %v3398_v21 }
 0x8e1   :  { %v3257_v34 = vrot.slane %v3243_v41, %v14398_v32  ;;  %v3258_v42 = vcombine.high %v3250_v18, %v3250_v18  ;;  %v3260_v8 = vcombine.high %v3166_v46, %v3166_v46  ;;  %v3267_v22 = vrot.slane %v3166_v46, %v14398_v32 }
 0x8e2   :  { %v3416_v14 = vcombine.low %v3408_v63, %v3415_v36  ;;  %v15879_v51 = vadd.f32 %v3250_v18, %v15721_v58 }
 0x8e3   :  { %v3259_v62 = vcombine.high %v3257_v34, %v3257_v34  ;;  %v15882_v52 = vadd.f32 %v3258_v42, %v15724_v19  ;;  %v3274_v44 = vrot.slane %v3260_v8, %v14398_v32  ;;  %v3275_v56 = vcombine.high %v3267_v22, %v3267_v22 }
 0x8e4   :  { %v3466_v53 = vsel %vm647_vm3, %v3416_v14, 0.0  ;;  %v15887_v24 = vadd.f32 %v3257_v34, %v15727_v28  ;;  %v15895_v19 = vadd.f32 %v3267_v22, %v15734_v12 }
 0x8e5   :  { %v3276_v0 = vcombine.high %v3274_v44, %v3274_v44  ;;  %3467 = vadd.xlane.f32.xlu0 %v3466_v53  ;;  %v15890_v60 = vadd.f32 %v3259_v62, %v15731_v26  ;;  %v3417_v58 = vcombine.low %v15879_v51, %v15882_v52  ;;  %v15898_v49 = vadd.f32 %v3275_v56, %v15737_v38 }
 0x8e6   :  { %v15901_v20 = vadd.f32 %v3274_v44, %v15740_v54  ;;  %v3463_v26 = vsel %vm647_vm3, %v3399_v1, 0.0 }
 0x8e7   :  { %v3418_v28 = vcombine.low %v15887_v24, %v15890_v60  ;;  %v15906_v59 = vadd.f32 %v3276_v0, %v15745_v39  ;;  %v3434_v23 = vcombine.low %v15895_v19, %v15898_v49  ;;  %v3425_v12 = vrot.slane %v3417_v58, %v14398_v32 }
 0x8e9   :  { %3464 = vadd.xlane.f32.xlu0 %v3463_v26  ;;  %v3432_v38 = vrot.slane %v3418_v28, %v14398_v32  ;;  %v3435_v54 = vcombine.low %v15901_v20, %v15906_v59  ;;  %v3442_v3 = vrot.slane %v3434_v23, %v14398_v32 }
 0x8eb   :  { %v3433_v57 = vcombine.low %v3425_v12, %v3432_v38  ;;  %v3449_v13 = vrot.slane %v3435_v54, %v14398_v32 }
 0x8ed   :  { %v3469_v39 = vsel %vm647_vm3, %v3433_v57, 0.0  ;;  %v3450_v50 = vcombine.low %v3442_v3, %v3449_v13 }
 0x8ee   :  { %3470 = vadd.xlane.f32.xlu1 %v3469_v39 }
 0x8ef   :  { %v3472_v11 = vsel %vm647_vm3, %v3450_v50, 0.0 }
 0x8f2   :  { %3473 = vadd.xlane.f32.xlu1 %v3472_v11 }
 0x965   :  { %v3459_v41 = vpop.xlane.xlu0 %3458 }
 0x966   :  { %v3475_v18 = vmul.f32 0.03125, %v3459_v41 }
 0x967   :  { %v3462_v46 = vpop.xlane.xlu1 %3461 }
 0x968   :  { %v3493_v47 = vrot.slane %v3475_v18, %v15350_v27  ;;  %v3500_v63 = vrot.slane %v3475_v18, %v15353_v31  ;;  %v3507_v36 = vrot.slane %v3475_v18, %v15356_v16  ;;  %v3514_v21 = vrot.slane %v3475_v18, %v15359_v55 }
 0x969   :  { %v3476_v34 = vmul.f32 0.03125, %v3462_v46 }
 0x96a   :  { %v15924_v42 = vsub.f32 %v15793_v45, %v3493_v47  ;;  %v15927_v8 = vsub.f32 %v15796_v30, %v3500_v63  ;;  %v15930_v22 = vsub.f32 %v15800_v33, %v3507_v36  ;;  %v15933_v14 = vsub.f32 %v15803_v29, %v3514_v21 }
 0x96b   :  { %v3521_v37 = vrot.slane %v3476_v34, %v15350_v27  ;;  %v3528_v62 = vrot.slane %v3476_v34, %v15353_v31  ;;  %v3535_v44 = vrot.slane %v3476_v34, %v15356_v16  ;;  %v3542_v56 = vrot.slane %v3476_v34, %v15359_v55 }
 0x96c   :  { %v3703_v45 = vmul.f32 %v15924_v42, %v15924_v42  ;;  %v3704_v30 = vmul.f32 %v15927_v8, %v15927_v8  ;;  %v3705_v33 = vmul.f32 %v15930_v22, %v15930_v22  ;;  %v3706_v29 = vmul.f32 %v15933_v14, %v15933_v14 }
 0x96d   :  { %v15948_v53 = vsub.f32 %v15808_v61, %v3521_v37  ;;  %v15951_v1 = vsub.f32 %v15811_v43, %v3528_v62  ;;  %v15954_v0 = vsub.f32 %v15814_v48, %v3535_v44  ;;  %v15957_v58 = vsub.f32 %v15819_v5, %v3542_v56 }
 0x96e   :  { %v3751_v28 = vcombine.low %v3703_v45, %v3704_v30  ;;  %v3752_v26 = vcombine.low %v3705_v33, %v3706_v29 }
 0x96f   :  { %v3707_v23 = vmul.f32 %v15948_v53, %v15948_v53  ;;  %v3708_v12 = vmul.f32 %v15951_v1, %v15951_v1  ;;  %v3709_v61 = vmul.f32 %v15954_v0, %v15954_v0  ;;  %v3710_v43 = vmul.f32 %v15957_v58, %v15957_v58 }
 0x970   :  { %v3759_v48 = vrot.slane %v3751_v28, %v14398_v32  ;;  %v3766_v38 = vrot.slane %v3752_v26, %v14398_v32 }
 0x971   :  { %v3768_v5 = vcombine.low %v3707_v23, %v3708_v12  ;;  %v3769_v54 = vcombine.low %v3709_v61, %v3710_v43 }
 0x972   :  { %v3468_v57 = vpop.xlane.xlu0 %3467  ;;  %v3767_v3 = vcombine.low %v3759_v48, %v3766_v38 }
 0x973   :  { %v3478_v13 = vmul.f32 0.03125, %v3468_v57  ;;  %v3776_v39 = vrot.slane %v3768_v5, %v14398_v32  ;;  %v3783_v50 = vrot.slane %v3769_v54, %v14398_v32 }
 0x974   :  { %v3859_v11 = vsel %vm647_vm3, %v3767_v3, 0.0 }
 0x975   :  { %v3577_v41 = vrot.slane %v3478_v13, %v15350_v27  ;;  %v3584_v18 = vrot.slane %v3478_v13, %v15353_v31  ;;  %v3591_v46 = vrot.slane %v3478_v13, %v15356_v16  ;;  %v3598_v47 = vrot.slane %v3478_v13, %v15359_v55  ;;  %3860 = vadd.xlane.f32.xlu0 %v3859_v11 }
 0x976   :  { %v3465_v63 = vpop.xlane.xlu0 %3464  ;;  %v3784_v36 = vcombine.low %v3776_v39, %v3783_v50 }
 0x977   :  { %v3477_v21 = vmul.f32 0.03125, %v3465_v63  ;;  %v15977_v34 = vsub.f32 %v15847_v17, %v3577_v41  ;;  %v15980_v37 = vsub.f32 %v15850_v10, %v3584_v18  ;;  %v15983_v62 = vsub.f32 %v15856_v35, %v3591_v46 }
 0x978   :  { %v3862_v44 = vsel %vm647_vm3, %v3784_v36, 0.0  ;;  %v15987_v56 = vsub.f32 %v15859_v7, %v3598_v47 }
 0x979   :  { %v3549_v45 = vrot.slane %v3477_v21, %v15350_v27  ;;  %v3556_v30 = vrot.slane %v3477_v21, %v15353_v31  ;;  %v3563_v33 = vrot.slane %v3477_v21, %v15356_v16  ;;  %v3570_v17 = vrot.slane %v3477_v21, %v15359_v55  ;;  %3863 = vadd.xlane.f32.xlu1 %v3862_v44 }
 0x97a   :  { %v3715_v10 = vmul.f32 %v15977_v34, %v15977_v34  ;;  %v3716_v35 = vmul.f32 %v15980_v37, %v15980_v37  ;;  %v3717_v29 = vmul.f32 %v15983_v62, %v15983_v62  ;;  %v3718_v7 = vmul.f32 %v15987_v56, %v15987_v56 }
 0x97b   :  { %v3471_v28 = vpop.xlane.xlu1 %3470  ;;  %v16002_v26 = vsub.f32 %v15853_v15, %v3549_v45  ;;  %v16005_v23 = vsub.f32 %v15838_v40, %v3556_v30  ;;  %v16008_v12 = vsub.f32 %v15841_v4, %v3563_v33  ;;  %v16011_v61 = vsub.f32 %v15844_v6, %v3570_v17 }
 0x97c   :  { %v3479_v43 = vmul.f32 0.03125, %v3471_v28  ;;  %v3802_v48 = vcombine.low %v3715_v10, %v3716_v35  ;;  %v3803_v38 = vcombine.low %v3717_v29, %v3718_v7 }
 0x97d   :  { %v3711_v5 = vmul.f32 %v16002_v26, %v16002_v26  ;;  %v3712_v54 = vmul.f32 %v16005_v23, %v16005_v23  ;;  %v3713_v15 = vmul.f32 %v16008_v12, %v16008_v12  ;;  %v3714_v40 = vmul.f32 %v16011_v61, %v16011_v61 }
 0x97e   :  { %v3605_v4 = vrot.slane %v3479_v43, %v15350_v27  ;;  %v3612_v6 = vrot.slane %v3479_v43, %v15353_v31  ;;  %v3619_v57 = vrot.slane %v3479_v43, %v15356_v16  ;;  %v3626_v3 = vrot.slane %v3479_v43, %v15359_v55 }
 0x97f   :  { %v3474_v13 = vpop.xlane.xlu1 %3473  ;;  %v3810_v39 = vrot.slane %v3802_v48, %v14398_v32  ;;  %v3817_v50 = vrot.slane %v3803_v38, %v14398_v32  ;;  %v3785_v11 = vcombine.low %v3711_v5, %v3712_v54  ;;  %v3786_v41 = vcombine.low %v3713_v15, %v3714_v40 }
 0x980   :  { %v3480_v18 = vmul.f32 0.03125, %v3474_v13  ;;  %v16028_v46 = vsub.f32 %v15879_v51, %v3605_v4  ;;  %v16031_v47 = vsub.f32 %v15882_v52, %v3612_v6  ;;  %v16034_v63 = vsub.f32 %v15887_v24, %v3619_v57 }
 0x981   :  { %v3818_v36 = vcombine.low %v3810_v39, %v3817_v50  ;;  %v3793_v21 = vrot.slane %v3785_v11, %v14398_v32  ;;  %v3800_v44 = vrot.slane %v3786_v41, %v14398_v32  ;;  %v16039_v45 = vsub.f32 %v15890_v60, %v3626_v3  ;;  %v13819_v41 = vld [vmem:[%s19260_s29 + $0x10] sm:$0xff]  }
 0x982   :  { %v3633_v30 = vrot.slane %v3480_v18, %v15350_v27  ;;  %v3640_v33 = vrot.slane %v3480_v18, %v15353_v31  ;;  %v3647_v51 = vrot.slane %v3480_v18, %v15356_v16  ;;  %v3654_v52 = vrot.slane %v3480_v18, %v15359_v55  ;;  %13310 = vmatpush3.bf16.msra.mxu0 %v13819_v41  ;;  %v13820_v18 = vld [vmem:[%s19260_s29 + $0x18] sm:$0xff]  }
 0x983   :  { %v3868_v17 = vsel %vm647_vm3, %v3818_v36, 0.0  ;;  %v3801_v24 = vcombine.low %v3793_v21, %v3800_v44  ;;  %v3719_v10 = vmul.f32 %v16028_v46, %v16028_v46  ;;  %v3720_v35 = vmul.f32 %v16031_v47, %v16031_v47  ;;  %13311 = vmatprep.subr.bf16.mxu0 %v19288_v25 }
 0x984   :  { %3869 = vadd.xlane.f32.xlu0 %v3868_v17  ;;  %v3721_v60 = vmul.f32 %v16034_v63, %v16034_v63  ;;  %v3722_v29 = vmul.f32 %v16039_v45, %v16039_v45  ;;  %v16055_v7 = vsub.f32 %v15895_v19, %v3633_v30  ;;  %v16058_v28 = vsub.f32 %v15898_v49, %v3640_v33  ;;  %v12687_v17 = vld [vmem:[%s19156_s17] ss:$0 sm:$0xff] }
 0x985   :  { %v3865_v43 = vsel %vm647_vm3, %v3801_v24, 0.0  ;;  %v3819_v48 = vcombine.low %v3719_v10, %v3720_v35  ;;  %v16062_v38 = vsub.f32 %v15901_v20, %v3647_v51  ;;  %v16065_v5 = vsub.f32 %v15906_v59, %v3654_v52  ;;  %v12686_v52 = vld [vmem:[%s19155_s16] ss:$0 sm:$0xff] }
 0x986   :  { %v3820_v54 = vcombine.low %v3721_v60, %v3722_v29  ;;  %v3723_v15 = vmul.f32 %v16055_v7, %v16055_v7  ;;  %v3724_v19 = vmul.f32 %v16058_v28, %v16058_v28  ;;  %13312 = vmatpush3.bf16.msra.mxu0 %v13820_v18  ;;  %v4122_v24 = vcombine.high %v12686_v52, %v12686_v52 }
 0x987   :  { %v3827_v40 = vrot.slane %v3819_v48, %v14398_v32  ;;  %v3725_v49 = vmul.f32 %v16062_v38, %v16062_v38  ;;  %v3726_v4 = vmul.f32 %v16065_v5, %v16065_v5  ;;  %13317 = vmatprep.subr.bf16.mxu0 %v19288_v25  ;;  %v4172_v10 = vcombine.high %v12687_v17, %v12687_v17 }
 0x988   :  { %3866 = vadd.xlane.f32.xlu0 %v3865_v43  ;;  %v3834_v20 = vrot.slane %v3820_v54, %v14398_v32  ;;  %v3836_v59 = vcombine.low %v3723_v15, %v3724_v19  ;;  %v16096_v35 = vrot.slane %v12686_v52, %v14398_v32  ;;  %v16099_v43 = vrot.slane %v4122_v24, %v14398_v32 }
 0x989   :  { %v3837_v6 = vcombine.low %v3725_v49, %v3726_v4  ;;  %v16102_v48 = vrot.slane %v12687_v17, %v14398_v32  ;;  %v16105_v15 = vrot.slane %v4172_v10, %v14398_v32 }
 0x98a   :  { %v3835_v57 = vcombine.low %v3827_v40, %v3834_v20  ;;  %v3844_v3 = vrot.slane %v3836_v59, %v14398_v32  ;;  %v16112_v20 = vcombine.high %v16096_v35, %v16096_v35 }
 0x98b   :  { %v3851_v13 = vrot.slane %v3837_v6, %v14398_v32 }
 0x98c   :  { %v3871_v39 = vsel %vm647_vm3, %v3835_v57, 0.0 }
 0x98d   :  { %3872 = vadd.xlane.f32.xlu1 %v3871_v39  ;;  %v3852_v50 = vcombine.low %v3844_v3, %v3851_v13  ;;  %v16118_v13 = vcombine.high %v16099_v43, %v16099_v43  ;;  %v16122_v39 = vcombine.high %v16102_v48, %v16102_v48 }
 0x98f   :  { %v3874_v11 = vsel %vm647_vm3, %v3852_v50, 0.0 }
 0x991   :  { %3875 = vadd.xlane.f32.xlu1 %v3874_v11 }
 0xa02   :  { %v3861_v36 = vpop.xlane.xlu0 %3860 }
 0xa03   :  { %v3877_v21 = vmul.f32 0.03125, %v3861_v36 }
 0xa05   :  { %v3883_v44 = vadd.f32 1e-05, %v3877_v21 }
 0xa06   :  { %v3864_v30 = vpop.xlane.xlu1 %3863 }
 0xa07   :  { %13959 = vrsqrt.f32 %v3883_v44  ;;  %v3878_v33 = vmul.f32 0.03125, %v3864_v30 }
 0xa09   :  { %v3884_v51 = vadd.f32 1e-05, %v3878_v33 }
 0xa0b   :  { %13961 = vrsqrt.f32 %v3884_v51 }
 0xa11   :  { %v13960_v60 = vpop.eup %13959  ;;  %v3870_v29 = vpop.xlane.xlu0 %3869 }
 0xa12   :  { %v3880_v54 = vmul.f32 0.03125, %v3870_v29  ;;  %v3907_v19 = vrot.slane %v13960_v60, %v15350_v27  ;;  %v3914_v40 = vrot.slane %v13960_v60, %v15353_v31  ;;  %v3928_v49 = vrot.slane %v13960_v60, %v15359_v55 }
 0xa13   :  { %v3921_v44 = vrot.slane %v13960_v60, %v15356_v16 }
 0xa14   :  { %v3886_v4 = vadd.f32 1e-05, %v3880_v54  ;;  %v4093_v59 = vmul.f32 %v3907_v19, %v15924_v42  ;;  %v4094_v6 = vmul.f32 %v3914_v40, %v15927_v8  ;;  %v4096_v50 = vmul.f32 %v3928_v49, %v15933_v14 }
 0xa15   :  { %v13962_v57 = vpop.eup %13961  ;;  %v3867_v3 = vpop.xlane.xlu0 %3866  ;;  %v16128_v42 = vcombine.high %v16105_v15, %v16105_v15 }
 0xa16   :  { %v3942_v11 = vrot.slane %v13962_v57, %v15353_v31  ;;  %13963 = vrsqrt.f32 %v3886_v4  ;;  %v3879_v41 = vmul.f32 0.03125, %v3867_v3  ;;  %v3935_v8 = vrot.slane %v13962_v57, %v15350_v27 }
 0xa17   :  { %v3949_v18 = vrot.slane %v13962_v57, %v15356_v16  ;;  %v3956_v36 = vrot.slane %v13962_v57, %v15359_v55  ;;  %v4143_v21 = vmul.f32 %v16096_v35, %v4093_v59  ;;  %v4144_v33 = vmul.f32 %v16112_v20, %v4094_v6 }
 0xa18   :  { %v4098_v14 = vmul.f32 %v3942_v11, %v15951_v1  ;;  %v3885_v30 = vadd.f32 1e-05, %v3879_v41  ;;  %v4097_v51 = vmul.f32 %v3935_v8, %v15948_v53  ;;  %v4146_v24 = vmul.f32 %v16118_v13, %v4096_v50 }
 0xa19   :  { %v4099_v52 = vmul.f32 %v3949_v18, %v15954_v0  ;;  %v4100_v17 = vmul.f32 %v3956_v36, %v15957_v58  ;;  %v16142_v29 = vadd.f32 %v16102_v48, %v4143_v21  ;;  %v4095_v53 = vmul.f32 %v3921_v44, %v15930_v22 }
 0xa1a   :  { %13965 = vrsqrt.f32 %v3885_v30  ;;  %v3873_v10 = vpop.xlane.xlu1 %3872  ;;  %v4147_v60 = vmul.f32 %v16096_v35, %v4097_v51  ;;  %v4148_v0 = vmul.f32 %v16112_v20, %v4098_v14  ;;  %v16150_v58 = vadd.f32 %v16122_v39, %v4144_v33 }
 0xa1b   :  { %v3881_v54 = vmul.f32 0.03125, %v3873_v10  ;;  %v4149_v1 = vmul.f32 %v16099_v43, %v4099_v52  ;;  %v4150_v19 = vmul.f32 %v16118_v13, %v4100_v17  ;;  %v16153_v40 = vadd.f32 %v16128_v42, %v4146_v24 }
 0xa1c   :  { %v16156_v4 = vadd.f32 %v16102_v48, %v4147_v60  ;;  %v4145_v8 = vmul.f32 %v16099_v43, %v4095_v53  ;;  %v4198_v21 = vadd.f32 %v16122_v39, %v4148_v0 }
 0xa1d   :  { %v3887_v49 = vadd.f32 1e-05, %v3881_v54  ;;  %v16159_v59 = vadd.f32 %v16105_v15, %v4149_v1  ;;  %v16162_v6 = vadd.f32 %v16128_v42, %v4150_v19  ;;  %v19307_v1 = vld [vmem:[#allocation6_spill] sm:$0xff] }
 0xa1e   :  { %v3876_v57 = vpop.xlane.xlu1 %3875  ;;  %v4195_v52 = vadd.f32 %v16105_v15, %v4145_v8  ;;  %v4272_v19 = vrot.slane %v4198_v21, %v19307_v1 }
 0xa1f   :  { %13967 = vrsqrt.f32 %v3887_v49  ;;  %v3882_v3 = vmul.f32 0.03125, %v3876_v57 }
 0xa20   :  { %v13964_v41 = vpop.eup %13963 }
 0xa21   :  { %v4005_v18 = vrot.slane %v13964_v41, %v15356_v16  ;;  %v3888_v36 = vadd.f32 1e-05, %v3882_v3  ;;  %v3991_v44 = vrot.slane %v13964_v41, %v15350_v27  ;;  %v3998_v14 = vrot.slane %v13964_v41, %v15353_v31 }
 0xa22   :  { %v4012_v30 = vrot.slane %v13964_v41, %v15359_v55 }
 0xa23   :  { %13969 = vrsqrt.f32 %v3888_v36  ;;  %v4107_v33 = vmul.f32 %v4005_v18, %v15983_v62  ;;  %v4105_v17 = vmul.f32 %v3991_v44, %v15977_v34  ;;  %v4106_v24 = vmul.f32 %v3998_v14, %v15980_v37 }
 0xa24   :  { %v13966_v51 = vpop.eup %13965  ;;  %v4108_v10 = vmul.f32 %v4012_v30, %v15987_v56  ;;  %v4268_v44 = vrot.slane %v4195_v52, %v19307_v1 }
 0xa25   :  { %v3963_v54 = vrot.slane %v13966_v51, %v15350_v27  ;;  %v3984_v60 = vrot.slane %v13966_v51, %v15359_v55  ;;  %v3970_v62 = vrot.slane %v13966_v51, %v15353_v31  ;;  %v3977_v53 = vrot.slane %v13966_v51, %v15356_v16 }
 0xa26   :  { %v4155_v0 = vmul.f32 %v16096_v35, %v4105_v17  ;;  %v4156_v49 = vmul.f32 %v16112_v20, %v4106_v24  ;;  %v4158_v34 = vmul.f32 %v16118_v13, %v4108_v10  ;;  %v4157_v57 = vmul.f32 %v16099_v43, %v4107_v33 }
 0xa27   :  { %v4101_v37 = vmul.f32 %v3963_v54, %v16002_v26  ;;  %v4104_v56 = vmul.f32 %v3984_v60, %v16011_v61  ;;  %v4102_v3 = vmul.f32 %v3970_v62, %v16005_v23  ;;  %v4103_v41 = vmul.f32 %v3977_v53, %v16008_v12 }
 0xa28   :  { %v16195_v8 = vadd.f32 %v16102_v48, %v4155_v0  ;;  %v16198_v18 = vadd.f32 %v16122_v39, %v4156_v49  ;;  %v16201_v36 = vadd.f32 %v16128_v42, %v4158_v34  ;;  %v4298_v24 = vsel %vm4297_vm6, %v4272_v19, %v4268_v44 }
 0xa29   :  { %v13968_v21 = vpop.eup %13967  ;;  %v4151_v26 = vmul.f32 %v16096_v35, %v4101_v37  ;;  %v4154_v61 = vmul.f32 %v16118_v13, %v4104_v56  ;;  %v4152_v23 = vmul.f32 %v16112_v20, %v4102_v3  ;;  %v4153_v30 = vmul.f32 %v16099_v43, %v4103_v41 }
 0xa2a   :  { %19308 = vst [vmem:[#allocation13_spill] sm:$0xff] %v16195_v8  ;;  %19309 = vst [vmem:[#allocation15_spill] sm:$0xff] %v16198_v18  ;;  %v4026_v12 = vrot.slane %v13968_v21, %v15353_v31  ;;  %v4019_v14 = vrot.slane %v13968_v21, %v15350_v27  ;;  %v4207_v54 = vadd.f32 %v16105_v15, %v4157_v57 }
 0xa2b   :  { %19310 = vst [vmem:[#allocation17_spill] sm:$0xff] %v16201_v36  ;;  %v4201_v51 = vadd.f32 %v16102_v48, %v4151_v26  ;;  %v4204_v17 = vadd.f32 %v16128_v42, %v4154_v61  ;;  %v16216_v10 = vadd.f32 %v16122_v39, %v4152_v23  ;;  %v16222_v62 = vadd.f32 %v16105_v15, %v4153_v30 }
 0xa2c   :  { %v4110_v52 = vmul.f32 %v4026_v12, %v16031_v47  ;;  %v4109_v60 = vmul.f32 %v4019_v14, %v16028_v46  ;;  %v4033_v34 = vrot.slane %v13968_v21, %v15356_v16  ;;  %v4040_v19 = vrot.slane %v13968_v21, %v15359_v55  ;;  %v19311_v12 = vld [vmem:[#allocation8_spill] sm:$0xff] }
 0xa2d   :  { %v13970_v53 = vpop.eup %13969  ;;  %v4276_v0 = vrot.slane %v4201_v51, %v19307_v1  ;;  %v4280_v49 = vrot.slane %v4204_v17, %v19307_v1 }
 0xa2e   :  { %v4047_v37 = vrot.slane %v13970_v53, %v15350_v27  ;;  %v4068_v47 = vrot.slane %v13970_v53, %v15359_v55  ;;  %v4160_v56 = vmul.f32 %v16112_v20, %v4110_v52  ;;  %v4159_v46 = vmul.f32 %v16096_v35, %v4109_v60  ;;  %v19313_v52 = vld [vmem:[#allocation7_spill] sm:$0xff] }
 0xa2f   :  { %v4300_v57 = vsel %vm4299_vm7, %v4276_v0, %v4298_v24  ;;  %v4054_v41 = vrot.slane %v13970_v53, %v15353_v31  ;;  %v4061_v26 = vrot.slane %v13970_v53, %v15356_v16  ;;  %v4111_v51 = vmul.f32 %v4033_v34, %v16034_v63 }
 0xa30   :  { %v4113_v61 = vmul.f32 %v4047_v37, %v16055_v7  ;;  %v4116_v21 = vmul.f32 %v4068_v47, %v16065_v5  ;;  %v4210_v44 = vadd.f32 %v16122_v39, %v4160_v56  ;;  %v4302_v23 = vsel %vm4301_vm8, %v4280_v49, %v4300_v57 }
 0xa31   :  { %v4310_v14 = vsel %vm340_vm1, %v4302_v23, %v19311_v12  ;;  %v16244_v30 = vadd.f32 %v16102_v48, %v4159_v46  ;;  %v4112_v5 = vmul.f32 %v4040_v19, %v16039_v45  ;;  %v4114_v0 = vmul.f32 %v4054_v41, %v16058_v28  ;;  %v19316_v23 = vld [vmem:[#allocation9_spill] sm:$0xff] }
 0xa32   :  { %v4163_v17 = vmul.f32 %v16096_v35, %v4113_v61  ;;  %v4166_v24 = vmul.f32 %v16118_v13, %v4116_v21  ;;  %v4288_v7 = vrot.slane %v4210_v44, %v19307_v1  ;;  %v4321_v60 = vrot.slane %v4310_v14, %v19313_v52 }
 0xa33   :  { %19312 = vst [vmem:[#allocation16_spill] sm:$0xff] %v16244_v30  ;;  %v4115_v49 = vmul.f32 %v4061_v26, %v16062_v38  ;;  %v4284_v35 = vrot.slane %v4207_v54, %v19307_v1  ;;  %v4314_v34 = vcombine.high %v4310_v14, %v4310_v14  ;;  %v4161_v56 = vmul.f32 %v16099_v43, %v4111_v51 }
 0xa34   :  { %v4213_v37 = vadd.f32 %v16102_v48, %v4163_v17  ;;  %v4216_v63 = vadd.f32 %v16128_v42, %v4166_v24  ;;  %v4329_v47 = vcombine.high %v4321_v60, %v4321_v60  ;;  %v4162_v28 = vmul.f32 %v16118_v13, %v4112_v5 }
 0xa35   :  { %v4303_v46 = vsel %vm4297_vm6, %v4288_v7, %v4284_v35  ;;  %v16265_v38 = vrot.slane %v4321_v60, %v19313_v52  ;;  %v4164_v54 = vmul.f32 %v16112_v20, %v4114_v0  ;;  %v4165_v57 = vmul.f32 %v16099_v43, %v4115_v49 }
 0xa36   :  { %v4292_v45 = vrot.slane %v4213_v37, %v19307_v1  ;;  %v4296_v19 = vrot.slane %v4216_v63, %v19307_v1  ;;  %v16268_v48 = vrot.slane %v4329_v47, %v19313_v52  ;;  %v16274_v26 = vadd.f32 %v16105_v15, %v4161_v56 }
 0xa37   :  { %v16277_v61 = vadd.f32 %v16128_v42, %v4162_v28  ;;  %v4328_v21 = vrot.slane %v4314_v34, %v19313_v52  ;;  %v16286_v43 = vadd.f32 %v16122_v39, %v4164_v54  ;;  %v16289_v12 = vadd.f32 %v16105_v15, %v4165_v57 }
 0xa38   :  { %v4304_v41 = vsel %vm4299_vm7, %v4292_v45, %v4303_v46  ;;  %19314 = vst [vmem:[#allocation20_spill] sm:$0xff] %v16274_v26  ;;  %v4402_v44 = vcombine.low %v16265_v38, %v16268_v48  ;;  %v12716_v17 = vcombine.high %v16265_v38, %v16268_v48 }
 0xa39   :  { %19315 = vst [vmem:[#allocation19_spill] sm:$0xff] %v16277_v61  ;;  %v4305_v13 = vsel %vm4301_vm8, %v4296_v19, %v4304_v41  ;;  %19317 = vst [vmem:[#allocation18_spill] sm:$0xff] %v16286_v43  ;;  %v16299_v7 = vrot.slane %v4328_v21, %v19313_v52 }
 0xa3a   :  { %v4311_v20 = vsel %vm340_vm1, %v4305_v13, %v19316_v23  ;;  %19318 = vst [vmem:[#allocation22_spill] sm:$0xff] %v16289_v12  ;;  %v4412_v60 = vrot.slane %v4402_v44, %v19313_v52  ;;  %v4419_v63 = vrot.slane %v12716_v17, %v19313_v52  ;;  %v12717_v23 = vld [vmem:[%s19146_s7 + $0x1] ss:$0 sm:$0xff] }
 0xa3b   :  { %v4353_v14 = vcombine.high %v4311_v20, %v4311_v20  ;;  %v4360_v51 = vrot.slane %v4311_v20, %v19313_v52 }
 0xa3c   :  { %v4434_v19 = vcombine.low %v4412_v60, %v4419_v63  ;;  %v14173_v60 = vld [vmem:[%s19282_s25] ss:$0 sm:$0xff]  ;;  %v14174_v63 = vld [vmem:[%s19282_s25 + $0x1] ss:$0 sm:$0xff] }
 0xa3d   :  { %v4367_v39 = vrot.slane %v4353_v14, %v19313_v52  ;;  %v4368_v5 = vcombine.high %v4360_v51, %v4360_v51  ;;  %v16303_v15 = vrot.slane %v4360_v51, %v19313_v52 }
 0xa3e   :  { %v4442_v57 = vrot.slane %v4434_v19, %v19313_v52  ;;  %v14176_v19 = vld [vmem:[%s19282_s25 + $0x3] ss:$0 sm:$0xff] }
 0xa3f   :  { %v16307_v0 = vrot.slane %v4368_v5, %v19313_v52  ;;  %v16311_v49 = vcombine.high %v16303_v15, %v16303_v15  ;;  %v4404_v37 = vcombine.low %v16299_v7, %v16303_v15  ;;  %v16317_v35 = vrot.slane %v4367_v39, %v19313_v52 }
 0xa41   :  { %v16321_v34 = vcombine.high %v16307_v0, %v16307_v0  ;;  %v4405_v47 = vcombine.low %v16307_v0, %v16311_v49  ;;  %v4426_v56 = vrot.slane %v4404_v37, %v19313_v52 }
 0xa43   :  { %v4433_v45 = vrot.slane %v4405_v47, %v19313_v52  ;;  %v4451_v46 = vcombine.low %v16321_v34, %v16317_v35 }
 0xa45   :  { %v4435_v28 = vcombine.low %v4426_v56, %v4433_v45  ;;  %v4458_v54 = vrot.slane %v4451_v46, %v19313_v52  ;;  %v14175_v56 = vld [vmem:[%s19282_s25 + $0x2] ss:$0 sm:$0xff] }
 0xa47   :  { %v4449_v41 = vrot.slane %v4435_v28, %v19313_v52  ;;  %v4465_v21 = vrot.slane %v4458_v54, %v19313_v52  ;;  %v19319_v28 = vld [vmem:[#allocation23_spill] sm:$0xff] }
 0xa49   :  { %v4450_v13 = vcombine.low %v4442_v57, %v4449_v41  ;;  %v19320_v57 = vld [vmem:[#allocation25_spill] sm:$0xff] }
 0xa4b   :  { %v4468_v44 = vpack.c.bf16 %v4465_v21, %v4450_v13  ;;  %v19321_v13 = vld [vmem:[#allocation24_spill] sm:$0xff] }
 0xa4d   :  { %13314 = vmatmul.mubr.msk.bf16.vlgmr.msra.gmra.mrb[72].mxu0 %vm647_vm3, %v4468_v44 }
 0xa4e   :  { %13319 = vmatprep.mubr.msk.bf16.mxu0 %vm14218_vm0, %v19288_v25 }
 0xb20   :  { %v4524_v20 = vpop.f32.mrb[72].mxu0 }
 0xb21   :  { %v4525_v14 = vadd.f32 %v12717_v23, %v4524_v20  ;;  %v13315_v51 = vpop.f32.mrb[73].mxu0 }
 0xb22   :  { %v4527_v17 = vpop.f32.mrb[74].mxu0 }
 0xb23   :  { %v4528_v39 = vadd.f32 %v12717_v23, %v4527_v17  ;;  %v13316_v5 = vpop.f32.mrb[75].mxu0  ;;  %v4532_v37 = vmul.f32 %v14173_v60, %v4525_v14  ;;  %v4613_v47 = vmul.f32 %v14174_v63, %v4525_v14  ;;  %v4786_v45 = vmul.f32 %v14175_v56, %v4525_v14 }
 0xb24   :  { %v4911_v46 = vmul.f32 %v14176_v19, %v4525_v14  ;;  %v16352_v54 = vmul.f32 %v4525_v14, %v19319_v28  ;;  %v16355_v41 = vmul.f32 %v4525_v14, %v19320_v57  ;;  %v16358_v21 = vmul.f32 %v4525_v14, %v19321_v13 }
 0xb25   :  { %v4531_v44 = vpack.c.bf16 %v4528_v39, %v4525_v14  ;;  %v4533_v23 = vmul.f32 %v14173_v60, %v4528_v39  ;;  %v4614_v20 = vmul.f32 %v14174_v63, %v4528_v39  ;;  %v4787_v51 = vmul.f32 %v14175_v56, %v4528_v39 }
 0xb26   :  { %v4912_v17 = vmul.f32 %v14176_v19, %v4528_v39  ;;  %v16361_v5 = vmul.f32 %v4528_v39, %v19319_v28  ;;  %v16364_v24 = vmul.f32 %v4528_v39, %v19320_v57  ;;  %v16367_v42 = vmul.f32 %v4528_v39, %v19321_v13 }
 0xb27   :  { %4536 = vrot.lane.b32.xlu0 %v4531_v44, %s14221_s5  ;;  %v4534_v53 = vpack.c.bf16 %v4533_v23, %v4532_v37  ;;  %v4615_v33 = vpack.c.bf16 %v4614_v20, %v4613_v47  ;;  %v4788_v3 = vpack.c.bf16 %v4787_v51, %v4786_v45  ;;  %v16377_v19 = vmul.f32 %v4525_v14, %v14971_v2  ;;  %v90_v20 = vld [vmem:[%s19322_s30 + $0x8] sm:$0x3] }
 0xb28   :  { %v4913_v11 = vpack.c.bf16 %v4912_v17, %v4911_v46  ;;  %v16380_v50 = vmul.f32 %v4528_v39, %v14971_v2  ;;  %v89_v46 = vld [vmem:[%s19322_s30] sm:$0xff] }
 0xb99   :  { %v4537_v47 = vpop.permute.xlu0 %4536 }
 0xb9a   :  { %v4542_v45 = vsel %vm647_vm3, %v4537_v47, 0 }
 0xb9b   :  { %13318 = vmatpush3.bf16.xpose.msra.mxu0 %v4542_v45 }
 0xb9c   :  { %13323 = vmatprep.subr.bf16.mxu0 %v19288_v25 }
 0xba2   :  { %13320 = vmatmul.mubr.msk.bf16.vlgmr.msra.gmra.mrb[76].mxu0 %vm647_vm3, %v4534_v53 }
 0xba3   :  { %13324 = vmatpush3.bf16.xpose.msra.mxu0 %v4542_v45  ;;  %13325 = vmatprep.mubr.msk.bf16.mxu0 %vm14218_vm0, %v19288_v25 }
 0xba4   :  { %13341 = vmatprep.subr.bf16.mxu0 %v19288_v25 }
 0xbaa   :  { %13326 = vmatmul.mubr.msk.bf16.vlgmr.msra.gmra.mrb[80].mxu0 %vm647_vm3, %v4615_v33 }
 0xbab   :  { %13342 = vmatpush3.bf16.xpose.msra.mxu0 %v4542_v45  ;;  %13343 = vmatprep.mubr.msk.bf16.mxu0 %vm14218_vm0, %v19288_v25 }
 0xbac   :  { %13353 = vmatprep.subr.bf16.mxu0 %v19288_v25 }
 0xbb2   :  { %13344 = vmatmul.mubr.msk.bf16.vlgmr.msra.gmra.mrb[84].mxu0 %vm647_vm3, %v4788_v3 }
 0xbb3   :  { %13354 = vmatpush3.bf16.xpose.msra.mxu0 %v4542_v45  ;;  %13355 = vmatprep.mubr.msk.bf16.mxu0 %vm14218_vm0, %v19288_v25 }
 0xbb4   :  { %13365 = vmatprep.subr.bf16.mxu0 %v19288_v25 }
 0xbba   :  { %13356 = vmatmul.mubr.msk.bf16.vlgmr.msra.gmra.mrb[88].mxu0 %vm647_vm3, %v4913_v11 }
 0xbbb   :  { %13369 = vmatprep.mubr.msk.bf16.mxu0 %vm14218_vm0, %v19288_v25 }
 0xc75   :  { %v4578_v33 = vpop.f32.mrb[76].mxu0 }
 0xc76   :  { %v13321_v53 = vpop.f32.mrb[77].mxu0  ;;  %v4579_v45 = vadd.f32 %v4578_v33, %v89_v46 }
 0xc77   :  { %v4581_v14 = vpop.f32.mrb[78].mxu0 }
 0xc78   :  { %v13322_v39 = vpop.f32.mrb[79].mxu0  ;;  %v4586_v56 = vsel %vm4585_vm9, %v4579_v45, -inf }
 0xc7d   :  { %v4653_v3 = vpop.f32.mrb[80].mxu0 }
 0xc7e   :  { %v4654_v44 = vadd.f32 %v4653_v3, %v89_v46  ;;  %v13327_v23 = vpop.f32.mrb[81].mxu0 }
 0xc7f   :  { %v4656_v51 = vpop.f32.mrb[82].mxu0  ;;  %v4582_v23 = vadd.f32 %v4581_v14, %v90_v20 }
 0xc80   :  { %v4657_v11 = vadd.f32 %v4656_v51, %v90_v20  ;;  %v13328_v17 = vpop.f32.mrb[83].mxu0  ;;  %v4660_v47 = vsel %vm4585_vm9, %v4654_v44, -inf }
 0xc81   :  { %4661 = vmax.xlane.f32.xlu1 %v4660_v47  ;;  %v4590_v51 = vsel %vm4589_vm10, %v4582_v23, -inf }
 0xc82   :  { %v4663_v53 = vsel %vm4589_vm10, %v4657_v11, -inf }
 0xc85   :  { %4664 = vmax.xlane.f32.xlu1 %v4663_v53  ;;  %v4826_v39 = vpop.f32.mrb[84].mxu0 }
 0xc86   :  { %v13345_v22 = vpop.f32.mrb[85].mxu0  ;;  %v4827_v63 = vadd.f32 %v4826_v39, %v89_v46 }
 0xc87   :  { %v4829_v3 = vpop.f32.mrb[86].mxu0 }
 0xc88   :  { %v13346_v37 = vpop.f32.mrb[87].mxu0  ;;  %v4830_v33 = vadd.f32 %v4829_v3, %v90_v20  ;;  %v4833_v53 = vsel %vm4585_vm9, %v4827_v63, -inf }
 0xc89   :  { %4587 = vmax.xlane.f32.xlu1 %v4586_v56 }
 0xc8a   :  { %v4836_v14 = vsel %vm4589_vm10, %v4830_v33, -inf }
 0xc8d   :  { %4591 = vmax.xlane.f32.xlu1 %v4590_v51  ;;  %v4951_v17 = vpop.f32.mrb[88].mxu0 }
 0xc8e   :  { %v4952_v60 = vadd.f32 %v4951_v17, %v89_v46  ;;  %v13357_v47 = vpop.f32.mrb[89].mxu0  ;;  %v19323_v46 = vpack.c.bf16 %v16361_v5, %v16352_v54 }
 0xc8f   :  { %v4954_v55 = vpop.f32.mrb[90].mxu0 }
 0xc90   :  { %v13358_v16 = vpop.f32.mrb[91].mxu0  ;;  %v4958_v22 = vsel %vm4585_vm9, %v4952_v60, -inf  ;;  %v4955_v37 = vadd.f32 %v4954_v55, %v90_v20 }
 0xc91   :  { %4834 = vmax.xlane.f32.xlu1 %v4833_v53  ;;  %4959 = vmax.xlane.f32.xlu0 %v4958_v22  ;;  %v19324_v16 = vpack.c.bf16 %v16364_v24, %v16355_v41 }
 0xc92   :  { %v4961_v56 = vsel %vm4589_vm10, %v4955_v37, -inf }
 0xc95   :  { %4837 = vmax.xlane.f32.xlu1 %v4836_v14 }
 0xc99   :  { %4962 = vmax.xlane.f32.xlu1 %v4961_v56 }
 0xca7   :  { %4687 = vrot.lane.b32.xlu0 %v19323_v46, %s14222_s26 }
 0xcab   :  { %4860 = vrot.lane.b32.xlu0 %v19324_v16, %s14222_s26 }
 0xd0e   :  { %v4662_v39 = vpop.xlane.xlu1 %4661 }
 0xd0f   :  { %v4666_v20 = vsub.f32 %v4654_v44, %v4662_v39 }
 0xd11   :  { %v4668_v22 = vmul.f32 1.442695, %v4666_v20 }
 0xd12   :  { %v4665_v3 = vpop.xlane.xlu1 %4664 }
 0xd13   :  { %v4667_v14 = vsub.f32 %v4657_v11, %v4665_v3  ;;  %v19325_v3 = vpack.c.bf16 %v16367_v42, %v16358_v21 }
 0xd15   :  { %v4670_v54 = vmul.f32 1.442695, %v4667_v14 }
 0xd16   :  { %v4588_v51 = vpop.xlane.xlu1 %4587 }
 0xd17   :  { %v4593_v55 = vsub.f32 %v4579_v45, %v4588_v51 }
 0xd19   :  { %v4595_v17 = vmul.f32 1.442695, %v4593_v55 }
 0xd1a   :  { %v4592_v47 = vpop.xlane.xlu1 %4591 }
 0xd1b   :  { %13971 = vpow2.f32 %v4595_v17  ;;  %v4594_v53 = vsub.f32 %v4582_v23, %v4592_v47 }
 0xd1d   :  { %v4597_v56 = vmul.f32 1.442695, %v4594_v53 }
 0xd1e   :  { %v4960_v31 = vpop.xlane.xlu0 %4959  ;;  %v4835_v51 = vpop.xlane.xlu1 %4834 }
 0xd1f   :  { %13973 = vpow2.f32 %v4597_v56  ;;  %v4839_v55 = vsub.f32 %v4827_v63, %v4835_v51  ;;  %v4964_v53 = vsub.f32 %v4952_v60, %v4960_v31 }
 0xd20   :  { %13975 = vpow2.f32 %v4668_v22 }
 0xd21   :  { %13977 = vpow2.f32 %v4670_v54  ;;  %v4841_v17 = vmul.f32 1.442695, %v4839_v55  ;;  %v4966_v56 = vmul.f32 1.442695, %v4964_v53 }
 0xd22   :  { %v4688_v5 = vpop.permute.xlu0 %4687  ;;  %v4838_v20 = vpop.xlane.xlu1 %4837 }
 0xd23   :  { %v4693_v24 = vsel %vm349_vm2, %v4688_v5, 0  ;;  %v4840_v47 = vsub.f32 %v4830_v33, %v4838_v20  ;;  %13979 = vpow2.f32 %v4841_v17 }
 0xd24   :  { %13330 = vmatpush3.bf16.msra.mxu1 %v4693_v24 }
 0xd25   :  { %v16424_v41 = vpop.eup %13971  ;;  %13335 = vmatprep.subr.bf16.mxu1 %v19288_v25  ;;  %v4843_v22 = vmul.f32 1.442695, %v4840_v47 }
 0xd26   :  { %v4599_v44 = vsel %vm4585_vm9, %v16424_v41, 0.0  ;;  %v4963_v14 = vpop.xlane.xlu1 %4962 }
 0xd27   :  { %4600 = vadd.xlane.f32.xlu1 %v4599_v44  ;;  %13981 = vpow2.f32 %v4843_v22  ;;  %v4965_v54 = vsub.f32 %v4955_v37, %v4963_v14  ;;  %v19326_v37 = vpack.c.bf16 %v16380_v50, %v16377_v19 }
 0xd28   :  { %13983 = vpow2.f32 %v4966_v56 }
 0xd29   :  { %v13974_v45 = vpop.eup %13973  ;;  %v4968_v5 = vmul.f32 1.442695, %v4965_v54 }
 0xd2a   :  { %v4602_v11 = vsel %vm4589_vm10, %v13974_v45, 0.0  ;;  %v13976_v23 = vpop.eup %13975 }
 0xd2b   :  { %4603 = vadd.xlane.f32.xlu1 %v4602_v11  ;;  %v4672_v46 = vsel %vm4585_vm9, %v13976_v23, 0.0  ;;  %v13978_v16 = vpop.eup %13977  ;;  %13985 = vpow2.f32 %v4968_v5  ;;  %v13821_v11 = vld [vmem:[%s19147_s8 + $0x10] sm:$0xff]   ;;  %v4861_v5 = vpop.permute.xlu0 %4860 }
 0xd2c   :  { %v4675_v39 = vsel %vm4589_vm10, %v13978_v16, 0.0  ;;  %13366 = vmatpush3.bf16.msra.mxu0 %v13821_v11 }
 0xd2d   :  { %v13980_v24 = vpop.eup %13979  ;;  %13367 = vmatprep.subr.bf16.mxu0 %v19288_v25 }
 0xd2e   :  { %v4845_v44 = vsel %vm4585_vm9, %v13980_v24, 0.0 }
 0xd2f   :  { %4673 = vadd.xlane.f32.xlu1 %v4672_v46 }
 0xd31   :  { %v13982_v42 = vpop.eup %13981 }
 0xd32   :  { %v4848_v21 = vsel %vm4589_vm10, %v13982_v42, 0.0  ;;  %v16438_v63 = vpop.eup %13983 }
 0xd33   :  { %4676 = vadd.xlane.f32.xlu1 %v4675_v39  ;;  %v4970_v31 = vsel %vm4585_vm9, %v16438_v63, 0.0 }
 0xd35   :  { %v13986_v60 = vpop.eup %13985 }
 0xd36   :  { %v4973_v33 = vsel %vm4589_vm10, %v13986_v60, 0.0 }
 0xd44   :  { %4737 = vrot.lane.b32.xlu1 %v19325_v3, %s14222_s26 }
 0xd68   :  { %4846 = vadd.xlane.f32.xlu1 %v4845_v44 }
 0xd6c   :  { %4849 = vadd.xlane.f32.xlu1 %v4848_v21 }
 0xd70   :  { %4971 = vadd.xlane.f32.xlu1 %v4970_v31 }
 0xd74   :  { %4974 = vadd.xlane.f32.xlu1 %v4973_v33 }
 0xd85   :  { %4985 = vrot.lane.b32.xlu1 %v19326_v37, %s14222_s26 }
 0xdb4   :  { %v4601_v46 = vpop.xlane.xlu1 %4600 }
 0xdb8   :  { %v4604_v39 = vpop.xlane.xlu1 %4603 }
 0xdbc   :  { %v4674_v3 = vpop.xlane.xlu1 %4673 }
 0xdbd   :  { %13987 = vrcp.f32 %v4674_v3 }
 0xdc0   :  { %v4677_v51 = vpop.xlane.xlu1 %4676 }
 0xdc1   :  { %13989 = vrcp.f32 %v4677_v51 }
 0xdc2   :  { %13991 = vrcp.f32 %v4604_v39 }
 0xdc3   :  { %13993 = vrcp.f32 %v4601_v46 }
 0xdc4   :  { %v4738_v19 = vpop.permute.xlu1 %4737 }
 0xdc5   :  { %v4743_v53 = vsel %vm349_vm2, %v4738_v19, 0 }
 0xdc7   :  { %v13988_v55 = vpop.eup %13987 }
 0xdc8   :  { %v4680_v17 = vmul.f32 %v13988_v55, %v13976_v23 }
 0xdcb   :  { %v13990_v20 = vpop.eup %13989 }
 0xdcc   :  { %v4681_v50 = vmul.f32 %v13990_v20, %v13978_v16  ;;  %v13992_v22 = vpop.eup %13991  ;;  %v4866_v16 = vsel %vm349_vm2, %v4861_v5, 0 }
 0xdcd   :  { %v13994_v14 = vpop.eup %13993  ;;  %v4608_v56 = vmul.f32 %v13992_v22, %v13974_v45 }
 0xdce   :  { %v4685_v47 = vpack.c.bf16 %v4681_v50, %v4680_v17  ;;  %v4607_v54 = vmul.f32 %v13994_v14, %v16424_v41 }
 0xdd0   :  { %13332 = vmatmul.mubr.msk.bf16.vlgmr.msra.gmra.mrb[36].mxu1 %vm4585_vm9, %v4685_v47  ;;  %v4612_v23 = vpack.c.bf16 %v4608_v56, %v4607_v54 }
 0xdd1   :  { %13336 = vmatpush3.bf16.msra.mxu1 %v4743_v53  ;;  %13337 = vmatprep.mubr.msk.bf16.mxu1 %vm14218_vm0, %v19288_v25 }
 0xdd2   :  { %13347 = vmatprep.subr.bf16.mxu1 %v19288_v25 }
 0xddc   :  { %13338 = vmatmul.mubr.msk.bf16.vlgmr.msra.gmra.mrb[36].mxu1 %vm4585_vm9, %v4612_v23 }
 0xddd   :  { %13348 = vmatpush3.bf16.msra.mxu1 %v4866_v16  ;;  %13349 = vmatprep.mubr.msk.bf16.mxu1 %vm14218_vm0, %v19288_v25 }
 0xdde   :  { %13359 = vmatprep.subr.bf16.mxu1 %v19288_v25 }
 0xdf5   :  { %v4847_v44 = vpop.xlane.xlu1 %4846 }
 0xdf6   :  { %13995 = vrcp.f32 %v4847_v44 }
 0xdf9   :  { %v4850_v21 = vpop.xlane.xlu1 %4849 }
 0xdfa   :  { %13997 = vrcp.f32 %v4850_v21 }
 0xdfd   :  { %v4972_v31 = vpop.xlane.xlu1 %4971 }
 0xe00   :  { %v13996_v33 = vpop.eup %13995 }
 0xe01   :  { %v4975_v45 = vpop.xlane.xlu1 %4974  ;;  %v4853_v37 = vmul.f32 %v13996_v33, %v13980_v24  ;;  %v13822_v24 = vld [vmem:[%s19147_s8 + $0x18] sm:$0xff]  }
 0xe02   :  { %13999 = vrcp.f32 %v4975_v45  ;;  %13368 = vmatpush3.bf16.msra.mxu0 %v13822_v24 }
 0xe03   :  { %14001 = vrcp.f32 %v4972_v31  ;;  %13373 = vmatprep.subr.bf16.mxu0 %v19288_v25 }
 0xe04   :  { %v13998_v41 = vpop.eup %13997 }
 0xe05   :  { %v4854_v11 = vmul.f32 %v13998_v41, %v13982_v42  ;;  %v4986_v46 = vpop.permute.xlu1 %4985 }
 0xe06   :  { %v4991_v3 = vsel %vm349_vm2, %v4986_v46, 0 }
 0xe07   :  { %v4858_v39 = vpack.c.bf16 %v4854_v11, %v4853_v37 }
 0xe09   :  { %13350 = vmatmul.mubr.msk.bf16.vlgmr.msra.gmra.mrb[36].mxu1 %vm4585_vm9, %v4858_v39  ;;  %v4351_v39 = vcombine.high %v16265_v38, %v16265_v38 }
 0xe0a   :  { %13360 = vmatpush3.bf16.msra.mxu1 %v4991_v3  ;;  %13361 = vmatprep.mubr.msk.bf16.mxu1 %vm14218_vm0, %v19288_v25  ;;  %v4352_v3 = vcombine.high %v16268_v48, %v16268_v48 }
 0xe0b   :  { %13381 = vmatprep.subr.bf16.mxu1 %v19288_v25 }
 0xe0c   :  { %v14000_v51 = vpop.eup %13999 }
 0xe0d   :  { %v14002_v55 = vpop.eup %14001  ;;  %v4979_v20 = vmul.f32 %v14000_v51, %v13986_v60 }
 0xe0e   :  { %v4978_v17 = vmul.f32 %v14002_v55, %v16438_v63  ;;  %v12729_v63 = vld [vmem:[%s19148_s9 + $0x1] ss:$0 sm:$0xff] }
 0xe10   :  { %v4983_v50 = vpack.c.bf16 %v4979_v20, %v4978_v17 }
 0xe15   :  { %13362 = vmatmul.mubr.msk.bf16.vlgmr.msra.gmra.mrb[36].mxu1 %vm4585_vm9, %v4983_v50 }
 0xe16   :  { %13389 = vmatprep.mubr.msk.bf16.mxu1 %vm14218_vm0, %v19288_v25 }
 0xee8   :  { %v5027_v42 = vpop.f32.mrb[36].mxu1 }
 0xee9   :  { %v13363_v19 = vpop.f32.mrb[37].mxu1 }
 0xeea   :  { %v5030_v47 = vpop.f32.mrb[38].mxu1 }
 0xeeb   :  { %v5036_v53 = vpack.c.bf16 %v5030_v47, %v5027_v42  ;;  %v13364_v60 = vpop.f32.mrb[39].mxu1 }
 0xeed   :  { %13370 = vmatmul.mubr.msk.bf16.vlgmr.msra.gmra.mrb[92].mxu0 %vm647_vm3, %v5036_v53 }
 0xeee   :  { %13377 = vmatprep.mubr.msk.bf16.mxu0 %vm14218_vm0, %v19288_v25 }
 0xfc0   :  { %v5092_v22 = vpop.f32.mrb[92].mxu0 }
 0xfc1   :  { %v5093_v14 = vadd.f32 %v12729_v63, %v5092_v22  ;;  %v13371_v56 = vpop.f32.mrb[93].mxu0 }
 0xfc2   :  { %v5095_v54 = vpop.f32.mrb[94].mxu0 }
 0xfc3   :  { %v5101_v5 = vcombine.high %v5093_v14, %v5093_v14  ;;  %v5108_v23 = vrot.slane %v5093_v14, %v19313_v52  ;;  %v5096_v16 = vadd.f32 %v12729_v63, %v5095_v54  ;;  %v13372_v44 = vpop.f32.mrb[95].mxu0 }
 0xfc5   :  { %v5115_v21 = vrot.slane %v5101_v5, %v19313_v52  ;;  %v5116_v31 = vcombine.high %v5108_v23, %v5108_v23  ;;  %v5124_v45 = vrot.slane %v5108_v23, %v19313_v52  ;;  %v5156_v33 = vrot.slane %v5096_v16, %v19313_v52 }
 0xfc7   :  { %v5117_v41 = vcombine.high %v5115_v21, %v5115_v21  ;;  %v5131_v37 = vrot.slane %v5115_v21, %v19313_v52  ;;  %v5138_v11 = vrot.slane %v5116_v31, %v19313_v52  ;;  %v5146_v46 = vcombine.high %v5124_v45, %v5124_v45 }
 0xfc8   :  { %v5157_v51 = vcombine.high %v5156_v33, %v5156_v33  ;;  %v5164_v55 = vrot.slane %v5156_v33, %v19313_v52  ;;  %v5182_v42 = vadd.f32 %v5124_v45, %v16265_v38 }
 0xfc9   :  { %v5145_v20 = vrot.slane %v5117_v41, %v19313_v52  ;;  %v5147_v17 = vcombine.high %v5131_v37, %v5131_v37  ;;  %v5148_v50 = vcombine.high %v5138_v11, %v5138_v11  ;;  %v5183_v24 = vadd.f32 %v5138_v11, %v16268_v48 }
 0xfca   :  { %v5184_v19 = vadd.f32 %v5146_v46, %v4351_v39  ;;  %v5171_v47 = vrot.slane %v5157_v51, %v19313_v52  ;;  %v5186_v63 = vadd.f32 %v5131_v37, %v16299_v7  ;;  %v5190_v56 = vadd.f32 %v5164_v55, %v16321_v34 }
 0xfcb   :  { %v5149_v53 = vcombine.high %v5145_v20, %v5145_v20  ;;  %v5185_v60 = vadd.f32 %v5148_v50, %v4352_v3  ;;  %v5187_v22 = vadd.f32 %v5145_v20, %v16303_v15  ;;  %v5202_v14 = vcombine.low %v5182_v42, %v5183_v24 }
 0xfcc   :  { %v5191_v54 = vadd.f32 %v5171_v47, %v16317_v35  ;;  %v5188_v5 = vadd.f32 %v5147_v17, %v16307_v0  ;;  %v16513_v46 = vsub.s32 1, %v19302_v9  ;;  %v16518_v20 = vsub.s32 2, %v19302_v9 }
 0xfcd   :  { %v5189_v48 = vadd.f32 %v5149_v53, %v16311_v49  ;;  %v5203_v23 = vcombine.low %v5184_v19, %v5185_v60  ;;  %v5204_v38 = vcombine.low %v5186_v63, %v5187_v22  ;;  %v5212_v21 = vrot.slane %v5202_v14, %v19313_v52 }
 0xfce   :  { %v5251_v16 = vcombine.low %v5190_v56, %v5191_v54  ;;  %19327 = vst [vmem:[#allocation21_spill] sm:$0xff] %v16513_v46  ;;  %19328 = vst [vmem:[#allocation5_spill] sm:$0xff] %v16518_v20  ;;  %v16521_v17 = vsub.s32 3, %v19302_v9  ;;  %v16524_v50 = vsub.s32 4, %v19302_v9  ;;  %v16527_v47 = vsub.s32 5, %v19302_v9 }
 0xfcf   :  { %v5205_v44 = vcombine.low %v5188_v5, %v5189_v48  ;;  %v5219_v31 = vrot.slane %v5203_v23, %v19313_v52  ;;  %v5226_v15 = vrot.slane %v5204_v38, %v19313_v52  ;;  %v16534_v38 = vsub.s32 6, %v19302_v9 }
 0xfd0   :  { %v5258_v7 = vrot.slane %v5251_v16, %v19313_v52  ;;  %19329 = vst [vmem:[#allocation8_spill] sm:$0xff] %v16521_v17  ;;  %19330 = vst [vmem:[#allocation9_spill] sm:$0xff] %v16524_v50  ;;  %v16537_v16 = vsub.s32 7, %v19302_v9 }
 0xfd1   :  { %v5233_v34 = vrot.slane %v5205_v44, %v19313_v52  ;;  %v5234_v35 = vcombine.low %v5212_v21, %v5219_v31  ;;  %19331 = vst [vmem:[#allocation27_spill] sm:$0xff] %v16527_v47  ;;  %19332 = vst [vmem:[#allocation28_spill] sm:$0xff] %v16534_v38 }
 0xfd2   :  { %v5265_v0 = vrot.slane %v5258_v7, %v19313_v52  ;;  %19333 = vst [vmem:[#allocation29_spill] sm:$0xff] %v16537_v16 }
 0xfd3   :  { %v5235_v45 = vcombine.low %v5226_v15, %v5233_v34  ;;  %v5242_v33 = vrot.slane %v5234_v35, %v19313_v52 }
 0xfd4   :  { %v5272_v49 = vsel %vm5271_vm11, %v5265_v0, 0.0 }
 0xfd5   :  { %5273 = vadd.xlane.f32.xlu1 %v5272_v49  ;;  %v5249_v41 = vrot.slane %v5235_v45, %v19313_v52 }
 0xfd7   :  { %v5250_v37 = vcombine.low %v5242_v33, %v5249_v41 }
 0xfd9   :  { %v5268_v11 = vsel %vm647_vm3, %v5250_v37, 0.0 }
 0xfda   :  { %5269 = vadd.xlane.f32.xlu0 %v5268_v11 }
0x1062   :  { %v5274_v39 = vpop.xlane.xlu1 %5273 }
0x1063   :  { %v5276_v3 = vmul.f32 0.03125, %v5274_v39 }
0x1065   :  { %v5314_v51 = vrot.slane %v5276_v3, %v19307_v1  ;;  %v5318_v55 = vrot.slane %v5276_v3, %v16513_v46 }
0x1067   :  { %v16529_v53 = vsub.f32 %v5190_v56, %v5314_v51  ;;  %v16531_v14 = vsub.f32 %v5191_v54, %v5318_v55  ;;  %v5270_v23 = vpop.xlane.xlu0 %5269 }
0x1068   :  { %v5275_v44 = vmul.f32 0.03125, %v5270_v23 }
0x1069   :  { %v5347_v21 = vmul.f32 %v16529_v53, %v16529_v53  ;;  %v5348_v31 = vmul.f32 %v16531_v14, %v16531_v14 }
0x106a   :  { %v5282_v7 = vrot.slane %v5275_v44, %v19307_v1  ;;  %v5286_v56 = vrot.slane %v5275_v44, %v16513_v46  ;;  %v5290_v54 = vrot.slane %v5275_v44, %v16518_v20  ;;  %v5294_v15 = vrot.slane %v5275_v44, %v16521_v17 }
0x106b   :  { %v5298_v34 = vrot.slane %v5275_v44, %v16524_v50  ;;  %v5302_v9 = vrot.slane %v5275_v44, %v16527_v47  ;;  %v5306_v35 = vrot.slane %v5275_v44, %v16534_v38  ;;  %v5310_v0 = vrot.slane %v5275_v44, %v16537_v16 }
0x106c   :  { %v16551_v45 = vsub.f32 %v5182_v42, %v5282_v7  ;;  %v16553_v49 = vsub.f32 %v5183_v24, %v5286_v56  ;;  %v16555_v33 = vsub.f32 %v5184_v19, %v5290_v54  ;;  %v16557_v41 = vsub.f32 %v5185_v60, %v5294_v15 }
0x106d   :  { %v16559_v37 = vsub.f32 %v5186_v63, %v5298_v34  ;;  %v16561_v11 = vsub.f32 %v5187_v22, %v5302_v9  ;;  %v16563_v39 = vsub.f32 %v5188_v5, %v5306_v35  ;;  %v16565_v3 = vsub.f32 %v5189_v48, %v5310_v0 }
0x106e   :  { %v5339_v51 = vmul.f32 %v16551_v45, %v16551_v45  ;;  %v5340_v42 = vmul.f32 %v16553_v49, %v16553_v49  ;;  %v5341_v24 = vmul.f32 %v16555_v33, %v16555_v33  ;;  %v5342_v19 = vmul.f32 %v16557_v41, %v16557_v41 }
0x106f   :  { %v5343_v60 = vmul.f32 %v16559_v37, %v16559_v37  ;;  %v5344_v63 = vmul.f32 %v16561_v11, %v16561_v11  ;;  %v5345_v22 = vmul.f32 %v16563_v39, %v16563_v39  ;;  %v5346_v5 = vmul.f32 %v16565_v3, %v16565_v3 }
0x1070   :  { %v5359_v48 = vcombine.low %v5339_v51, %v5340_v42  ;;  %v5360_v55 = vcombine.low %v5341_v24, %v5342_v19  ;;  %v5408_v34 = vcombine.low %v5347_v21, %v5348_v31  ;;  %v13823_v21 = vld [vmem:[%s19151_s12 + $0x10] sm:$0xff]   ;;  %v13824_v31 = vld [vmem:[%s19151_s12 + $0x18] sm:$0xff]  }
0x1071   :  { %v5361_v23 = vcombine.low %v5343_v60, %v5344_v63  ;;  %v5362_v44 = vcombine.low %v5345_v22, %v5346_v5  ;;  %13374 = vmatpush3.bf16.msra.mxu0 %v13823_v21  ;;  %v13826_v63 = vld [vmem:[%s19153_s14 + $0x28] sm:$0xff]   ;;  %v12733_v22 = vld [vmem:[%s19149_s10 + $0x1] ss:$0 sm:$0xff] }
0x1072   :  { %v5369_v7 = vrot.slane %v5359_v48, %v19313_v52  ;;  %v5376_v56 = vrot.slane %v5360_v55, %v19313_v52  ;;  %v5415_v51 = vrot.slane %v5408_v34, %v19313_v52  ;;  %13375 = vmatprep.subr.bf16.mxu0 %v19288_v25  ;;  %v12734_v5 = vld [vmem:[%s19150_s11 + $0x1] ss:$0 sm:$0xff]  ;;  %v5504_v48 = vcombine.high %v12733_v22, %v12733_v22 }
0x1073   :  { %v5383_v54 = vrot.slane %v5361_v23, %v19313_v52  ;;  %v5390_v15 = vrot.slane %v5362_v44, %v19313_v52  ;;  %v5576_v55 = vcombine.high %v12734_v5, %v12734_v5 }
0x1074   :  { %v5391_v9 = vcombine.low %v5369_v7, %v5376_v56  ;;  %v5422_v19 = vrot.slane %v5415_v51, %v19313_v52  ;;  %v5511_v7 = vrot.slane %v12733_v22, %v19313_v52  ;;  %v5518_v56 = vrot.slane %v5504_v48, %v19313_v52 }
0x1075   :  { %v5392_v35 = vcombine.low %v5383_v54, %v5390_v15  ;;  %13376 = vmatpush3.bf16.msra.mxu0 %v13824_v31  ;;  %v5583_v15 = vrot.slane %v12734_v5, %v19313_v52  ;;  %v5590_v34 = vrot.slane %v5576_v55, %v19313_v52 }
0x1076   :  { %v5399_v0 = vrot.slane %v5391_v9, %v19313_v52  ;;  %v5428_v60 = vsel %vm5271_vm11, %v5422_v19, 0.0  ;;  %13393 = vmatprep.subr.bf16.mxu0 %v19288_v25  ;;  %v5520_v51 = vcombine.high %v5518_v56, %v5518_v56  ;;  %v5534_v31 = vrot.slane %v5518_v56, %v19313_v52 }
0x1077   :  { %v5406_v27 = vrot.slane %v5392_v35, %v19313_v52  ;;  %v5592_v19 = vcombine.high %v5590_v34, %v5590_v34  ;;  %v5606_v5 = vrot.slane %v5590_v34, %v19313_v52 }
0x1079   :  { %v5407_v42 = vcombine.low %v5399_v0, %v5406_v27  ;;  %v13825_v27 = vld [vmem:[%s19153_s14 + $0x20] sm:$0xff]   ;;  %v5519_v0 = vcombine.high %v5511_v7, %v5511_v7  ;;  %v5620_v48 = vrot.slane %v5592_v19, %v19313_v52 }
0x107a   :  { %13382 = vmatpush3.bf16.msra.mxu1 %v13825_v27  ;;  %v5548_v27 = vrot.slane %v5520_v51, %v19313_v52 }
0x107b   :  { %v5425_v24 = vsel %vm647_vm3, %v5407_v42, 0.0  ;;  %13383 = vmatprep.subr.bf16.mxu1 %v19288_v25  ;;  %v5591_v42 = vcombine.high %v5583_v15, %v5583_v15  ;;  %v5541_v21 = vrot.slane %v5519_v0, %v19313_v52 }
0x107c   :  { %5426 = vadd.xlane.f32.xlu0 %v5425_v24 }
0x107d   :  { %v5613_v22 = vrot.slane %v5591_v42, %v19313_v52 }
0x107e   :  { %13384 = vmatpush3.bf16.msra.mxu1 %v13826_v63  ;;  %v5599_v63 = vrot.slane %v5583_v15, %v19313_v52 }
0x107f   :  { %13385 = vmatprep.subr.bf16.mxu1 %v19288_v25  ;;  %v5623_v0 = vcombine.high %v5613_v22, %v5613_v22 }
0x1080   :  { %5429 = vadd.xlane.f32.xlu0 %v5428_v60  ;;  %v5527_v60 = vrot.slane %v5511_v7, %v19313_v52  ;;  %v5621_v7 = vcombine.high %v5599_v63, %v5599_v63 }
0x1082   :  { %v5549_v55 = vcombine.high %v5527_v60, %v5527_v60 }
0x1109   :  { %v5427_v23 = vpop.xlane.xlu0 %5426 }
0x110a   :  { %v5431_v44 = vmul.f32 0.03125, %v5427_v23  ;;  %v5551_v23 = vcombine.high %v5541_v21, %v5541_v21 }
0x110c   :  { %v5433_v54 = vadd.f32 1e-05, %v5431_v44  ;;  %v5550_v44 = vcombine.high %v5534_v31, %v5534_v31 }
0x110d   :  { %v5430_v9 = vpop.xlane.xlu0 %5429 }
0x110e   :  { %14003 = vrsqrt.f32 %v5433_v54  ;;  %v5432_v35 = vmul.f32 0.03125, %v5430_v9  ;;  %v5552_v54 = vcombine.high %v5548_v27, %v5548_v27 }
0x1110   :  { %v5434_v24 = vadd.f32 1e-05, %v5432_v35  ;;  %v5622_v35 = vcombine.high %v5606_v5, %v5606_v5 }
0x1112   :  { %14005 = vrsqrt.f32 %v5434_v24  ;;  %v5624_v24 = vcombine.high %v5620_v48, %v5620_v48 }
0x1118   :  { %v14004_v9 = vpop.eup %14003 }
0x1119   :  { %v5442_v56 = vrot.slane %v14004_v9, %v19307_v1  ;;  %v5446_v51 = vrot.slane %v14004_v9, %v16513_v46  ;;  %v5450_v15 = vrot.slane %v14004_v9, %v16518_v20  ;;  %v5454_v42 = vrot.slane %v14004_v9, %v16521_v17 }
0x111a   :  { %v5458_v34 = vrot.slane %v14004_v9, %v16524_v50  ;;  %v5462_v19 = vrot.slane %v14004_v9, %v16527_v47  ;;  %v5466_v2 = vrot.slane %v14004_v9, %v16534_v38  ;;  %v5470_v57 = vrot.slane %v14004_v9, %v16537_v16 }
0x111b   :  { %v5489_v13 = vmul.f32 %v5442_v56, %v16551_v45  ;;  %v5490_v28 = vmul.f32 %v5446_v51, %v16553_v49  ;;  %v5491_v12 = vmul.f32 %v5450_v15, %v16555_v33  ;;  %v5492_v43 = vmul.f32 %v5454_v42, %v16557_v41 }
0x111c   :  { %v14006_v61 = vpop.eup %14005  ;;  %v5493_v26 = vmul.f32 %v5458_v34, %v16559_v37  ;;  %v5494_v30 = vmul.f32 %v5462_v19, %v16561_v11  ;;  %v5495_v36 = vmul.f32 %v5466_v2, %v16563_v39  ;;  %v5496_v18 = vmul.f32 %v5470_v57, %v16565_v3 }
0x111d   :  { %v5474_v8 = vrot.slane %v14006_v61, %v19307_v1  ;;  %v5478_v9 = vrot.slane %v14006_v61, %v16513_v46  ;;  %v5561_v45 = vmul.f32 %v5527_v60, %v5489_v13  ;;  %v5562_v56 = vmul.f32 %v5541_v21, %v5490_v28 }
0x111e   :  { %v5563_v49 = vmul.f32 %v5549_v55, %v5491_v12  ;;  %v5564_v51 = vmul.f32 %v5551_v23, %v5492_v43  ;;  %v5565_v33 = vmul.f32 %v5534_v31, %v5493_v26  ;;  %v5566_v15 = vmul.f32 %v5548_v27, %v5494_v30 }
0x111f   :  { %v5497_v41 = vmul.f32 %v5474_v8, %v16529_v53  ;;  %v5498_v37 = vmul.f32 %v5478_v9, %v16531_v14  ;;  %v5567_v42 = vmul.f32 %v5550_v44, %v5495_v36  ;;  %v5568_v11 = vmul.f32 %v5552_v54, %v5496_v18 }
0x1120   :  { %v16647_v34 = vadd.f32 %v5599_v63, %v5561_v45  ;;  %v16649_v2 = vadd.f32 %v5613_v22, %v5562_v56  ;;  %v16651_v57 = vadd.f32 %v5621_v7, %v5563_v49  ;;  %v16653_v39 = vadd.f32 %v5623_v0, %v5564_v51  ;;  %v13827_v7 = vld [vmem:[%s19153_s14 + $0x30] sm:$0xff]   ;;  %v12735_v0 = vld [vmem:[%s19152_s13 + $0x1] ss:$0 sm:$0xff] }
0x1121   :  { %v5569_v61 = vmul.f32 %v5527_v60, %v5497_v41  ;;  %v5570_v28 = vmul.f32 %v5541_v21, %v5498_v37  ;;  %v16655_v12 = vadd.f32 %v5606_v5, %v5565_v33  ;;  %v16657_v26 = vadd.f32 %v5620_v48, %v5566_v15  ;;  %13386 = vmatpush3.bf16.msra.mxu1 %v13827_v7  ;;  %v12739_v41 = vld [vmem:[%s19154_s15 + $0x1] ss:$0 sm:$0xff] }
0x1122   :  { %v16659_v30 = vadd.f32 %v5622_v35, %v5567_v42  ;;  %v16661_v8 = vadd.f32 %v5624_v24, %v5568_v11  ;;  %v5653_v18 = vcombine.low %v16647_v34, %v16649_v2  ;;  %v5654_v36 = vcombine.low %v16651_v57, %v16653_v39  ;;  %13387 = vmatprep.subr.bf16.mxu1 %v19288_v25  ;;  %v13828_v35 = vld [vmem:[%s19153_s14 + $0x38] sm:$0xff]  }
0x1123   :  { %v16667_v43 = vadd.f32 %v5599_v63, %v5569_v61  ;;  %v16669_v13 = vadd.f32 %v5613_v22, %v5570_v28  ;;  %v5655_v53 = vcombine.low %v16655_v12, %v16657_v26 }
0x1124   :  { %v5656_v14 = vcombine.low %v16659_v30, %v16661_v8  ;;  %v5663_v3 = vrot.slane %v5653_v18, %v19313_v52  ;;  %v5670_v60 = vrot.slane %v5654_v36, %v19313_v52 }
0x1125   :  { %v5677_v21 = vrot.slane %v5655_v53, %v19313_v52  ;;  %v5702_v31 = vcombine.low %v16667_v43, %v16669_v13  ;;  %13388 = vmatpush3.bf16.msra.mxu1 %v13828_v35 }
0x1126   :  { %v5684_v27 = vrot.slane %v5656_v14, %v19313_v52  ;;  %v5685_v63 = vcombine.low %v5663_v3, %v5670_v60  ;;  %13427 = vmatprep.subr.bf16.mxu1 %v19288_v25 }
0x1127   :  { %v5709_v22 = vrot.slane %v5702_v31, %v19313_v52 }
0x1128   :  { %v5686_v5 = vcombine.low %v5677_v21, %v5684_v27  ;;  %v5693_v48 = vrot.slane %v5685_v63, %v19313_v52 }
0x1129   :  { %v5716_v23 = vrot.slane %v5709_v22, %v19313_v52 }
0x112a   :  { %v5700_v55 = vrot.slane %v5686_v5, %v19313_v52 }
0x112c   :  { %v5701_v44 = vcombine.low %v5693_v48, %v5700_v55 }
0x112e   :  { %v5719_v54 = vpack.c.bf16 %v5716_v23, %v5701_v44 }
0x1130   :  { %13378 = vmatmul.mubr.msk.bf16.vlgmr.msra.gmra.mrb[96].mxu0 %vm647_vm3, %v5719_v54 }
0x1131   :  { %13397 = vmatprep.mubr.msk.bf16.mxu0 %vm14218_vm0, %v19288_v25 }
0x1203   :  { %v5775_v24 = vpop.f32.mrb[96].mxu0 }
0x1204   :  { %v5776_v19 = vadd.f32 %v12735_v0, %v5775_v24  ;;  %v13379_v9 = vpop.f32.mrb[97].mxu0 }
0x1205   :  { %v5778_v45 = vpop.f32.mrb[98].mxu0 }
0x1206   :  { %v5779_v56 = vadd.f32 %v12735_v0, %v5778_v45  ;;  %v13380_v49 = vpop.f32.mrb[99].mxu0  ;;  %v5782_v51 = vmax.f32 %v5776_v19, 0.0 }
0x1208   :  { %v5783_v33 = vmax.f32 %v5779_v56, 0.0 }
0x120a   :  { %v5784_v15 = vpack.c.bf16 %v5783_v33, %v5782_v51 }
0x120c   :  { %13390 = vmatmul.mubr.msk.bf16.vlgmr.msra.gmra.mrb[40].mxu1 %vm3102_vm5, %v5784_v15 }
0x120d   :  { %13433 = vmatprep.mubr.msk.bf16.mxu1 %vm14218_vm0, %v19288_v25 }
0x12df   :  { %v5852_v37 = vpop.f32.mrb[40].mxu1 }
0x12e0   :  { %v5853_v42 = vadd.f32 %v12739_v41, %v5852_v37  ;;  %v13391_v11 = vpop.f32.mrb[41].mxu1 }
0x12e1   :  { %v5855_v61 = vpop.f32.mrb[42].mxu1 }
0x12e2   :  { %v5861_v28 = vcombine.high %v5853_v42, %v5853_v42  ;;  %v5868_v18 = vrot.slane %v5853_v42, %v19313_v52  ;;  %v5856_v36 = vadd.f32 %v12739_v41, %v5855_v61  ;;  %v13392_v53 = vpop.f32.mrb[43].mxu1 }
0x12e4   :  { %v5875_v14 = vrot.slane %v5861_v28, %v19313_v52  ;;  %v5876_v3 = vcombine.high %v5868_v18, %v5868_v18  ;;  %v5884_v60 = vrot.slane %v5868_v18, %v19313_v52  ;;  %v5916_v21 = vrot.slane %v5856_v36, %v19313_v52 }
0x12e6   :  { %v5877_v31 = vcombine.high %v5875_v14, %v5875_v14  ;;  %v5891_v27 = vrot.slane %v5875_v14, %v19313_v52  ;;  %v5898_v63 = vrot.slane %v5876_v3, %v19313_v52  ;;  %v5906_v22 = vcombine.high %v5884_v60, %v5884_v60 }
0x12e7   :  { %v5917_v5 = vcombine.high %v5916_v21, %v5916_v21  ;;  %v5924_v48 = vrot.slane %v5916_v21, %v19313_v52  ;;  %v5942_v7 = vadd.f32 %v5884_v60, %v16647_v34 }
0x12e8   :  { %v5905_v55 = vrot.slane %v5877_v31, %v19313_v52  ;;  %v5907_v23 = vcombine.high %v5891_v27, %v5891_v27  ;;  %v5908_v44 = vcombine.high %v5898_v63, %v5898_v63  ;;  %v5943_v54 = vadd.f32 %v5898_v63, %v16649_v2 }
0x12e9   :  { %v5944_v35 = vadd.f32 %v5906_v22, %v16651_v57  ;;  %v5931_v0 = vrot.slane %v5917_v5, %v19313_v52  ;;  %v5946_v9 = vadd.f32 %v5891_v27, %v16655_v12  ;;  %v5950_v49 = vadd.f32 %v5924_v48, %v16667_v43 }
0x12ea   :  { %v5909_v24 = vcombine.high %v5905_v55, %v5905_v55  ;;  %v5945_v19 = vadd.f32 %v5908_v44, %v16653_v39  ;;  %v5947_v45 = vadd.f32 %v5905_v55, %v16657_v26  ;;  %v5962_v56 = vcombine.low %v5942_v7, %v5943_v54 }
0x12eb   :  { %v5951_v51 = vadd.f32 %v5931_v0, %v16669_v13  ;;  %v5948_v2 = vadd.f32 %v5907_v23, %v16659_v30 }
0x12ec   :  { %v5949_v34 = vadd.f32 %v5909_v24, %v16661_v8  ;;  %v5963_v33 = vcombine.low %v5944_v35, %v5945_v19  ;;  %v5964_v57 = vcombine.low %v5946_v9, %v5947_v45  ;;  %v5972_v37 = vrot.slane %v5962_v56, %v19313_v52 }
0x12ed   :  { %v6011_v15 = vcombine.low %v5950_v49, %v5951_v51 }
0x12ee   :  { %v5965_v41 = vcombine.low %v5948_v2, %v5949_v34  ;;  %v5979_v39 = vrot.slane %v5963_v33, %v19313_v52  ;;  %v5986_v26 = vrot.slane %v5964_v57, %v19313_v52 }
0x12ef   :  { %v6018_v12 = vrot.slane %v6011_v15, %v19313_v52 }
0x12f0   :  { %v5993_v43 = vrot.slane %v5965_v41, %v19313_v52  ;;  %v5994_v42 = vcombine.low %v5972_v37, %v5979_v39 }
0x12f1   :  { %v6025_v13 = vrot.slane %v6018_v12, %v19313_v52 }
0x12f2   :  { %v5995_v30 = vcombine.low %v5986_v26, %v5993_v43  ;;  %v6002_v11 = vrot.slane %v5994_v42, %v19313_v52 }
0x12f3   :  { %v6031_v8 = vsel %vm5271_vm11, %v6025_v13, 0.0 }
0x12f4   :  { %6032 = vadd.xlane.f32.xlu1 %v6031_v8  ;;  %v6009_v61 = vrot.slane %v5995_v30, %v19313_v52 }
0x12f6   :  { %v6010_v28 = vcombine.low %v6002_v11, %v6009_v61 }
0x12f8   :  { %v6028_v18 = vsel %vm647_vm3, %v6010_v28, 0.0 }
0x12f9   :  { %6029 = vadd.xlane.f32.xlu0 %v6028_v18 }
0x1381   :  { %v6033_v36 = vpop.xlane.xlu1 %6032 }
0x1382   :  { %v6035_v53 = vmul.f32 0.03125, %v6033_v36 }
0x1384   :  { %v6073_v14 = vrot.slane %v6035_v53, %v19307_v1  ;;  %v6077_v3 = vrot.slane %v6035_v53, %v16513_v46 }
0x1386   :  { %v16736_v60 = vsub.f32 %v5950_v49, %v6073_v14  ;;  %v16738_v21 = vsub.f32 %v5951_v51, %v6077_v3  ;;  %v6030_v31 = vpop.xlane.xlu0 %6029 }
0x1387   :  { %v6034_v27 = vmul.f32 0.03125, %v6030_v31 }
0x1388   :  { %v6106_v63 = vmul.f32 %v16736_v60, %v16736_v60  ;;  %v6107_v22 = vmul.f32 %v16738_v21, %v16738_v21 }
0x1389   :  { %v6041_v5 = vrot.slane %v6034_v27, %v19307_v1  ;;  %v6045_v48 = vrot.slane %v6034_v27, %v16513_v46  ;;  %v6049_v55 = vrot.slane %v6034_v27, %v16518_v20  ;;  %v6053_v23 = vrot.slane %v6034_v27, %v16521_v17 }
0x138a   :  { %v6167_v44 = vcombine.low %v6106_v63, %v6107_v22  ;;  %v6057_v0 = vrot.slane %v6034_v27, %v16524_v50  ;;  %v6061_v24 = vrot.slane %v6034_v27, %v16527_v47  ;;  %v6065_v56 = vrot.slane %v6034_v27, %v16534_v38  ;;  %v13829_v22 = vld [vmem:[%s19260_s29 + $0x20] sm:$0xff]  }
0x138b   :  { %v6069_v49 = vrot.slane %v6034_v27, %v16537_v16  ;;  %v16752_v51 = vsub.f32 %v5942_v7, %v6041_v5  ;;  %v16754_v33 = vsub.f32 %v5943_v54, %v6045_v48  ;;  %v16756_v57 = vsub.f32 %v5944_v35, %v6049_v55  ;;  %13394 = vmatpush3.bf16.msra.mxu0 %v13829_v22  ;;  %v13830_v5 = vld [vmem:[%s19260_s29 + $0x28] sm:$0xff]  }
0x138c   :  { %v6174_v15 = vrot.slane %v6167_v44, %v19313_v52  ;;  %v16759_v41 = vsub.f32 %v5945_v19, %v6053_v23  ;;  %v16761_v37 = vsub.f32 %v5946_v9, %v6057_v0  ;;  %v16763_v39 = vsub.f32 %v5947_v45, %v6061_v24  ;;  %13395 = vmatprep.subr.bf16.mxu0 %v19288_v25  ;;  %v12745_v44 = vld [vmem:[%s19155_s16 + $0x1] ss:$0 sm:$0xff] }
0x138d   :  { %v16765_v12 = vsub.f32 %v5948_v2, %v6065_v56  ;;  %v16767_v26 = vsub.f32 %v5949_v34, %v6069_v49  ;;  %v6098_v7 = vmul.f32 %v16752_v51, %v16752_v51  ;;  %v6099_v54 = vmul.f32 %v16754_v33, %v16754_v33  ;;  %v12746_v0 = vld [vmem:[%s19156_s17 + $0x1] ss:$0 sm:$0xff] }
0x138e   :  { %v6181_v35 = vrot.slane %v6174_v15, %v19313_v52  ;;  %v6100_v19 = vmul.f32 %v16756_v57, %v16756_v57  ;;  %v6101_v9 = vmul.f32 %v16759_v41, %v16759_v41  ;;  %v6102_v45 = vmul.f32 %v16761_v37, %v16761_v37 }
0x138f   :  { %v6103_v2 = vmul.f32 %v16763_v39, %v16763_v39  ;;  %v6104_v34 = vmul.f32 %v16765_v12, %v16765_v12  ;;  %v6105_v43 = vmul.f32 %v16767_v26, %v16767_v26  ;;  %v6118_v42 = vcombine.low %v6098_v7, %v6099_v54  ;;  %13396 = vmatpush3.bf16.msra.mxu0 %v13830_v5 }
0x1390   :  { %v6187_v13 = vsel %vm5271_vm11, %v6181_v35, 0.0  ;;  %v6119_v30 = vcombine.low %v6100_v19, %v6101_v9  ;;  %13409 = vmatprep.subr.bf16.mxu0 %v19288_v25  ;;  %v6270_v24 = vrot.slane %v12745_v44, %v19313_v52  ;;  %v6342_v56 = vrot.slane %v12746_v0, %v19313_v52 }
0x1391   :  { %6188 = vadd.xlane.f32.xlu1 %v6187_v13  ;;  %v6120_v8 = vcombine.low %v6102_v45, %v6103_v2  ;;  %v6121_v11 = vcombine.low %v6104_v34, %v6105_v43  ;;  %v6128_v61 = vrot.slane %v6118_v42, %v19313_v52  ;;  %v6263_v54 = vcombine.high %v12745_v44, %v12745_v44  ;;  %v19341_v44 = vld [vmem:[#allocation17_spill] sm:$0xff] }
0x1392   :  { %v6135_v28 = vrot.slane %v6119_v30, %v19313_v52  ;;  %v6278_v15 = vcombine.high %v6270_v24, %v6270_v24  ;;  %v6335_v35 = vcombine.high %v12746_v0, %v12746_v0  ;;  %v6350_v19 = vcombine.high %v6342_v56, %v6342_v56  ;;  %v19342_v0 = vld [vmem:[#allocation16_spill] sm:$0xff] }
0x1393   :  { %v6142_v18 = vrot.slane %v6120_v8, %v19313_v52  ;;  %v6149_v36 = vrot.slane %v6121_v11, %v19313_v52  ;;  %v6277_v42 = vrot.slane %v6263_v54, %v19313_v52  ;;  %v6286_v13 = vrot.slane %v6270_v24, %v19313_v52 }
0x1394   :  { %v6150_v53 = vcombine.low %v6128_v61, %v6135_v28  ;;  %v6300_v2 = vrot.slane %v6278_v15, %v19313_v52  ;;  %v6349_v30 = vrot.slane %v6335_v35, %v19313_v52  ;;  %v6372_v8 = vrot.slane %v6350_v19, %v19313_v52  ;;  %v19345_v15 = vld [vmem:[#allocation20_spill] sm:$0xff] }
0x1395   :  { %v6151_v14 = vcombine.low %v6142_v18, %v6149_v36  ;;  %v19334_v18 = vcombine.low %v16142_v29, %v16150_v58  ;;  %v19336_v29 = vcombine.low %v16159_v59, %v16162_v6  ;;  %v19337_v5 = vcombine.low %v16216_v10, %v16222_v62  ;;  %v19346_v10 = vld [vmem:[#allocation19_spill] sm:$0xff] }
0x1396   :  { %v6158_v3 = vrot.slane %v6150_v53, %v19313_v52  ;;  %v6279_v53 = vcombine.high %v6277_v42, %v6277_v42  ;;  %v6351_v22 = vcombine.high %v6349_v30, %v6349_v30  ;;  %v19343_v24 = vcombine.low %v19341_v44, %v19342_v0 }
0x1397   :  { %v6165_v31 = vrot.slane %v6151_v14, %v19313_v52  ;;  %v16823_v36 = vrot.slane %v19334_v18, %v14398_v32  ;;  %v6293_v14 = vrot.slane %v6277_v42, %v19313_v52  ;;  %v16838_v58 = vrot.slane %v19336_v29, %v14398_v32 }
0x1398   :  { %v19347_v62 = vcombine.low %v19345_v15, %v19346_v10  ;;  %v6310_v54 = vcombine.high %v6300_v2, %v6300_v2  ;;  %v6382_v35 = vcombine.high %v6372_v8, %v6372_v8  ;;  %v16864_v19 = vrot.slane %v6279_v53, %v19313_v52 }
0x1399   :  { %v6166_v27 = vcombine.low %v6158_v3, %v6165_v31  ;;  %v6358_v3 = vrot.slane %v6342_v56, %v19313_v52  ;;  %v19335_v31 = vcombine.low %v16153_v40, %v16156_v4  ;;  %v19338_v40 = vld [vmem:[#allocation13_spill] sm:$0xff]  ;;  %v19339_v4 = vld [vmem:[#allocation15_spill] sm:$0xff]  ;;  %v6563_v56 = vrot.slane %v19343_v24, %v14398_v32 }
0x139a   :  { %v16871_v42 = vrot.slane %v6351_v22, %v19313_v52 }
0x139b   :  { %v6184_v63 = vsel %vm647_vm3, %v6166_v27, 0.0  ;;  %v16831_v27 = vrot.slane %v19335_v31, %v14398_v32  ;;  %v6380_v59 = vcombine.high %v6358_v3, %v6358_v3 }
0x139c   :  { %6185 = vadd.xlane.f32.xlu0 %v6184_v63 }
0x141e   :  { %v6189_v48 = vpop.xlane.xlu1 %6188 }
0x141f   :  { %v6191_v55 = vmul.f32 0.03125, %v6189_v48  ;;  %v16844_v48 = vrot.slane %v19337_v5, %v14398_v32 }
0x1421   :  { %v6193_v23 = vadd.f32 1e-05, %v6191_v55  ;;  %v19340_v55 = vcombine.low %v19338_v40, %v19339_v4 }
0x1423   :  { %14007 = vrsqrt.f32 %v6193_v23  ;;  %v6555_v23 = vrot.slane %v19340_v55, %v14398_v32 }
0x1429   :  { %v6186_v49 = vpop.xlane.xlu0 %6185 }
0x142a   :  { %v6190_v7 = vmul.f32 0.03125, %v6186_v49  ;;  %v6308_v49 = vcombine.high %v6286_v13, %v6286_v13 }
0x142c   :  { %v6192_v9 = vadd.f32 1e-05, %v6190_v7  ;;  %v16861_v7 = vrot.slane %v19347_v62, %v14398_v32 }
0x142d   :  { %v14008_v45 = vpop.eup %14007 }
0x142e   :  { %v6233_v34 = vrot.slane %v14008_v45, %v19307_v1  ;;  %v6237_v43 = vrot.slane %v14008_v45, %v16513_v46  ;;  %14009 = vrsqrt.f32 %v6192_v9  ;;  %v6309_v9 = vcombine.high %v6293_v14, %v6293_v14 }
0x1430   :  { %v6256_v11 = vmul.f32 %v6233_v34, %v16736_v60  ;;  %v6257_v61 = vmul.f32 %v6237_v43, %v16738_v21  ;;  %v6365_v60 = vrot.slane %v6349_v30, %v19313_v52 }
0x1432   :  { %v6329_v28 = vmul.f32 %v6300_v2, %v6257_v61  ;;  %v6328_v21 = vmul.f32 %v6286_v13, %v6256_v11  ;;  %v6381_v30 = vcombine.high %v6365_v60, %v6365_v60 }
0x1434   :  { %v6401_v63 = vadd.f32 %v6372_v8, %v6329_v28  ;;  %v16866_v34 = vadd.f32 %v6358_v3, %v6328_v21 }
0x1436   :  { %v16855_v6 = vrot.slane %v6401_v63, %v19307_v1 }
0x1438   :  { %19344 = vst [vmem:[#allocation13_spill] sm:$0xff] %v16855_v6  ;;  %v14010_v45 = vpop.eup %14009  ;;  %v6482_v43 = vrot.slane %v16855_v6, %v19313_v52 }
0x1439   :  { %v6201_v11 = vrot.slane %v14010_v45, %v19307_v1  ;;  %v6205_v61 = vrot.slane %v14010_v45, %v16513_v46  ;;  %v6209_v28 = vrot.slane %v14010_v45, %v16518_v20  ;;  %v6217_v18 = vrot.slane %v14010_v45, %v16524_v50  ;;  %v19371_v46 = vld [vmem:[#allocation26_spill] sm:$0xff] }
0x143a   :  { %v6483_v53 = vcombine.high %v6482_v43, %v6482_v43  ;;  %v6213_v31 = vrot.slane %v14010_v45, %v16521_v17  ;;  %v6221_v21 = vrot.slane %v14010_v45, %v16527_v47  ;;  %v6225_v63 = vrot.slane %v14010_v45, %v16534_v38 }
0x143b   :  { %v6248_v29 = vmul.f32 %v6201_v11, %v16752_v51  ;;  %v6249_v22 = vmul.f32 %v6205_v61, %v16754_v33  ;;  %v6250_v5 = vmul.f32 %v6209_v28, %v16756_v57  ;;  %v6252_v40 = vmul.f32 %v6217_v18, %v16761_v37 }
0x143c   :  { %v6251_v4 = vmul.f32 %v6213_v31, %v16759_v41  ;;  %v6253_v55 = vmul.f32 %v6221_v21, %v16763_v39  ;;  %v6254_v44 = vmul.f32 %v6225_v63, %v16765_v12  ;;  %v16888_v0 = vrot.slane %v6482_v43, %v19313_v52 }
0x143d   :  { %v6320_v24 = vmul.f32 %v6286_v13, %v6248_v29  ;;  %v6321_v15 = vmul.f32 %v6300_v2, %v6249_v22  ;;  %v6322_v10 = vmul.f32 %v6308_v49, %v6250_v5  ;;  %v6324_v62 = vmul.f32 %v6293_v14, %v6252_v40  ;;  %v19348_v13 = vld [vmem:[#allocation18_spill] sm:$0xff] }
0x143e   :  { %v6323_v51 = vmul.f32 %v6310_v54, %v6251_v4  ;;  %v6325_v33 = vmul.f32 %v16864_v19, %v6253_v55  ;;  %v6326_v11 = vmul.f32 %v6309_v9, %v6254_v44  ;;  %v16892_v57 = vrot.slane %v6483_v53, %v19313_v52  ;;  %v19349_v2 = vld [vmem:[#allocation22_spill] sm:$0xff] }
0x143f   :  { %v6392_v37 = vadd.f32 %v6358_v3, %v6320_v24  ;;  %v6393_v41 = vadd.f32 %v6372_v8, %v6321_v15  ;;  %v6394_v61 = vadd.f32 %v6380_v59, %v6322_v10  ;;  %v6396_v39 = vadd.f32 %v6365_v60, %v6324_v62 }
0x1440   :  { %v6395_v28 = vadd.f32 %v6382_v35, %v6323_v51  ;;  %v6397_v12 = vadd.f32 %v16871_v42, %v6325_v33  ;;  %v6398_v43 = vadd.f32 %v6381_v30, %v6326_v11  ;;  %v19350_v49 = vcombine.low %v19348_v13, %v19349_v2 }
0x1441   :  { %v6627_v54 = vrot.slane %v16866_v34, %v19307_v1  ;;  %v16904_v9 = vrot.slane %v6396_v39, %v19307_v1  ;;  %v6311_v8 = vcombine.high %v16864_v19, %v16864_v19  ;;  %v6383_v3 = vcombine.high %v16871_v42, %v16871_v42 }
0x1442   :  { %v16899_v14 = vrot.slane %v19350_v49, %v14398_v32  ;;  %v6599_v60 = vrot.slane %v6392_v37, %v19307_v1  ;;  %v6603_v59 = vrot.slane %v6393_v41, %v19307_v1  ;;  %v6615_v35 = vrot.slane %v6397_v12, %v19307_v1 }
0x1443   :  { %19351 = vst [vmem:[#allocation15_spill] sm:$0xff] %v16904_v9  ;;  %v6619_v30 = vrot.slane %v6398_v43, %v19307_v1  ;;  %v6458_v18 = vrot.slane %v16904_v9, %v19313_v52  ;;  %v6607_v53 = vrot.slane %v6394_v61, %v19307_v1  ;;  %v6655_v31 = vrot.slane %v16888_v0, %v19307_v1 }
0x1444   :  { %v6659_v19 = vrot.slane %v16892_v57, %v19307_v1  ;;  %v6611_v42 = vrot.slane %v6395_v28, %v19307_v1  ;;  %v6680_v21 = vsel %vm340_vm1, %v6555_v23, %v6615_v35  ;;  %v6229_v29 = vrot.slane %v14010_v45, %v16537_v16 }
0x1445   :  { %v6681_v63 = vsel %vm340_vm1, %v6563_v56, %v6619_v30  ;;  %v6459_v22 = vcombine.high %v6458_v18, %v6458_v18  ;;  %v6466_v5 = vrot.slane %v6458_v18, %v19313_v52  ;;  %v6688_v40 = vsel %vm349_vm2, %v6680_v21, %v6655_v31 }
0x1446   :  { %v16928_v4 = vsel %vm349_vm2, %v6681_v63, %v6659_v19  ;;  %v6676_v55 = vsel %vm340_vm1, %v16823_v36, %v6599_v60  ;;  %v6677_v44 = vsel %vm340_vm1, %v16831_v27, %v6603_v59  ;;  %v6764_v24 = vcombine.high %v6688_v40, %v6688_v40 }
0x1447   :  { %v6255_v23 = vmul.f32 %v6229_v29, %v16767_v26  ;;  %v6473_v56 = vrot.slane %v6459_v22, %v19313_v52  ;;  %v6474_v45 = vcombine.high %v6466_v5, %v6466_v5  ;;  %v6639_v15 = vrot.slane %v6466_v5, %v19307_v1 }
0x1448   :  { %v16938_v10 = vrot.slane %v6688_v40, %v14398_v32  ;;  %v6678_v62 = vsel %vm340_vm1, %v16838_v58, %v6607_v53  ;;  %v6679_v36 = vsel %vm340_vm1, %v16844_v48, %v6611_v42  ;;  %v16946_v27 = vrot.slane %v16928_v4, %v14398_v32 }
0x1449   :  { %v6327_v51 = vmul.f32 %v6311_v8, %v6255_v23  ;;  %v6643_v26 = vrot.slane %v6473_v56, %v19307_v1  ;;  %v6647_v33 = vrot.slane %v6474_v45, %v19307_v1  ;;  %v6684_v11 = vsel %vm349_vm2, %v6676_v55, %v6639_v15 }
0x144a   :  { %19352 = vst [vmem:[#allocation17_spill] sm:$0xff] %v16938_v10  ;;  %19353 = vst [vmem:[#allocation16_spill] sm:$0xff] %v16946_v27  ;;  %v6475_v37 = vcombine.high %v6473_v56, %v6473_v56  ;;  %v6700_v41 = vcombine.high %v6684_v11, %v6684_v11  ;;  %v16952_v61 = vrot.slane %v6684_v11, %v14398_v32 }
0x144b   :  { %v16955_v58 = vrot.slane %v6764_v24, %v14398_v32  ;;  %v6498_v48 = vcombine.high %v16888_v0, %v16888_v0  ;;  %v6685_v39 = vsel %vm349_vm2, %v6677_v44, %v6643_v26  ;;  %v6686_v28 = vsel %vm349_vm2, %v6678_v62, %v6647_v33 }
0x144c   :  { %v6651_v12 = vrot.slane %v6475_v37, %v19307_v1  ;;  %v16964_v43 = vcombine.high %v16938_v10, %v16938_v10  ;;  %v16967_v13 = vrot.slane %v6700_v41, %v14398_v32  ;;  %v16971_v2 = vcombine.high %v16952_v61, %v16952_v61 }
0x144d   :  { %19354 = vst [vmem:[#allocation20_spill] sm:$0xff] %v16955_v58  ;;  %v6716_v49 = vcombine.high %v6685_v39, %v6685_v39  ;;  %v16974_v0 = vrot.slane %v6685_v39, %v14398_v32  ;;  %v16977_v8 = vrot.slane %v6686_v28, %v14398_v32  ;;  %v6732_v59 = vcombine.high %v6686_v28, %v6686_v28 }
0x144e   :  { %19355 = vst [vmem:[#allocation19_spill] sm:$0xff] %v16964_v43  ;;  %v6687_v60 = vsel %vm349_vm2, %v6679_v36, %v6651_v12  ;;  %v6399_v35 = vadd.f32 %v6383_v3, %v6327_v51  ;;  %v6852_v53 = vcombine.low %v16952_v61, %v16971_v2  ;;  %v6903_v21 = vcombine.low %v16938_v10, %v16964_v43 }
0x144f   :  { %v16981_v30 = vrot.slane %v6716_v49, %v14398_v32  ;;  %v16985_v18 = vcombine.high %v16974_v0, %v16974_v0  ;;  %v6853_v31 = vcombine.low %v16967_v13, %v16974_v0  ;;  %v16993_v19 = vcombine.high %v16977_v8, %v16977_v8 }
0x1450   :  { %v6748_v42 = vcombine.high %v6687_v60, %v6687_v60  ;;  %v16996_v3 = vrot.slane %v6687_v60, %v14398_v32  ;;  %v6860_v63 = vrot.slane %v6852_v53, %v14398_v32  ;;  %v17004_v22 = vrot.slane %v6732_v59, %v14398_v32 }
0x1451   :  { %v6869_v29 = vcombine.low %v16985_v18, %v16981_v30  ;;  %v6499_v5 = vcombine.high %v16892_v57, %v16892_v57  ;;  %v6867_v40 = vrot.slane %v6853_v31, %v14398_v32  ;;  %v6870_v55 = vcombine.low %v16977_v8, %v16993_v19 }
0x1452   :  { %19356 = vst [vmem:[#allocation18_spill] sm:$0xff] %v16996_v3  ;;  %19357 = vst [vmem:[#allocation22_spill] sm:$0xff] %v17004_v22  ;;  %v17012_v44 = vrot.slane %v6748_v42, %v14398_v32  ;;  %v17016_v24 = vcombine.high %v16996_v3, %v16996_v3  ;;  %v6904_v56 = vcombine.low %v16955_v58, %v16946_v27 }
0x1453   :  { %v6877_v23 = vrot.slane %v6869_v29, %v14398_v32  ;;  %v6623_v45 = vrot.slane %v6399_v35, %v19307_v1  ;;  %v6683_v57 = vsel %vm340_vm1, %v16899_v14, %v6627_v54  ;;  %v6884_v15 = vrot.slane %v6870_v55, %v14398_v32 }
0x1454   :  { %19358 = vst [vmem:[#allocation30_spill] sm:$0xff] %v17012_v44  ;;  %19359 = vst [vmem:[#allocation31_spill] sm:$0xff] %v17016_v24  ;;  %v6887_v62 = vcombine.low %v17016_v24, %v17012_v44  ;;  %v6911_v36 = vrot.slane %v6903_v21, %v14398_v32  ;;  %v6663_v51 = vrot.slane %v6498_v48, %v19307_v1 }
0x1455   :  { %v6886_v26 = vcombine.low %v17004_v22, %v16996_v3  ;;  %v6667_v33 = vrot.slane %v6499_v5, %v19307_v1  ;;  %v6682_v34 = vsel %vm340_vm1, %v16861_v7, %v6623_v45  ;;  %v6780_v14 = vcombine.high %v16928_v4, %v16928_v4 }
0x1456   :  { %v6868_v54 = vcombine.low %v6860_v63, %v6867_v40  ;;  %v6885_v11 = vcombine.low %v6877_v23, %v6884_v15  ;;  %v6690_v37 = vsel %vm349_vm2, %v6682_v34, %v6663_v51  ;;  %v17042_v41 = vcombine.high %v16946_v27, %v16946_v27 }
0x1457   :  { %v6901_v48 = vrot.slane %v6887_v62, %v14398_v32  ;;  %v6691_v39 = vsel %vm349_vm2, %v6683_v57, %v6667_v33  ;;  %v6796_v28 = vcombine.high %v6690_v37, %v6690_v37  ;;  %v17047_v12 = vrot.slane %v6690_v37, %v14398_v32 }
0x1458   :  { %19360 = vst [vmem:[#allocation32_spill] sm:$0xff] %v17042_v41  ;;  %v6960_v7 = vpack.c.bf16 %v6885_v11, %v6868_v54  ;;  %v17050_v49 = vrot.slane %v6780_v14, %v14398_v32  ;;  %v6812_v4 = vcombine.high %v6691_v39, %v6691_v39  ;;  %v17053_v60 = vrot.slane %v6691_v39, %v14398_v32  ;;  %v19368_v39 = vld [vmem:[#allocation23_spill] sm:$0xff] }
0x1459   :  { %19361 = vst [vmem:[#allocation33_spill] sm:$0xff] %v17047_v12  ;;  %v6894_v59 = vrot.slane %v6886_v26, %v14398_v32  ;;  %v6918_v35 = vrot.slane %v6904_v56, %v14398_v32  ;;  %v17058_v53 = vrot.slane %v6796_v28, %v14398_v32  ;;  %v17062_v31 = vcombine.high %v17047_v12, %v17047_v12 }
0x145a   :  { %19362 = vst [vmem:[#allocation34_spill] sm:$0xff] %v17050_v49  ;;  %19363 = vst [vmem:[#allocation35_spill] sm:$0xff] %v17053_v60  ;;  %13398 = vmatmul.mubr.msk.bf16.vlgmr.msra.gmra.mrb[100].mxu0 %vm647_vm3, %v6960_v7  ;;  %v17066_v42 = vrot.slane %v6812_v4, %v14398_v32  ;;  %v17070_v21 = vcombine.high %v17053_v60, %v17053_v60  ;;  %v6920_v29 = vcombine.low %v17042_v41, %v17050_v49  ;;  %v19369_v7 = vld [vmem:[#allocation24_spill] sm:$0xff] }
0x145b   :  { %19364 = vst [vmem:[#allocation36_spill] sm:$0xff] %v17058_v53  ;;  %19365 = vst [vmem:[#allocation37_spill] sm:$0xff] %v17062_v31  ;;  %13401 = vmatprep.mubr.msk.bf16.mxu0 %vm14218_vm0, %v19288_v25  ;;  %v6902_v63 = vcombine.low %v6894_v59, %v6901_v48  ;;  %v6921_v5 = vcombine.low %v17047_v12, %v17062_v31  ;;  %v6937_v40 = vcombine.low %v17058_v53, %v17053_v60  ;;  %v17108_v59 = vld [vmem:[%s19282_s25] ss:$0 sm:$0xff] }
0x145c   :  { %19366 = vst [vmem:[#allocation38_spill] sm:$0xff] %v17066_v42  ;;  %19367 = vst [vmem:[#allocation39_spill] sm:$0xff] %v17070_v21  ;;  %v6938_v55 = vcombine.low %v17070_v21, %v17066_v42  ;;  %v6919_v23 = vcombine.low %v6911_v36, %v6918_v35  ;;  %v6928_v45 = vrot.slane %v6920_v29, %v14398_v32  ;;  %v17095_v36 = vld [vmem:[%s19146_s7 + $0x2] ss:$0 sm:$0xff] }
0x145d   :  { %v6935_v57 = vrot.slane %v6921_v5, %v14398_v32  ;;  %v6945_v15 = vrot.slane %v6937_v40, %v14398_v32  ;;  %v17124_v5 = vld [vmem:[%s19282_s25 + $0x2] ss:$0 sm:$0xff] }
0x145e   :  { %v6961_v56 = vpack.c.bf16 %v6919_v23, %v6902_v63  ;;  %v6952_v62 = vrot.slane %v6938_v55, %v14398_v32  ;;  %v17116_v63 = vld [vmem:[%s19282_s25 + $0x1] ss:$0 sm:$0xff]  ;;  %v17132_v55 = vld [vmem:[%s19282_s25 + $0x3] ss:$0 sm:$0xff] }
0x145f   :  { %v6936_v51 = vcombine.low %v6928_v45, %v6935_v57 }
0x1460   :  { %v6953_v26 = vcombine.low %v6945_v15, %v6952_v62 }
0x1462   :  { %13402 = vmatmul.mubr.msk.bf16.gmra.mrb[104].mxu0 %vm647_vm3, %v6961_v56  ;;  %v6962_v33 = vpack.c.bf16 %v6953_v26, %v6936_v51  ;;  %v19370_v56 = vld [vmem:[#allocation25_spill] sm:$0xff] }
0x1463   :  { %13405 = vmatprep.mubr.msk.bf16.mxu0 %vm14218_vm0, %v19288_v25 }
0x146a   :  { %13406 = vmatmul.mubr.msk.bf16.gmra.mrb[108].mxu0 %vm647_vm3, %v6962_v33 }
0x146b   :  { %13415 = vmatprep.mubr.msk.bf16.mxu0 %vm14218_vm0, %v19288_v25 }
0x152d   :  { %v7024_v34 = vpop.f32.mrb[100].mxu0 }
0x152e   :  { %v7025_v14 = vadd.f32 %v17095_v36, %v7024_v34  ;;  %v13399_v54 = vpop.f32.mrb[101].mxu0 }
0x152f   :  { %v7027_v11 = vpop.f32.mrb[102].mxu0 }
0x1530   :  { %v7028_v37 = vadd.f32 %v17095_v36, %v7027_v11  ;;  %v13400_v48 = vpop.f32.mrb[103].mxu0  ;;  %v17100_v28 = vmul.f32 %v7025_v14, %v19368_v39  ;;  %v17103_v4 = vmul.f32 %v7025_v14, %v19369_v7  ;;  %v17111_v35 = vmul.f32 %v17108_v59, %v7025_v14 }
0x1531   :  { %v17119_v29 = vmul.f32 %v17116_v63, %v7025_v14  ;;  %v17127_v40 = vmul.f32 %v17124_v5, %v7025_v14  ;;  %v17135_v23 = vmul.f32 %v17132_v55, %v7025_v14  ;;  %v17138_v45 = vmul.f32 %v7025_v14, %v19370_v56 }
0x1532   :  { %v7047_v57 = vpack.c.bf16 %v7028_v37, %v7025_v14  ;;  %v17141_v15 = vmul.f32 %v7028_v37, %v19368_v39  ;;  %v17144_v62 = vmul.f32 %v7028_v37, %v19369_v7  ;;  %v17147_v51 = vmul.f32 %v17108_v59, %v7028_v37 }
0x1533   :  { %v17150_v26 = vmul.f32 %v17116_v63, %v7028_v37  ;;  %v17153_v33 = vmul.f32 %v17124_v5, %v7028_v37  ;;  %v17156_v34 = vmul.f32 %v17132_v55, %v7028_v37  ;;  %v17159_v54 = vmul.f32 %v7028_v37, %v19370_v56 }
0x1534   :  { %7062 = vrot.lane.b32.xlu0 %v7047_v57, %s14221_s5  ;;  %v17178_v6 = vmul.f32 %v7025_v14, %v19371_v46  ;;  %v17181_v16 = vmul.f32 %v7028_v37, %v19371_v46 }
0x1535   :  { %v7032_v38 = vpop.f32.mrb[104].mxu0 }
0x1536   :  { %v7033_v11 = vadd.f32 %v17095_v36, %v7032_v38  ;;  %v13403_v20 = vpop.f32.mrb[105].mxu0 }
0x1537   :  { %v7035_v48 = vpop.f32.mrb[106].mxu0 }
0x1538   :  { %v7036_v47 = vadd.f32 %v17095_v36, %v7035_v48  ;;  %v13404_v52 = vpop.f32.mrb[107].mxu0  ;;  %v7364_v50 = vmul.f32 %v7033_v11, %v19368_v39  ;;  %v7211_v17 = vmul.f32 %v7033_v11, %v19369_v7  ;;  %v17187_v9 = vmul.f32 %v17108_v59, %v7033_v11 }
0x1539   :  { %v17190_v38 = vmul.f32 %v17116_v63, %v7033_v11  ;;  %v17193_v20 = vmul.f32 %v17124_v5, %v7033_v11  ;;  %v17196_v14 = vmul.f32 %v17132_v55, %v7033_v11  ;;  %v17199_v37 = vmul.f32 %v7033_v11, %v19370_v56 }
0x153a   :  { %v7048_v52 = vpack.c.bf16 %v7036_v47, %v7033_v11  ;;  %v7365_v48 = vmul.f32 %v7036_v47, %v19368_v39  ;;  %v7212_v57 = vmul.f32 %v7036_v47, %v19369_v7  ;;  %v17204_v1 = vmul.f32 %v17108_v59, %v7036_v47 }
0x153b   :  { %v17207_v42 = vmul.f32 %v17116_v63, %v7036_v47  ;;  %v17210_v21 = vmul.f32 %v17124_v5, %v7036_v47  ;;  %v17213_v60 = vmul.f32 %v17132_v55, %v7036_v47  ;;  %v17216_v53 = vmul.f32 %v7036_v47, %v19370_v56 }
0x153c   :  { %7064 = vrot.lane.b32.xlu1 %v7048_v52, %s14221_s5  ;;  %v7369_v31 = vpack.c.bf16 %v7365_v48, %v7364_v50  ;;  %v7216_v12 = vpack.c.bf16 %v7212_v57, %v7211_v17  ;;  %v17234_v48 = vmul.f32 %v7033_v11, %v19371_v46  ;;  %v17237_v41 = vmul.f32 %v7036_v47, %v19371_v46 }
0x153d   :  { %v7040_v27 = vpop.f32.mrb[108].mxu0 }
0x153e   :  { %v7041_v17 = vadd.f32 %v17095_v36, %v7040_v27  ;;  %7379 = vrot.lane.b32.xlu0 %v7369_v31, %s14222_s26  ;;  %v13407_v57 = vpop.f32.mrb[109].mxu0 }
0x153f   :  { %v7043_v52 = vpop.f32.mrb[110].mxu0 }
0x1540   :  { %v7044_v44 = vadd.f32 %v17095_v36, %v7043_v52  ;;  %v13408_v58 = vpop.f32.mrb[111].mxu0  ;;  %v7366_v43 = vmul.f32 %v7041_v17, %v19368_v39  ;;  %v17242_v49 = vmul.f32 %v17108_v59, %v7041_v17  ;;  %v17245_v27 = vmul.f32 %v17116_v63, %v7041_v17 }
0x1541   :  { %v17248_v31 = vmul.f32 %v17124_v5, %v7041_v17  ;;  %v17251_v11 = vmul.f32 %v17132_v55, %v7041_v17  ;;  %v17254_v47 = vmul.f32 %v7041_v17, %v19369_v7  ;;  %v17257_v36 = vmul.f32 %v7041_v17, %v19370_v56 }
0x1542   :  { %7457 = vrot.lane.b32.xlu0 %v7216_v12, %s14222_s26  ;;  %v7049_v58 = vpack.c.bf16 %v7044_v44, %v7041_v17  ;;  %v7367_v57 = vmul.f32 %v7044_v44, %v19368_v39  ;;  %v7055_v52 = vmul.f32 %v17108_v59, %v7044_v44  ;;  %v7226_v50 = vmul.f32 %v17116_v63, %v7044_v44 }
0x1543   :  { %v17264_v24 = vmul.f32 %v17124_v5, %v7044_v44  ;;  %v17267_v10 = vmul.f32 %v17132_v55, %v7044_v44  ;;  %v17270_v3 = vmul.f32 %v7044_v44, %v19369_v7  ;;  %v17273_v22 = vmul.f32 %v7044_v44, %v19370_v56 }
0x1544   :  { %7066 = vrot.lane.b32.xlu1 %v7049_v58, %s14221_s5  ;;  %v7370_v12 = vpack.c.bf16 %v7367_v57, %v7366_v43  ;;  %v7058_v39 = vpack.c.bf16 %v7055_v52, %v17242_v49  ;;  %v7229_v59 = vpack.c.bf16 %v7226_v50, %v17245_v27  ;;  %v7915_v63 = vpack.c.bf16 %v17237_v41, %v17234_v48 }
0x1545   :  { %v7538_v5 = vpack.c.bf16 %v17264_v24, %v17248_v31  ;;  %v7775_v55 = vpack.c.bf16 %v17267_v10, %v17251_v11  ;;  %v7217_v7 = vpack.c.bf16 %v17270_v3, %v17254_v47  ;;  %v7679_v58 = vpack.c.bf16 %v17273_v22, %v17257_v36 }
0x1546   :  { %v17289_v43 = vmul.f32 %v7041_v17, %v19371_v46  ;;  %v17292_v49 = vmul.f32 %v7044_v44, %v19371_v46  ;;  %v19372_v50 = vpack.c.bf16 %v17141_v15, %v17100_v28  ;;  %v19373_v57 = vpack.c.bf16 %v17144_v62, %v17103_v4 }
0x1548   :  { %7377 = vrot.lane.b32.xlu1 %v19372_v50, %s14222_s26  ;;  %v19375_v50 = vpack.c.bf16 %v17150_v26, %v17119_v29  ;;  %v19377_v26 = vpack.c.bf16 %v17207_v42, %v17190_v38  ;;  %v19380_v42 = vpack.c.bf16 %v17156_v34, %v17135_v23 }
0x154c   :  { %7455 = vrot.lane.b32.xlu1 %v19373_v57, %s14222_s26 }
0x1550   :  { %7381 = vrot.lane.b32.xlu1 %v7370_v12, %s14222_s26  ;;  %v19374_v12 = vpack.c.bf16 %v17147_v51, %v17111_v35  ;;  %v19376_v51 = vpack.c.bf16 %v17204_v1, %v17187_v9  ;;  %v19378_v1 = vpack.c.bf16 %v17153_v33, %v17127_v40  ;;  %v19379_v9 = vpack.c.bf16 %v17210_v21, %v17193_v20  ;;  %v17394_v40 = vld [vmem:[%s19286_s1] sm:$0xff]  ;;  %v17405_v20 = vld [vmem:[%s19286_s1 + $0x8] sm:$0xff] }
0x1551   :  { %v19381_v21 = vpack.c.bf16 %v17213_v60, %v17196_v14 }
0x15a6   :  { %v7063_v17 = vpop.permute.xlu0 %7062 }
0x15a7   :  { %v7078_v52 = vsel %vm647_vm3, %v7063_v17, 0 }
0x15a8   :  { %13410 = vmatpush3.bf16.xpose.msra.mxu0 %v7078_v52  ;;  %13428 = vmatpush3.bf16.xpose.msra.mxu1 %v7078_v52 }
0x15a9   :  { %13411 = vmatprep.subr.bf16.mxu0 %v19288_v25  ;;  %13429 = vmatprep.subr.bf16.mxu1 %v19288_v25 }
0x15ae   :  { %v7065_v44 = vpop.permute.xlu1 %7064 }
0x15af   :  { %v7081_v28 = vsel %vm647_vm3, %v7065_v44, 0 }
0x15b0   :  { %13412 = vmatpush3.bf16.xpose.msra.mxu0 %v7081_v28  ;;  %13430 = vmatpush3.bf16.xpose.msra.mxu1 %v7081_v28  ;;  %v7380_v35 = vpop.permute.xlu0 %7379 }
0x15b1   :  { %13413 = vmatprep.subr.bf16.mxu0 %v19288_v25  ;;  %13431 = vmatprep.subr.bf16.mxu1 %v19288_v25 }
0x15b6   :  { %v7067_v4 = vpop.permute.xlu1 %7066 }
0x15b7   :  { %v7084_v15 = vsel %vm647_vm3, %v7067_v4, 0 }
0x15b8   :  { %13414 = vmatpush3.bf16.xpose.msra.mxu0 %v7084_v15  ;;  %13432 = vmatpush3.bf16.xpose.msra.mxu1 %v7084_v15 }
0x15b9   :  { %13445 = vmatprep.subr.bf16.mxu0 %v19288_v25  ;;  %13481 = vmatprep.subr.bf16.mxu1 %v19288_v25 }
0x15ba   :  { %v7378_v62 = vpop.permute.xlu1 %7377 }
0x15be   :  { %v17322_v57 = vpop.permute.xlu1 %7455 }
0x15bf   :  { %13416 = vmatmul.mubr.msk.bf16.vlgmr.msra.gmra.mrb[112].mxu0 %vm647_vm3, %v19374_v12  ;;  %13434 = vmatmul.mubr.msk.bf16.vlgmr.msra.gmra.mrb[44].mxu1 %vm647_vm3, %v19375_v50 }
0x15c0   :  { %13446 = vmatpush3.bf16.msra.mxu0 %v7378_v62  ;;  %13482 = vmatpush3.bf16.xpose.msra.mxu1 %v7078_v52 }
0x15c1   :  { %13447 = vmatprep.subr.bf16.mxu0 %v19288_v25  ;;  %13419 = vmatprep.mubr.msk.bf16.mxu0 %vm14218_vm0, %v19288_v25 }
0x15c2   :  { %13437 = vmatprep.mubr.msk.bf16.mxu1 %vm14218_vm0, %v19288_v25  ;;  %13483 = vmatprep.subr.bf16.mxu1 %v19288_v25  ;;  %v7382_v29 = vpop.permute.xlu1 %7381 }
0x15c4   :  { %13448 = vmatpush3.bf16.msra.mxu0 %v7380_v35 }
0x15c5   :  { %13449 = vmatprep.subr.bf16.mxu0 %v19288_v25 }
0x15c7   :  { %13420 = vmatmul.mubr.msk.bf16.gmra.mrb[116].mxu0 %vm647_vm3, %v19376_v51  ;;  %13438 = vmatmul.mubr.msk.bf16.gmra.mrb[48].mxu1 %vm647_vm3, %v19377_v26 }
0x15c8   :  { %13450 = vmatpush3.bf16.msra.mxu0 %v7382_v29  ;;  %13484 = vmatpush3.bf16.xpose.msra.mxu1 %v7081_v28 }
0x15c9   :  { %13423 = vmatprep.mubr.msk.bf16.mxu0 %vm14218_vm0, %v19288_v25  ;;  %13441 = vmatprep.mubr.msk.bf16.mxu1 %vm14218_vm0, %v19288_v25 }
0x15ca   :  { %13485 = vmatprep.subr.bf16.mxu1 %v19288_v25  ;;  %13463 = vmatprep.subr.bf16.mxu0 %v19288_v25 }
0x15cf   :  { %13424 = vmatmul.mubr.msk.bf16.gmra.mrb[120].mxu0 %vm647_vm3, %v7058_v39  ;;  %13442 = vmatmul.mubr.msk.bf16.gmra.mrb[52].mxu1 %vm647_vm3, %v7229_v59 }
0x15d0   :  { %13486 = vmatpush3.bf16.xpose.msra.mxu1 %v7084_v15  ;;  %13487 = vmatprep.mubr.msk.bf16.mxu1 %vm14218_vm0, %v19288_v25 }
0x15d1   :  { %13517 = vmatprep.subr.bf16.mxu1 %v19288_v25  ;;  %13451 = vmatprep.mubr.msk.bf16.mxu0 %vm14218_vm0, %v19288_v25 }
0x15d7   :  { %13488 = vmatmul.mubr.msk.bf16.vlgmr.msra.gmra.mrb[56].mxu1 %vm647_vm3, %v19378_v1 }
0x15d8   :  { %13518 = vmatpush3.bf16.xpose.msra.mxu1 %v7078_v52  ;;  %13491 = vmatprep.mubr.msk.bf16.mxu1 %vm14218_vm0, %v19288_v25 }
0x15d9   :  { %13519 = vmatprep.subr.bf16.mxu1 %v19288_v25 }
0x15df   :  { %13492 = vmatmul.mubr.msk.bf16.gmra.mrb[60].mxu1 %vm647_vm3, %v19379_v9  ;;  %v17437_v9 = vld [vmem:[%s19286_s1 + $0x18] sm:$0xff] }
0x15e0   :  { %13520 = vmatpush3.bf16.xpose.msra.mxu1 %v7081_v28  ;;  %13495 = vmatprep.mubr.msk.bf16.mxu1 %vm14218_vm0, %v19288_v25  ;;  %v17422_v28 = vld [vmem:[%s19286_s1 + $0x10] sm:$0xff] }
0x15e1   :  { %13521 = vmatprep.subr.bf16.mxu1 %v19288_v25 }
0x15e7   :  { %13496 = vmatmul.mubr.msk.bf16.gmra.mrb[64].mxu1 %vm647_vm3, %v7538_v5 }
0x15e8   :  { %13522 = vmatpush3.bf16.xpose.msra.mxu1 %v7084_v15  ;;  %13523 = vmatprep.mubr.msk.bf16.mxu1 %vm14218_vm0, %v19288_v25 }
0x15e9   :  { %13553 = vmatprep.subr.bf16.mxu1 %v19288_v25 }
0x15ef   :  { %13524 = vmatmul.mubr.msk.bf16.vlgmr.msra.gmra.mrb[68].mxu1 %vm647_vm3, %v19380_v42 }
0x15f0   :  { %13527 = vmatprep.mubr.msk.bf16.mxu1 %vm14218_vm0, %v19288_v25 }
0x15f7   :  { %13528 = vmatmul.mubr.msk.bf16.gmra.mrb[72].mxu1 %vm647_vm3, %v19381_v21 }
0x15f8   :  { %13531 = vmatprep.mubr.msk.bf16.mxu1 %vm14218_vm0, %v19288_v25 }
0x15ff   :  { %13532 = vmatmul.mubr.msk.bf16.gmra.mrb[76].mxu1 %vm647_vm3, %v7775_v55 }
0x1600   :  { %13557 = vmatprep.mubr.msk.bf16.mxu1 %vm14218_vm0, %v19288_v25 }
0x1692   :  { %v7120_v24 = vpop.f32.mrb[112].mxu0  ;;  %v7273_v39 = vpop.f32.mrb[44].mxu1 }
0x1693   :  { %v17397_v60 = vadd.f32 %v17394_v40, %v7273_v39  ;;  %v13417_v23 = vpop.f32.mrb[113].mxu0  ;;  %v13435_v33 = vpop.f32.mrb[45].mxu1  ;;  %v17400_v10 = vadd.f32 %v17394_v40, %v7120_v24 }
0x1694   :  { %v7123_v34 = vpop.f32.mrb[114].mxu0  ;;  %v7276_v38 = vpop.f32.mrb[46].mxu1  ;;  %v17450_v33 = vld [vmem:[%s19286_s1 + $0x20] sm:$0xff] }
0x1695   :  { %v17408_v14 = vadd.f32 %v17405_v20, %v7276_v38  ;;  %v13418_v31 = vpop.f32.mrb[115].mxu0  ;;  %v13436_v11 = vpop.f32.mrb[47].mxu1  ;;  %v7296_v59 = vsel %vm816_vm4, %v17397_v60, -inf  ;;  %v17413_v5 = vadd.f32 %v17405_v20, %v7123_v34  ;;  %v7143_v17 = vsel %vm816_vm4, %v17400_v10, -inf }
0x1696   :  { %7297 = vmax.xlane.f32.xlu1 %v7296_v59 }
0x1697   :  { %v7299_v55 = vsel %vm816_vm4, %v17408_v14, -inf  ;;  %v7146_v50 = vsel %vm816_vm4, %v17413_v5, -inf }
0x1698   :  { %7300 = vmax.xlane.f32.xlu0 %v7299_v55 }
0x169a   :  { %v7128_v52 = vpop.f32.mrb[116].mxu0  ;;  %7144 = vmax.xlane.f32.xlu1 %v7143_v17  ;;  %v7281_v44 = vpop.f32.mrb[48].mxu1 }
0x169b   :  { %v17425_v4 = vadd.f32 %v17422_v28, %v7128_v52  ;;  %v17428_v15 = vadd.f32 %v17422_v28, %v7281_v44  ;;  %v13421_v62 = vpop.f32.mrb[117].mxu0  ;;  %v13439_v12 = vpop.f32.mrb[49].mxu1 }
0x169c   :  { %v7131_v35 = vpop.f32.mrb[118].mxu0  ;;  %7147 = vmax.xlane.f32.xlu0 %v7146_v50  ;;  %v7284_v29 = vpop.f32.mrb[50].mxu1 }
0x169d   :  { %v13422_v51 = vpop.f32.mrb[119].mxu0  ;;  %v13440_v26 = vpop.f32.mrb[51].mxu1  ;;  %v7149_v1 = vsel %vm816_vm4, %v17425_v4, -inf  ;;  %v17440_v42 = vadd.f32 %v17437_v9, %v7284_v29  ;;  %v7302_v21 = vsel %vm816_vm4, %v17428_v15, -inf  ;;  %v17445_v23 = vadd.f32 %v17437_v9, %v7131_v35 }
0x169e   :  { %7150 = vmax.xlane.f32.xlu1 %v7149_v1 }
0x169f   :  { %v7305_v11 = vsel %vm816_vm4, %v17440_v42, -inf  ;;  %v7152_v12 = vsel %vm816_vm4, %v17445_v23, -inf }
0x16a0   :  { %7303 = vmax.xlane.f32.xlu0 %v7302_v21 }
0x16a2   :  { %v7136_v24 = vpop.f32.mrb[120].mxu0  ;;  %v7289_v39 = vpop.f32.mrb[52].mxu1 }
0x16a3   :  { %v17453_v34 = vadd.f32 %v17450_v33, %v7289_v39  ;;  %v13425_v38 = vpop.f32.mrb[121].mxu0  ;;  %v13443_v31 = vpop.f32.mrb[53].mxu1  ;;  %v17458_v17 = vadd.f32 %v17450_v33, %v7136_v24 }
0x16a4   :  { %v7139_v59 = vpop.f32.mrb[122].mxu0  ;;  %7306 = vmax.xlane.f32.xlu0 %v7305_v11  ;;  %v7292_v55 = vpop.f32.mrb[54].mxu1 }
0x16a5   :  { %v13426_v52 = vpop.f32.mrb[123].mxu0  ;;  %v13444_v44 = vpop.f32.mrb[55].mxu1  ;;  %v7308_v62 = vsel %vm816_vm4, %v17453_v34, -inf  ;;  %v7155_v50 = vsel %vm816_vm4, %v17458_v17, -inf }
0x16a6   :  { %7309 = vmax.xlane.f32.xlu1 %v7308_v62  ;;  %v19382_v44 = vpack.c.bf16 %v17159_v54, %v17138_v45  ;;  %v19383_v62 = vpack.c.bf16 %v17216_v53, %v17199_v37  ;;  %v14186_v53 = vld [vmem:[%s19286_s1 + $0x28] sm:$0xff] }
0x16a7   :  { %v17484_v54 = vadd.f32 %v14186_v53, %v7292_v55 }
0x16a8   :  { %7153 = vmax.xlane.f32.xlu0 %v7152_v12 }
0x16aa   :  { %7156 = vmax.xlane.f32.xlu1 %v7155_v50  ;;  %v7582_v35 = vpop.f32.mrb[56].mxu1 }
0x16ab   :  { %v13489_v29 = vpop.f32.mrb[57].mxu1  ;;  %v17479_v45 = vadd.f32 %v17394_v40, %v7582_v35 }
0x16ac   :  { %v7585_v51 = vpop.f32.mrb[58].mxu1 }
0x16ad   :  { %v13490_v26 = vpop.f32.mrb[59].mxu1 }
0x16b2   :  { %v7590_v1 = vpop.f32.mrb[60].mxu1 }
0x16b3   :  { %v13493_v21 = vpop.f32.mrb[61].mxu1  ;;  %v17487_v37 = vadd.f32 %v17422_v28, %v7590_v1  ;;  %v17501_v1 = vadd.f32 %v17405_v20, %v7585_v51 }
0x16b4   :  { %v7593_v24 = vpop.f32.mrb[62].mxu1 }
0x16b5   :  { %v13494_v39 = vpop.f32.mrb[63].mxu1  ;;  %v7611_v55 = vsel %vm816_vm4, %v17487_v37, -inf }
0x16ba   :  { %v7598_v38 = vpop.f32.mrb[64].mxu1 }
0x16bb   :  { %7459 = vrot.lane.b32.xlu1 %v7217_v7, %s14222_s26  ;;  %v13497_v31 = vpop.f32.mrb[65].mxu1  ;;  %v17496_v35 = vadd.f32 %v17450_v33, %v7598_v38  ;;  %v17511_v38 = vadd.f32 %v17437_v9, %v7593_v24 }
0x16bc   :  { %v7601_v11 = vpop.f32.mrb[66].mxu1 }
0x16bd   :  { %v13498_v52 = vpop.f32.mrb[67].mxu1 }
0x16be   :  { %7686 = vrot.lane.b32.xlu0 %v19382_v44, %s14222_s26  ;;  %v7605_v44 = vsel %vm816_vm4, %v17479_v45, -inf }
0x16c2   :  { %7688 = vrot.lane.b32.xlu0 %v19383_v62, %s14222_s26  ;;  %v7819_v12 = vpop.f32.mrb[68].mxu1  ;;  %v17491_v62 = vadd.f32 %v14186_v53, %v7139_v59 }
0x16c3   :  { %v13525_v50 = vpop.f32.mrb[69].mxu1  ;;  %v17506_v59 = vadd.f32 %v17394_v40, %v7819_v12  ;;  %v17520_v40 = vadd.f32 %v14186_v53, %v7601_v11  ;;  %v7614_v12 = vsel %vm816_vm4, %v17511_v38, -inf }
0x16c4   :  { %v7822_v29 = vpop.f32.mrb[70].mxu1  ;;  %v7158_v50 = vsel %vm816_vm4, %v17491_v62, -inf }
0x16c5   :  { %v13526_v26 = vpop.f32.mrb[71].mxu1 }
0x16c6   :  { %v7617_v26 = vsel %vm816_vm4, %v17496_v35, -inf }
0x16ca   :  { %v7827_v21 = vpop.f32.mrb[72].mxu1 }
0x16cb   :  { %v13529_v3 = vpop.f32.mrb[73].mxu1  ;;  %v17516_v51 = vadd.f32 %v17422_v28, %v7827_v21  ;;  %v17530_v28 = vadd.f32 %v17405_v20, %v7822_v29  ;;  %v7620_v21 = vsel %vm816_vm4, %v17520_v40, -inf }
0x16cc   :  { %v7830_v7 = vpop.f32.mrb[74].mxu1  ;;  %v7608_v3 = vsel %vm816_vm4, %v17501_v1, -inf }
0x16cd   :  { %v13530_v47 = vpop.f32.mrb[75].mxu1 }
0x16ce   :  { %v7842_v47 = vsel %vm816_vm4, %v17506_v59, -inf }
0x16d2   :  { %v7835_v39 = vpop.f32.mrb[76].mxu1 }
0x16d3   :  { %v13533_v31 = vpop.f32.mrb[77].mxu1  ;;  %v17525_v24 = vadd.f32 %v17450_v33, %v7835_v39  ;;  %v7845_v33 = vsel %vm816_vm4, %v17530_v28, -inf }
0x16d4   :  { %v7838_v52 = vpop.f32.mrb[78].mxu1  ;;  %v7848_v31 = vsel %vm816_vm4, %v17516_v51, -inf }
0x16d5   :  { %v13534_v27 = vpop.f32.mrb[79].mxu1  ;;  %v7854_v11 = vsel %vm816_vm4, %v17525_v24, -inf  ;;  %v17541_v39 = vadd.f32 %v14186_v53, %v7838_v52 }
0x16d6   :  { %v7311_v27 = vsel %vm816_vm4, %v17484_v54, -inf }
0x16d7   :  { %v7857_v29 = vsel %vm816_vm4, %v17541_v39, -inf }
0x16df   :  { %7606 = vmax.xlane.f32.xlu1 %v7605_v44  ;;  %v17537_v44 = vadd.f32 %v17437_v9, %v7830_v7 }
0x16e1   :  { %7312 = vmax.xlane.f32.xlu0 %v7311_v27  ;;  %v7851_v20 = vsel %vm816_vm4, %v17537_v44, -inf  ;;  %v17547_v27 = vpop.permute.xlu0 %7457 }
0x16e3   :  { %7612 = vmax.xlane.f32.xlu1 %v7611_v55 }
0x16e5   :  { %7159 = vmax.xlane.f32.xlu0 %v7158_v50 }
0x16e7   :  { %7618 = vmax.xlane.f32.xlu1 %v7617_v26 }
0x16e9   :  { %7609 = vmax.xlane.f32.xlu0 %v7608_v3 }
0x16eb   :  { %7843 = vmax.xlane.f32.xlu1 %v7842_v47 }
0x16ed   :  { %7615 = vmax.xlane.f32.xlu0 %v7614_v12 }
0x16ef   :  { %7849 = vmax.xlane.f32.xlu1 %v7848_v31 }
0x16f1   :  { %7621 = vmax.xlane.f32.xlu0 %v7620_v21 }
0x16f3   :  { %7855 = vmax.xlane.f32.xlu1 %v7854_v11 }
0x16f5   :  { %7846 = vmax.xlane.f32.xlu0 %v7845_v33 }
0x16f9   :  { %7852 = vmax.xlane.f32.xlu0 %v7851_v20 }
0x16fd   :  { %7858 = vmax.xlane.f32.xlu0 %v7857_v29 }
0x1723   :  { %v7298_v55 = vpop.xlane.xlu1 %7297 }
0x1724   :  { %v7314_v9 = vsub.f32 %v17397_v60, %v7298_v55 }
0x1725   :  { %v7301_v7 = vpop.xlane.xlu0 %7300 }
0x1726   :  { %v7320_v50 = vmul.f32 1.442695, %v7314_v9  ;;  %v7315_v26 = vsub.f32 %v17408_v14, %v7301_v7 }
0x1727   :  { %v7145_v3 = vpop.xlane.xlu1 %7144 }
0x1728   :  { %14011 = vpow2.f32 %v7320_v50  ;;  %v7322_v52 = vmul.f32 1.442695, %v7315_v26  ;;  %v7161_v53 = vsub.f32 %v17400_v10, %v7145_v3 }
0x1729   :  { %v7148_v47 = vpop.xlane.xlu0 %7147 }
0x172a   :  { %14013 = vpow2.f32 %v7322_v52  ;;  %v7167_v12 = vmul.f32 1.442695, %v7161_v53  ;;  %v7162_v31 = vsub.f32 %v17413_v5, %v7148_v47 }
0x172b   :  { %v7151_v21 = vpop.xlane.xlu1 %7150 }
0x172c   :  { %14015 = vpow2.f32 %v7167_v12  ;;  %v7169_v11 = vmul.f32 1.442695, %v7162_v31  ;;  %v7163_v33 = vsub.f32 %v17425_v4, %v7151_v21 }
0x172d   :  { %v7304_v60 = vpop.xlane.xlu0 %7303 }
0x172e   :  { %14017 = vpow2.f32 %v7169_v11  ;;  %v7171_v20 = vmul.f32 1.442695, %v7163_v33  ;;  %v7316_v14 = vsub.f32 %v17428_v15, %v7304_v60 }
0x1730   :  { %14019 = vpow2.f32 %v7171_v20  ;;  %v7324_v29 = vmul.f32 1.442695, %v7316_v14 }
0x1731   :  { %v7307_v55 = vpop.xlane.xlu0 %7306 }
0x1732   :  { %v17555_v9 = vpop.eup %14011  ;;  %14021 = vpow2.f32 %v7324_v29  ;;  %v7317_v10 = vsub.f32 %v17440_v42, %v7307_v55 }
0x1733   :  { %v7310_v7 = vpop.xlane.xlu1 %7309  ;;  %v7332_v5 = vsel %vm816_vm4, %v17555_v9, 0.0 }
0x1734   :  { %v17560_v50 = vpop.eup %14013  ;;  %v7326_v4 = vmul.f32 1.442695, %v7317_v10  ;;  %v7318_v26 = vsub.f32 %v17453_v34, %v7310_v7  ;;  %7333 = vadd.xlane.f32.xlu1 %v7332_v5 }
0x1735   :  { %v7154_v3 = vpop.xlane.xlu0 %7153  ;;  %v7335_v15 = vsel %vm816_vm4, %v17560_v50, 0.0 }
0x1736   :  { %v17565_v52 = vpop.eup %14015  ;;  %14023 = vpow2.f32 %v7326_v4  ;;  %v7328_v53 = vmul.f32 1.442695, %v7318_v26  ;;  %v7164_v42 = vsub.f32 %v17445_v23, %v7154_v3  ;;  %7336 = vadd.xlane.f32.xlu0 %v7335_v15 }
0x1737   :  { %v7157_v47 = vpop.xlane.xlu1 %7156  ;;  %v7179_v12 = vsel %vm816_vm4, %v17565_v52, 0.0 }
0x1738   :  { %v17570_v31 = vpop.eup %14017  ;;  %14025 = vpow2.f32 %v7328_v53  ;;  %v7173_v34 = vmul.f32 1.442695, %v7164_v42  ;;  %v7165_v21 = vsub.f32 %v17458_v17, %v7157_v47  ;;  %7180 = vadd.xlane.f32.xlu1 %v7179_v12 }
0x1739   :  { %v7182_v11 = vsel %vm816_vm4, %v17570_v31, 0.0  ;;  %v17603_v3 = vpop.permute.xlu0 %7686 }
0x173a   :  { %v17575_v33 = vpop.eup %14019  ;;  %14027 = vpow2.f32 %v7173_v34  ;;  %v7175_v60 = vmul.f32 1.442695, %v7165_v21  ;;  %7183 = vadd.xlane.f32.xlu0 %v7182_v11 }
0x173b   :  { %v7185_v14 = vsel %vm816_vm4, %v17575_v33, 0.0  ;;  %v17605_v15 = vpop.permute.xlu1 %7459 }
0x173c   :  { %v17577_v23 = vpop.eup %14021  ;;  %14029 = vpow2.f32 %v7175_v60 }
0x173d   :  { %v7338_v20 = vsel %vm816_vm4, %v17577_v23, 0.0  ;;  %v17607_v53 = vpop.permute.xlu0 %7688 }
0x173e   :  { %7339 = vadd.xlane.f32.xlu1 %v7338_v20  ;;  %7186 = vadd.xlane.f32.xlu0 %v7185_v14 }
0x1740   :  { %v17583_v17 = vpop.eup %14023 }
0x1741   :  { %v7341_v29 = vsel %vm816_vm4, %v17583_v17, 0.0 }
0x1742   :  { %v17587_v55 = vpop.eup %14025  ;;  %7342 = vadd.xlane.f32.xlu0 %v7341_v29 }
0x1743   :  { %v7344_v10 = vsel %vm816_vm4, %v17587_v55, 0.0 }
0x1744   :  { %v17591_v7 = vpop.eup %14027  ;;  %7345 = vadd.xlane.f32.xlu1 %v7344_v10 }
0x1745   :  { %v7188_v5 = vsel %vm816_vm4, %v17591_v7, 0.0 }
0x1746   :  { %v17595_v4 = vpop.eup %14029  ;;  %7189 = vadd.xlane.f32.xlu0 %v7188_v5 }
0x1747   :  { %v7191_v26 = vsel %vm816_vm4, %v17595_v4, 0.0 }
0x174a   :  { %7192 = vadd.xlane.f32.xlu0 %v7191_v26 }
0x1755   :  { %7690 = vrot.lane.b32.xlu1 %v7679_v58, %s14222_s26 }
0x176c   :  { %v7607_v42 = vpop.xlane.xlu1 %7606 }
0x176d   :  { %v7623_v47 = vsub.f32 %v17479_v45, %v7607_v42 }
0x176e   :  { %v7313_v12 = vpop.xlane.xlu0 %7312 }
0x176f   :  { %v7629_v34 = vmul.f32 1.442695, %v7623_v47  ;;  %v7319_v21 = vsub.f32 %v17484_v54, %v7313_v12 }
0x1770   :  { %v7613_v11 = vpop.xlane.xlu1 %7612 }
0x1771   :  { %14031 = vpow2.f32 %v7629_v34  ;;  %v7330_v60 = vmul.f32 1.442695, %v7319_v21 }
0x1772   :  { %v7160_v20 = vpop.xlane.xlu0 %7159 }
0x1773   :  { %14033 = vpow2.f32 %v7330_v60 }
0x1774   :  { %v7619_v22 = vpop.xlane.xlu1 %7618 }
0x1776   :  { %v7610_v36 = vpop.xlane.xlu0 %7609 }
0x1778   :  { %v7844_v58 = vpop.xlane.xlu1 %7843 }
0x1779   :  { %v7860_v14 = vsub.f32 %v17506_v59, %v7844_v58 }
0x177a   :  { %v7616_v29 = vpop.xlane.xlu0 %7615 }
0x177b   :  { %v17612_v10 = vpop.eup %14031  ;;  %v7626_v5 = vsub.f32 %v17511_v38, %v7616_v29  ;;  %v7866_v42 = vmul.f32 1.442695, %v7860_v14  ;;  %v19384_v29 = vpack.c.bf16 %v17181_v16, %v17178_v6 }
0x177c   :  { %v7850_v45 = vpop.xlane.xlu1 %7849  ;;  %v7641_v26 = vsel %vm816_vm4, %v17612_v10, 0.0 }
0x177d   :  { %v17617_v54 = vpop.eup %14033  ;;  %v7635_v47 = vmul.f32 1.442695, %v7626_v5  ;;  %v7862_v12 = vsub.f32 %v17516_v51, %v7850_v45  ;;  %7642 = vadd.xlane.f32.xlu1 %v7641_v26  ;;  %v7166_v5 = vsub.f32 %v17491_v62, %v7160_v20  ;;  %v7624_v26 = vsub.f32 %v17501_v1, %v7610_v36 }
0x177e   :  { %v7347_v34 = vsel %vm816_vm4, %v17617_v54, 0.0 }
0x177f   :  { %14035 = vpow2.f32 %v7635_v47  ;;  %7348 = vadd.xlane.f32.xlu0 %v7347_v34  ;;  %v7870_v59 = vmul.f32 1.442695, %v7862_v12  ;;  %v7177_v45 = vmul.f32 1.442695, %v7166_v5  ;;  %v7631_v47 = vmul.f32 1.442695, %v7624_v26  ;;  %v7622_v12 = vpop.xlane.xlu0 %7621 }
0x1780   :  { %14037 = vpow2.f32 %v7866_v42  ;;  %v7625_v42 = vsub.f32 %v17487_v37, %v7613_v11  ;;  %v7628_v62 = vsub.f32 %v17520_v40, %v7622_v12 }
0x1781   :  { %14039 = vpow2.f32 %v7870_v59  ;;  %v7627_v59 = vsub.f32 %v17496_v35, %v7619_v22  ;;  %v7856_v35 = vpop.xlane.xlu1 %7855 }
0x1782   :  { %14041 = vpow2.f32 %v7177_v45  ;;  %v7633_v34 = vmul.f32 1.442695, %v7625_v42  ;;  %v7639_v20 = vmul.f32 1.442695, %v7628_v62 }
0x1783   :  { %14043 = vpow2.f32 %v7631_v47  ;;  %v7847_v16 = vpop.xlane.xlu0 %7846  ;;  %v7637_v6 = vmul.f32 1.442695, %v7627_v59 }
0x1784   :  { %14045 = vpow2.f32 %v7633_v34  ;;  %v7861_v41 = vsub.f32 %v17530_v28, %v7847_v16  ;;  %v7864_v28 = vsub.f32 %v17525_v24, %v7856_v35 }
0x1785   :  { %14047 = vpow2.f32 %v7637_v6 }
0x1786   :  { %14049 = vpow2.f32 %v7639_v20  ;;  %v7868_v11 = vmul.f32 1.442695, %v7861_v41  ;;  %v7874_v5 = vmul.f32 1.442695, %v7864_v28 }
0x1787   :  { %v7853_v48 = vpop.xlane.xlu0 %7852 }
0x1788   :  { %v7863_v22 = vsub.f32 %v17537_v44, %v7853_v48  ;;  %14051 = vpow2.f32 %v7868_v11 }
0x1789   :  { %v17622_v38 = vpop.eup %14035 }
0x178a   :  { %v7650_v21 = vsel %vm816_vm4, %v17622_v38, 0.0  ;;  %v17626_v60 = vpop.eup %14037 }
0x178b   :  { %7651 = vadd.xlane.f32.xlu1 %v7650_v21  ;;  %v7878_v51 = vsel %vm816_vm4, %v17626_v60, 0.0  ;;  %v17630_v58 = vpop.eup %14039  ;;  %v7872_v21 = vmul.f32 1.442695, %v7863_v22 }
0x178c   :  { %v7884_v14 = vsel %vm816_vm4, %v17630_v58, 0.0  ;;  %v17647_v1 = vpop.eup %14041 }
0x178d   :  { %v17652_v37 = vpop.eup %14043  ;;  %14053 = vpow2.f32 %v7872_v21 }
0x178e   :  { %v7644_v40 = vsel %vm816_vm4, %v17652_v37, 0.0  ;;  %v17657_v36 = vpop.eup %14045  ;;  %14055 = vpow2.f32 %v7874_v5 }
0x178f   :  { %7879 = vadd.xlane.f32.xlu1 %v7878_v51  ;;  %v7859_v51 = vpop.xlane.xlu0 %7858 }
0x1790   :  { %v7865_v44 = vsub.f32 %v17541_v39, %v7859_v51 }
0x1792   :  { %v7876_v24 = vmul.f32 1.442695, %v7865_v44 }
0x1793   :  { %7885 = vadd.xlane.f32.xlu1 %v7884_v14  ;;  %v7647_v14 = vsel %vm816_vm4, %v17657_v36, 0.0 }
0x1795   :  { %7923 = vrot.lane.b32.xlu0 %v19384_v29, %s14222_s26  ;;  %v17662_v29 = vpop.eup %14047 }
0x1796   :  { %v7653_v45 = vsel %vm816_vm4, %v17662_v29, 0.0  ;;  %v17667_v26 = vpop.eup %14049 }
0x1797   :  { %v7656_v12 = vsel %vm816_vm4, %v17667_v26, 0.0  ;;  %v17671_v34 = vpop.eup %14051 }
0x1798   :  { %v7881_v16 = vsel %vm816_vm4, %v17671_v34, 0.0  ;;  %v17675_v6 = vpop.eup %14053 }
0x1799   :  { %v17677_v62 = vpop.eup %14055  ;;  %v7887_v48 = vsel %vm816_vm4, %v17675_v6, 0.0 }
0x179a   :  { %v7890_v21 = vsel %vm816_vm4, %v17677_v62, 0.0 }
0x17a4   :  { %7925 = vrot.lane.b32.xlu1 %v7915_v63, %s14222_s26  ;;  %v7194_v63 = vsel %vm816_vm4, %v17647_v1, 0.0 }
0x17b4   :  { %7195 = vadd.xlane.f32.xlu0 %v7194_v63 }
0x17b8   :  { %7645 = vadd.xlane.f32.xlu0 %v7644_v40 }
0x17bc   :  { %7648 = vadd.xlane.f32.xlu0 %v7647_v14 }
0x17c0   :  { %7654 = vadd.xlane.f32.xlu0 %v7653_v45 }
0x17c1   :  { %v7334_v42 = vpop.xlane.xlu1 %7333 }
0x17c2   :  { %14057 = vrcp.f32 %v7334_v42 }
0x17c3   :  { %v7337_v47 = vpop.xlane.xlu0 %7336 }
0x17c4   :  { %14059 = vrcp.f32 %v7337_v47  ;;  %7657 = vadd.xlane.f32.xlu0 %v7656_v12 }
0x17c5   :  { %14061 = vpow2.f32 %v7876_v24  ;;  %v7181_v39 = vpop.xlane.xlu1 %7180 }
0x17c6   :  { %14063 = vrcp.f32 %v7181_v39 }
0x17c7   :  { %v7184_v59 = vpop.xlane.xlu0 %7183 }
0x17c8   :  { %14065 = vrcp.f32 %v7184_v59  ;;  %7882 = vadd.xlane.f32.xlu0 %v7881_v16 }
0x17cb   :  { %v7340_v20 = vpop.xlane.xlu1 %7339  ;;  %v7187_v41 = vpop.xlane.xlu0 %7186 }
0x17cc   :  { %v14058_v63 = vpop.eup %14057  ;;  %7888 = vadd.xlane.f32.xlu0 %v7887_v48  ;;  %14067 = vrcp.f32 %v7340_v20 }
0x17cd   :  { %v7356_v22 = vmul.f32 %v14058_v63, %v17555_v9 }
0x17ce   :  { %v14060_v35 = vpop.eup %14059 }
0x17cf   :  { %v17681_v11 = vpop.eup %14061  ;;  %v7357_v40 = vmul.f32 %v14060_v35, %v17560_v50  ;;  %v7343_v28 = vpop.xlane.xlu0 %7342 }
0x17d0   :  { %v14064_v51 = vpop.eup %14063  ;;  %14069 = vrcp.f32 %v7343_v28  ;;  %7891 = vadd.xlane.f32.xlu0 %v7890_v21  ;;  %v7893_v9 = vsel %vm816_vm4, %v17681_v11, 0.0 }
0x17d1   :  { %v7371_v14 = vpack.c.bf16 %v7357_v40, %v7356_v22  ;;  %v7203_v44 = vmul.f32 %v14064_v51, %v17565_v52  ;;  %v7346_v47 = vpop.xlane.xlu1 %7345 }
0x17d2   :  { %v14066_v5 = vpop.eup %14065  ;;  %14071 = vrcp.f32 %v7346_v47 }
0x17d3   :  { %v7204_v45 = vmul.f32 %v14066_v5, %v17570_v31  ;;  %13452 = vmatmul.mubr.msk.bf16.vlgmr.msra.gmra.mrb[124].mxu0 %vm816_vm4, %v7371_v14 }
0x17d4   :  { %13464 = vmatpush3.bf16.msra.mxu0 %v17322_v57  ;;  %7894 = vadd.xlane.f32.xlu0 %v7893_v9 }
0x17d5   :  { %v7218_v50 = vpack.c.bf16 %v7204_v45, %v7203_v44  ;;  %13465 = vmatprep.subr.bf16.mxu0 %v19288_v25  ;;  %13455 = vmatprep.mubr.msk.bf16.mxu0 %vm14218_vm0, %v19288_v25  ;;  %v7691_v35 = vpop.permute.xlu1 %7690 }
0x17d6   :  { %v14068_v24 = vpop.eup %14067 }
0x17d7   :  { %v7358_v31 = vmul.f32 %v14068_v24, %v17577_v23  ;;  %v13831_v23 = vld [vmem:[%s19147_s8 + $0x20] sm:$0xff]  }
0x17d8   :  { %13466 = vmatpush3.bf16.msra.mxu0 %v17547_v27  ;;  %v19385_v27 = vpack.c.bf16 %v17292_v49, %v17289_v43  ;;  %13554 = vmatpush3.bf16.msra.mxu1 %v13831_v23 }
0x17d9   :  { %13467 = vmatprep.subr.bf16.mxu0 %v19288_v25  ;;  %13555 = vmatprep.subr.bf16.mxu1 %v19288_v25 }
0x17da   :  { %v14070_v52 = vpop.eup %14069 }
0x17db   :  { %v7359_v42 = vmul.f32 %v14070_v52, %v17583_v17  ;;  %v7190_v17 = vpop.xlane.xlu0 %7189 }
0x17dc   :  { %13468 = vmatpush3.bf16.msra.mxu0 %v17605_v15  ;;  %v13832_v15 = vld [vmem:[%s19147_s8 + $0x28] sm:$0xff]   ;;  %v14072_v49 = vpop.eup %14071 }
0x17dd   :  { %v7372_v57 = vpack.c.bf16 %v7359_v42, %v7358_v31  ;;  %13499 = vmatprep.subr.bf16.mxu0 %v19288_v25  ;;  %13556 = vmatpush3.bf16.msra.mxu1 %v13832_v15  ;;  %v7360_v59 = vmul.f32 %v14072_v49, %v17587_v55 }
0x17de   :  { %13569 = vmatprep.subr.bf16.mxu1 %v19288_v25 }
0x17df   :  { %13456 = vmatmul.mubr.msk.bf16.gmra.mrb[128].mxu0 %vm816_vm4, %v7372_v57  ;;  %v7193_v12 = vpop.xlane.xlu0 %7192 }
0x17e0   :  { %13459 = vmatprep.mubr.msk.bf16.mxu0 %vm14218_vm0, %v19288_v25 }
0x17ea   :  { %7927 = vrot.lane.b32.xlu0 %v19385_v27, %s14222_s26 }
0x180c   :  { %v7349_v43 = vpop.xlane.xlu0 %7348 }
0x180d   :  { %14073 = vrcp.f32 %v7349_v43 }
0x180e   :  { %14075 = vrcp.f32 %v7190_v17 }
0x180f   :  { %14077 = vrcp.f32 %v7187_v41 }
0x1810   :  { %14079 = vrcp.f32 %v7193_v12 }
0x1817   :  { %v14074_v39 = vpop.eup %14073 }
0x1818   :  { %v7361_v16 = vmul.f32 %v14074_v39, %v17617_v54  ;;  %v14076_v48 = vpop.eup %14075 }
0x1819   :  { %v14078_v63 = vpop.eup %14077  ;;  %v7206_v55 = vmul.f32 %v14076_v48, %v17591_v7  ;;  %v7643_v7 = vpop.xlane.xlu1 %7642 }
0x181a   :  { %v7373_v20 = vpack.c.bf16 %v7361_v16, %v7360_v59  ;;  %v7205_v54 = vmul.f32 %v14078_v63, %v17575_v33  ;;  %v14080_v40 = vpop.eup %14079 }
0x181b   :  { %v7207_v14 = vmul.f32 %v14080_v40, %v17595_v4 }
0x181c   :  { %13460 = vmatmul.mubr.msk.bf16.gmra.mrb[132].mxu0 %vm816_vm4, %v7373_v20  ;;  %v7219_v41 = vpack.c.bf16 %v7206_v55, %v7205_v54 }
0x181d   :  { %13469 = vmatprep.mubr.msk.bf16.mxu0 %vm14218_vm0, %v19288_v25  ;;  %v7652_v28 = vpop.xlane.xlu1 %7651 }
0x1821   :  { %v7880_v9 = vpop.xlane.xlu1 %7879 }
0x1824   :  { %13470 = vmatmul.mubr.msk.bf16.vlgmr.msra.gmra.mrb[124].mxu0 %vm816_vm4, %v7218_v50 }
0x1825   :  { %13500 = vmatpush3.bf16.msra.mxu0 %v17603_v3  ;;  %13473 = vmatprep.mubr.msk.bf16.mxu0 %vm14218_vm0, %v19288_v25  ;;  %v7924_v3 = vpop.permute.xlu0 %7923  ;;  %v7886_v4 = vpop.xlane.xlu1 %7885 }
0x1826   :  { %13501 = vmatprep.subr.bf16.mxu0 %v19288_v25 }
0x1829   :  { %13502 = vmatpush3.bf16.msra.mxu0 %v17607_v53  ;;  %v7926_v17 = vpop.permute.xlu1 %7925 }
0x182a   :  { %13503 = vmatprep.subr.bf16.mxu0 %v19288_v25 }
0x182c   :  { %13474 = vmatmul.mubr.msk.bf16.gmra.mrb[128].mxu0 %vm816_vm4, %v7219_v41 }
0x182d   :  { %13504 = vmatpush3.bf16.msra.mxu0 %v7691_v35  ;;  %13477 = vmatprep.mubr.msk.bf16.mxu0 %vm14218_vm0, %v19288_v25 }
0x182e   :  { %13535 = vmatprep.subr.bf16.mxu0 %v19288_v25 }
0x1841   :  { %v7196_v22 = vpop.xlane.xlu0 %7195 }
0x1842   :  { %14081 = vrcp.f32 %v7196_v22 }
0x1845   :  { %v7646_v33 = vpop.xlane.xlu0 %7645 }
0x1846   :  { %14083 = vrcp.f32 %v7646_v33 }
0x1847   :  { %14085 = vrcp.f32 %v7643_v7 }
0x1849   :  { %v7649_v53 = vpop.xlane.xlu0 %7648 }
0x184a   :  { %14087 = vrcp.f32 %v7649_v53 }
0x184b   :  { %14089 = vrcp.f32 %v7652_v28 }
0x184c   :  { %v14082_v21 = vpop.eup %14081 }
0x184d   :  { %v7655_v51 = vpop.xlane.xlu0 %7654  ;;  %v7208_v5 = vmul.f32 %v14082_v21, %v17647_v1 }
0x184f   :  { %v7220_v44 = vpack.c.bf16 %v7208_v5, %v7207_v14 }
0x1850   :  { %v14084_v45 = vpop.eup %14083 }
0x1851   :  { %13478 = vmatmul.mubr.msk.bf16.gmra.mrb[132].mxu0 %vm816_vm4, %v7220_v44  ;;  %v7658_v50 = vpop.xlane.xlu0 %7657  ;;  %v14086_v24 = vpop.eup %14085  ;;  %v7666_v52 = vmul.f32 %v14084_v45, %v17652_v37 }
0x1852   :  { %13505 = vmatprep.mubr.msk.bf16.mxu0 %vm14218_vm0, %v19288_v25  ;;  %v7665_v31 = vmul.f32 %v14086_v24, %v17612_v10  ;;  %14091 = vrcp.f32 %v7658_v50  ;;  %v17785_v50 = vld [vmem:[%s19148_s9 + $0x2] ss:$0 sm:$0xff] }
0x1853   :  { %14093 = vrcp.f32 %v7655_v51 }
0x1854   :  { %v7680_v1 = vpack.c.bf16 %v7666_v52, %v7665_v31  ;;  %v14088_v57 = vpop.eup %14087 }
0x1855   :  { %v7883_v42 = vpop.xlane.xlu0 %7882  ;;  %v14090_v23 = vpop.eup %14089  ;;  %v7667_v37 = vmul.f32 %v14088_v57, %v17657_v36 }
0x1856   :  { %v7668_v15 = vmul.f32 %v14090_v23, %v17622_v38  ;;  %14095 = vrcp.f32 %v7883_v42 }
0x1857   :  { %14097 = vrcp.f32 %v7880_v9 }
0x1858   :  { %v7681_v47 = vpack.c.bf16 %v7668_v15, %v7667_v37 }
0x1859   :  { %13506 = vmatmul.mubr.msk.bf16.vlgmr.msra.gmra.mrb[124].mxu0 %vm816_vm4, %v7680_v1  ;;  %v7889_v27 = vpop.xlane.xlu0 %7888 }
0x185a   :  { %13536 = vmatpush3.bf16.msra.mxu0 %v7924_v3  ;;  %13509 = vmatprep.mubr.msk.bf16.mxu0 %vm14218_vm0, %v19288_v25  ;;  %14099 = vrcp.f32 %v7889_v27 }
0x185b   :  { %13537 = vmatprep.subr.bf16.mxu0 %v19288_v25  ;;  %14101 = vrcp.f32 %v7886_v4 }
0x185c   :  { %v14092_v12 = vpop.eup %14091 }
0x185d   :  { %v7892_v10 = vpop.xlane.xlu0 %7891  ;;  %v14094_v49 = vpop.eup %14093  ;;  %v7670_v36 = vmul.f32 %v14092_v12, %v17667_v26 }
0x185e   :  { %13538 = vmatpush3.bf16.msra.mxu0 %v7926_v17  ;;  %v7669_v59 = vmul.f32 %v14094_v49, %v17662_v29 }
0x185f   :  { %13539 = vmatprep.subr.bf16.mxu0 %v19288_v25 }
0x1860   :  { %v7682_v38 = vpack.c.bf16 %v7670_v36, %v7669_v59  ;;  %v14096_v16 = vpop.eup %14095 }
0x1861   :  { %13510 = vmatmul.mubr.msk.bf16.gmra.mrb[128].mxu0 %vm816_vm4, %v7681_v47  ;;  %v7895_v43 = vpop.xlane.xlu0 %7894  ;;  %v14098_v20 = vpop.eup %14097  ;;  %v7903_v48 = vmul.f32 %v14096_v16, %v17671_v34 }
0x1862   :  { %13513 = vmatprep.mubr.msk.bf16.mxu0 %vm14218_vm0, %v19288_v25  ;;  %v7902_v26 = vmul.f32 %v14098_v20, %v17626_v60  ;;  %14103 = vrcp.f32 %v7895_v43 }
0x1863   :  { %14105 = vrcp.f32 %v7892_v10 }
0x1864   :  { %v7917_v63 = vpack.c.bf16 %v7903_v48, %v7902_v26  ;;  %v14100_v29 = vpop.eup %14099 }
0x1865   :  { %v7928_v39 = vpop.permute.xlu0 %7927  ;;  %v14102_v55 = vpop.eup %14101  ;;  %v7905_v54 = vmul.f32 %v14100_v29, %v17675_v6 }
0x1866   :  { %13540 = vmatpush3.bf16.msra.mxu0 %v7928_v39  ;;  %v7904_v41 = vmul.f32 %v14102_v55, %v17630_v58 }
0x1867   :  { %13585 = vmatprep.subr.bf16.mxu0 %v19288_v25 }
0x1868   :  { %v7918_v35 = vpack.c.bf16 %v7905_v54, %v7904_v41 }
0x1869   :  { %13514 = vmatmul.mubr.msk.bf16.gmra.mrb[132].mxu0 %vm816_vm4, %v7682_v38 }
0x186a   :  { %13541 = vmatprep.mubr.msk.bf16.mxu0 %vm14218_vm0, %v19288_v25 }
0x186c   :  { %v14104_v3 = vpop.eup %14103 }
0x186d   :  { %v14106_v34 = vpop.eup %14105  ;;  %v7907_v60 = vmul.f32 %v14104_v3, %v17681_v11 }
0x186e   :  { %v7906_v22 = vmul.f32 %v14106_v34, %v17677_v62 }
0x1870   :  { %v7919_v7 = vpack.c.bf16 %v7907_v60, %v7906_v22  ;;  %v19386_v22 = vld [vmem:[#allocation22_spill] sm:$0xff] }
0x1871   :  { %13542 = vmatmul.mubr.msk.bf16.vlgmr.msra.gmra.mrb[124].mxu0 %vm816_vm4, %v7917_v63 }
0x1872   :  { %13545 = vmatprep.mubr.msk.bf16.mxu0 %vm14218_vm0, %v19288_v25 }
0x1879   :  { %13546 = vmatmul.mubr.msk.bf16.gmra.mrb[128].mxu0 %vm816_vm4, %v7918_v35 }
0x187a   :  { %13549 = vmatprep.mubr.msk.bf16.mxu0 %vm14218_vm0, %v19288_v25 }
0x1881   :  { %13550 = vmatmul.mubr.msk.bf16.gmra.mrb[132].mxu0 %vm816_vm4, %v7919_v7 }
0x1882   :  { %13593 = vmatprep.mubr.msk.bf16.mxu0 %vm14218_vm0, %v19288_v25 }
0x1944   :  { %v7975_v6 = vpop.f32.mrb[124].mxu0 }
0x1945   :  { %v13543_v58 = vpop.f32.mrb[125].mxu0 }
0x1946   :  { %v7978_v33 = vpop.f32.mrb[126].mxu0 }
0x1947   :  { %v8004_v53 = vpack.c.bf16 %v7978_v33, %v7975_v6  ;;  %v13544_v40 = vpop.f32.mrb[127].mxu0 }
0x1949   :  { %13558 = vmatmul.mubr.msk.bf16.vlgmr.msra.gmra.mrb[80].mxu1 %vm647_vm3, %v8004_v53 }
0x194a   :  { %13561 = vmatprep.mubr.msk.bf16.mxu1 %vm14218_vm0, %v19288_v25 }
0x194c   :  { %v7983_v28 = vpop.f32.mrb[128].mxu0 }
0x194d   :  { %v13547_v11 = vpop.f32.mrb[129].mxu0 }
0x194e   :  { %v7986_v21 = vpop.f32.mrb[130].mxu0 }
0x194f   :  { %v8005_v62 = vpack.c.bf16 %v7986_v21, %v7983_v28  ;;  %v13548_v51 = vpop.f32.mrb[131].mxu0  ;;  %v19387_v28 = vld [vmem:[#allocation18_spill] sm:$0xff]  ;;  %v19388_v21 = vld [vmem:[#allocation17_spill] sm:$0xff] }
0x1951   :  { %13562 = vmatmul.mubr.msk.bf16.gmra.mrb[84].mxu1 %vm647_vm3, %v8005_v62 }
0x1952   :  { %13565 = vmatprep.mubr.msk.bf16.mxu1 %vm14218_vm0, %v19288_v25 }
0x1954   :  { %v7991_v14 = vpop.f32.mrb[132].mxu0 }
0x1955   :  { %v13551_v5 = vpop.f32.mrb[133].mxu0 }
0x1956   :  { %v7994_v44 = vpop.f32.mrb[134].mxu0  ;;  %v19389_v5 = vld [vmem:[#allocation31_spill] sm:$0xff] }
0x1957   :  { %v8006_v45 = vpack.c.bf16 %v7994_v44, %v7991_v14  ;;  %v13552_v9 = vpop.f32.mrb[135].mxu0 }
0x1958   :  { %v19390_v9 = vld [vmem:[#allocation19_spill] sm:$0xff] }
0x1959   :  { %13566 = vmatmul.mubr.msk.bf16.gmra.mrb[88].mxu1 %vm647_vm3, %v8006_v45 }
0x195a   :  { %13573 = vmatprep.mubr.msk.bf16.mxu1 %vm14218_vm0, %v19288_v25 }
0x1a1c   :  { %v8068_v24 = vpop.f32.mrb[80].mxu1 }
0x1a1d   :  { %v8069_v52 = vadd.f32 %v17785_v50, %v8068_v24  ;;  %v13559_v31 = vpop.f32.mrb[81].mxu1 }
0x1a1e   :  { %v8071_v42 = vpop.f32.mrb[82].mxu1 }
0x1a1f   :  { %v8097_v4 = vcombine.high %v8069_v52, %v8069_v52  ;;  %v8104_v1 = vrot.slane %v8069_v52, %v14398_v32  ;;  %v8072_v57 = vadd.f32 %v17785_v50, %v8071_v42  ;;  %v13560_v27 = vpop.f32.mrb[83].mxu1  ;;  %v19391_v42 = vld [vmem:[#allocation30_spill] sm:$0xff] }
0x1a21   :  { %v8111_v23 = vrot.slane %v8097_v4, %v14398_v32  ;;  %v8112_v37 = vcombine.high %v8104_v1, %v8104_v1  ;;  %v8114_v17 = vcombine.high %v8072_v57, %v8072_v57  ;;  %v8121_v10 = vrot.slane %v8072_v57, %v14398_v32 }
0x1a22   :  { %v17793_v47 = vadd.f32 %v8104_v1, %v16952_v61 }
0x1a23   :  { %v8113_v15 = vcombine.high %v8111_v23, %v8111_v23  ;;  %v17796_v12 = vadd.f32 %v8112_v37, %v16971_v2  ;;  %v8128_v43 = vrot.slane %v8114_v17, %v14398_v32  ;;  %v8129_v49 = vcombine.high %v8121_v10, %v8121_v10  ;;  %v19392_v37 = vld [vmem:[#allocation20_spill] sm:$0xff] }
0x1a24   :  { %v8076_v36 = vpop.f32.mrb[84].mxu1  ;;  %v17800_v39 = vadd.f32 %v8111_v23, %v16967_v13  ;;  %v17808_v61 = vadd.f32 %v8121_v10, %v16985_v18  ;;  %v19393_v10 = vld [vmem:[#allocation16_spill] sm:$0xff] }
0x1a25   :  { %v17803_v59 = vadd.f32 %v8113_v15, %v16974_v0  ;;  %v8271_v38 = vcombine.low %v17793_v47, %v17796_v12  ;;  %v8130_v16 = vcombine.high %v8128_v43, %v8128_v43  ;;  %v13563_v20 = vpop.f32.mrb[85].mxu1  ;;  %v17811_v2 = vadd.f32 %v8129_v49, %v16981_v30 }
0x1a26   :  { %v8077_v48 = vadd.f32 %v17785_v50, %v8076_v36  ;;  %v8079_v26 = vpop.f32.mrb[86].mxu1  ;;  %v17815_v13 = vadd.f32 %v8128_v43, %v16977_v8 }
0x1a27   :  { %v17818_v0 = vadd.f32 %v8130_v16, %v16993_v19  ;;  %v8080_v63 = vadd.f32 %v17785_v50, %v8079_v26  ;;  %v13564_v29 = vpop.f32.mrb[87].mxu1  ;;  %v8272_v55 = vcombine.low %v17800_v39, %v17803_v59  ;;  %v8288_v18 = vcombine.low %v17808_v61, %v17811_v2 }
0x1a28   :  { %v8131_v30 = vcombine.high %v8077_v48, %v8077_v48  ;;  %v8138_v54 = vrot.slane %v8077_v48, %v14398_v32  ;;  %v8279_v41 = vrot.slane %v8271_v38, %v14398_v32 }
0x1a29   :  { %v8148_v35 = vcombine.high %v8080_v63, %v8080_v63  ;;  %v8155_v8 = vrot.slane %v8080_v63, %v14398_v32  ;;  %v8286_v19 = vrot.slane %v8272_v55, %v14398_v32  ;;  %v8289_v3 = vcombine.low %v17815_v13, %v17818_v0 }
0x1a2a   :  { %v8145_v34 = vrot.slane %v8131_v30, %v14398_v32  ;;  %v8146_v60 = vcombine.high %v8138_v54, %v8138_v54  ;;  %v17833_v7 = vadd.f32 %v8138_v54, %v19386_v22  ;;  %v8296_v53 = vrot.slane %v8288_v18, %v14398_v32 }
0x1a2b   :  { %v8162_v6 = vrot.slane %v8148_v35, %v14398_v32  ;;  %v8163_v58 = vcombine.high %v8155_v8, %v8155_v8  ;;  %v8287_v33 = vcombine.low %v8279_v41, %v8286_v19  ;;  %v17841_v62 = vadd.f32 %v8155_v8, %v19388_v21  ;;  %v19394_v41 = vld [vmem:[#allocation32_spill] sm:$0xff]  ;;  %v19395_v8 = vld [vmem:[#allocation34_spill] sm:$0xff] }
0x1a2c   :  { %v8147_v40 = vcombine.high %v8145_v34, %v8145_v34  ;;  %v17838_v11 = vadd.f32 %v8146_v60, %v19387_v28  ;;  %v8084_v51 = vpop.f32.mrb[88].mxu1  ;;  %v8303_v14 = vrot.slane %v8289_v3, %v14398_v32  ;;  %v17845_v44 = vadd.f32 %v8145_v34, %v19389_v5  ;;  %v19398_v21 = vld [vmem:[#allocation36_spill] sm:$0xff]  ;;  %v19399_v5 = vld [vmem:[#allocation35_spill] sm:$0xff] }
0x1a2d   :  { %v8164_v45 = vcombine.high %v8162_v6, %v8162_v6  ;;  %v17848_v24 = vadd.f32 %v8163_v58, %v19390_v9  ;;  %v8085_v52 = vadd.f32 %v17785_v50, %v8084_v51  ;;  %v13567_v31 = vpop.f32.mrb[89].mxu1  ;;  %v8379_v57 = vsel %vm647_vm3, %v8287_v33, 0.0  ;;  %v19396_v58 = vld [vmem:[#allocation33_spill] sm:$0xff] }
0x1a2e   :  { %v17852_v4 = vadd.f32 %v8147_v40, %v19391_v42  ;;  %v8305_v1 = vcombine.low %v17833_v7, %v17838_v11  ;;  %v8087_v27 = vpop.f32.mrb[90].mxu1  ;;  %v8304_v23 = vcombine.low %v8296_v53, %v8303_v14  ;;  %v17858_v17 = vadd.f32 %v8162_v6, %v19392_v37  ;;  %8380 = vadd.xlane.f32.xlu0 %v8379_v57  ;;  %v19397_v53 = vld [vmem:[#allocation37_spill] sm:$0xff]  ;;  %v19400_v42 = vld [vmem:[#allocation39_spill] sm:$0xff]  ;;  %v19401_v57 = vld [vmem:[#allocation38_spill] sm:$0xff] }
0x1a2f   :  { %v17861_v15 = vadd.f32 %v8164_v45, %v19393_v10  ;;  %v8165_v43 = vcombine.high %v8085_v52, %v8085_v52  ;;  %v8172_v49 = vrot.slane %v8085_v52, %v14398_v32  ;;  %v13568_v36 = vpop.f32.mrb[91].mxu1  ;;  %v8322_v38 = vcombine.low %v17841_v62, %v17848_v24 }
0x1a30   :  { %v8088_v16 = vadd.f32 %v17785_v50, %v8087_v27  ;;  %v8382_v20 = vsel %vm647_vm3, %v8304_v23, 0.0  ;;  %v8306_v48 = vcombine.low %v17845_v44, %v17852_v4  ;;  %v8313_v30 = vrot.slane %v8305_v1, %v14398_v32 }
0x1a31   :  { %v8179_v26 = vrot.slane %v8165_v43, %v14398_v32  ;;  %v8180_v63 = vcombine.high %v8172_v49, %v8172_v49  ;;  %8383 = vadd.xlane.f32.xlu1 %v8382_v20  ;;  %v8323_v29 = vcombine.low %v17858_v17, %v17861_v15  ;;  %v17877_v35 = vadd.f32 %v8172_v49, %v19394_v41  ;;  %v19404_v41 = vld [vmem:[#allocation14_spill] sm:$0xff] }
0x1a32   :  { %v8182_v55 = vcombine.high %v8088_v16, %v8088_v16  ;;  %v8189_v18 = vrot.slane %v8088_v16, %v14398_v32  ;;  %v8320_v54 = vrot.slane %v8306_v48, %v14398_v32  ;;  %v8330_v6 = vrot.slane %v8322_v38, %v14398_v32 }
0x1a33   :  { %v8181_v50 = vcombine.high %v8179_v26, %v8179_v26  ;;  %v17880_v19 = vadd.f32 %v8180_v63, %v19395_v8  ;;  %v8337_v3 = vrot.slane %v8323_v29, %v14398_v32  ;;  %v17886_v33 = vadd.f32 %v8179_v26, %v19396_v58 }
0x1a34   :  { %v8196_v34 = vrot.slane %v8182_v55, %v14398_v32  ;;  %v8197_v60 = vcombine.high %v8189_v18, %v8189_v18  ;;  %v8321_v22 = vcombine.low %v8313_v30, %v8320_v54  ;;  %v17894_v51 = vadd.f32 %v8189_v18, %v19398_v21  ;;  %v19402_v18 = vld [vmem:[#allocation11_spill] sm:$0xff]  ;;  %v19403_v54 = vld [vmem:[#allocation10_spill] sm:$0xff] }
0x1a35   :  { %v17889_v40 = vadd.f32 %v8181_v50, %v19397_v53  ;;  %v8339_v28 = vcombine.low %v17877_v35, %v17880_v19  ;;  %v8338_v52 = vcombine.low %v8330_v6, %v8337_v3  ;;  %v19405_v3 = vld [vmem:[#allocation12_spill] sm:$0xff] }
0x1a36   :  { %v8198_v14 = vcombine.high %v8196_v34, %v8196_v34  ;;  %v17897_v45 = vadd.f32 %v8197_v60, %v19399_v5  ;;  %v8385_v9 = vsel %vm647_vm3, %v8321_v22, 0.0  ;;  %v17903_v1 = vadd.f32 %v8196_v34, %v19400_v42 }
0x1a37   :  { %8386 = vadd.xlane.f32.xlu0 %v8385_v9  ;;  %v8340_v31 = vcombine.low %v17886_v33, %v17889_v40  ;;  %v8347_v37 = vrot.slane %v8339_v28, %v14398_v32  ;;  %v8388_v43 = vsel %vm647_vm3, %v8338_v52, 0.0 }
0x1a38   :  { %v17906_v27 = vadd.f32 %v8198_v14, %v19401_v57  ;;  %v8356_v23 = vcombine.low %v17894_v51, %v17897_v45 }
0x1a39   :  { %v8354_v10 = vrot.slane %v8340_v31, %v14398_v32 }
0x1a3a   :  { %v8357_v49 = vcombine.low %v17903_v1, %v17906_v27  ;;  %v8364_v38 = vrot.slane %v8356_v23, %v14398_v32 }
0x1a3b   :  { %8389 = vadd.xlane.f32.xlu0 %v8388_v43  ;;  %v8355_v36 = vcombine.low %v8347_v37, %v8354_v10 }
0x1a3c   :  { %v8371_v16 = vrot.slane %v8357_v49, %v14398_v32 }
0x1a3d   :  { %v8391_v20 = vsel %vm647_vm3, %v8355_v36, 0.0 }
0x1a3e   :  { %v8372_v48 = vcombine.low %v8364_v38, %v8371_v16 }
0x1a3f   :  { %8392 = vadd.xlane.f32.xlu0 %v8391_v20 }
0x1a40   :  { %v8394_v26 = vsel %vm647_vm3, %v8372_v48, 0.0 }
0x1a41   :  { %8395 = vadd.xlane.f32.xlu1 %v8394_v26 }
0x1abb   :  { %v8381_v63 = vpop.xlane.xlu0 %8380 }
0x1abc   :  { %v8397_v29 = vmul.f32 0.03125, %v8381_v63 }
0x1abe   :  { %v8384_v55 = vpop.xlane.xlu1 %8383  ;;  %v8415_v30 = vrot.slane %v8397_v29, %v19402_v18  ;;  %v8422_v50 = vrot.slane %v8397_v29, %v19403_v54  ;;  %v8429_v8 = vrot.slane %v8397_v29, %v19404_v41  ;;  %v8436_v34 = vrot.slane %v8397_v29, %v19405_v3 }
0x1abf   :  { %v8398_v60 = vmul.f32 0.03125, %v8384_v55 }
0x1ac0   :  { %v17924_v22 = vsub.f32 %v17793_v47, %v8415_v30  ;;  %v17927_v6 = vsub.f32 %v17796_v12, %v8422_v50  ;;  %v17930_v58 = vsub.f32 %v17800_v39, %v8429_v8  ;;  %v17933_v53 = vsub.f32 %v17803_v59, %v8436_v34 }
0x1ac1   :  { %v8443_v28 = vrot.slane %v8398_v60, %v19402_v18  ;;  %v8450_v21 = vrot.slane %v8398_v60, %v19403_v54  ;;  %v8457_v14 = vrot.slane %v8398_v60, %v19404_v41  ;;  %v8464_v5 = vrot.slane %v8398_v60, %v19405_v3 }
0x1ac2   :  { %v8625_v47 = vmul.f32 %v17924_v22, %v17924_v22  ;;  %v8626_v12 = vmul.f32 %v17927_v6, %v17927_v6  ;;  %v8627_v39 = vmul.f32 %v17930_v58, %v17930_v58  ;;  %v8628_v59 = vmul.f32 %v17933_v53, %v17933_v53 }
0x1ac3   :  { %v17948_v9 = vsub.f32 %v17808_v61, %v8443_v28  ;;  %v17951_v52 = vsub.f32 %v17811_v2, %v8450_v21  ;;  %v17954_v31 = vsub.f32 %v17815_v13, %v8457_v14  ;;  %v17957_v42 = vsub.f32 %v17818_v0, %v8464_v5 }
0x1ac4   :  { %v8387_v57 = vpop.xlane.xlu0 %8386  ;;  %v8673_v37 = vcombine.low %v8625_v47, %v8626_v12  ;;  %v8674_v10 = vcombine.low %v8627_v39, %v8628_v59 }
0x1ac5   :  { %v8399_v23 = vmul.f32 0.03125, %v8387_v57  ;;  %v8629_v43 = vmul.f32 %v17948_v9, %v17948_v9  ;;  %v8630_v61 = vmul.f32 %v17951_v52, %v17951_v52  ;;  %v8631_v2 = vmul.f32 %v17954_v31, %v17954_v31 }
0x1ac6   :  { %v8632_v13 = vmul.f32 %v17957_v42, %v17957_v42  ;;  %v8681_v20 = vrot.slane %v8673_v37, %v14398_v32  ;;  %v8688_v48 = vrot.slane %v8674_v10, %v14398_v32 }
0x1ac7   :  { %v8471_v49 = vrot.slane %v8399_v23, %v19402_v18  ;;  %v8478_v0 = vrot.slane %v8399_v23, %v19403_v54  ;;  %v8485_v36 = vrot.slane %v8399_v23, %v19404_v41  ;;  %v8492_v38 = vrot.slane %v8399_v23, %v19405_v3 }
0x1ac8   :  { %v8390_v16 = vpop.xlane.xlu0 %8389  ;;  %v8690_v26 = vcombine.low %v8629_v43, %v8630_v61  ;;  %v8691_v63 = vcombine.low %v8631_v2, %v8632_v13  ;;  %v8689_v34 = vcombine.low %v8681_v20, %v8688_v48 }
0x1ac9   :  { %v17974_v29 = vsub.f32 %v17833_v7, %v8471_v49  ;;  %v17977_v55 = vsub.f32 %v17838_v11, %v8478_v0  ;;  %v17980_v30 = vsub.f32 %v17845_v44, %v8485_v36  ;;  %v17983_v50 = vsub.f32 %v17852_v4, %v8492_v38 }
0x1aca   :  { %v8400_v8 = vmul.f32 0.03125, %v8390_v16  ;;  %v8698_v60 = vrot.slane %v8690_v26, %v14398_v32  ;;  %v8705_v28 = vrot.slane %v8691_v63, %v14398_v32  ;;  %v8781_v39 = vsel %vm647_vm3, %v8689_v34, 0.0 }
0x1acb   :  { %v8633_v21 = vmul.f32 %v17974_v29, %v17974_v29  ;;  %v8634_v7 = vmul.f32 %v17977_v55, %v17977_v55  ;;  %v8635_v11 = vmul.f32 %v17980_v30, %v17980_v30  ;;  %v8636_v44 = vmul.f32 %v17983_v50, %v17983_v50  ;;  %8782 = vadd.xlane.f32.xlu0 %v8781_v39 }
0x1acc   :  { %v8499_v4 = vrot.slane %v8400_v8, %v19402_v18  ;;  %v8506_v14 = vrot.slane %v8400_v8, %v19403_v54  ;;  %v8513_v5 = vrot.slane %v8400_v8, %v19404_v41  ;;  %v8520_v47 = vrot.slane %v8400_v8, %v19405_v3  ;;  %v8393_v12 = vpop.xlane.xlu0 %8392 }
0x1acd   :  { %v8401_v59 = vmul.f32 0.03125, %v8393_v12  ;;  %v8706_v57 = vcombine.low %v8698_v60, %v8705_v28  ;;  %v8707_v23 = vcombine.low %v8633_v21, %v8634_v7  ;;  %v8708_v38 = vcombine.low %v8635_v11, %v8636_v44 }
0x1ace   :  { %v18001_v37 = vsub.f32 %v17841_v62, %v8499_v4  ;;  %v18004_v10 = vsub.f32 %v17848_v24, %v8506_v14  ;;  %v18007_v43 = vsub.f32 %v17858_v17, %v8513_v5  ;;  %v18010_v61 = vsub.f32 %v17861_v15, %v8520_v47  ;;  %v8396_v2 = vpop.xlane.xlu1 %8395 }
0x1acf   :  { %v8527_v13 = vrot.slane %v8401_v59, %v19402_v18  ;;  %v8534_v49 = vrot.slane %v8401_v59, %v19403_v54  ;;  %v8541_v0 = vrot.slane %v8401_v59, %v19404_v41  ;;  %v8548_v62 = vrot.slane %v8401_v59, %v19405_v3 }
0x1ad0   :  { %v8784_v36 = vsel %vm647_vm3, %v8706_v57, 0.0  ;;  %v8402_v24 = vmul.f32 0.03125, %v8396_v2  ;;  %v8715_v17 = vrot.slane %v8707_v23, %v14398_v32  ;;  %v8640_v44 = vmul.f32 %v18010_v61, %v18010_v61 }
0x1ad1   :  { %v18019_v16 = vsub.f32 %v17877_v35, %v8527_v13  ;;  %v18022_v15 = vsub.f32 %v17880_v19, %v8534_v49  ;;  %v18025_v20 = vsub.f32 %v17886_v33, %v8541_v0  ;;  %v18028_v48 = vsub.f32 %v17889_v40, %v8548_v62  ;;  %8785 = vadd.xlane.f32.xlu1 %v8784_v36 }
0x1ad2   :  { %v8555_v26 = vrot.slane %v8402_v24, %v19402_v18  ;;  %v8562_v63 = vrot.slane %v8402_v24, %v19403_v54  ;;  %v8569_v8 = vrot.slane %v8402_v24, %v19404_v41  ;;  %v8576_v34 = vrot.slane %v8402_v24, %v19405_v3 }
0x1ad3   :  { %v8722_v35 = vrot.slane %v8708_v38, %v14398_v32  ;;  %v8637_v19 = vmul.f32 %v18001_v37, %v18001_v37  ;;  %v8638_v33 = vmul.f32 %v18004_v10, %v18004_v10  ;;  %v8639_v40 = vmul.f32 %v18007_v43, %v18007_v43 }
0x1ad4   :  { %v18042_v60 = vsub.f32 %v17894_v51, %v8555_v26  ;;  %v18045_v28 = vsub.f32 %v17897_v45, %v8562_v63  ;;  %v18048_v21 = vsub.f32 %v17903_v1, %v8569_v8  ;;  %v18051_v7 = vsub.f32 %v17906_v27, %v8576_v34 }
0x1ad5   :  { %v8723_v11 = vcombine.low %v8715_v17, %v8722_v35  ;;  %v8724_v4 = vcombine.low %v8637_v19, %v8638_v33  ;;  %v8641_v14 = vmul.f32 %v18019_v16, %v18019_v16  ;;  %v8642_v51 = vmul.f32 %v18022_v15, %v18022_v15  ;;  %v13833_v19 = vld [vmem:[%s19151_s12 + $0x20] sm:$0xff]   ;;  %v13834_v33 = vld [vmem:[%s19151_s12 + $0x28] sm:$0xff]  }
0x1ad6   :  { %v8643_v45 = vmul.f32 %v18025_v20, %v18025_v20  ;;  %v8644_v1 = vmul.f32 %v18028_v48, %v18028_v48  ;;  %v8645_v27 = vmul.f32 %v18042_v60, %v18042_v60  ;;  %v8725_v47 = vcombine.low %v8639_v40, %v8640_v44  ;;  %13570 = vmatpush3.bf16.msra.mxu1 %v13833_v19  ;;  %v13835_v40 = vld [vmem:[%s19153_s14 + $0x40] sm:$0xff]  }
0x1ad7   :  { %v8787_v5 = vsel %vm647_vm3, %v8723_v11, 0.0  ;;  %v8732_v12 = vrot.slane %v8724_v4, %v14398_v32  ;;  %v8646_v39 = vmul.f32 %v18045_v28, %v18045_v28  ;;  %v8741_v59 = vcombine.low %v8641_v14, %v8642_v51  ;;  %13571 = vmatprep.subr.bf16.mxu1 %v19288_v25  ;;  %13586 = vmatpush3.bf16.msra.mxu0 %v13835_v40  ;;  %v13836_v11 = vld [vmem:[%s19153_s14 + $0x48] sm:$0xff]  }
0x1ad8   :  { %8788 = vadd.xlane.f32.xlu0 %v8787_v5  ;;  %v8742_v57 = vcombine.low %v8643_v45, %v8644_v1  ;;  %v8647_v23 = vmul.f32 %v18048_v21, %v18048_v21  ;;  %v8648_v2 = vmul.f32 %v18051_v7, %v18051_v7  ;;  %v8739_v13 = vrot.slane %v8725_v47, %v14398_v32  ;;  %v12812_v5 = vld [vmem:[%s19150_s11 + $0x2] ss:$0 sm:$0xff] }
0x1ad9   :  { %v8758_v49 = vcombine.low %v8645_v27, %v8646_v39  ;;  %v8749_v0 = vrot.slane %v8741_v59, %v14398_v32  ;;  %13587 = vmatprep.subr.bf16.mxu0 %v19288_v25  ;;  %v12811_v27 = vld [vmem:[%s19149_s10 + $0x2] ss:$0 sm:$0xff] }
0x1ada   :  { %v8756_v62 = vrot.slane %v8742_v57, %v14398_v32  ;;  %v8759_v36 = vcombine.low %v8647_v23, %v8648_v2  ;;  %v8740_v24 = vcombine.low %v8732_v12, %v8739_v13  ;;  %13572 = vmatpush3.bf16.msra.mxu1 %v13834_v33  ;;  %v9044_v47 = vcombine.high %v12811_v27, %v12811_v27 }
0x1adb   :  { %v8766_v38 = vrot.slane %v8758_v49, %v14398_v32  ;;  %13605 = vmatprep.subr.bf16.mxu1 %v19288_v25  ;;  %13588 = vmatpush3.bf16.msra.mxu0 %v13836_v11  ;;  %v9094_v12 = vcombine.high %v12812_v5, %v12812_v5  ;;  %v18104_v57 = vrot.slane %v12811_v27, %v14398_v32 }
0x1adc   :  { %v8757_v17 = vcombine.low %v8749_v0, %v8756_v62  ;;  %v8773_v26 = vrot.slane %v8759_v36, %v14398_v32  ;;  %v8790_v63 = vsel %vm647_vm3, %v8740_v24, 0.0  ;;  %13589 = vmatprep.subr.bf16.mxu0 %v19288_v25  ;;  %v18107_v2 = vrot.slane %v9044_v47, %v14398_v32 }
0x1add   :  { %8791 = vadd.xlane.f32.xlu1 %v8790_v63  ;;  %v18110_v13 = vrot.slane %v12812_v5, %v14398_v32  ;;  %v18113_v49 = vrot.slane %v9094_v12, %v14398_v32  ;;  %v18117_v62 = vcombine.high %v18104_v57, %v18104_v57 }
0x1ade   :  { %v8793_v8 = vsel %vm647_vm3, %v8757_v17, 0.0  ;;  %v8774_v34 = vcombine.low %v8766_v38, %v8773_v26 }
0x1adf   :  { %8794 = vadd.xlane.f32.xlu0 %v8793_v8  ;;  %v18133_v19 = vcombine.high %v18113_v49, %v18113_v49 }
0x1ae0   :  { %v8796_v35 = vsel %vm647_vm3, %v8774_v34, 0.0  ;;  %v18125_v34 = vcombine.high %v18107_v2, %v18107_v2 }
0x1ae1   :  { %8797 = vadd.xlane.f32.xlu1 %v8796_v35  ;;  %v18129_v35 = vcombine.high %v18110_v13, %v18110_v13 }
0x1b58   :  { %v8783_v44 = vpop.xlane.xlu0 %8782 }
0x1b59   :  { %v8799_v4 = vmul.f32 0.03125, %v8783_v44 }
0x1b5b   :  { %v8805_v14 = vadd.f32 1e-05, %v8799_v4 }
0x1b5d   :  { %14107 = vrsqrt.f32 %v8805_v14 }
0x1b5e   :  { %v8786_v51 = vpop.xlane.xlu1 %8785 }
0x1b5f   :  { %v8800_v45 = vmul.f32 0.03125, %v8786_v51 }
0x1b61   :  { %v8806_v1 = vadd.f32 1e-05, %v8800_v45 }
0x1b63   :  { %14109 = vrsqrt.f32 %v8806_v1 }
0x1b65   :  { %v8789_v39 = vpop.xlane.xlu0 %8788 }
0x1b66   :  { %v8801_v59 = vmul.f32 0.03125, %v8789_v39 }
0x1b67   :  { %v14108_v0 = vpop.eup %14107 }
0x1b68   :  { %v8807_v23 = vadd.f32 1e-05, %v8801_v59  ;;  %v8829_v24 = vrot.slane %v14108_v0, %v19402_v18  ;;  %v8836_v38 = vrot.slane %v14108_v0, %v19403_v54  ;;  %v8843_v17 = vrot.slane %v14108_v0, %v19404_v41 }
0x1b69   :  { %v8850_v26 = vrot.slane %v14108_v0, %v19405_v3 }
0x1b6a   :  { %14111 = vrsqrt.f32 %v8807_v23  ;;  %v8792_v36 = vpop.xlane.xlu1 %8791  ;;  %v9015_v11 = vmul.f32 %v8829_v24, %v17924_v22  ;;  %v9016_v44 = vmul.f32 %v8836_v38, %v17927_v6  ;;  %v9017_v4 = vmul.f32 %v8843_v17, %v17930_v58 }
0x1b6b   :  { %v8802_v63 = vmul.f32 0.03125, %v8792_v36  ;;  %v9018_v12 = vmul.f32 %v8850_v26, %v17933_v53 }
0x1b6c   :  { %v8795_v8 = vpop.xlane.xlu0 %8794  ;;  %v9065_v39 = vmul.f32 %v18104_v57, %v9015_v11  ;;  %v9066_v0 = vmul.f32 %v18117_v62, %v9016_v44  ;;  %v9067_v24 = vmul.f32 %v18107_v2, %v9017_v4 }
0x1b6d   :  { %v14110_v33 = vpop.eup %14109  ;;  %v8803_v40 = vmul.f32 0.03125, %v8795_v8  ;;  %v8808_v14 = vadd.f32 1e-05, %v8802_v63  ;;  %v9068_v53 = vmul.f32 %v18125_v34, %v9018_v12 }
0x1b6e   :  { %v8857_v51 = vrot.slane %v14110_v33, %v19402_v18  ;;  %v8864_v45 = vrot.slane %v14110_v33, %v19403_v54  ;;  %v8871_v1 = vrot.slane %v14110_v33, %v19404_v41  ;;  %v8798_v5 = vpop.xlane.xlu1 %8797  ;;  %v8878_v47 = vrot.slane %v14110_v33, %v19405_v3 }
0x1b6f   :  { %v8809_v27 = vadd.f32 1e-05, %v8803_v40  ;;  %14113 = vrsqrt.f32 %v8808_v14  ;;  %v8804_v22 = vmul.f32 0.03125, %v8798_v5  ;;  %v18156_v26 = vadd.f32 %v18110_v13, %v9065_v39 }
0x1b70   :  { %v9019_v6 = vmul.f32 %v8857_v51, %v17948_v9  ;;  %v9020_v58 = vmul.f32 %v8864_v45, %v17951_v52  ;;  %v9021_v59 = vmul.f32 %v8871_v1, %v17954_v31  ;;  %v9022_v23 = vmul.f32 %v8878_v47, %v17957_v42 }
0x1b71   :  { %14115 = vrsqrt.f32 %v8809_v27  ;;  %v8810_v36 = vadd.f32 1e-05, %v8804_v22  ;;  %v18159_v42 = vadd.f32 %v18129_v35, %v9066_v0  ;;  %v18162_v63 = vadd.f32 %v18113_v49, %v9067_v24 }
0x1b72   :  { %v9069_v38 = vmul.f32 %v18104_v57, %v9019_v6  ;;  %v9070_v17 = vmul.f32 %v18117_v62, %v9020_v58  ;;  %v9071_v9 = vmul.f32 %v18107_v2, %v9021_v59  ;;  %v9072_v52 = vmul.f32 %v18125_v34, %v9022_v23 }
0x1b73   :  { %14117 = vrsqrt.f32 %v8810_v36  ;;  %v18165_v8 = vadd.f32 %v18133_v19, %v9068_v53  ;;  %v9163_v4 = vcombine.low %v18156_v26, %v18159_v42 }
0x1b74   :  { %v14112_v31 = vpop.eup %14111  ;;  %v18168_v33 = vadd.f32 %v18110_v13, %v9069_v38  ;;  %v18171_v40 = vadd.f32 %v18129_v35, %v9070_v17  ;;  %v18174_v11 = vadd.f32 %v18113_v49, %v9071_v9  ;;  %v18177_v44 = vadd.f32 %v18133_v19, %v9072_v52 }
0x1b75   :  { %v9164_v14 = vcombine.low %v18162_v63, %v18165_v8  ;;  %v8885_v51 = vrot.slane %v14112_v31, %v19402_v18  ;;  %v8892_v45 = vrot.slane %v14112_v31, %v19403_v54  ;;  %v8899_v5 = vrot.slane %v14112_v31, %v19404_v41 }
0x1b76   :  { %v9180_v1 = vcombine.low %v18168_v33, %v18171_v40  ;;  %v9181_v27 = vcombine.low %v18174_v11, %v18177_v44  ;;  %v8906_v47 = vrot.slane %v14112_v31, %v19405_v3  ;;  %v9171_v12 = vrot.slane %v9163_v4, %v14398_v32 }
0x1b77   :  { %v9178_v39 = vrot.slane %v9164_v14, %v14398_v32  ;;  %v9023_v22 = vmul.f32 %v8885_v51, %v17974_v29  ;;  %v9024_v6 = vmul.f32 %v8892_v45, %v17977_v55  ;;  %v9025_v23 = vmul.f32 %v8899_v5, %v17980_v30 }
0x1b78   :  { %v9188_v58 = vrot.slane %v9180_v1, %v14398_v32  ;;  %v9195_v59 = vrot.slane %v9181_v27, %v14398_v32  ;;  %v9026_v0 = vmul.f32 %v8906_v47, %v17983_v50 }
0x1b79   :  { %v14114_v36 = vpop.eup %14113  ;;  %v9179_v24 = vcombine.low %v9171_v12, %v9178_v39  ;;  %v9073_v53 = vmul.f32 %v18104_v57, %v9023_v22  ;;  %v9074_v38 = vmul.f32 %v18117_v62, %v9024_v6  ;;  %v9075_v30 = vmul.f32 %v18107_v2, %v9025_v23 }
0x1b7a   :  { %v9196_v9 = vcombine.low %v9188_v58, %v9195_v59  ;;  %v8913_v29 = vrot.slane %v14114_v36, %v19402_v18  ;;  %v8920_v55 = vrot.slane %v14114_v36, %v19403_v54  ;;  %v8927_v52 = vrot.slane %v14114_v36, %v19404_v41 }
0x1b7b   :  { %v14116_v17 = vpop.eup %14115  ;;  %v8934_v31 = vrot.slane %v14114_v36, %v19405_v3  ;;  %v9076_v50 = vmul.f32 %v18125_v34, %v9026_v0  ;;  %v18208_v4 = vadd.f32 %v18110_v13, %v9073_v53  ;;  %v18215_v47 = vadd.f32 %v18129_v35, %v9074_v38 }
0x1b7c   :  { %v9271_v14 = vpack.c.bf16 %v9196_v9, %v9179_v24  ;;  %v9027_v51 = vmul.f32 %v8913_v29, %v18001_v37  ;;  %v9028_v45 = vmul.f32 %v8920_v55, %v18004_v10  ;;  %v9029_v1 = vmul.f32 %v8927_v52, %v18007_v43 }
0x1b7d   :  { %v14118_v27 = vpop.eup %14117  ;;  %v9030_v5 = vmul.f32 %v8934_v31, %v18010_v61  ;;  %v18218_v12 = vadd.f32 %v18113_v49, %v9075_v30  ;;  %v18221_v39 = vadd.f32 %v18133_v19, %v9076_v50  ;;  %v8941_v22 = vrot.slane %v14116_v17, %v19402_v18 }
0x1b7e   :  { %13574 = vmatmul.mubr.msk.bf16.vlgmr.msra.gmra.mrb[92].mxu1 %vm647_vm3, %v9271_v14  ;;  %v9077_v37 = vmul.f32 %v18104_v57, %v9027_v51  ;;  %v9078_v10 = vmul.f32 %v18117_v62, %v9028_v45  ;;  %v9079_v43 = vmul.f32 %v18107_v2, %v9029_v1  ;;  %v9197_v6 = vcombine.low %v18208_v4, %v18215_v47 }
0x1b7f   :  { %13577 = vmatprep.mubr.msk.bf16.mxu1 %vm14218_vm0, %v19288_v25  ;;  %v9080_v61 = vmul.f32 %v18125_v34, %v9030_v5  ;;  %v9198_v58 = vcombine.low %v18218_v12, %v18221_v39  ;;  %v8948_v59 = vrot.slane %v14116_v17, %v19403_v54  ;;  %v8955_v24 = vrot.slane %v14116_v17, %v19404_v41 }
0x1b80   :  { %v18237_v23 = vadd.f32 %v18110_v13, %v9077_v37  ;;  %v18240_v0 = vadd.f32 %v18129_v35, %v9078_v10  ;;  %v18243_v36 = vadd.f32 %v18113_v49, %v9079_v43  ;;  %v9205_v38 = vrot.slane %v9197_v6, %v14398_v32 }
0x1b81   :  { %v18247_v53 = vadd.f32 %v18133_v19, %v9080_v61  ;;  %v9212_v9 = vrot.slane %v9198_v58, %v14398_v32  ;;  %v8962_v29 = vrot.slane %v14116_v17, %v19405_v3  ;;  %v8969_v52 = vrot.slane %v14118_v27, %v19402_v18 }
0x1b82   :  { %v9214_v55 = vcombine.low %v18237_v23, %v18240_v0  ;;  %v8976_v31 = vrot.slane %v14118_v27, %v19403_v54  ;;  %v8983_v30 = vrot.slane %v14118_v27, %v19404_v41  ;;  %v8990_v51 = vrot.slane %v14118_v27, %v19405_v3 }
0x1b83   :  { %v9213_v50 = vcombine.low %v9205_v38, %v9212_v9  ;;  %v9215_v14 = vcombine.low %v18243_v36, %v18247_v53  ;;  %v9031_v45 = vmul.f32 %v8941_v22, %v18019_v16  ;;  %v9032_v17 = vmul.f32 %v8948_v59, %v18022_v15 }
0x1b84   :  { %v9222_v1 = vrot.slane %v9214_v55, %v14398_v32  ;;  %v9033_v5 = vmul.f32 %v8955_v24, %v18025_v20  ;;  %v9034_v37 = vmul.f32 %v8962_v29, %v18028_v48  ;;  %v9035_v43 = vmul.f32 %v8969_v52, %v18042_v60 }
0x1b85   :  { %v9229_v10 = vrot.slane %v9215_v14, %v14398_v32  ;;  %v9036_v61 = vmul.f32 %v8976_v31, %v18045_v28  ;;  %v9037_v6 = vmul.f32 %v8983_v30, %v18048_v21  ;;  %v9038_v27 = vmul.f32 %v8990_v51, %v18051_v7  ;;  %v13837_v51 = vld [vmem:[%s19153_s14 + $0x50] sm:$0xff]  }
0x1b86   :  { %v9081_v16 = vmul.f32 %v18104_v57, %v9031_v45  ;;  %v9082_v22 = vmul.f32 %v18117_v62, %v9032_v17  ;;  %v9083_v15 = vmul.f32 %v18107_v2, %v9033_v5  ;;  %v9084_v20 = vmul.f32 %v18125_v34, %v9034_v37  ;;  %13590 = vmatpush3.bf16.msra.mxu0 %v13837_v51  ;;  %v13838_v45 = vld [vmem:[%s19153_s14 + $0x58] sm:$0xff]  }
0x1b87   :  { %v9230_v58 = vcombine.low %v9222_v1, %v9229_v10  ;;  %v9085_v48 = vmul.f32 %v18104_v57, %v9035_v43  ;;  %v9086_v59 = vmul.f32 %v18117_v62, %v9036_v61  ;;  %v9087_v60 = vmul.f32 %v18107_v2, %v9037_v6  ;;  %13591 = vmatprep.subr.bf16.mxu0 %v19288_v25  ;;  %v12813_v1 = vld [vmem:[%s19152_s13 + $0x2] ss:$0 sm:$0xff] }
0x1b88   :  { %v9088_v28 = vmul.f32 %v18125_v34, %v9038_v27  ;;  %v18279_v21 = vadd.f32 %v18110_v13, %v9081_v16  ;;  %v18282_v7 = vadd.f32 %v18129_v35, %v9082_v22  ;;  %v18285_v38 = vadd.f32 %v18113_v49, %v9083_v15 }
0x1b89   :  { %v9272_v24 = vpack.c.bf16 %v9230_v58, %v9213_v50  ;;  %v18288_v9 = vadd.f32 %v18133_v19, %v9084_v20  ;;  %v18291_v57 = vadd.f32 %v18110_v13, %v9085_v48  ;;  %v18294_v2 = vadd.f32 %v18129_v35, %v9086_v59 }
0x1b8a   :  { %v18297_v62 = vadd.f32 %v18113_v49, %v9087_v60  ;;  %v18300_v34 = vadd.f32 %v18133_v19, %v9088_v28  ;;  %v9231_v29 = vcombine.low %v18279_v21, %v18282_v7  ;;  %13592 = vmatpush3.bf16.msra.mxu0 %v13838_v45 }
0x1b8b   :  { %13578 = vmatmul.mubr.msk.bf16.gmra.mrb[96].mxu1 %vm647_vm3, %v9272_v24  ;;  %v9232_v55 = vcombine.low %v18285_v38, %v18288_v9  ;;  %v9248_v49 = vcombine.low %v18291_v57, %v18294_v2  ;;  %13625 = vmatprep.subr.bf16.mxu0 %v19288_v25 }
0x1b8c   :  { %13581 = vmatprep.mubr.msk.bf16.mxu1 %vm14218_vm0, %v19288_v25  ;;  %v9239_v13 = vrot.slane %v9231_v29, %v14398_v32  ;;  %v9249_v35 = vcombine.low %v18297_v62, %v18300_v34 }
0x1b8d   :  { %v9246_v19 = vrot.slane %v9232_v55, %v14398_v32  ;;  %v9256_v52 = vrot.slane %v9248_v49, %v14398_v32 }
0x1b8e   :  { %v9263_v31 = vrot.slane %v9249_v35, %v14398_v32 }
0x1b8f   :  { %v9247_v30 = vcombine.low %v9239_v13, %v9246_v19 }
0x1b90   :  { %v9264_v50 = vcombine.low %v9256_v52, %v9263_v31 }
0x1b92   :  { %v9273_v14 = vpack.c.bf16 %v9264_v50, %v9247_v30  ;;  %v18343_v50 = vld [vmem:[%s19154_s15 + $0x2] ss:$0 sm:$0xff] }
0x1b94   :  { %13582 = vmatmul.mubr.msk.bf16.gmra.mrb[100].mxu1 %vm647_vm3, %v9273_v14 }
0x1b95   :  { %13609 = vmatprep.mubr.msk.bf16.mxu1 %vm14218_vm0, %v19288_v25 }
0x1c51   :  { %v9335_v17 = vpop.f32.mrb[92].mxu1 }
0x1c52   :  { %v9336_v5 = vadd.f32 %v12813_v1, %v9335_v17  ;;  %v13575_v37 = vpop.f32.mrb[93].mxu1 }
0x1c53   :  { %v9338_v10 = vpop.f32.mrb[94].mxu1 }
0x1c54   :  { %v9339_v43 = vadd.f32 %v12813_v1, %v9338_v10  ;;  %v13576_v61 = vpop.f32.mrb[95].mxu1  ;;  %v9358_v6 = vmax.f32 %v9336_v5, 0.0 }
0x1c56   :  { %v9359_v27 = vmax.f32 %v9339_v43, 0.0 }
0x1c58   :  { %v9364_v16 = vpack.c.bf16 %v9359_v27, %v9358_v6 }
0x1c5a   :  { %13594 = vmatmul.mubr.msk.bf16.vlgmr.msra.gmra.mrb[136].mxu0 %vm3102_vm5, %v9364_v16 }
0x1c5b   :  { %13597 = vmatprep.mubr.msk.bf16.mxu0 %vm14218_vm0, %v19288_v25 }
0x1c5e   :  { %v9343_v22 = vpop.f32.mrb[96].mxu1 }
0x1c5f   :  { %v9344_v15 = vadd.f32 %v12813_v1, %v9343_v22  ;;  %v13579_v58 = vpop.f32.mrb[97].mxu1 }
0x1c60   :  { %v9346_v20 = vpop.f32.mrb[98].mxu1 }
0x1c61   :  { %v9347_v48 = vadd.f32 %v12813_v1, %v9346_v20  ;;  %v13580_v59 = vpop.f32.mrb[99].mxu1  ;;  %v9360_v60 = vmax.f32 %v9344_v15, 0.0 }
0x1c63   :  { %v9361_v28 = vmax.f32 %v9347_v48, 0.0 }
0x1c65   :  { %v9365_v24 = vpack.c.bf16 %v9361_v28, %v9360_v60 }
0x1c67   :  { %v9351_v29 = vpop.f32.mrb[100].mxu1  ;;  %13598 = vmatmul.mubr.msk.bf16.gmra.mrb[140].mxu0 %vm3102_vm5, %v9365_v24 }
0x1c68   :  { %v9352_v55 = vadd.f32 %v12813_v1, %v9351_v29  ;;  %v13583_v13 = vpop.f32.mrb[101].mxu1  ;;  %13601 = vmatprep.mubr.msk.bf16.mxu0 %vm14218_vm0, %v19288_v25 }
0x1c69   :  { %v9354_v49 = vpop.f32.mrb[102].mxu1 }
0x1c6a   :  { %v9355_v35 = vadd.f32 %v12813_v1, %v9354_v49  ;;  %v13584_v19 = vpop.f32.mrb[103].mxu1  ;;  %v9362_v52 = vmax.f32 %v9352_v55, 0.0 }
0x1c6c   :  { %v9363_v31 = vmax.f32 %v9355_v35, 0.0 }
0x1c6e   :  { %v9366_v30 = vpack.c.bf16 %v9363_v31, %v9362_v52 }
0x1c70   :  { %13602 = vmatmul.mubr.msk.bf16.gmra.mrb[144].mxu0 %vm3102_vm5, %v9366_v30 }
0x1c71   :  { %13627 = vmatprep.mubr.msk.bf16.mxu0 %vm14218_vm0, %v19288_v25 }
0x1d2d   :  { %v9440_v14 = vpop.f32.mrb[136].mxu0 }
0x1d2e   :  { %v9441_v51 = vadd.f32 %v18343_v50, %v9440_v14  ;;  %v13595_v45 = vpop.f32.mrb[137].mxu0 }
0x1d2f   :  { %v9443_v17 = vpop.f32.mrb[138].mxu0 }
0x1d30   :  { %v9469_v1 = vcombine.high %v9441_v51, %v9441_v51  ;;  %v9476_v5 = vrot.slane %v9441_v51, %v14398_v32  ;;  %v9444_v37 = vadd.f32 %v18343_v50, %v9443_v17  ;;  %v13596_v10 = vpop.f32.mrb[139].mxu0 }
0x1d32   :  { %v9483_v43 = vrot.slane %v9469_v1, %v14398_v32  ;;  %v9484_v61 = vcombine.high %v9476_v5, %v9476_v5  ;;  %v9486_v6 = vcombine.high %v9444_v37, %v9444_v37  ;;  %v9493_v27 = vrot.slane %v9444_v37, %v14398_v32 }
0x1d33   :  { %v18351_v22 = vadd.f32 %v9476_v5, %v18156_v26 }
0x1d34   :  { %v9485_v16 = vcombine.high %v9483_v43, %v9483_v43  ;;  %v18354_v15 = vadd.f32 %v9484_v61, %v18159_v42  ;;  %v9500_v58 = vrot.slane %v9486_v6, %v14398_v32  ;;  %v9501_v20 = vcombine.high %v9493_v27, %v9493_v27 }
0x1d35   :  { %v18358_v48 = vadd.f32 %v9483_v43, %v18162_v63  ;;  %v18366_v24 = vadd.f32 %v9493_v27, %v18168_v33 }
0x1d36   :  { %v18361_v59 = vadd.f32 %v9485_v16, %v18165_v8  ;;  %v9643_v60 = vcombine.low %v18351_v22, %v18354_v15  ;;  %v9502_v28 = vcombine.high %v9500_v58, %v9500_v58  ;;  %v18369_v26 = vadd.f32 %v9501_v20, %v18171_v40 }
0x1d37   :  { %v18372_v42 = vadd.f32 %v9500_v58, %v18174_v11 }
0x1d38   :  { %v18375_v29 = vadd.f32 %v9502_v28, %v18177_v44  ;;  %v9644_v63 = vcombine.low %v18358_v48, %v18361_v59  ;;  %v9660_v8 = vcombine.low %v18366_v24, %v18369_v26  ;;  %v9651_v13 = vrot.slane %v9643_v60, %v14398_v32 }
0x1d3a   :  { %v9448_v55 = vpop.f32.mrb[140].mxu0  ;;  %v9658_v33 = vrot.slane %v9644_v63, %v14398_v32  ;;  %v9661_v40 = vcombine.low %v18372_v42, %v18375_v29  ;;  %v9668_v19 = vrot.slane %v9660_v8, %v14398_v32 }
0x1d3b   :  { %v9449_v11 = vadd.f32 %v18343_v50, %v9448_v55  ;;  %v13599_v49 = vpop.f32.mrb[141].mxu0 }
0x1d3c   :  { %v9451_v35 = vpop.f32.mrb[142].mxu0  ;;  %v9659_v44 = vcombine.low %v9651_v13, %v9658_v33  ;;  %v9675_v52 = vrot.slane %v9661_v40, %v14398_v32 }
0x1d3d   :  { %v9503_v31 = vcombine.high %v9449_v11, %v9449_v11  ;;  %v9510_v30 = vrot.slane %v9449_v11, %v14398_v32  ;;  %v9452_v14 = vadd.f32 %v18343_v50, %v9451_v35  ;;  %v13600_v51 = vpop.f32.mrb[143].mxu0 }
0x1d3e   :  { %v9751_v45 = vsel %vm647_vm3, %v9659_v44, 0.0  ;;  %v9676_v17 = vcombine.low %v9668_v19, %v9675_v52 }
0x1d3f   :  { %v9517_v1 = vrot.slane %v9503_v31, %v14398_v32  ;;  %v9518_v5 = vcombine.high %v9510_v30, %v9510_v30  ;;  %v9520_v37 = vcombine.high %v9452_v14, %v9452_v14  ;;  %9752 = vadd.xlane.f32.xlu0 %v9751_v45  ;;  %v9527_v10 = vrot.slane %v9452_v14, %v14398_v32 }
0x1d40   :  { %v9754_v43 = vsel %vm647_vm3, %v9676_v17, 0.0 }
0x1d41   :  { %v9519_v61 = vcombine.high %v9517_v1, %v9517_v1  ;;  %v9534_v6 = vrot.slane %v9520_v37, %v14398_v32  ;;  %9755 = vadd.xlane.f32.xlu1 %v9754_v43  ;;  %v9535_v27 = vcombine.high %v9527_v10, %v9527_v10  ;;  %v18396_v16 = vadd.f32 %v9518_v5, %v18215_v47 }
0x1d42   :  { %v18399_v58 = vadd.f32 %v9517_v1, %v18218_v12  ;;  %v18405_v63 = vadd.f32 %v9527_v10, %v18237_v23  ;;  %v18412_v47 = vadd.f32 %v9510_v30, %v18208_v4 }
0x1d43   :  { %v18402_v20 = vadd.f32 %v9519_v61, %v18221_v39  ;;  %v9536_v60 = vcombine.high %v9534_v6, %v9534_v6  ;;  %v9456_v28 = vpop.f32.mrb[144].mxu0  ;;  %v18408_v8 = vadd.f32 %v9535_v27, %v18240_v0  ;;  %v18415_v12 = vadd.f32 %v9534_v6, %v18243_v36 }
0x1d44   :  { %v9457_v55 = vadd.f32 %v18343_v50, %v9456_v28  ;;  %v13603_v13 = vpop.f32.mrb[145].mxu0  ;;  %v9677_v36 = vcombine.low %v18412_v47, %v18396_v16 }
0x1d45   :  { %v18418_v39 = vadd.f32 %v9536_v60, %v18247_v53  ;;  %v9459_v33 = vpop.f32.mrb[146].mxu0  ;;  %v9678_v23 = vcombine.low %v18399_v58, %v18402_v20  ;;  %v9694_v0 = vcombine.low %v18405_v63, %v18408_v8 }
0x1d46   :  { %v9537_v40 = vcombine.high %v9457_v55, %v9457_v55  ;;  %v9544_v11 = vrot.slane %v9457_v55, %v14398_v32  ;;  %v9460_v49 = vadd.f32 %v18343_v50, %v9459_v33  ;;  %v13604_v4 = vpop.f32.mrb[147].mxu0  ;;  %v9685_v37 = vrot.slane %v9677_v36, %v14398_v32 }
0x1d47   :  { %v9695_v53 = vcombine.low %v18415_v12, %v18418_v39  ;;  %v9702_v31 = vrot.slane %v9694_v0, %v14398_v32  ;;  %v9692_v14 = vrot.slane %v9678_v23, %v14398_v32 }
0x1d48   :  { %v9551_v35 = vrot.slane %v9537_v40, %v14398_v32  ;;  %v9552_v44 = vcombine.high %v9544_v11, %v9544_v11  ;;  %v9554_v19 = vcombine.high %v9460_v49, %v9460_v49  ;;  %v9561_v52 = vrot.slane %v9460_v49, %v14398_v32 }
0x1d49   :  { %v9709_v30 = vrot.slane %v9695_v53, %v14398_v32  ;;  %v18436_v51 = vadd.f32 %v9544_v11, %v18279_v21  ;;  %v9693_v60 = vcombine.low %v9685_v37, %v9692_v14 }
0x1d4a   :  { %v9553_v50 = vcombine.high %v9551_v35, %v9551_v35  ;;  %v18439_v45 = vadd.f32 %v9552_v44, %v18282_v7  ;;  %v9568_v17 = vrot.slane %v9554_v19, %v14398_v32  ;;  %v9569_v1 = vcombine.high %v9561_v52, %v9561_v52 }
0x1d4b   :  { %v9710_v5 = vcombine.low %v9702_v31, %v9709_v30  ;;  %v18444_v10 = vadd.f32 %v9551_v35, %v18285_v38  ;;  %v18452_v6 = vadd.f32 %v9561_v52, %v18291_v57 }
0x1d4c   :  { %v18447_v43 = vadd.f32 %v9553_v50, %v18288_v9  ;;  %v9711_v61 = vcombine.low %v18436_v51, %v18439_v45  ;;  %v9570_v21 = vcombine.high %v9568_v17, %v9568_v17  ;;  %v18455_v7 = vadd.f32 %v9569_v1, %v18294_v2 }
0x1d4d   :  { %v9760_v27 = vsel %vm647_vm3, %v9710_v5, 0.0  ;;  %v18459_v28 = vadd.f32 %v9568_v17, %v18297_v62  ;;  %v9757_v62 = vsel %vm647_vm3, %v9693_v60, 0.0 }
0x1d4e   :  { %v18462_v38 = vadd.f32 %v9570_v21, %v18300_v34  ;;  %9761 = vadd.xlane.f32.xlu0 %v9760_v27  ;;  %v9712_v9 = vcombine.low %v18444_v10, %v18447_v43  ;;  %v9728_v57 = vcombine.low %v18452_v6, %v18455_v7  ;;  %v9719_v55 = vrot.slane %v9711_v61, %v14398_v32 }
0x1d50   :  { %v9726_v2 = vrot.slane %v9712_v9, %v14398_v32  ;;  %v9729_v13 = vcombine.low %v18459_v28, %v18462_v38  ;;  %v9736_v34 = vrot.slane %v9728_v57, %v14398_v32 }
0x1d52   :  { %9758 = vadd.xlane.f32.xlu0 %v9757_v62  ;;  %v9727_v33 = vcombine.low %v9719_v55, %v9726_v2  ;;  %v9743_v23 = vrot.slane %v9729_v13, %v14398_v32 }
0x1d54   :  { %v9763_v0 = vsel %vm647_vm3, %v9727_v33, 0.0  ;;  %v9744_v40 = vcombine.low %v9736_v34, %v9743_v23 }
0x1d55   :  { %9764 = vadd.xlane.f32.xlu1 %v9763_v0 }
0x1d56   :  { %v9766_v11 = vsel %vm647_vm3, %v9744_v40, 0.0 }
0x1d59   :  { %9767 = vadd.xlane.f32.xlu1 %v9766_v11 }
0x1dcc   :  { %v9753_v49 = vpop.xlane.xlu0 %9752 }
0x1dcd   :  { %v9769_v4 = vmul.f32 0.03125, %v9753_v49 }
0x1dce   :  { %v9756_v36 = vpop.xlane.xlu1 %9755 }
0x1dcf   :  { %v9787_v53 = vrot.slane %v9769_v4, %v19402_v18  ;;  %v9794_v35 = vrot.slane %v9769_v4, %v19403_v54  ;;  %v9801_v44 = vrot.slane %v9769_v4, %v19404_v41  ;;  %v9808_v19 = vrot.slane %v9769_v4, %v19405_v3 }
0x1dd0   :  { %v9770_v52 = vmul.f32 0.03125, %v9756_v36 }
0x1dd1   :  { %v18482_v31 = vsub.f32 %v18358_v48, %v9801_v44  ;;  %v9973_v30 = vsub.f32 %v18351_v22, %v9787_v53  ;;  %v9974_v14 = vsub.f32 %v18354_v15, %v9794_v35  ;;  %v9976_v50 = vsub.f32 %v18361_v59, %v9808_v19 }
0x1dd2   :  { %v9815_v17 = vrot.slane %v9770_v52, %v19402_v18  ;;  %v9822_v1 = vrot.slane %v9770_v52, %v19403_v54  ;;  %v9829_v5 = vrot.slane %v9770_v52, %v19404_v41  ;;  %v9836_v37 = vrot.slane %v9770_v52, %v19405_v3 }
0x1dd3   :  { %v9997_v61 = vmul.f32 %v9973_v30, %v9973_v30  ;;  %v9998_v21 = vmul.f32 %v9974_v14, %v9974_v14  ;;  %v9999_v48 = vmul.f32 %v18482_v31, %v18482_v31  ;;  %v10000_v27 = vmul.f32 %v9976_v50, %v9976_v50 }
0x1dd4   :  { %v18494_v22 = vsub.f32 %v18369_v26, %v9822_v1  ;;  %v9977_v15 = vsub.f32 %v18366_v24, %v9815_v17  ;;  %v9979_v59 = vsub.f32 %v18372_v42, %v9829_v5  ;;  %v9980_v60 = vsub.f32 %v18375_v29, %v9836_v37 }
0x1dd5   :  { %v10045_v9 = vcombine.low %v9997_v61, %v9998_v21  ;;  %v10046_v57 = vcombine.low %v9999_v48, %v10000_v27 }
0x1dd6   :  { %v10001_v55 = vmul.f32 %v9977_v15, %v9977_v15  ;;  %v10002_v2 = vmul.f32 %v18494_v22, %v18494_v22  ;;  %v10003_v13 = vmul.f32 %v9979_v59, %v9979_v59  ;;  %v10004_v62 = vmul.f32 %v9980_v60, %v9980_v60 }
0x1dd7   :  { %v10053_v33 = vrot.slane %v10045_v9, %v14398_v32  ;;  %v10060_v34 = vrot.slane %v10046_v57, %v14398_v32 }
0x1dd8   :  { %v10062_v26 = vcombine.low %v10001_v55, %v10002_v2  ;;  %v10063_v23 = vcombine.low %v10003_v13, %v10004_v62 }
0x1dd9   :  { %v10061_v0 = vcombine.low %v10053_v33, %v10060_v34 }
0x1dda   :  { %v10070_v24 = vrot.slane %v10062_v26, %v14398_v32  ;;  %v10077_v42 = vrot.slane %v10063_v23, %v14398_v32 }
0x1ddb   :  { %v9762_v29 = vpop.xlane.xlu0 %9761  ;;  %v10153_v40 = vsel %vm647_vm3, %v10061_v0, 0.0 }
0x1ddc   :  { %v9772_v11 = vmul.f32 0.03125, %v9762_v29  ;;  %10154 = vadd.xlane.f32.xlu0 %v10153_v40  ;;  %v10078_v49 = vcombine.low %v10070_v24, %v10077_v42 }
0x1dde   :  { %v9871_v4 = vrot.slane %v9772_v11, %v19402_v18  ;;  %v9878_v36 = vrot.slane %v9772_v11, %v19403_v54  ;;  %v9885_v53 = vrot.slane %v9772_v11, %v19404_v41  ;;  %v9892_v35 = vrot.slane %v9772_v11, %v19405_v3 }
0x1ddf   :  { %v9759_v44 = vpop.xlane.xlu0 %9758  ;;  %v10156_v19 = vsel %vm647_vm3, %v10078_v49, 0.0 }
0x1de0   :  { %v18512_v52 = vsub.f32 %v18415_v12, %v9885_v53  ;;  %v9771_v30 = vmul.f32 0.03125, %v9759_v44  ;;  %10157 = vadd.xlane.f32.xlu1 %v10156_v19  ;;  %v9985_v14 = vsub.f32 %v18405_v63, %v9871_v4  ;;  %v9986_v50 = vsub.f32 %v18408_v8, %v9878_v36 }
0x1de1   :  { %v9988_v17 = vsub.f32 %v18418_v39, %v9892_v35 }
0x1de2   :  { %v9843_v1 = vrot.slane %v9771_v30, %v19402_v18  ;;  %v9850_v5 = vrot.slane %v9771_v30, %v19403_v54  ;;  %v9857_v37 = vrot.slane %v9771_v30, %v19404_v41  ;;  %v9864_v61 = vrot.slane %v9771_v30, %v19405_v3  ;;  %v9765_v21 = vpop.xlane.xlu1 %9764 }
0x1de3   :  { %v9773_v48 = vmul.f32 0.03125, %v9765_v21  ;;  %v10009_v12 = vmul.f32 %v9985_v14, %v9985_v14  ;;  %v10010_v27 = vmul.f32 %v9986_v50, %v9986_v50  ;;  %v10011_v15 = vmul.f32 %v18512_v52, %v18512_v52 }
0x1de4   :  { %v18524_v63 = vsub.f32 %v18412_v47, %v9843_v1  ;;  %v18527_v8 = vsub.f32 %v18402_v20, %v9864_v61  ;;  %v10012_v39 = vmul.f32 %v9988_v17, %v9988_v17  ;;  %v9982_v59 = vsub.f32 %v18396_v16, %v9850_v5 }
0x1de5   :  { %v9899_v60 = vrot.slane %v9773_v48, %v19402_v18  ;;  %v9906_v9 = vrot.slane %v9773_v48, %v19403_v54  ;;  %v9913_v57 = vrot.slane %v9773_v48, %v19404_v41  ;;  %v9920_v55 = vrot.slane %v9773_v48, %v19405_v3 }
0x1de6   :  { %v9768_v2 = vpop.xlane.xlu1 %9767  ;;  %v10096_v13 = vcombine.low %v10009_v12, %v10010_v27  ;;  %v10097_v62 = vcombine.low %v10011_v15, %v10012_v39  ;;  %v9983_v47 = vsub.f32 %v18399_v58, %v9857_v37  ;;  %v10005_v20 = vmul.f32 %v18524_v63, %v18524_v63 }
0x1de7   :  { %v18538_v33 = vsub.f32 %v18439_v45, %v9906_v9  ;;  %v9774_v16 = vmul.f32 0.03125, %v9768_v2  ;;  %v10006_v34 = vmul.f32 %v9982_v59, %v9982_v59  ;;  %v10008_v26 = vmul.f32 %v18527_v8, %v18527_v8  ;;  %v13839_v2 = vld [vmem:[%s19260_s29 + $0x30] sm:$0xff]  }
0x1de8   :  { %v10104_v23 = vrot.slane %v10096_v13, %v14398_v32  ;;  %v10111_v0 = vrot.slane %v10097_v62, %v14398_v32  ;;  %v10007_v24 = vmul.f32 %v9983_v47, %v9983_v47  ;;  %v9989_v42 = vsub.f32 %v18436_v51, %v9899_v60  ;;  %13606 = vmatpush3.bf16.msra.mxu1 %v13839_v2  ;;  %v13840_v13 = vld [vmem:[%s19260_s29 + $0x38] sm:$0xff]   ;;  %v19406_v2 = vld [vmem:[#allocation6_spill] sm:$0xff] }
0x1de9   :  { %v9927_v58 = vrot.slane %v9774_v16, %v19402_v18  ;;  %v9934_v29 = vrot.slane %v9774_v16, %v19403_v54  ;;  %v9941_v40 = vrot.slane %v9774_v16, %v19404_v41  ;;  %v9948_v45 = vrot.slane %v9774_v16, %v19405_v3  ;;  %13607 = vmatprep.subr.bf16.mxu1 %v19288_v25 }
0x1dea   :  { %v10112_v11 = vcombine.low %v10104_v23, %v10111_v0  ;;  %v10079_v49 = vcombine.low %v10005_v20, %v10006_v34  ;;  %v10080_v4 = vcombine.low %v10007_v24, %v10008_v26  ;;  %v9991_v36 = vsub.f32 %v18444_v10, %v9913_v57 }
0x1deb   :  { %v18551_v53 = vsub.f32 %v18452_v6, %v9927_v58  ;;  %v18554_v35 = vsub.f32 %v18462_v38, %v9948_v45  ;;  %v9992_v51 = vsub.f32 %v18447_v43, %v9920_v55  ;;  %v10013_v44 = vmul.f32 %v9989_v42, %v9989_v42  ;;  %v12827_v45 = vld [vmem:[%s19155_s16 + $0x2] ss:$0 sm:$0xff] }
0x1dec   :  { %v10162_v19 = vsel %vm647_vm3, %v10112_v11, 0.0  ;;  %v10087_v30 = vrot.slane %v10079_v49, %v14398_v32  ;;  %v10094_v14 = vrot.slane %v10080_v4, %v14398_v32  ;;  %v10014_v50 = vmul.f32 %v18538_v33, %v18538_v33  ;;  %13608 = vmatpush3.bf16.msra.mxu1 %v13840_v13 }
0x1ded   :  { %10163 = vadd.xlane.f32.xlu0 %v10162_v19  ;;  %v10015_v10 = vmul.f32 %v9991_v36, %v9991_v36  ;;  %v10016_v17 = vmul.f32 %v9992_v51, %v9992_v51  ;;  %v9994_v6 = vsub.f32 %v18455_v7, %v9934_v29  ;;  %v9995_v38 = vsub.f32 %v18459_v28, %v9941_v40  ;;  %v12828_v51 = vld [vmem:[%s19156_s17 + $0x2] ss:$0 sm:$0xff] }
0x1dee   :  { %v10095_v1 = vcombine.low %v10087_v30, %v10094_v14  ;;  %v10113_v5 = vcombine.low %v10013_v44, %v10014_v50  ;;  %v10017_v43 = vmul.f32 %v18551_v53, %v18551_v53  ;;  %v10020_v37 = vmul.f32 %v18554_v35, %v18554_v35  ;;  %13613 = vmatprep.subr.bf16.mxu1 %v19288_v25 }
0x1def   :  { %v10114_v61 = vcombine.low %v10015_v10, %v10016_v17  ;;  %v10018_v21 = vmul.f32 %v9994_v6, %v9994_v6  ;;  %v10019_v48 = vmul.f32 %v9995_v38, %v9995_v38  ;;  %v10279_v49 = vrot.slane %v12827_v45, %v14398_v32 }
0x1df0   :  { %v10159_v12 = vsel %vm647_vm3, %v10095_v1, 0.0  ;;  %v10121_v27 = vrot.slane %v10113_v5, %v14398_v32  ;;  %v10272_v44 = vcombine.high %v12827_v45, %v12827_v45  ;;  %v10313_v50 = vrot.slane %v12828_v51, %v14398_v32 }
0x1df1   :  { %10160 = vadd.xlane.f32.xlu0 %v10159_v12  ;;  %v10128_v7 = vrot.slane %v10114_v61, %v14398_v32  ;;  %v10130_v15 = vcombine.low %v10017_v43, %v10018_v21  ;;  %v10131_v28 = vcombine.low %v10019_v48, %v10020_v37  ;;  %v10287_v14 = vcombine.high %v10279_v49, %v10279_v49 }
0x1df2   :  { %v10306_v6 = vcombine.high %v12828_v51, %v12828_v51  ;;  %v10286_v1 = vrot.slane %v10272_v44, %v14398_v32  ;;  %v10321_v37 = vcombine.high %v10313_v50, %v10313_v50  ;;  %v19408_v51 = vld [vmem:[#allocation7_spill] sm:$0xff] }
0x1df3   :  { %v10129_v39 = vcombine.low %v10121_v27, %v10128_v7  ;;  %v10138_v59 = vrot.slane %v10130_v15, %v14398_v32  ;;  %v10145_v60 = vrot.slane %v10131_v28, %v14398_v32 }
0x1df4   :  { %v10320_v12 = vrot.slane %v10306_v6, %v14398_v32 }
0x1df5   :  { %v10165_v9 = vsel %vm647_vm3, %v10129_v39, 0.0  ;;  %v10146_v57 = vcombine.low %v10138_v59, %v10145_v60 }
0x1df6   :  { %10166 = vadd.xlane.f32.xlu1 %v10165_v9  ;;  %v10322_v60 = vcombine.high %v10320_v12, %v10320_v12 }
0x1df7   :  { %v10168_v55 = vsel %vm647_vm3, %v10146_v57, 0.0 }
0x1dfa   :  { %10169 = vadd.xlane.f32.xlu1 %v10168_v55 }
0x1e69   :  { %v10155_v62 = vpop.xlane.xlu0 %10154 }
0x1e6a   :  { %v10171_v16 = vmul.f32 0.03125, %v10155_v62 }
0x1e6c   :  { %v10177_v26 = vadd.f32 1e-05, %v10171_v16 }
0x1e6d   :  { %v10158_v47 = vpop.xlane.xlu1 %10157 }
0x1e6e   :  { %v10172_v20 = vmul.f32 0.03125, %v10158_v47 }
0x1e70   :  { %v10178_v34 = vadd.f32 1e-05, %v10172_v20 }
0x1e72   :  { %14119 = vrsqrt.f32 %v10178_v34 }
0x1e73   :  { %14121 = vrsqrt.f32 %v10177_v26 }
0x1e7a   :  { %v10164_v23 = vpop.xlane.xlu0 %10163 }
0x1e7b   :  { %v10174_v0 = vmul.f32 0.03125, %v10164_v23 }
0x1e7c   :  { %v14120_v58 = vpop.eup %14119 }
0x1e7d   :  { %v10180_v24 = vadd.f32 1e-05, %v10174_v0  ;;  %v14122_v40 = vpop.eup %14121  ;;  %v10208_v4 = vrot.slane %v14120_v58, %v19403_v54 }
0x1e7e   :  { %v10161_v42 = vpop.xlane.xlu0 %10160  ;;  %v10201_v19 = vrot.slane %v14122_v40, %v19404_v41 }
0x1e7f   :  { %v10173_v29 = vmul.f32 0.03125, %v10161_v42  ;;  %14123 = vrsqrt.f32 %v10180_v24  ;;  %v10260_v10 = vmul.f32 %v10208_v4, %v18494_v22  ;;  %v10288_v22 = vcombine.high %v10286_v1, %v10286_v1 }
0x1e80   :  { %v10259_v5 = vmul.f32 %v10201_v19, %v18482_v31 }
0x1e81   :  { %v10179_v11 = vadd.f32 1e-05, %v10173_v29  ;;  %v10294_v61 = vmul.f32 %v10287_v14, %v10260_v10 }
0x1e82   :  { %v10293_v27 = vmul.f32 %v10286_v1, %v10259_v5 }
0x1e83   :  { %14125 = vrsqrt.f32 %v10179_v11  ;;  %v10167_v36 = vpop.xlane.xlu1 %10166  ;;  %v10328_v15 = vadd.f32 %v10321_v37, %v10294_v61  ;;  %v19407_v11 = vld [vmem:[#allocation15_spill] sm:$0xff] }
0x1e84   :  { %v10175_v30 = vmul.f32 0.03125, %v10167_v36  ;;  %v10327_v31 = vadd.f32 %v10320_v12, %v10293_v27 }
0x1e85   :  { %v10390_v32 = vrot.slane %v10328_v15, %v19406_v2 }
0x1e86   :  { %v10181_v17 = vadd.f32 1e-05, %v10175_v30  ;;  %v10386_v16 = vrot.slane %v10327_v31, %v19406_v2 }
0x1e87   :  { %v10170_v38 = vpop.xlane.xlu1 %10169 }
0x1e88   :  { %14127 = vrsqrt.f32 %v10181_v17  ;;  %v10176_v43 = vmul.f32 0.03125, %v10170_v38 }
0x1e89   :  { %v14124_v48 = vpop.eup %14123 }
0x1e8a   :  { %v10182_v21 = vadd.f32 1e-05, %v10176_v43  ;;  %v10229_v59 = vrot.slane %v14124_v48, %v19404_v41 }
0x1e8c   :  { %14129 = vrsqrt.f32 %v10182_v21  ;;  %v10263_v47 = vmul.f32 %v10229_v59, %v18512_v52 }
0x1e8d   :  { %v14126_v7 = vpop.eup %14125 }
0x1e8e   :  { %v10215_v28 = vrot.slane %v14126_v7, %v19402_v18  ;;  %v10222_v39 = vrot.slane %v14126_v7, %v19405_v3  ;;  %v10297_v24 = vmul.f32 %v10286_v1, %v10263_v47 }
0x1e90   :  { %v10261_v9 = vmul.f32 %v10215_v28, %v18524_v63  ;;  %v10262_v57 = vmul.f32 %v10222_v39, %v18527_v8  ;;  %v10415_v63 = vsel %vm4297_vm6, %v10390_v32, %v10386_v16  ;;  %v10331_v36 = vadd.f32 %v10320_v12, %v10297_v24 }
0x1e92   :  { %v14128_v55 = vpop.eup %14127  ;;  %v10295_v13 = vmul.f32 %v10279_v49, %v10261_v9  ;;  %v10296_v62 = vmul.f32 %v10288_v22, %v10262_v57  ;;  %v10402_v17 = vrot.slane %v10331_v36, %v19406_v2 }
0x1e93   :  { %v10236_v20 = vrot.slane %v14128_v55, %v19403_v54 }
0x1e94   :  { %v10329_v34 = vadd.f32 %v10313_v50, %v10295_v13  ;;  %v10330_v26 = vadd.f32 %v10322_v60, %v10296_v62 }
0x1e95   :  { %v10264_v41 = vmul.f32 %v10236_v20, %v18538_v33 }
0x1e96   :  { %v14130_v23 = vpop.eup %14129  ;;  %v10394_v8 = vrot.slane %v10329_v34, %v19406_v2  ;;  %v10398_v0 = vrot.slane %v10330_v26, %v19406_v2 }
0x1e97   :  { %v10298_v42 = vmul.f32 %v10287_v14, %v10264_v41  ;;  %v10243_v58 = vrot.slane %v14130_v23, %v19402_v18  ;;  %v10250_v52 = vrot.slane %v14130_v23, %v19405_v3 }
0x1e98   :  { %v10416_v54 = vsel %vm4299_vm7, %v10394_v8, %v10415_v63 }
0x1e99   :  { %v10417_v29 = vsel %vm4301_vm8, %v10398_v0, %v10416_v54  ;;  %v10332_v40 = vadd.f32 %v10321_v37, %v10298_v42  ;;  %v10265_v33 = vmul.f32 %v10243_v58, %v18551_v53  ;;  %v10266_v45 = vmul.f32 %v10250_v52, %v18554_v35  ;;  %v19409_v37 = vld [vmem:[#allocation13_spill] sm:$0xff] }
0x1e9a   :  { %v10425_v4 = vsel %vm340_vm1, %v10417_v29, %v19407_v11  ;;  %v12858_v0 = vld [vmem:[%s19146_s7 + $0x3] ss:$0 sm:$0xff] }
0x1e9b   :  { %v10436_v44 = vrot.slane %v10425_v4, %v19408_v51  ;;  %v10299_v19 = vmul.f32 %v10279_v49, %v10265_v33  ;;  %v10300_v30 = vmul.f32 %v10288_v22, %v10266_v45  ;;  %v10406_v3 = vrot.slane %v10332_v40, %v19406_v2  ;;  %v14187_v40 = vld [vmem:[%s19282_s25] ss:$0 sm:$0xff]  ;;  %v14188_v45 = vld [vmem:[%s19282_s25 + $0x1] ss:$0 sm:$0xff] }
0x1e9c   :  { %v10429_v6 = vcombine.high %v10425_v4, %v10425_v4  ;;  %v14189_v4 = vld [vmem:[%s19282_s25 + $0x2] ss:$0 sm:$0xff] }
0x1e9d   :  { %v10444_v18 = vcombine.high %v10436_v44, %v10436_v44  ;;  %v10333_v14 = vadd.f32 %v10313_v50, %v10299_v19  ;;  %v10334_v10 = vadd.f32 %v10322_v60, %v10300_v30  ;;  %v10418_v1 = vsel %vm4297_vm6, %v10406_v3, %v10402_v17  ;;  %v19410_v30 = vld [vmem:[#allocation23_spill] sm:$0xff] }
0x1e9e   :  { %v18628_v49 = vrot.slane %v10436_v44, %v19408_v51  ;;  %v10443_v50 = vrot.slane %v10429_v6, %v19408_v51  ;;  %v14190_v44 = vld [vmem:[%s19282_s25 + $0x3] ss:$0 sm:$0xff] }
0x1e9f   :  { %v18622_v53 = vrot.slane %v10444_v18, %v19408_v51  ;;  %v10410_v35 = vrot.slane %v10333_v14, %v19406_v2  ;;  %v10414_v38 = vrot.slane %v10334_v10, %v19406_v2  ;;  %v19411_v14 = vld [vmem:[#allocation24_spill] sm:$0xff] }
0x1ea0   :  { %v18644_v22 = vrot.slane %v10443_v50, %v19408_v51 }
0x1ea1   :  { %v10419_v5 = vsel %vm4299_vm7, %v10410_v35, %v10418_v1  ;;  %v10517_v21 = vcombine.low %v18628_v49, %v18622_v53  ;;  %v12857_v27 = vcombine.high %v18628_v49, %v18622_v53 }
0x1ea2   :  { %v10420_v43 = vsel %vm4301_vm8, %v10414_v38, %v10419_v5 }
0x1ea3   :  { %v10426_v61 = vsel %vm340_vm1, %v10420_v43, %v19409_v37  ;;  %v10527_v39 = vrot.slane %v10517_v21, %v19408_v51  ;;  %v10534_v9 = vrot.slane %v12857_v27, %v19408_v51 }
0x1ea4   :  { %v10468_v48 = vcombine.high %v10426_v61, %v10426_v61  ;;  %v10475_v12 = vrot.slane %v10426_v61, %v19408_v51 }
0x1ea5   :  { %v10549_v47 = vcombine.low %v10527_v39, %v10534_v9 }
0x1ea6   :  { %v10483_v7 = vcombine.high %v10475_v12, %v10475_v12  ;;  %v18641_v15 = vrot.slane %v10475_v12, %v19408_v51  ;;  %v10482_v28 = vrot.slane %v10468_v48, %v19408_v51 }
0x1ea7   :  { %v10557_v26 = vrot.slane %v10549_v47, %v19408_v51 }
0x1ea8   :  { %v18649_v59 = vrot.slane %v10483_v7, %v19408_v51  ;;  %v18653_v31 = vcombine.high %v18641_v15, %v18641_v15  ;;  %v10519_v60 = vcombine.low %v18644_v22, %v18641_v15  ;;  %v18659_v57 = vrot.slane %v10482_v28, %v19408_v51 }
0x1eaa   :  { %v18663_v55 = vcombine.high %v18649_v59, %v18649_v59  ;;  %v10520_v32 = vcombine.low %v18649_v59, %v18653_v31  ;;  %v10541_v13 = vrot.slane %v10519_v60, %v19408_v51 }
0x1eac   :  { %v10548_v62 = vrot.slane %v10520_v32, %v19408_v51  ;;  %v10566_v20 = vcombine.low %v18663_v55, %v18659_v57 }
0x1eae   :  { %v10550_v16 = vcombine.low %v10541_v13, %v10548_v62  ;;  %v10573_v34 = vrot.slane %v10566_v20, %v19408_v51  ;;  %v14191_v20 = vld [vmem:[%s19322_s30] sm:$0xff] }
0x1eb0   :  { %v10564_v41 = vrot.slane %v10550_v16, %v19408_v51  ;;  %v10580_v63 = vrot.slane %v10573_v34, %v19408_v51 }
0x1eb2   :  { %v10565_v23 = vcombine.low %v10557_v26, %v10564_v41  ;;  %v14192_v41 = vld [vmem:[%s19322_s30 + $0x8] sm:$0x3] }
0x1eb4   :  { %v10583_v8 = vpack.c.bf16 %v10580_v63, %v10565_v23 }
0x1eb6   :  { %13610 = vmatmul.mubr.msk.bf16.vlgmr.msra.gmra.mrb[104].mxu1 %vm647_vm3, %v10583_v8 }
0x1eb7   :  { %13615 = vmatprep.mubr.msk.bf16.mxu1 %vm14218_vm0, %v19288_v25 }
0x1f89   :  { %v10639_v24 = vpop.f32.mrb[104].mxu1 }
0x1f8a   :  { %v10640_v42 = vadd.f32 %v12858_v0, %v10639_v24  ;;  %v13611_v58 = vpop.f32.mrb[105].mxu1 }
0x1f8b   :  { %v10642_v52 = vpop.f32.mrb[106].mxu1 }
0x1f8c   :  { %v10643_v54 = vadd.f32 %v12858_v0, %v10642_v52  ;;  %v13612_v29 = vpop.f32.mrb[107].mxu1  ;;  %v10647_v33 = vmul.f32 %v14187_v40, %v10640_v42  ;;  %v10726_v11 = vmul.f32 %v14188_v45, %v10640_v42  ;;  %v10899_v36 = vmul.f32 %v14189_v4, %v10640_v42 }
0x1f8d   :  { %v11024_v19 = vmul.f32 %v14190_v44, %v10640_v42  ;;  %v18694_v18 = vmul.f32 %v10640_v42, %v19410_v30  ;;  %v18697_v3 = vmul.f32 %v10640_v42, %v19370_v56  ;;  %v18700_v10 = vmul.f32 %v10640_v42, %v19411_v14 }
0x1f8e   :  { %v10646_v17 = vpack.c.bf16 %v10643_v54, %v10640_v42  ;;  %v10648_v6 = vmul.f32 %v14187_v40, %v10643_v54  ;;  %v10727_v35 = vmul.f32 %v14188_v45, %v10643_v54  ;;  %v10900_v38 = vmul.f32 %v14189_v4, %v10643_v54 }
0x1f8f   :  { %v11025_v1 = vmul.f32 %v14190_v44, %v10643_v54  ;;  %v18703_v5 = vmul.f32 %v10643_v54, %v19410_v30  ;;  %v18706_v50 = vmul.f32 %v10643_v54, %v19370_v56  ;;  %v18709_v43 = vmul.f32 %v10643_v54, %v19411_v14 }
0x1f90   :  { %10651 = vrot.lane.b32.xlu0 %v10646_v17, %s14221_s5  ;;  %v10649_v37 = vpack.c.bf16 %v10648_v6, %v10647_v33  ;;  %v10728_v61 = vpack.c.bf16 %v10727_v35, %v10726_v11  ;;  %v10901_v21 = vpack.c.bf16 %v10900_v38, %v10899_v36  ;;  %v18719_v56 = vmul.f32 %v10640_v42, %v19371_v46 }
0x1f91   :  { %v11026_v48 = vpack.c.bf16 %v11025_v1, %v11024_v19  ;;  %v10797_v12 = vpack.c.bf16 %v18703_v5, %v18694_v18  ;;  %v10970_v27 = vpack.c.bf16 %v18706_v50, %v18697_v3  ;;  %v10724_v7 = vpack.c.bf16 %v18709_v43, %v18700_v10 }
0x1f92   :  { %v18722_v28 = vmul.f32 %v10643_v54, %v19371_v46 }
0x1f94   :  { %v11095_v39 = vpack.c.bf16 %v18722_v28, %v18719_v56 }
0x2002   :  { %v10652_v60 = vpop.permute.xlu0 %10651 }
0x2003   :  { %v10657_v9 = vsel %vm647_vm3, %v10652_v60, 0 }
0x2004   :  { %13614 = vmatpush3.bf16.xpose.msra.mxu1 %v10657_v9 }
0x2005   :  { %13619 = vmatprep.subr.bf16.mxu1 %v19288_v25 }
0x200b   :  { %13616 = vmatmul.mubr.msk.bf16.vlgmr.msra.gmra.mrb[108].mxu1 %vm647_vm3, %v10649_v37 }
0x200c   :  { %13620 = vmatpush3.bf16.xpose.msra.mxu1 %v10657_v9  ;;  %13621 = vmatprep.mubr.msk.bf16.mxu1 %vm14218_vm0, %v19288_v25 }
0x200d   :  { %13637 = vmatprep.subr.bf16.mxu1 %v19288_v25 }
0x2013   :  { %13622 = vmatmul.mubr.msk.bf16.vlgmr.msra.gmra.mrb[112].mxu1 %vm647_vm3, %v10728_v61 }
0x2014   :  { %13638 = vmatpush3.bf16.xpose.msra.mxu1 %v10657_v9  ;;  %13639 = vmatprep.mubr.msk.bf16.mxu1 %vm14218_vm0, %v19288_v25 }
0x2015   :  { %13649 = vmatprep.subr.bf16.mxu1 %v19288_v25 }
0x201b   :  { %13640 = vmatmul.mubr.msk.bf16.vlgmr.msra.gmra.mrb[116].mxu1 %vm647_vm3, %v10901_v21 }
0x201c   :  { %13650 = vmatpush3.bf16.xpose.msra.mxu1 %v10657_v9  ;;  %13651 = vmatprep.mubr.msk.bf16.mxu1 %vm14218_vm0, %v19288_v25 }
0x201d   :  { %13661 = vmatprep.subr.bf16.mxu1 %v19288_v25 }
0x2023   :  { %13652 = vmatmul.mubr.msk.bf16.vlgmr.msra.gmra.mrb[120].mxu1 %vm647_vm3, %v11026_v48 }
0x2024   :  { %13665 = vmatprep.mubr.msk.bf16.mxu1 %vm14218_vm0, %v19288_v25 }
0x20de   :  { %v10693_v46 = vpop.f32.mrb[108].mxu1 }
0x20df   :  { %v13617_v32 = vpop.f32.mrb[109].mxu1  ;;  %v10694_v0 = vadd.f32 %v14191_v20, %v10693_v46 }
0x20e0   :  { %v10696_v13 = vpop.f32.mrb[110].mxu1 }
0x20e1   :  { %v13618_v62 = vpop.f32.mrb[111].mxu1  ;;  %v10697_v54 = vadd.f32 %v14192_v41, %v10696_v13  ;;  %v10700_v40 = vsel %vm4585_vm9, %v10694_v0, -inf }
0x20e3   :  { %v10703_v45 = vsel %vm4589_vm10, %v10697_v54, -inf }
0x20e6   :  { %v10766_v47 = vpop.f32.mrb[112].mxu1 }
0x20e7   :  { %v10767_v16 = vadd.f32 %v14191_v20, %v10766_v47  ;;  %v13623_v34 = vpop.f32.mrb[113].mxu1 }
0x20e8   :  { %v10769_v26 = vpop.f32.mrb[114].mxu1 }
0x20e9   :  { %v10770_v23 = vadd.f32 %v14192_v41, %v10769_v26  ;;  %v13624_v63 = vpop.f32.mrb[115].mxu1  ;;  %v10773_v8 = vsel %vm4585_vm9, %v10767_v16, -inf }
0x20ea   :  { %10774 = vmax.xlane.f32.xlu1 %v10773_v8 }
0x20eb   :  { %v10776_v24 = vsel %vm4589_vm10, %v10770_v23, -inf }
0x20ee   :  { %10777 = vmax.xlane.f32.xlu1 %v10776_v24  ;;  %v10939_v42 = vpop.f32.mrb[116].mxu1 }
0x20ef   :  { %v13641_v58 = vpop.f32.mrb[117].mxu1  ;;  %v10940_v33 = vadd.f32 %v14191_v20, %v10939_v42 }
0x20f0   :  { %v10942_v52 = vpop.f32.mrb[118].mxu1 }
0x20f1   :  { %v13642_v29 = vpop.f32.mrb[119].mxu1  ;;  %v10943_v19 = vadd.f32 %v14192_v41, %v10942_v52  ;;  %v10946_v14 = vsel %vm4585_vm9, %v10940_v33, -inf }
0x20f2   :  { %10701 = vmax.xlane.f32.xlu1 %v10700_v40 }
0x20f3   :  { %v10949_v35 = vsel %vm4589_vm10, %v10943_v19, -inf }
0x20f6   :  { %10704 = vmax.xlane.f32.xlu1 %v10703_v45  ;;  %v11064_v11 = vpop.f32.mrb[120].mxu1 }
0x20f7   :  { %v11065_v4 = vadd.f32 %v14191_v20, %v11064_v11  ;;  %v13653_v36 = vpop.f32.mrb[121].mxu1 }
0x20f8   :  { %v11067_v44 = vpop.f32.mrb[122].mxu1 }
0x20f9   :  { %v13654_v30 = vpop.f32.mrb[123].mxu1  ;;  %v11071_v17 = vsel %vm4585_vm9, %v11065_v4, -inf  ;;  %v11068_v6 = vadd.f32 %v14192_v41, %v11067_v44  ;;  %v13841_v44 = vld [vmem:[%s19147_s8 + $0x30] sm:$0xff]  }
0x20fa   :  { %10947 = vmax.xlane.f32.xlu1 %v10946_v14  ;;  %11072 = vmax.xlane.f32.xlu0 %v11071_v17 }
0x20fb   :  { %v11074_v38 = vsel %vm4589_vm10, %v11068_v6, -inf  ;;  %13662 = vmatpush3.bf16.msra.mxu1 %v13841_v44 }
0x20fc   :  { %13663 = vmatprep.subr.bf16.mxu1 %v19288_v25 }
0x20fe   :  { %10950 = vmax.xlane.f32.xlu1 %v10949_v35 }
0x2102   :  { %11075 = vmax.xlane.f32.xlu1 %v11074_v38 }
0x2110   :  { %10800 = vrot.lane.b32.xlu0 %v10797_v12, %s14222_s26 }
0x2114   :  { %10973 = vrot.lane.b32.xlu0 %v10970_v27, %s14222_s26 }
0x2177   :  { %v10775_v1 = vpop.xlane.xlu1 %10774 }
0x2178   :  { %v10779_v48 = vsub.f32 %v10767_v16, %v10775_v1 }
0x217a   :  { %v10781_v32 = vmul.f32 1.442695, %v10779_v48 }
0x217b   :  { %v10778_v37 = vpop.xlane.xlu1 %10777 }
0x217c   :  { %v10780_v13 = vsub.f32 %v10770_v23, %v10778_v37 }
0x217e   :  { %v10783_v18 = vmul.f32 1.442695, %v10780_v13 }
0x217f   :  { %v10702_v61 = vpop.xlane.xlu1 %10701 }
0x2180   :  { %v10706_v21 = vsub.f32 %v10694_v0, %v10702_v61 }
0x2182   :  { %v10708_v60 = vmul.f32 1.442695, %v10706_v21 }
0x2183   :  { %v10705_v9 = vpop.xlane.xlu1 %10704 }
0x2184   :  { %14131 = vpow2.f32 %v10708_v60  ;;  %v10707_v46 = vsub.f32 %v10697_v54, %v10705_v9 }
0x2186   :  { %v10710_v62 = vmul.f32 1.442695, %v10707_v46 }
0x2187   :  { %v11073_v47 = vpop.xlane.xlu0 %11072  ;;  %v10948_v23 = vpop.xlane.xlu1 %10947 }
0x2188   :  { %14133 = vpow2.f32 %v10710_v62  ;;  %v10952_v63 = vsub.f32 %v10940_v33, %v10948_v23  ;;  %v11077_v42 = vsub.f32 %v11065_v4, %v11073_v47 }
0x2189   :  { %14135 = vpow2.f32 %v10781_v32 }
0x218a   :  { %14137 = vpow2.f32 %v10783_v18  ;;  %v10954_v0 = vmul.f32 1.442695, %v10952_v63  ;;  %v11079_v54 = vmul.f32 1.442695, %v11077_v42  ;;  %v13842_v63 = vld [vmem:[%s19147_s8 + $0x38] sm:$0xff]  }
0x218b   :  { %v10801_v5 = vpop.permute.xlu0 %10800  ;;  %v10951_v8 = vpop.xlane.xlu1 %10950  ;;  %13664 = vmatpush3.bf16.msra.mxu1 %v13842_v63 }
0x218c   :  { %v10806_v3 = vsel %vm349_vm2, %v10801_v5, 0  ;;  %v10953_v24 = vsub.f32 %v10943_v19, %v10951_v8  ;;  %14139 = vpow2.f32 %v10954_v0  ;;  %13669 = vmatprep.subr.bf16.mxu1 %v19288_v25 }
0x218d   :  { %13626 = vmatpush3.bf16.msra.mxu0 %v10806_v3 }
0x218e   :  { %v18766_v50 = vpop.eup %14131  ;;  %13631 = vmatprep.subr.bf16.mxu0 %v19288_v25  ;;  %v10956_v58 = vmul.f32 1.442695, %v10953_v24 }
0x218f   :  { %v10712_v12 = vsel %vm4585_vm9, %v18766_v50, 0.0  ;;  %v11076_v52 = vpop.xlane.xlu1 %11075  ;;  %v10974_v60 = vpop.permute.xlu0 %10973 }
0x2190   :  { %10713 = vadd.xlane.f32.xlu1 %v10712_v12  ;;  %14141 = vpow2.f32 %v10956_v58  ;;  %v11078_v29 = vsub.f32 %v11068_v6, %v11076_v52  ;;  %v10979_v46 = vsel %vm349_vm2, %v10974_v60, 0  ;;  %v12870_v52 = vld [vmem:[%s19148_s9 + $0x3] ss:$0 sm:$0xff] }
0x2191   :  { %14143 = vpow2.f32 %v11079_v54 }
0x2192   :  { %v14134_v27 = vpop.eup %14133  ;;  %v11081_v40 = vmul.f32 1.442695, %v11078_v29 }
0x2193   :  { %v10715_v20 = vsel %vm4589_vm10, %v14134_v27, 0.0  ;;  %v14136_v16 = vpop.eup %14135 }
0x2194   :  { %10716 = vadd.xlane.f32.xlu1 %v10715_v20  ;;  %v10785_v34 = vsel %vm4585_vm9, %v14136_v16, 0.0  ;;  %v14138_v26 = vpop.eup %14137  ;;  %14145 = vpow2.f32 %v11081_v40 }
0x2195   :  { %v10788_v41 = vsel %vm4589_vm10, %v14138_v26, 0.0 }
0x2196   :  { %v14140_v45 = vpop.eup %14139 }
0x2197   :  { %v10958_v11 = vsel %vm4585_vm9, %v14140_v45, 0.0 }
0x2198   :  { %10786 = vadd.xlane.f32.xlu1 %v10785_v34 }
0x219a   :  { %v14142_v10 = vpop.eup %14141 }
0x219b   :  { %v10961_v43 = vsel %vm4589_vm10, %v14142_v10, 0.0 }
0x219c   :  { %10789 = vadd.xlane.f32.xlu1 %v10788_v41 }
0x21ad   :  { %10850 = vrot.lane.b32.xlu1 %v10724_v7, %s14222_s26  ;;  %v18780_v7 = vpop.eup %14143 }
0x21ae   :  { %v11083_v33 = vsel %vm4585_vm9, %v18780_v7, 0.0  ;;  %v14146_v4 = vpop.eup %14145 }
0x21af   :  { %v11086_v36 = vsel %vm4589_vm10, %v14146_v4, 0.0 }
0x21d1   :  { %10959 = vadd.xlane.f32.xlu1 %v10958_v11 }
0x21d5   :  { %10962 = vadd.xlane.f32.xlu1 %v10961_v43 }
0x21d9   :  { %11084 = vadd.xlane.f32.xlu1 %v11083_v33 }
0x21dd   :  { %11087 = vadd.xlane.f32.xlu1 %v11086_v36 }
0x21ee   :  { %11098 = vrot.lane.b32.xlu1 %v11095_v39, %s14222_s26 }
0x221d   :  { %v10714_v19 = vpop.xlane.xlu1 %10713 }
0x2221   :  { %v10717_v30 = vpop.xlane.xlu1 %10716 }
0x2225   :  { %v10787_v14 = vpop.xlane.xlu1 %10786 }
0x2226   :  { %14147 = vrcp.f32 %v10787_v14 }
0x2229   :  { %v10790_v17 = vpop.xlane.xlu1 %10789 }
0x222a   :  { %14149 = vrcp.f32 %v10790_v17 }
0x222b   :  { %14151 = vrcp.f32 %v10717_v30 }
0x222c   :  { %14153 = vrcp.f32 %v10714_v19 }
0x222d   :  { %v10851_v28 = vpop.permute.xlu1 %10850 }
0x222e   :  { %v10856_v1 = vsel %vm349_vm2, %v10851_v28, 0 }
0x2230   :  { %v14148_v6 = vpop.eup %14147 }
0x2231   :  { %v10793_v38 = vmul.f32 %v14148_v6, %v14136_v16  ;;  %v10466_v6 = vcombine.high %v18628_v49, %v18628_v49 }
0x2234   :  { %v14150_v35 = vpop.eup %14149 }
0x2235   :  { %v10794_v56 = vmul.f32 %v14150_v35, %v14138_v26  ;;  %v14152_v37 = vpop.eup %14151  ;;  %v10467_v35 = vcombine.high %v18622_v53, %v18622_v53 }
0x2236   :  { %v14154_v61 = vpop.eup %14153  ;;  %v10721_v21 = vmul.f32 %v14152_v37, %v14134_v27 }
0x2237   :  { %v10798_v39 = vpack.c.bf16 %v10794_v56, %v10793_v38  ;;  %v10720_v48 = vmul.f32 %v14154_v61, %v18766_v50 }
0x2239   :  { %13628 = vmatmul.mubr.msk.bf16.vlgmr.msra.gmra.mrb[148].mxu0 %vm4585_vm9, %v10798_v39  ;;  %v10725_v9 = vpack.c.bf16 %v10721_v21, %v10720_v48 }
0x223a   :  { %13632 = vmatpush3.bf16.msra.mxu0 %v10856_v1  ;;  %13633 = vmatprep.mubr.msk.bf16.mxu0 %vm14218_vm0, %v19288_v25 }
0x223b   :  { %13643 = vmatprep.subr.bf16.mxu0 %v19288_v25 }
0x2245   :  { %13634 = vmatmul.mubr.msk.bf16.vlgmr.msra.gmra.mrb[148].mxu0 %vm4585_vm9, %v10725_v9 }
0x2246   :  { %13644 = vmatpush3.bf16.msra.mxu0 %v10979_v46  ;;  %13645 = vmatprep.mubr.msk.bf16.mxu0 %vm14218_vm0, %v19288_v25 }
0x2247   :  { %13655 = vmatprep.subr.bf16.mxu0 %v19288_v25 }
0x225e   :  { %v10960_v32 = vpop.xlane.xlu1 %10959 }
0x225f   :  { %14155 = vrcp.f32 %v10960_v32 }
0x2262   :  { %v10963_v13 = vpop.xlane.xlu1 %10962 }
0x2263   :  { %14157 = vrcp.f32 %v10963_v13 }
0x2266   :  { %v11085_v62 = vpop.xlane.xlu1 %11084 }
0x2269   :  { %v14156_v18 = vpop.eup %14155 }
0x226a   :  { %v11088_v47 = vpop.xlane.xlu1 %11087  ;;  %v10966_v3 = vmul.f32 %v14156_v18, %v14140_v45 }
0x226b   :  { %14159 = vrcp.f32 %v11088_v47 }
0x226c   :  { %14161 = vrcp.f32 %v11085_v62 }
0x226d   :  { %v14158_v5 = vpop.eup %14157 }
0x226e   :  { %v10967_v50 = vmul.f32 %v14158_v5, %v14142_v10  ;;  %v11099_v12 = vpop.permute.xlu1 %11098 }
0x226f   :  { %v11104_v20 = vsel %vm349_vm2, %v11099_v12, 0 }
0x2270   :  { %v10971_v27 = vpack.c.bf16 %v10967_v50, %v10966_v3 }
0x2272   :  { %13646 = vmatmul.mubr.msk.bf16.vlgmr.msra.gmra.mrb[148].mxu0 %vm4585_vm9, %v10971_v27 }
0x2273   :  { %13656 = vmatpush3.bf16.msra.mxu0 %v11104_v20  ;;  %13657 = vmatprep.mubr.msk.bf16.mxu0 %vm14218_vm0, %v19288_v25 }
0x2274   :  { %13677 = vmatprep.subr.bf16.mxu0 %v19288_v25 }
0x2275   :  { %v14160_v16 = vpop.eup %14159 }
0x2276   :  { %v14162_v34 = vpop.eup %14161  ;;  %v11092_v26 = vmul.f32 %v14160_v16, %v14146_v4 }
0x2277   :  { %v11091_v41 = vmul.f32 %v14162_v34, %v18780_v7 }
0x2279   :  { %v11096_v23 = vpack.c.bf16 %v11092_v26, %v11091_v41 }
0x227e   :  { %13658 = vmatmul.mubr.msk.bf16.vlgmr.msra.gmra.mrb[148].mxu0 %vm4585_vm9, %v11096_v23 }
0x227f   :  { %13685 = vmatprep.mubr.msk.bf16.mxu0 %vm14218_vm0, %v19288_v25 }
0x2351   :  { %v11140_v8 = vpop.f32.mrb[148].mxu0 }
0x2352   :  { %v13659_v0 = vpop.f32.mrb[149].mxu0 }
0x2353   :  { %v11143_v24 = vpop.f32.mrb[150].mxu0  ;;  %v19412_v0 = vld [vmem:[#allocation21_spill] sm:$0xff] }
0x2354   :  { %v11149_v42 = vpack.c.bf16 %v11143_v24, %v11140_v8  ;;  %v13660_v58 = vpop.f32.mrb[151].mxu0 }
0x2356   :  { %13666 = vmatmul.mubr.msk.bf16.vlgmr.msra.gmra.mrb[124].mxu1 %vm647_vm3, %v11149_v42 }
0x2357   :  { %13673 = vmatprep.mubr.msk.bf16.mxu1 %vm14218_vm0, %v19288_v25 }
0x2429   :  { %v11205_v54 = vpop.f32.mrb[124].mxu1 }
0x242a   :  { %v11206_v29 = vadd.f32 %v12870_v52, %v11205_v54  ;;  %v13667_v40 = vpop.f32.mrb[125].mxu1 }
0x242b   :  { %v11208_v45 = vpop.f32.mrb[126].mxu1 }
0x242c   :  { %v11214_v11 = vcombine.high %v11206_v29, %v11206_v29  ;;  %v11221_v10 = vrot.slane %v11206_v29, %v19408_v51  ;;  %v11209_v43 = vadd.f32 %v12870_v52, %v11208_v45  ;;  %v13668_v7 = vpop.f32.mrb[127].mxu1 }
0x242d   :  { %v19414_v7 = vld [vmem:[#allocation8_spill] sm:$0xff] }
0x242e   :  { %v11228_v33 = vrot.slane %v11214_v11, %v19408_v51  ;;  %v11229_v4 = vcombine.high %v11221_v10, %v11221_v10  ;;  %v11237_v36 = vrot.slane %v11221_v10, %v19408_v51  ;;  %v11269_v44 = vrot.slane %v11209_v43, %v19408_v51  ;;  %v19413_v10 = vld [vmem:[#allocation5_spill] sm:$0xff] }
0x2430   :  { %v11230_v19 = vcombine.high %v11228_v33, %v11228_v33  ;;  %v11244_v30 = vrot.slane %v11228_v33, %v19408_v51  ;;  %v11251_v14 = vrot.slane %v11229_v4, %v19408_v51  ;;  %v11259_v17 = vcombine.high %v11237_v36, %v11237_v36  ;;  %v19415_v4 = vld [vmem:[#allocation9_spill] sm:$0xff] }
0x2431   :  { %v11270_v38 = vcombine.high %v11269_v44, %v11269_v44  ;;  %v11277_v56 = vrot.slane %v11269_v44, %v19408_v51  ;;  %v11295_v61 = vadd.f32 %v11237_v36, %v18628_v49  ;;  %v19416_v44 = vld [vmem:[#allocation27_spill] sm:$0xff] }
0x2432   :  { %v11258_v28 = vrot.slane %v11230_v19, %v19408_v51  ;;  %v11260_v39 = vcombine.high %v11244_v30, %v11244_v30  ;;  %v11261_v1 = vcombine.high %v11251_v14, %v11251_v14  ;;  %v11296_v37 = vadd.f32 %v11251_v14, %v18622_v53 }
0x2433   :  { %v11297_v21 = vadd.f32 %v11259_v17, %v10466_v6  ;;  %v11284_v48 = vrot.slane %v11270_v38, %v19408_v51  ;;  %v11299_v46 = vadd.f32 %v11244_v30, %v18644_v22  ;;  %v11303_v62 = vadd.f32 %v11277_v56, %v18663_v55  ;;  %v19417_v30 = vld [vmem:[#allocation28_spill] sm:$0xff]  ;;  %v19418_v17 = vld [vmem:[#allocation29_spill] sm:$0xff] }
0x2434   :  { %v11262_v60 = vcombine.high %v11258_v28, %v11258_v28  ;;  %v11298_v9 = vadd.f32 %v11261_v1, %v10467_v35  ;;  %v11300_v32 = vadd.f32 %v11258_v28, %v18641_v15  ;;  %v11315_v13 = vcombine.low %v11295_v61, %v11296_v37 }
0x2435   :  { %v11304_v47 = vadd.f32 %v11284_v48, %v18659_v57  ;;  %v11301_v18 = vadd.f32 %v11260_v39, %v18649_v59 }
0x2436   :  { %v11302_v53 = vadd.f32 %v11262_v60, %v18653_v31  ;;  %v11316_v5 = vcombine.low %v11297_v21, %v11298_v9  ;;  %v11317_v49 = vcombine.low %v11299_v46, %v11300_v32  ;;  %v11325_v12 = vrot.slane %v11315_v13, %v19408_v51 }
0x2437   :  { %v11364_v3 = vcombine.low %v11303_v62, %v11304_v47 }
0x2438   :  { %v11318_v50 = vcombine.low %v11301_v18, %v11302_v53  ;;  %v11332_v27 = vrot.slane %v11316_v5, %v19408_v51  ;;  %v11339_v15 = vrot.slane %v11317_v49, %v19408_v51 }
0x2439   :  { %v11371_v22 = vrot.slane %v11364_v3, %v19408_v51 }
0x243a   :  { %v11346_v55 = vrot.slane %v11318_v50, %v19408_v51  ;;  %v11347_v20 = vcombine.low %v11325_v12, %v11332_v27 }
0x243b   :  { %v11378_v57 = vrot.slane %v11371_v22, %v19408_v51 }
0x243c   :  { %v11348_v59 = vcombine.low %v11339_v15, %v11346_v55  ;;  %v11355_v16 = vrot.slane %v11347_v20, %v19408_v51 }
0x243d   :  { %v11384_v31 = vsel %vm5271_vm11, %v11378_v57, 0.0 }
0x243e   :  { %11385 = vadd.xlane.f32.xlu1 %v11384_v31  ;;  %v11362_v34 = vrot.slane %v11348_v59, %v19408_v51 }
0x2440   :  { %v11363_v26 = vcombine.low %v11355_v16, %v11362_v34 }
0x2442   :  { %v11381_v41 = vsel %vm647_vm3, %v11363_v26, 0.0  ;;  %v13843_v26 = vld [vmem:[%s19151_s12 + $0x30] sm:$0xff]  }
0x2443   :  { %11382 = vadd.xlane.f32.xlu0 %v11381_v41  ;;  %13670 = vmatpush3.bf16.msra.mxu1 %v13843_v26  ;;  %v13844_v41 = vld [vmem:[%s19151_s12 + $0x38] sm:$0xff]  }
0x2444   :  { %13671 = vmatprep.subr.bf16.mxu1 %v19288_v25 }
0x2447   :  { %13672 = vmatpush3.bf16.msra.mxu1 %v13844_v41 }
0x2448   :  { %13689 = vmatprep.subr.bf16.mxu1 %v19288_v25 }
0x24cb   :  { %v11386_v23 = vpop.xlane.xlu1 %11385 }
0x24cc   :  { %v11388_v63 = vmul.f32 0.03125, %v11386_v23  ;;  %v13845_v23 = vld [vmem:[%s19153_s14 + $0x60] sm:$0xff]  }
0x24cd   :  { %13678 = vmatpush3.bf16.msra.mxu0 %v13845_v23 }
0x24ce   :  { %v11426_v8 = vrot.slane %v11388_v63, %v19406_v2  ;;  %v11430_v24 = vrot.slane %v11388_v63, %v19412_v0  ;;  %v13846_v63 = vld [vmem:[%s19153_s14 + $0x68] sm:$0xff]   ;;  %13679 = vmatprep.subr.bf16.mxu0 %v19288_v25 }
0x24d0   :  { %v18856_v42 = vsub.f32 %v11303_v62, %v11426_v8  ;;  %v18858_v58 = vsub.f32 %v11304_v47, %v11430_v24  ;;  %v11383_v52 = vpop.xlane.xlu0 %11382  ;;  %v12874_v8 = vld [vmem:[%s19149_s10 + $0x3] ss:$0 sm:$0xff] }
0x24d1   :  { %v11387_v54 = vmul.f32 0.03125, %v11383_v52  ;;  %13680 = vmatpush3.bf16.msra.mxu0 %v13846_v63  ;;  %v12875_v24 = vld [vmem:[%s19150_s11 + $0x3] ss:$0 sm:$0xff]  ;;  %v11616_v52 = vcombine.high %v12874_v8, %v12874_v8 }
0x24d2   :  { %v11459_v29 = vmul.f32 %v18856_v42, %v18856_v42  ;;  %v11460_v40 = vmul.f32 %v18858_v58, %v18858_v58  ;;  %13681 = vmatprep.subr.bf16.mxu0 %v19288_v25 }
0x24d3   :  { %v11394_v45 = vrot.slane %v11387_v54, %v19406_v2  ;;  %v11398_v11 = vrot.slane %v11387_v54, %v19412_v0  ;;  %v11402_v43 = vrot.slane %v11387_v54, %v19413_v10  ;;  %v11406_v33 = vrot.slane %v11387_v54, %v19414_v7 }
0x24d4   :  { %v11410_v36 = vrot.slane %v11387_v54, %v19415_v4  ;;  %v11414_v19 = vrot.slane %v11387_v54, %v19416_v44  ;;  %v11418_v14 = vrot.slane %v11387_v54, %v19417_v30  ;;  %v11422_v6 = vrot.slane %v11387_v54, %v19418_v17 }
0x24d5   :  { %v18872_v35 = vsub.f32 %v11295_v61, %v11394_v45  ;;  %v18874_v38 = vsub.f32 %v11296_v37, %v11398_v11  ;;  %v18876_v56 = vsub.f32 %v11297_v21, %v11402_v43  ;;  %v18878_v28 = vsub.f32 %v11298_v9, %v11406_v33 }
0x24d6   :  { %v18880_v39 = vsub.f32 %v11299_v46, %v11410_v36  ;;  %v18882_v1 = vsub.f32 %v11300_v32, %v11414_v19  ;;  %v18884_v48 = vsub.f32 %v11301_v18, %v11418_v14  ;;  %v18886_v60 = vsub.f32 %v11302_v53, %v11422_v6 }
0x24d7   :  { %v11451_v13 = vmul.f32 %v18872_v35, %v18872_v35  ;;  %v11452_v61 = vmul.f32 %v18874_v38, %v18874_v38  ;;  %v11453_v37 = vmul.f32 %v18876_v56, %v18876_v56  ;;  %v11454_v21 = vmul.f32 %v18878_v28, %v18878_v28 }
0x24d8   :  { %v11455_v9 = vmul.f32 %v18880_v39, %v18880_v39  ;;  %v11456_v46 = vmul.f32 %v18882_v1, %v18882_v1  ;;  %v11457_v32 = vmul.f32 %v18884_v48, %v18884_v48  ;;  %v11458_v62 = vmul.f32 %v18886_v60, %v18886_v60 }
0x24d9   :  { %v11471_v47 = vcombine.low %v11451_v13, %v11452_v61  ;;  %v11472_v18 = vcombine.low %v11453_v37, %v11454_v21  ;;  %v11520_v27 = vcombine.low %v11459_v29, %v11460_v40  ;;  %v11688_v54 = vcombine.high %v12875_v24, %v12875_v24 }
0x24da   :  { %v11473_v53 = vcombine.low %v11455_v9, %v11456_v46  ;;  %v11474_v5 = vcombine.low %v11457_v32, %v11458_v62  ;;  %v11623_v45 = vrot.slane %v12874_v8, %v19408_v51  ;;  %v11630_v11 = vrot.slane %v11616_v52, %v19408_v51 }
0x24db   :  { %v11481_v49 = vrot.slane %v11471_v47, %v19408_v51  ;;  %v11488_v3 = vrot.slane %v11472_v18, %v19408_v51  ;;  %v11527_v57 = vrot.slane %v11520_v27, %v19408_v51  ;;  %v11695_v33 = vrot.slane %v12875_v24, %v19408_v51 }
0x24dc   :  { %v11495_v50 = vrot.slane %v11473_v53, %v19408_v51  ;;  %v11502_v12 = vrot.slane %v11474_v5, %v19408_v51  ;;  %v11702_v36 = vrot.slane %v11688_v54, %v19408_v51  ;;  %v11631_v6 = vcombine.high %v11623_v45, %v11623_v45 }
0x24dd   :  { %v11503_v22 = vcombine.low %v11481_v49, %v11488_v3  ;;  %v11534_v16 = vrot.slane %v11527_v57, %v19408_v51  ;;  %v11632_v13 = vcombine.high %v11630_v11, %v11630_v11  ;;  %v11703_v61 = vcombine.high %v11695_v33, %v11695_v33 }
0x24de   :  { %v11504_v15 = vcombine.low %v11495_v50, %v11502_v12  ;;  %v11704_v21 = vcombine.high %v11702_v36, %v11702_v36  ;;  %v11639_v9 = vrot.slane %v11623_v45, %v19408_v51  ;;  %v11653_v46 = vrot.slane %v11631_v6, %v19408_v51 }
0x24df   :  { %v11511_v55 = vrot.slane %v11503_v22, %v19408_v51  ;;  %v11540_v34 = vsel %vm5271_vm11, %v11534_v16, 0.0  ;;  %v11646_v32 = vrot.slane %v11630_v11, %v19408_v51  ;;  %v11660_v62 = vrot.slane %v11632_v13, %v19408_v51 }
0x24e0   :  { %v11518_v20 = vrot.slane %v11504_v15, %v19408_v51  ;;  %v11711_v47 = vrot.slane %v11695_v33, %v19408_v51  ;;  %v11725_v18 = vrot.slane %v11703_v61, %v19408_v51  ;;  %v11718_v53 = vrot.slane %v11702_v36, %v19408_v51 }
0x24e1   :  { %v11732_v5 = vrot.slane %v11704_v21, %v19408_v51  ;;  %v11661_v49 = vcombine.high %v11639_v9, %v11639_v9  ;;  %v11663_v3 = vcombine.high %v11653_v46, %v11653_v46  ;;  %v11662_v50 = vcombine.high %v11646_v32, %v11646_v32 }
0x24e2   :  { %v11519_v59 = vcombine.low %v11511_v55, %v11518_v20  ;;  %v11664_v12 = vcombine.high %v11660_v62, %v11660_v62  ;;  %v11733_v22 = vcombine.high %v11711_v47, %v11711_v47  ;;  %v11734_v15 = vcombine.high %v11718_v53, %v11718_v53 }
0x24e3   :  { %v11735_v55 = vcombine.high %v11725_v18, %v11725_v18  ;;  %v11736_v20 = vcombine.high %v11732_v5, %v11732_v5 }
0x24e4   :  { %v11537_v31 = vsel %vm647_vm3, %v11519_v59, 0.0 }
0x24e5   :  { %11538 = vadd.xlane.f32.xlu0 %v11537_v31 }
0x24e9   :  { %11541 = vadd.xlane.f32.xlu0 %v11540_v34 }
0x2572   :  { %v11539_v29 = vpop.xlane.xlu0 %11538 }
0x2573   :  { %v11543_v40 = vmul.f32 0.03125, %v11539_v29 }
0x2575   :  { %v11545_v43 = vadd.f32 1e-05, %v11543_v40 }
0x2576   :  { %v11542_v19 = vpop.xlane.xlu0 %11541 }
0x2577   :  { %14163 = vrsqrt.f32 %v11545_v43  ;;  %v11544_v14 = vmul.f32 0.03125, %v11542_v19 }
0x2579   :  { %v11546_v37 = vadd.f32 1e-05, %v11544_v14 }
0x257b   :  { %14165 = vrsqrt.f32 %v11546_v37 }
0x2581   :  { %v14164_v27 = vpop.eup %14163 }
0x2582   :  { %v11554_v57 = vrot.slane %v14164_v27, %v19406_v2  ;;  %v11558_v59 = vrot.slane %v14164_v27, %v19412_v0  ;;  %v11562_v31 = vrot.slane %v14164_v27, %v19413_v10  ;;  %v11566_v16 = vrot.slane %v14164_v27, %v19414_v7 }
0x2583   :  { %v11570_v34 = vrot.slane %v14164_v27, %v19415_v4  ;;  %v11574_v26 = vrot.slane %v14164_v27, %v19416_v44  ;;  %v11578_v41 = vrot.slane %v14164_v27, %v19417_v30  ;;  %v11582_v23 = vrot.slane %v14164_v27, %v19418_v17 }
0x2584   :  { %v11601_v63 = vmul.f32 %v11554_v57, %v18872_v35  ;;  %v11602_v8 = vmul.f32 %v11558_v59, %v18874_v38  ;;  %v11603_v24 = vmul.f32 %v11562_v31, %v18876_v56  ;;  %v11604_v52 = vmul.f32 %v11566_v16, %v18878_v28 }
0x2585   :  { %v14166_v54 = vpop.eup %14165  ;;  %v11605_v29 = vmul.f32 %v11570_v34, %v18880_v39  ;;  %v11606_v40 = vmul.f32 %v11574_v26, %v18882_v1  ;;  %v11607_v45 = vmul.f32 %v11578_v41, %v18884_v48  ;;  %v11608_v11 = vmul.f32 %v11582_v23, %v18886_v60  ;;  %v13847_v34 = vld [vmem:[%s19153_s14 + $0x70] sm:$0xff]   ;;  %v13848_v26 = vld [vmem:[%s19153_s14 + $0x78] sm:$0xff]   ;;  %v12876_v41 = vld [vmem:[%s19152_s13 + $0x3] ss:$0 sm:$0xff] }
0x2586   :  { %v11673_v43 = vmul.f32 %v11639_v9, %v11601_v63  ;;  %v11674_v33 = vmul.f32 %v11653_v46, %v11602_v8  ;;  %v11586_v36 = vrot.slane %v14166_v54, %v19406_v2  ;;  %v11590_v35 = vrot.slane %v14166_v54, %v19412_v0  ;;  %13682 = vmatpush3.bf16.msra.mxu0 %v13847_v34 }
0x2587   :  { %v11675_v38 = vmul.f32 %v11661_v49, %v11603_v24  ;;  %v11676_v19 = vmul.f32 %v11663_v3, %v11604_v52  ;;  %v11677_v56 = vmul.f32 %v11646_v32, %v11605_v29  ;;  %v11678_v14 = vmul.f32 %v11660_v62, %v11606_v40  ;;  %13683 = vmatprep.subr.bf16.mxu0 %v19288_v25 }
0x2588   :  { %v11609_v28 = vmul.f32 %v11586_v36, %v18856_v42  ;;  %v11610_v39 = vmul.f32 %v11590_v35, %v18858_v58  ;;  %v11679_v6 = vmul.f32 %v11662_v50, %v11607_v45  ;;  %v11680_v1 = vmul.f32 %v11664_v12, %v11608_v11  ;;  %v12880_v11 = vld [vmem:[%s19154_s15 + $0x3] ss:$0 sm:$0xff] }
0x2589   :  { %v18968_v13 = vadd.f32 %v11711_v47, %v11673_v43  ;;  %v18970_v48 = vadd.f32 %v11725_v18, %v11674_v33  ;;  %v18972_v60 = vadd.f32 %v11733_v22, %v11675_v38  ;;  %v18974_v61 = vadd.f32 %v11735_v55, %v11676_v19 }
0x258a   :  { %v11681_v37 = vmul.f32 %v11639_v9, %v11609_v28  ;;  %v11682_v21 = vmul.f32 %v11653_v46, %v11610_v39  ;;  %v18976_v49 = vadd.f32 %v11718_v53, %v11677_v56  ;;  %v18978_v32 = vadd.f32 %v11732_v5, %v11678_v14  ;;  %13684 = vmatpush3.bf16.msra.mxu0 %v13848_v26 }
0x258b   :  { %v18980_v62 = vadd.f32 %v11734_v15, %v11679_v6  ;;  %v18982_v42 = vadd.f32 %v11736_v20, %v11680_v1  ;;  %v11765_v58 = vcombine.low %v18968_v13, %v18970_v48  ;;  %v11766_v3 = vcombine.low %v18972_v60, %v18974_v61 }
0x258c   :  { %v18988_v50 = vadd.f32 %v11711_v47, %v11681_v37  ;;  %v18990_v12 = vadd.f32 %v11725_v18, %v11682_v21  ;;  %v11767_v9 = vcombine.low %v18976_v49, %v18978_v32 }
0x258d   :  { %v11768_v46 = vcombine.low %v18980_v62, %v18982_v42  ;;  %v11775_v53 = vrot.slane %v11765_v58, %v19408_v51  ;;  %v11782_v5 = vrot.slane %v11766_v3, %v19408_v51 }
0x258e   :  { %v11789_v27 = vrot.slane %v11767_v9, %v19408_v51  ;;  %v11814_v22 = vcombine.low %v18988_v50, %v18990_v12 }
0x258f   :  { %v11796_v47 = vrot.slane %v11768_v46, %v19408_v51  ;;  %v11797_v15 = vcombine.low %v11775_v53, %v11782_v5 }
0x2590   :  { %v11821_v18 = vrot.slane %v11814_v22, %v19408_v51 }
0x2591   :  { %v11798_v55 = vcombine.low %v11789_v27, %v11796_v47  ;;  %v11805_v20 = vrot.slane %v11797_v15, %v19408_v51 }
0x2592   :  { %v11828_v59 = vrot.slane %v11821_v18, %v19408_v51 }
0x2593   :  { %v11812_v57 = vrot.slane %v11798_v55, %v19408_v51 }
0x2595   :  { %v11813_v31 = vcombine.low %v11805_v20, %v11812_v57 }
0x2597   :  { %v11831_v16 = vpack.c.bf16 %v11828_v59, %v11813_v31 }
0x2599   :  { %13674 = vmatmul.mubr.msk.bf16.vlgmr.msra.gmra.mrb[128].mxu1 %vm647_vm3, %v11831_v16 }
0x259a   :  { %13693 = vmatprep.mubr.msk.bf16.mxu1 %vm14218_vm0, %v19288_v25 }
0x266c   :  { %v11887_v23 = vpop.f32.mrb[128].mxu1 }
0x266d   :  { %v11888_v63 = vadd.f32 %v12876_v41, %v11887_v23  ;;  %v13675_v8 = vpop.f32.mrb[129].mxu1 }
0x266e   :  { %v11890_v24 = vpop.f32.mrb[130].mxu1 }
0x266f   :  { %v11891_v52 = vadd.f32 %v12876_v41, %v11890_v24  ;;  %v13676_v54 = vpop.f32.mrb[131].mxu1  ;;  %v11894_v29 = vmax.f32 %v11888_v63, 0.0 }
0x2671   :  { %v11895_v40 = vmax.f32 %v11891_v52, 0.0 }
0x2673   :  { %v11896_v45 = vpack.c.bf16 %v11895_v40, %v11894_v29 }
0x2675   :  { %13686 = vmatmul.mubr.msk.bf16.vlgmr.msra.gmra.mrb[152].mxu0 %vm3102_vm5, %v11896_v45 }
0x2748   :  { %v11964_v43 = vpop.f32.mrb[152].mxu0 }
0x2749   :  { %v11965_v33 = vadd.f32 %v12880_v11, %v11964_v43  ;;  %v13687_v36 = vpop.f32.mrb[153].mxu0 }
0x274a   :  { %v11967_v35 = vpop.f32.mrb[154].mxu0 }
0x274b   :  { %v11973_v38 = vcombine.high %v11965_v33, %v11965_v33  ;;  %v11980_v19 = vrot.slane %v11965_v33, %v19408_v51  ;;  %v11968_v56 = vadd.f32 %v12880_v11, %v11967_v35  ;;  %v13688_v14 = vpop.f32.mrb[155].mxu0 }
0x274d   :  { %v11987_v28 = vrot.slane %v11973_v38, %v19408_v51  ;;  %v11988_v39 = vcombine.high %v11980_v19, %v11980_v19  ;;  %v11996_v6 = vrot.slane %v11980_v19, %v19408_v51  ;;  %v12028_v1 = vrot.slane %v11968_v56, %v19408_v51 }
0x274f   :  { %v11989_v37 = vcombine.high %v11987_v28, %v11987_v28  ;;  %v12003_v21 = vrot.slane %v11987_v28, %v19408_v51  ;;  %v12010_v58 = vrot.slane %v11988_v39, %v19408_v51  ;;  %v12018_v3 = vcombine.high %v11996_v6, %v11996_v6 }
0x2750   :  { %v12029_v9 = vcombine.high %v12028_v1, %v12028_v1  ;;  %v12036_v46 = vrot.slane %v12028_v1, %v19408_v51  ;;  %v12054_v47 = vadd.f32 %v11996_v6, %v18968_v13 }
0x2751   :  { %v12017_v53 = vrot.slane %v11989_v37, %v19408_v51  ;;  %v12019_v5 = vcombine.high %v12003_v21, %v12003_v21  ;;  %v12020_v27 = vcombine.high %v12010_v58, %v12010_v58  ;;  %v12055_v22 = vadd.f32 %v12010_v58, %v18970_v48 }
0x2752   :  { %v12056_v15 = vadd.f32 %v12018_v3, %v18972_v60  ;;  %v12043_v18 = vrot.slane %v12029_v9, %v19408_v51  ;;  %v12058_v57 = vadd.f32 %v12003_v21, %v18976_v49  ;;  %v12062_v16 = vadd.f32 %v12036_v46, %v18988_v50 }
0x2753   :  { %v12021_v55 = vcombine.high %v12017_v53, %v12017_v53  ;;  %v12057_v20 = vadd.f32 %v12020_v27, %v18974_v61  ;;  %v12059_v59 = vadd.f32 %v12017_v53, %v18978_v32  ;;  %v12074_v31 = vcombine.low %v12054_v47, %v12055_v22 }
0x2754   :  { %v12063_v34 = vadd.f32 %v12043_v18, %v18990_v12  ;;  %v12060_v48 = vadd.f32 %v12019_v5, %v18980_v62 }
0x2755   :  { %v12061_v13 = vadd.f32 %v12021_v55, %v18982_v42  ;;  %v12075_v26 = vcombine.low %v12056_v15, %v12057_v20  ;;  %v12076_v60 = vcombine.low %v12058_v57, %v12059_v59  ;;  %v12084_v63 = vrot.slane %v12074_v31, %v19408_v51 }
0x2756   :  { %v12123_v41 = vcombine.low %v12062_v16, %v12063_v34 }
0x2757   :  { %v12077_v23 = vcombine.low %v12060_v48, %v12061_v13  ;;  %v12091_v61 = vrot.slane %v12075_v26, %v19408_v51  ;;  %v12098_v32 = vrot.slane %v12076_v60, %v19408_v51 }
0x2758   :  { %v12130_v49 = vrot.slane %v12123_v41, %v19408_v51 }
0x2759   :  { %v12105_v50 = vrot.slane %v12077_v23, %v19408_v51  ;;  %v12106_v8 = vcombine.low %v12084_v63, %v12091_v61 }
0x275a   :  { %v12137_v12 = vrot.slane %v12130_v49, %v19408_v51 }
0x275b   :  { %v12107_v62 = vcombine.low %v12098_v32, %v12105_v50  ;;  %v12114_v24 = vrot.slane %v12106_v8, %v19408_v51 }
0x275c   :  { %v12143_v42 = vsel %vm5271_vm11, %v12137_v12, 0.0 }
0x275d   :  { %12144 = vadd.xlane.f32.xlu1 %v12143_v42  ;;  %v12121_v52 = vrot.slane %v12107_v62, %v19408_v51 }
0x275f   :  { %v12122_v54 = vcombine.low %v12114_v24, %v12121_v52 }
0x2761   :  { %v12140_v29 = vsel %vm647_vm3, %v12122_v54, 0.0 }
0x2762   :  { %12141 = vadd.xlane.f32.xlu0 %v12140_v29  ;;  %v12886_v29 = vld [vmem:[%s19155_s16 + $0x3] ss:$0 sm:$0xff] }
0x27ea   :  { %v12145_v40 = vpop.xlane.xlu1 %12144 }
0x27eb   :  { %v12147_v45 = vmul.f32 0.03125, %v12145_v40  ;;  %v12334_v40 = vrot.slane %v12886_v29, %v19408_v51 }
0x27ed   :  { %v12185_v11 = vrot.slane %v12147_v45, %v19406_v2  ;;  %v12189_v43 = vrot.slane %v12147_v45, %v19412_v0 }
0x27ef   :  { %v12208_v33 = vsub.f32 %v12062_v16, %v12185_v11  ;;  %v19054_v36 = vsub.f32 %v12063_v34, %v12189_v43  ;;  %v12142_v35 = vpop.xlane.xlu0 %12141  ;;  %v12887_v11 = vld [vmem:[%s19156_s17 + $0x3] ss:$0 sm:$0xff]  ;;  %v12327_v43 = vcombine.high %v12886_v29, %v12886_v29 }
0x27f0   :  { %v12146_v38 = vmul.f32 0.03125, %v12142_v35  ;;  %v12349_v35 = vcombine.high %v12334_v40, %v12334_v40 }
0x27f1   :  { %v12218_v19 = vmul.f32 %v12208_v33, %v12208_v33  ;;  %v12219_v56 = vmul.f32 %v19054_v36, %v19054_v36 }
0x27f2   :  { %v12153_v14 = vrot.slane %v12146_v38, %v19406_v2  ;;  %v12157_v28 = vrot.slane %v12146_v38, %v19412_v0  ;;  %v12161_v39 = vrot.slane %v12146_v38, %v19413_v10  ;;  %v12165_v6 = vrot.slane %v12146_v38, %v19414_v7 }
0x27f3   :  { %v12279_v1 = vcombine.low %v12218_v19, %v12219_v56  ;;  %v12169_v37 = vrot.slane %v12146_v38, %v19415_v4  ;;  %v12173_v21 = vrot.slane %v12146_v38, %v19416_v44  ;;  %v12177_v58 = vrot.slane %v12146_v38, %v19417_v30 }
0x27f4   :  { %v12181_v3 = vrot.slane %v12146_v38, %v19418_v17  ;;  %v12200_v9 = vsub.f32 %v12054_v47, %v12153_v14  ;;  %v12201_v46 = vsub.f32 %v12055_v22, %v12157_v28  ;;  %v12202_v53 = vsub.f32 %v12056_v15, %v12161_v39 }
0x27f5   :  { %v12286_v5 = vrot.slane %v12279_v1, %v19408_v51  ;;  %v12203_v27 = vsub.f32 %v12057_v20, %v12165_v6  ;;  %v12204_v18 = vsub.f32 %v12058_v57, %v12169_v37  ;;  %v12205_v55 = vsub.f32 %v12059_v59, %v12173_v21 }
0x27f6   :  { %v12206_v10 = vsub.f32 %v12060_v48, %v12177_v58  ;;  %v12207_v31 = vsub.f32 %v12061_v13, %v12181_v3  ;;  %v12210_v7 = vmul.f32 %v12200_v9, %v12200_v9  ;;  %v12211_v16 = vmul.f32 %v12201_v46, %v12201_v46 }
0x27f7   :  { %v12293_v34 = vrot.slane %v12286_v5, %v19408_v51  ;;  %v12212_v26 = vmul.f32 %v12202_v53, %v12202_v53  ;;  %v12213_v44 = vmul.f32 %v12203_v27, %v12203_v27  ;;  %v12214_v60 = vmul.f32 %v12204_v18, %v12204_v18 }
0x27f8   :  { %v12215_v30 = vmul.f32 %v12205_v55, %v12205_v55  ;;  %v12216_v41 = vmul.f32 %v12206_v10, %v12206_v10  ;;  %v12217_v17 = vmul.f32 %v12207_v31, %v12207_v31  ;;  %v12230_v47 = vcombine.low %v12210_v7, %v12211_v16 }
0x27f9   :  { %v12299_v22 = vsel %vm5271_vm11, %v12293_v34, 0.0  ;;  %v12231_v15 = vcombine.low %v12212_v26, %v12213_v44  ;;  %v12366_v38 = vcombine.high %v12887_v11, %v12887_v11  ;;  %v12373_v19 = vrot.slane %v12887_v11, %v19408_v51 }
0x27fa   :  { %12300 = vadd.xlane.f32.xlu1 %v12299_v22  ;;  %v12232_v20 = vcombine.low %v12214_v60, %v12215_v30  ;;  %v12233_v57 = vcombine.low %v12216_v41, %v12217_v17  ;;  %v12240_v59 = vrot.slane %v12230_v47, %v19408_v51  ;;  %v12341_v56 = vrot.slane %v12327_v43, %v19408_v51  ;;  %v13849_v22 = vld [vmem:[%s19159_s20] sm:$0xff]  }
0x27fb   :  { %v12247_v48 = vrot.slane %v12231_v15, %v19408_v51  ;;  %v12356_v28 = vrot.slane %v12349_v35, %v19408_v51  ;;  %v12380_v39 = vrot.slane %v12366_v38, %v19408_v51  ;;  %v12388_v6 = vcombine.high %v12373_v19, %v12373_v19  ;;  %13690 = vmatpush3.bf16.msra.mxu1 %v13849_v22  ;;  %v13850_v15 = vld [vmem:[%s19159_s20 + $0x8] sm:$0xff]   ;;  %s14227_s20 = smov [#allocation2]  }
0x27fc   :  { %v12254_v13 = vrot.slane %v12232_v20, %v19408_v51  ;;  %v12261_v23 = vrot.slane %v12233_v57, %v19408_v51  ;;  %v12348_v21 = vrot.slane %v12341_v56, %v19408_v51  ;;  %13691 = vmatprep.subr.bf16.mxu1 %v19288_v25  ;;  %s12621_s7 = sshll.u32 %s14227_s20, 4  ;;  %s12622_s7 = int_to_ptr.vmem [resolvable:$true] %s12621_s7 }
0x27fd   :  { %v12262_v63 = vcombine.low %v12240_v59, %v12247_v48  ;;  %v12387_v9 = vrot.slane %v12380_v39, %v19408_v51  ;;  %v12395_v46 = vrot.slane %v12388_v6, %v19408_v51  ;;  %v12888_v48 = vld [vmem:[%s19157_s18] ss:$0 sm:$0xff]  ;;  %s14193_s1 = scalar_lea.vmem %s12622_s7, 32  ;;  %p14198_p1 = scmp.lt.s32.totalorder %s12622_s7, %s12622_s7 }
0x27fe   :  { %v12263_v61 = vcombine.low %v12254_v13, %v12261_v23  ;;  %v12889_v13 = vld [vmem:[%s19158_s19] ss:$0 sm:$0xff]  ;;  %v12487_v23 = vrot.slane %v12888_v48, %v19408_v51  ;;  %p14194_p0 = scmp.ne.s32.totalorder %s12622_s7, %s14193_s1  ;;  %p14199_p2 = scmp.lt.s32.totalorder %s14193_s1, %s14193_s1 }
0x27ff   :  { %v12270_v49 = vrot.slane %v12262_v63, %v19408_v51  ;;  %13692 = vmatpush3.bf16.msra.mxu1 %v13850_v15  ;;  %v12518_v63 = vrot.slane %v12889_v13, %v19408_v51 }
0x2800   :  { %v12277_v32 = vrot.slane %v12263_v61, %v19408_v51  ;;  %v12488_v61 = vcombine.high %v12487_v23, %v12487_v23  ;;  %p14200_p3 = por %p14199_p2, %p14198_p1 }
0x2802   :  { %v12278_v50 = vcombine.low %v12270_v49, %v12277_v32  ;;  %v12519_v49 = vcombine.high %v12518_v63, %v12518_v63  ;;  %v12495_v32 = vrot.slane %v12487_v23, %v19408_v51  ;;  %p14201_p4 = pnand %p14200_p3, %p14194_p0 }
0x2804   :  { %v12296_v8 = vsel %vm647_vm3, %v12278_v50, 0.0  ;;  %v12502_v50 = vrot.slane %v12488_v61, %v19408_v51 }
0x2805   :  { %12297 = vadd.xlane.f32.xlu0 %v12296_v8 }
0x2887   :  { %v12301_v12 = vpop.xlane.xlu1 %12300 }
0x2888   :  { %v12303_v62 = vmul.f32 0.03125, %v12301_v12 }
0x288a   :  { %v12305_v42 = vadd.f32 1e-05, %v12303_v62  ;;  %v12533_v62 = vrot.slane %v12519_v49, %v19408_v51 }
0x288c   :  { %14167 = vrsqrt.f32 %v12305_v42 }
0x2892   :  { %v12298_v24 = vpop.xlane.xlu0 %12297 }
0x2893   :  { %v12302_v52 = vmul.f32 0.03125, %v12298_v24 }
0x2895   :  { %v12304_v54 = vadd.f32 1e-05, %v12302_v52  ;;  %v12526_v52 = vrot.slane %v12518_v63, %v19408_v51 }
0x2896   :  { %v14168_v45 = vpop.eup %14167 }
0x2897   :  { %14169 = vrsqrt.f32 %v12304_v54  ;;  %v12317_v33 = vrot.slane %v14168_v45, %v19412_v0 }
0x2899   :  { %v12321_v14 = vmul.f32 %v12317_v33, %v19054_v36 }
0x289b   :  { %v12360_v3 = vmul.f32 %v12356_v28, %v12321_v14 }
0x289d   :  { %v12399_v27 = vadd.f32 %v12395_v46, %v12360_v3 }
0x28a1   :  { %v14170_v1 = vpop.eup %14169 }
0x28a2   :  { %v12313_v37 = vrot.slane %v14170_v1, %v19415_v4 }
0x28a4   :  { %v12320_v58 = vmul.f32 %v12313_v37, %v12204_v18 }
0x28a6   :  { %v12359_v53 = vmul.f32 %v12348_v21, %v12320_v58 }
0x28a8   :  { %v12398_v5 = vadd.f32 %v12387_v9, %v12359_v53 }
0x28aa   :  { %v12404_v36 = vcombine.low %v12398_v5, %v12399_v27 }
0x28ac   :  { %v12411_v55 = vrot.slane %v12404_v36, %v19408_v51 }
0x28ae   :  { %v12418_v10 = vrot.slane %v12411_v55, %v19408_v51 }
0x28b0   :  { %v12420_v31 = vsel %vm5271_vm11, %v12418_v10, 0.0 }
0x28b1   :  { %12421 = vadd.xlane.f32.xlu0 %v12420_v31 }
0x293e   :  { %v12422_v4 = vpop.xlane.xlu0 %12421 }
0x293f   :  { %v12423_v7 = vmul.f32 0.03125, %v12422_v4 }
0x2941   :  { %v12428_v18 = vrot.slane %v12423_v7, %v19406_v2  ;;  %v12432_v16 = vrot.slane %v12423_v7, %v19412_v0 }
0x2943   :  { %v12435_v34 = vsub.f32 %v12398_v5, %v12428_v18  ;;  %v12436_v26 = vsub.f32 %v12399_v27, %v12432_v16 }
0x2945   :  { %v12437_v44 = vmul.f32 %v12435_v34, %v12435_v34  ;;  %v12438_v60 = vmul.f32 %v12436_v26, %v12436_v26 }
0x2947   :  { %v12441_v30 = vcombine.low %v12437_v44, %v12438_v60 }
0x2949   :  { %v12448_v41 = vrot.slane %v12441_v30, %v19408_v51 }
0x294b   :  { %v12455_v17 = vrot.slane %v12448_v41, %v19408_v51 }
0x294d   :  { %v12457_v47 = vsel %vm5271_vm11, %v12455_v17, 0.0 }
0x294e   :  { %12458 = vadd.xlane.f32.xlu1 %v12457_v47 }
0x29db   :  { %v12459_v20 = vpop.xlane.xlu1 %12458 }
0x29dc   :  { %v12460_v57 = vmul.f32 0.03125, %v12459_v20 }
0x29de   :  { %v12461_v59 = vadd.f32 1e-05, %v12460_v57 }
0x29e0   :  { %14171 = vrsqrt.f32 %v12461_v59 }
0x29ea   :  { %v14172_v25 = vpop.eup %14171 }
0x29eb   :  { %v12467_v8 = vrot.slane %v14172_v25, %v19406_v2  ;;  %v12471_v12 = vrot.slane %v14172_v25, %v19412_v0  ;;  %v12890_v0 = vld [vmem:[%s19160_s21] ss:$0 sm:$0xff] }
0x29ed   :  { %v12474_v42 = vmul.f32 %v12467_v8, %v12435_v34  ;;  %v12475_v24 = vmul.f32 %v12471_v12, %v12436_v26 }
0x29ef   :  { %v12505_v54 = vmul.f32 %v12495_v32, %v12474_v42  ;;  %v12506_v29 = vmul.f32 %v12502_v50, %v12475_v24 }
0x29f1   :  { %v12537_v40 = vadd.f32 %v12533_v62, %v12506_v29  ;;  %v12536_v45 = vadd.f32 %v12526_v52, %v12505_v54 }
0x29f3   :  { %v12542_v11 = vpack.c.bf16 %v12536_v45, %v12536_v45  ;;  %v12543_v43 = vpack.c.bf16 %v12537_v40, %v12537_v40 }
0x29f5   :  { %v12554_v33 = vunpack.c.l.b16 %v12543_v43  ;;  %v12553_v35 = vunpack.c.l.b16 %v12542_v11 }
0x29f7   :  { %v12555_v38 = vrot.slane %v12554_v33, 7 }
0x29f9   :  { %v12556_v19 = vsel %vm4297_vm6, %v12555_v38, %v12553_v35 }
0x29fa   :  { %v12557_v2 = vpack.c.b16 %v12556_v19, %v12556_v19 }
0x29fc   :  { %13694 = vmatmul.mubr.msk.bf16.vlgmr.msra.gmra.mrb[132].mxu1 %vm647_vm3, %v12557_v2 }
0x2acf   :  { %v12607_v51 = vpop.f32.mrb[132].mxu1 }
0x2ad0   :  { %v12608_v56 = vadd.f32 %v12890_v0, %v12607_v51  ;;  %v13695_v14 = vpop.f32.mrb[133].mxu1 }
0x2ad1   :  { %v12610_v28 = vpop.f32.mrb[134].mxu1 }
0x2ad2   :  { %v13696_v39 = vpop.f32.mrb[135].mxu1  ;;  %12614 = vst.msk [vmem:[#allocation2] sm:$0x3] %vm12613_vm12, %v12608_v56 }
0x2ad3   :  { %14204 = shalt.err (!%p14201_p4)
}
0x2ad4   :  { %s14205_s21 = scalar_lea.hbm %s19161_s22, 32 }
0x2ad5   :  { %p14206_p5 = scmp.ne.s32.totalorder %s19161_s22, %s14205_s21  ;;  %p14209_p6 = scmp.lt.u32.totalorder %s14205_s21, %s19161_s22 }
0x2ad7   :  { %p14211_p7 = pnand %p14209_p6, %p14206_p5 }
0x2ad9   :  { %14214 = shalt.err (!%p14211_p7)
}
0x2ada   :  { %12624 = dma.vmem_to_hbm [thread:$0]  %s12622_s7, 32, %s19161_s22, [#allocation3]  }
0x2adb   :  { %14215 = dma.done.wait [#allocation3], 32  }
0x2adc   :  { %14216 = vsyncadd [#allocation3], 4294967264 }
0x2add   :  { %12628 = vsyncpa [#allocation3], 1 }

</bundles_post_ra>
